<compile_context>
chip_gen: v7x
topology: tpu7x:2x2x1
jax: 0.10.0
libtpu: 0.0.40
codegen_flags: <defaults>
</compile_context>

<pallas_src>
import functools

import jax
import jax.numpy as jnp
from jax.experimental import pallas as pl
from jax.experimental.pallas import tpu as pltpu


# ------------------------------ helpers ------------------------------------

def _pick_tile(total, target, multiple):
    """Largest divisor of `total` that is a multiple of `multiple` and <= target.

    Falls back to `total` itself (a full-extent block is always legal)."""
    cap = min(target, total)
    for t in range(cap, 0, -1):
        if total % t == 0 and t % multiple == 0:
            return t
    return total


def _im2col_3x3(x_nhwc):
    """(B,H,W,C) -> (B*H*W, 9*C) patches, tap-major then channel (pad=1)."""
    B, H, W, C = x_nhwc.shape
    xp = jnp.pad(x_nhwc, ((0, 0), (1, 1), (1, 1), (0, 0)))
    cols = [xp[:, kh:kh + H, kw:kw + W, :]
            for kh in range(3) for kw in range(3)]
    patches = jnp.concatenate(cols, axis=-1)          # (B,H,W,9C), tap-major
    return patches.reshape(B * H * W, 9 * C)


# ----------------------- conv 3x3 (+bias +ReLU) -----------------------------

def _conv_mm_relu_kernel(p_ref, w_ref, b_ref, o_ref):
    # p_ref: (TR, 9*Cin) bf16   w_ref: (9*Cin, Cout) bf16   b_ref: (1, Cout) f32
    acc = jnp.dot(p_ref[...], w_ref[...], preferred_element_type=jnp.float32)
    acc = acc + b_ref[...]                     # f32 epilogue
    o_ref[...] = jnp.maximum(acc, 0.0).astype(o_ref.dtype)


def conv3x3_relu(x_nhwc, w, b, *, row_target=512):
    """3x3 conv, padding=1, stride=1, fused bias + ReLU.

    x_nhwc: (B,H,W,Cin), w: (9*Cin, Cout) tap-major rows, b: (Cout,)
    -> (B,H,W,Cout) bf16
    """
    B, H, W, Cin = x_nhwc.shape
    K, Cout = w.shape
    assert K == 9 * Cin
    R = B * H * W

    x_nhwc = x_nhwc.astype(jnp.bfloat16)
    patches = _im2col_3x3(x_nhwc)              # (R, 9*Cin) bf16 (XLA glue)

    tr = _pick_tile(R, row_target, 16)         # row tile (16-multiple for bf16)
    out = pl.pallas_call(
        _conv_mm_relu_kernel,
        out_shape=jax.ShapeDtypeStruct((R, Cout), jnp.bfloat16),
        grid=(R // tr,),
        in_specs=[
            pl.BlockSpec((tr, K), lambda i: (i, 0)),
            pl.BlockSpec((K, Cout), lambda i: (0, 0)),   # grid-invariant weight
            pl.BlockSpec((1, Cout), lambda i: (0, 0)),   # grid-invariant bias
        ],
        out_specs=pl.BlockSpec((tr, Cout), lambda i: (i, 0)),
        compiler_params=pltpu.CompilerParams(
            dimension_semantics=("parallel",)),
    )(patches, w.astype(jnp.bfloat16), b.reshape(1, Cout).astype(jnp.float32))
    return out.reshape(B, H, W, Cout)


# ------------------------------- max pool 2x2 -------------------------------

def _maxpool2_kernel(x_ref, o_ref):
    # x_ref: (TR, Wo, 2C)  -- W-neighbor pairs packed into the lane dim
    # o_ref: (TR//2, Wo, C)
    tro, wo, c = o_ref.shape
    x = x_ref[...].astype(jnp.float32)
    mw = jnp.maximum(x[:, :, :c], x[:, :, c:])     # pool over W (lane slices)
    mr = mw.reshape(tro, 2, wo, c)                 # leading-dim-only reshape
    o_ref[...] = jnp.maximum(mr[:, 0], mr[:, 1]).astype(o_ref.dtype)


def maxpool2(x_nhwc):
    B, H, W, C = x_nhwc.shape
    assert H % 2 == 0 and W % 2 == 0
    Ho, Wo = H // 2, W // 2
    R = B * H                                       # batch folded into rows
    xr = x_nhwc.reshape(R, Wo, 2 * C)               # pure reshape (XLA glue)
    tr = _pick_tile(R, 256, 2)                      # even row tile (H pairs stay intact)
    out = pl.pallas_call(
        _maxpool2_kernel,
        out_shape=jax.ShapeDtypeStruct((R // 2, Wo, C), x_nhwc.dtype),
        grid=(R // tr,),
        in_specs=[pl.BlockSpec((tr, Wo, 2 * C), lambda i: (i, 0, 0))],
        out_specs=pl.BlockSpec((tr // 2, Wo, C), lambda i: (i, 0, 0)),
        compiler_params=pltpu.CompilerParams(
            dimension_semantics=("parallel",)),
    )(xr)
    return out.reshape(B, Ho, Wo, C)


# --------------------------------- linear ----------------------------------

def _linear_kernel(x_ref, w_ref, b_ref, o_ref, *, relu):
    y = jnp.dot(x_ref[...], w_ref[...], preferred_element_type=jnp.float32)
    y = y + b_ref[...]                       # f32 epilogue
    if relu:
        y = jnp.maximum(y, 0.0)
    o_ref[...] = y.astype(o_ref.dtype)


def linear(x, w, b, *, relu, out_dtype=jnp.float32):
    B, D = x.shape
    N = w.shape[1]
    return pl.pallas_call(
        functools.partial(_linear_kernel, relu=relu),
        out_shape=jax.ShapeDtypeStruct((B, N), out_dtype),
        grid=(1,),
        in_specs=[
            pl.BlockSpec((B, D), lambda i: (0, 0)),
            pl.BlockSpec((D, N), lambda i: (0, 0)),
            pl.BlockSpec((1, N), lambda i: (0, 0)),
        ],
        out_specs=pl.BlockSpec((B, N), lambda i: (0, 0)),
        compiler_params=pltpu.CompilerParams(
            dimension_semantics=("parallel",),
            vmem_limit_bytes=32 * 1024 * 1024),   # headroom for the fc1 weight
    )(x.astype(jnp.bfloat16), w.astype(jnp.bfloat16),
      b.reshape(1, N).astype(jnp.float32))


# ------------------------------ params & model ------------------------------

def init_params(key, num_classes=10):
    # Deterministic synthetic init (PyTorch-style uniform(-1/sqrt(fan_in), +)).
    def uconv(k, cin, cout, pad_cin_to=None):
        bound = 1.0 / (cin * 9) ** 0.5
        kw, kb = jax.random.split(k)
        w = jax.random.uniform(kw, (9, cin, cout), jnp.float32, -bound, bound)
        b = jax.random.uniform(kb, (cout,), jnp.float32, -bound, bound)
        if pad_cin_to is not None and pad_cin_to > cin:
            # zero-pad input channels (input is zero-padded identically -> exact)
            w = jnp.pad(w, ((0, 0), (0, pad_cin_to - cin), (0, 0)))
            cin = pad_cin_to
        # tap-major-then-channel rows, matching _im2col_3x3's concat order
        return w.reshape(9 * cin, cout).astype(jnp.bfloat16), b

    def ulin(k, din, dout):
        bound = 1.0 / din ** 0.5
        kw, kb = jax.random.split(k)
        w = jax.random.uniform(kw, (din, dout), jnp.float32, -bound, bound)
        b = jax.random.uniform(kb, (dout,), jnp.float32, -bound, bound)
        return w, b

    ks = jax.random.split(key, 6)
    w1, b1 = uconv(ks[0], 1, 32, pad_cin_to=8)     # Cin 1 -> 8 (avoid K=9 matmul)
    w2, b2 = uconv(ks[1], 32, 32)
    w3, b3 = uconv(ks[2], 32, 64)
    w4, b4 = uconv(ks[3], 64, 64)

    wf1, bf1 = ulin(ks[4], 64 * 7 * 7, 512)
    # Permute fc1 rows once from torch CHW-flatten order to NHWC-flatten order
    # so the forward pass flattens NHWC directly (no runtime transpose).
    wf1 = wf1.reshape(64, 7, 7, 512).transpose(1, 2, 0, 3).reshape(64 * 49, 512)
    wf2, bf2 = ulin(ks[5], 512, num_classes)

    return dict(w1=w1, b1=b1, w2=w2, b2=b2, w3=w3, b3=b3, w4=w4, b4=b4,
                wf1=wf1.astype(jnp.bfloat16), bf1=bf1,
                wf2=wf2.astype(jnp.bfloat16), bf2=bf2)


def conv4_forward(params, x_nchw):
    """Conv4.forward: NCHW float32 input -> (B, num_classes) f32 logits."""
    B = x_nchw.shape[0]
    x = jnp.transpose(x_nchw, (0, 2, 3, 1))                         # NCHW -> NHWC (once)
    x = jnp.pad(x, ((0, 0), (0, 0), (0, 0), (0, 8 - x.shape[-1])))  # Cin 1 -> 8 zeros
    x = conv3x3_relu(x, params["w1"], params["b1"])                 # relu(conv1)
    x = conv3x3_relu(x, params["w2"], params["b2"])                 # relu(conv2)
    x = maxpool2(x)                                                 # max_pool2d(.,2)
    x = conv3x3_relu(x, params["w3"], params["b3"])                 # relu(conv3)
    x = conv3x3_relu(x, params["w4"], params["b4"])                 # relu(conv4)
    x = maxpool2(x)                                                 # max_pool2d(.,2)
    x = x.reshape(B, -1)                                            # NHWC flatten (wf1 pre-permuted)
    x = linear(x, params["wf1"], params["bf1"], relu=True,
               out_dtype=jnp.bfloat16)                              # relu(fc1)
    x = linear(x, params["wf2"], params["bf2"], relu=False,
               out_dtype=jnp.float32)                               # fc2
    return x


if __name__ == "__main__":
    key = jax.random.PRNGKey(0)
    kp, kx = jax.random.split(key)
    num_classes = 10
    params = init_params(kp, num_classes=num_classes)
    # MNIST-shaped NCHW input (batch=2, 1 channel, 28x28) as the module implies.
    x = jax.random.normal(kx, (2, 1, 28, 28), jnp.float32)
    out = jax.jit(conv4_forward)(params, x)
    jax.block_until_ready(out)
    assert out.shape == (2, num_classes) and out.dtype == jnp.float32
    print("KERNEL_OK")
</pallas_src>

<mosaic_0001>
module attributes {stable_mosaic.version = 11 : i64} {
  func.func @_conv_mm_relu_kernel(%arg0: i32, %arg1: memref<224x72xbf16, #tpu.memory_space<vmem>>, %arg2: memref<72x32xbf16, #tpu.memory_space<vmem>>, %arg3: memref<1x32xf32, #tpu.memory_space<vmem>>, %arg4: memref<224x32xbf16, #tpu.memory_space<vmem>>) attributes {dimension_semantics = [#tpu.dimension_semantics<parallel>], iteration_bounds = array<i64: 7>, scalar_prefetch = 0 : i64, scratch_operands = 0 : i64, tpu.core_type = #tpu.core_type<tc>, window_params = [{transform_indices = @transform_0, window_bounds = array<i64: 224, 72>}, {pipeline_mode = #tpu.pipeline_mode<synchronous>, transform_indices = @transform_1, window_bounds = array<i64: 72, 32>}, {pipeline_mode = #tpu.pipeline_mode<synchronous>, transform_indices = @transform_2, window_bounds = array<i64: 1, 32>}, {transform_indices = @transform_3, window_bounds = array<i64: 224, 32>}]} {
    %c0 = arith.constant 0 : index
    %c0_0 = arith.constant 0 : index
    %0 = vector.load %arg1[%c0, %c0_0] : memref<224x72xbf16, #tpu.memory_space<vmem>>, vector<224x72xbf16>
    %c0_1 = arith.constant 0 : index
    %c0_2 = arith.constant 0 : index
    %1 = vector.load %arg2[%c0_1, %c0_2] : memref<72x32xbf16, #tpu.memory_space<vmem>>, vector<72x32xbf16>
    %cst = arith.constant dense<0.000000e+00> : vector<224x32xf32>
    %2 = tpu.matmul %0, %1, %cst {dimension_numbers = #tpu.dot_dimension_numbers<[1], [0], [0], [1], [0, 0, 1, 1], [], []>} : vector<224x72xbf16>, vector<72x32xbf16>, vector<224x32xf32> -> vector<224x32xf32>
    %c0_3 = arith.constant 0 : index
    %c0_4 = arith.constant 0 : index
    %3 = vector.load %arg3[%c0_3, %c0_4] : memref<1x32xf32, #tpu.memory_space<vmem>>, vector<1x32xf32>
    %4 = vector.broadcast %3 : vector<1x32xf32> to vector<224x32xf32>
    %5 = arith.addf %2, %4 : vector<224x32xf32>
    %cst_5 = arith.constant 0.000000e+00 : f32
    %6 = vector.broadcast %cst_5 : f32 to vector<224x32xf32>
    %7 = arith.maximumf %5, %6 : vector<224x32xf32>
    %8 = arith.truncf %7 : vector<224x32xf32> to vector<224x32xbf16>
    %c0_6 = arith.constant 0 : index
    %c0_7 = arith.constant 0 : index
    %9 = vector.load %arg4[%c0_6, %c0_7] : memref<224x32xbf16, #tpu.memory_space<vmem>>, vector<224x32xbf16>
    tpu.vector_store %arg4[%c0_6, %c0_7], %8 {strides = array<i32>} : memref<224x32xbf16, #tpu.memory_space<vmem>>, vector<224x32xbf16>,
    return
  }
  func.func @transform_0(%arg0: i32) -> (i32, i32) {
    %c0_i32 = arith.constant 0 : i32
    %c0_i32_0 = arith.constant 0 : i32
    return %arg0, %c0_i32 : i32, i32
  }
  func.func @transform_1(%arg0: i32) -> (i32, i32) {
    %c0_i32 = arith.constant 0 : i32
    %c0_i32_0 = arith.constant 0 : i32
    %c0_i32_1 = arith.constant 0 : i32
    return %c0_i32, %c0_i32_0 : i32, i32
  }
  func.func @transform_2(%arg0: i32) -> (i32, i32) {
    %c0_i32 = arith.constant 0 : i32
    %c0_i32_0 = arith.constant 0 : i32
    %c0_i32_1 = arith.constant 0 : i32
    return %c0_i32, %c0_i32_0 : i32, i32
  }
  func.func @transform_3(%arg0: i32) -> (i32, i32) {
    %c0_i32 = arith.constant 0 : i32
    %c0_i32_0 = arith.constant 0 : i32
    return %arg0, %c0_i32 : i32, i32
  }
}

module attributes {stable_mosaic.version = 11 : i64} {
  func.func @_conv_mm_relu_kernel(%arg0: i32, %arg1: memref<224x288xbf16, #tpu.memory_space<vmem>>, %arg2: memref<288x32xbf16, #tpu.memory_space<vmem>>, %arg3: memref<1x32xf32, #tpu.memory_space<vmem>>, %arg4: memref<224x32xbf16, #tpu.memory_space<vmem>>) attributes {dimension_semantics = [#tpu.dimension_semantics<parallel>], iteration_bounds = array<i64: 7>, scalar_prefetch = 0 : i64, scratch_operands = 0 : i64, tpu.core_type = #tpu.core_type<tc>, window_params = [{transform_indices = @transform_0, window_bounds = array<i64: 224, 288>}, {pipeline_mode = #tpu.pipeline_mode<synchronous>, transform_indices = @transform_1, window_bounds = array<i64: 288, 32>}, {pipeline_mode = #tpu.pipeline_mode<synchronous>, transform_indices = @transform_2, window_bounds = array<i64: 1, 32>}, {transform_indices = @transform_3, window_bounds = array<i64: 224, 32>}]} {
    %c0 = arith.constant 0 : index
    %c0_0 = arith.constant 0 : index
    %0 = vector.load %arg1[%c0, %c0_0] : memref<224x288xbf16, #tpu.memory_space<vmem>>, vector<224x288xbf16>
    %c0_1 = arith.constant 0 : index
    %c0_2 = arith.constant 0 : index
    %1 = vector.load %arg2[%c0_1, %c0_2] : memref<288x32xbf16, #tpu.memory_space<vmem>>, vector<288x32xbf16>
    %cst = arith.constant dense<0.000000e+00> : vector<224x32xf32>
    %2 = tpu.matmul %0, %1, %cst {dimension_numbers = #tpu.dot_dimension_numbers<[1], [0], [0], [1], [0, 0, 1, 1], [], []>} : vector<224x288xbf16>, vector<288x32xbf16>, vector<224x32xf32> -> vector<224x32xf32>
    %c0_3 = arith.constant 0 : index
    %c0_4 = arith.constant 0 : index
    %3 = vector.load %arg3[%c0_3, %c0_4] : memref<1x32xf32, #tpu.memory_space<vmem>>, vector<1x32xf32>
    %4 = vector.broadcast %3 : vector<1x32xf32> to vector<224x32xf32>
    %5 = arith.addf %2, %4 : vector<224x32xf32>
    %cst_5 = arith.constant 0.000000e+00 : f32
    %6 = vector.broadcast %cst_5 : f32 to vector<224x32xf32>
    %7 = arith.maximumf %5, %6 : vector<224x32xf32>
    %8 = arith.truncf %7 : vector<224x32xf32> to vector<224x32xbf16>
    %c0_6 = arith.constant 0 : index
    %c0_7 = arith.constant 0 : index
    %9 = vector.load %arg4[%c0_6, %c0_7] : memref<224x32xbf16, #tpu.memory_space<vmem>>, vector<224x32xbf16>
    tpu.vector_store %arg4[%c0_6, %c0_7], %8 {strides = array<i32>} : memref<224x32xbf16, #tpu.memory_space<vmem>>, vector<224x32xbf16>,
    return
  }
  func.func @transform_0(%arg0: i32) -> (i32, i32) {
    %c0_i32 = arith.constant 0 : i32
    %c0_i32_0 = arith.constant 0 : i32
    return %arg0, %c0_i32 : i32, i32
  }
  func.func @transform_1(%arg0: i32) -> (i32, i32) {
    %c0_i32 = arith.constant 0 : i32
    %c0_i32_0 = arith.constant 0 : i32
    %c0_i32_1 = arith.constant 0 : i32
    return %c0_i32, %c0_i32_0 : i32, i32
  }
  func.func @transform_2(%arg0: i32) -> (i32, i32) {
    %c0_i32 = arith.constant 0 : i32
    %c0_i32_0 = arith.constant 0 : i32
    %c0_i32_1 = arith.constant 0 : i32
    return %c0_i32, %c0_i32_0 : i32, i32
  }
  func.func @transform_3(%arg0: i32) -> (i32, i32) {
    %c0_i32 = arith.constant 0 : i32
    %c0_i32_0 = arith.constant 0 : i32
    return %arg0, %c0_i32 : i32, i32
  }
}

module attributes {stable_mosaic.version = 11 : i64} {
  func.func @_maxpool2_kernel(%arg0: i32, %arg1: memref<56x14x64xbf16, #tpu.memory_space<vmem>>, %arg2: memref<28x14x32xbf16, #tpu.memory_space<vmem>>) attributes {dimension_semantics = [#tpu.dimension_semantics<parallel>], iteration_bounds = array<i64: 1>, scalar_prefetch = 0 : i64, scratch_operands = 0 : i64, tpu.core_type = #tpu.core_type<tc>, window_params = [{transform_indices = @transform_0, window_bounds = array<i64: 56, 14, 64>}, {transform_indices = @transform_1, window_bounds = array<i64: 28, 14, 32>}]} {
    %c0 = arith.constant 0 : index
    %c0_0 = arith.constant 0 : index
    %c0_1 = arith.constant 0 : index
    %0 = vector.load %arg1[%c0, %c0_0, %c0_1] : memref<56x14x64xbf16, #tpu.memory_space<vmem>>, vector<56x14x64xbf16>
    %1 = arith.extf %0 : vector<56x14x64xbf16> to vector<56x14x64xf32>
    %2 = vector.extract_strided_slice %1 {offsets = [0, 0, 0], sizes = [56, 14, 32], strides = [1, 1, 1]} : vector<56x14x64xf32> to vector<56x14x32xf32>
    %3 = vector.extract_strided_slice %1 {offsets = [0, 0, 32], sizes = [56, 14, 32], strides = [1, 1, 1]} : vector<56x14x64xf32> to vector<56x14x32xf32>
    %4 = arith.maximumf %2, %3 : vector<56x14x32xf32>
    %5 = vector.shape_cast %4 : vector<56x14x32xf32> to vector<28x2x14x32xf32>
    %6 = vector.extract_strided_slice %5 {offsets = [0, 0, 0, 0], sizes = [28, 1, 14, 32], strides = [1, 1, 1, 1]} : vector<28x2x14x32xf32> to vector<28x1x14x32xf32>
    %7 = vector.shape_cast %6 : vector<28x1x14x32xf32> to vector<28x14x32xf32>
    %8 = vector.extract_strided_slice %5 {offsets = [0, 1, 0, 0], sizes = [28, 1, 14, 32], strides = [1, 1, 1, 1]} : vector<28x2x14x32xf32> to vector<28x1x14x32xf32>
    %9 = vector.shape_cast %8 : vector<28x1x14x32xf32> to vector<28x14x32xf32>
    %10 = arith.maximumf %7, %9 : vector<28x14x32xf32>
    %11 = arith.truncf %10 : vector<28x14x32xf32> to vector<28x14x32xbf16>
    %c0_2 = arith.constant 0 : index
    %c0_3 = arith.constant 0 : index
    %c0_4 = arith.constant 0 : index
    %12 = vector.load %arg2[%c0_2, %c0_3, %c0_4] : memref<28x14x32xbf16, #tpu.memory_space<vmem>>, vector<28x14x32xbf16>
    tpu.vector_store %arg2[%c0_2, %c0_3, %c0_4], %11 {strides = array<i32>} : memref<28x14x32xbf16, #tpu.memory_space<vmem>>, vector<28x14x32xbf16>,
    return
  }
  func.func @transform_0(%arg0: i32) -> (i32, i32, i32) {
    %c0_i32 = arith.constant 0 : i32
    %c0_i32_0 = arith.constant 0 : i32
    %c0_i32_1 = arith.constant 0 : i32
    return %arg0, %c0_i32, %c0_i32_0 : i32, i32, i32
  }
  func.func @transform_1(%arg0: i32) -> (i32, i32, i32) {
    %c0_i32 = arith.constant 0 : i32
    %c0_i32_0 = arith.constant 0 : i32
    %c0_i32_1 = arith.constant 0 : i32
    return %arg0, %c0_i32, %c0_i32_0 : i32, i32, i32
  }
}

module attributes {stable_mosaic.version = 11 : i64} {
  func.func @_conv_mm_relu_kernel(%arg0: i32, %arg1: memref<392x288xbf16, #tpu.memory_space<vmem>>, %arg2: memref<288x64xbf16, #tpu.memory_space<vmem>>, %arg3: memref<1x64xf32, #tpu.memory_space<vmem>>, %arg4: memref<392x64xbf16, #tpu.memory_space<vmem>>) attributes {dimension_semantics = [#tpu.dimension_semantics<parallel>], iteration_bounds = array<i64: 1>, scalar_prefetch = 0 : i64, scratch_operands = 0 : i64, tpu.core_type = #tpu.core_type<tc>, window_params = [{transform_indices = @transform_0, window_bounds = array<i64: 392, 288>}, {pipeline_mode = #tpu.pipeline_mode<synchronous>, transform_indices = @transform_1, window_bounds = array<i64: 288, 64>}, {pipeline_mode = #tpu.pipeline_mode<synchronous>, transform_indices = @transform_2, window_bounds = array<i64: 1, 64>}, {transform_indices = @transform_3, window_bounds = array<i64: 392, 64>}]} {
    %c0 = arith.constant 0 : index
    %c0_0 = arith.constant 0 : index
    %0 = vector.load %arg1[%c0, %c0_0] : memref<392x288xbf16, #tpu.memory_space<vmem>>, vector<392x288xbf16>
    %c0_1 = arith.constant 0 : index
    %c0_2 = arith.constant 0 : index
    %1 = vector.load %arg2[%c0_1, %c0_2] : memref<288x64xbf16, #tpu.memory_space<vmem>>, vector<288x64xbf16>
    %cst = arith.constant dense<0.000000e+00> : vector<392x64xf32>
    %2 = tpu.matmul %0, %1, %cst {dimension_numbers = #tpu.dot_dimension_numbers<[1], [0], [0], [1], [0, 0, 1, 1], [], []>} : vector<392x288xbf16>, vector<288x64xbf16>, vector<392x64xf32> -> vector<392x64xf32>
    %c0_3 = arith.constant 0 : index
    %c0_4 = arith.constant 0 : index
    %3 = vector.load %arg3[%c0_3, %c0_4] : memref<1x64xf32, #tpu.memory_space<vmem>>, vector<1x64xf32>
    %4 = vector.broadcast %3 : vector<1x64xf32> to vector<392x64xf32>
    %5 = arith.addf %2, %4 : vector<392x64xf32>
    %cst_5 = arith.constant 0.000000e+00 : f32
    %6 = vector.broadcast %cst_5 : f32 to vector<392x64xf32>
    %7 = arith.maximumf %5, %6 : vector<392x64xf32>
    %8 = arith.truncf %7 : vector<392x64xf32> to vector<392x64xbf16>
    %c0_6 = arith.constant 0 : index
    %c0_7 = arith.constant 0 : index
    %9 = vector.load %arg4[%c0_6, %c0_7] : memref<392x64xbf16, #tpu.memory_space<vmem>>, vector<392x64xbf16>
    tpu.vector_store %arg4[%c0_6, %c0_7], %8 {strides = array<i32>} : memref<392x64xbf16, #tpu.memory_space<vmem>>, vector<392x64xbf16>,
    return
  }
  func.func @transform_0(%arg0: i32) -> (i32, i32) {
    %c0_i32 = arith.constant 0 : i32
    %c0_i32_0 = arith.constant 0 : i32
    return %arg0, %c0_i32 : i32, i32
  }
  func.func @transform_1(%arg0: i32) -> (i32, i32) {
    %c0_i32 = arith.constant 0 : i32
    %c0_i32_0 = arith.constant 0 : i32
    %c0_i32_1 = arith.constant 0 : i32
    return %c0_i32, %c0_i32_0 : i32, i32
  }
  func.func @transform_2(%arg0: i32) -> (i32, i32) {
    %c0_i32 = arith.constant 0 : i32
    %c0_i32_0 = arith.constant 0 : i32
    %c0_i32_1 = arith.constant 0 : i32
    return %c0_i32, %c0_i32_0 : i32, i32
  }
  func.func @transform_3(%arg0: i32) -> (i32, i32) {
    %c0_i32 = arith.constant 0 : i32
    %c0_i32_0 = arith.constant 0 : i32
    return %arg0, %c0_i32 : i32, i32
  }
}

module attributes {stable_mosaic.version = 11 : i64} {
  func.func @_conv_mm_relu_kernel(%arg0: i32, %arg1: memref<392x576xbf16, #tpu.memory_space<vmem>>, %arg2: memref<576x64xbf16, #tpu.memory_space<vmem>>, %arg3: memref<1x64xf32, #tpu.memory_space<vmem>>, %arg4: memref<392x64xbf16, #tpu.memory_space<vmem>>) attributes {dimension_semantics = [#tpu.dimension_semantics<parallel>], iteration_bounds = array<i64: 1>, scalar_prefetch = 0 : i64, scratch_operands = 0 : i64, tpu.core_type = #tpu.core_type<tc>, window_params = [{transform_indices = @transform_0, window_bounds = array<i64: 392, 576>}, {pipeline_mode = #tpu.pipeline_mode<synchronous>, transform_indices = @transform_1, window_bounds = array<i64: 576, 64>}, {pipeline_mode = #tpu.pipeline_mode<synchronous>, transform_indices = @transform_2, window_bounds = array<i64: 1, 64>}, {transform_indices = @transform_3, window_bounds = array<i64: 392, 64>}]} {
    %c0 = arith.constant 0 : index
    %c0_0 = arith.constant 0 : index
    %0 = vector.load %arg1[%c0, %c0_0] : memref<392x576xbf16, #tpu.memory_space<vmem>>, vector<392x576xbf16>
    %c0_1 = arith.constant 0 : index
    %c0_2 = arith.constant 0 : index
    %1 = vector.load %arg2[%c0_1, %c0_2] : memref<576x64xbf16, #tpu.memory_space<vmem>>, vector<576x64xbf16>
    %cst = arith.constant dense<0.000000e+00> : vector<392x64xf32>
    %2 = tpu.matmul %0, %1, %cst {dimension_numbers = #tpu.dot_dimension_numbers<[1], [0], [0], [1], [0, 0, 1, 1], [], []>} : vector<392x576xbf16>, vector<576x64xbf16>, vector<392x64xf32> -> vector<392x64xf32>
    %c0_3 = arith.constant 0 : index
    %c0_4 = arith.constant 0 : index
    %3 = vector.load %arg3[%c0_3, %c0_4] : memref<1x64xf32, #tpu.memory_space<vmem>>, vector<1x64xf32>
    %4 = vector.broadcast %3 : vector<1x64xf32> to vector<392x64xf32>
    %5 = arith.addf %2, %4 : vector<392x64xf32>
    %cst_5 = arith.constant 0.000000e+00 : f32
    %6 = vector.broadcast %cst_5 : f32 to vector<392x64xf32>
    %7 = arith.maximumf %5, %6 : vector<392x64xf32>
    %8 = arith.truncf %7 : vector<392x64xf32> to vector<392x64xbf16>
    %c0_6 = arith.constant 0 : index
    %c0_7 = arith.constant 0 : index
    %9 = vector.load %arg4[%c0_6, %c0_7] : memref<392x64xbf16, #tpu.memory_space<vmem>>, vector<392x64xbf16>
    tpu.vector_store %arg4[%c0_6, %c0_7], %8 {strides = array<i32>} : memref<392x64xbf16, #tpu.memory_space<vmem>>, vector<392x64xbf16>,
    return
  }
  func.func @transform_0(%arg0: i32) -> (i32, i32) {
    %c0_i32 = arith.constant 0 : i32
    %c0_i32_0 = arith.constant 0 : i32
    return %arg0, %c0_i32 : i32, i32
  }
  func.func @transform_1(%arg0: i32) -> (i32, i32) {
    %c0_i32 = arith.constant 0 : i32
    %c0_i32_0 = arith.constant 0 : i32
    %c0_i32_1 = arith.constant 0 : i32
    return %c0_i32, %c0_i32_0 : i32, i32
  }
  func.func @transform_2(%arg0: i32) -> (i32, i32) {
    %c0_i32 = arith.constant 0 : i32
    %c0_i32_0 = arith.constant 0 : i32
    %c0_i32_1 = arith.constant 0 : i32
    return %c0_i32, %c0_i32_0 : i32, i32
  }
  func.func @transform_3(%arg0: i32) -> (i32, i32) {
    %c0_i32 = arith.constant 0 : i32
    %c0_i32_0 = arith.constant 0 : i32
    return %arg0, %c0_i32 : i32, i32
  }
}

module attributes {stable_mosaic.version = 11 : i64} {
  func.func @_maxpool2_kernel(%arg0: i32, %arg1: memref<28x7x128xbf16, #tpu.memory_space<vmem>>, %arg2: memref<14x7x64xbf16, #tpu.memory_space<vmem>>) attributes {dimension_semantics = [#tpu.dimension_semantics<parallel>], iteration_bounds = array<i64: 1>, scalar_prefetch = 0 : i64, scratch_operands = 0 : i64, tpu.core_type = #tpu.core_type<tc>, window_params = [{transform_indices = @transform_0, window_bounds = array<i64: 28, 7, 128>}, {transform_indices = @transform_1, window_bounds = array<i64: 14, 7, 64>}]} {
    %c0 = arith.constant 0 : index
    %c0_0 = arith.constant 0 : index
    %c0_1 = arith.constant 0 : index
    %0 = vector.load %arg1[%c0, %c0_0, %c0_1] : memref<28x7x128xbf16, #tpu.memory_space<vmem>>, vector<28x7x128xbf16>
    %1 = arith.extf %0 : vector<28x7x128xbf16> to vector<28x7x128xf32>
    %2 = vector.extract_strided_slice %1 {offsets = [0, 0, 0], sizes = [28, 7, 64], strides = [1, 1, 1]} : vector<28x7x128xf32> to vector<28x7x64xf32>
    %3 = vector.extract_strided_slice %1 {offsets = [0, 0, 64], sizes = [28, 7, 64], strides = [1, 1, 1]} : vector<28x7x128xf32> to vector<28x7x64xf32>
    %4 = arith.maximumf %2, %3 : vector<28x7x64xf32>
    %5 = vector.shape_cast %4 : vector<28x7x64xf32> to vector<14x2x7x64xf32>
    %6 = vector.extract_strided_slice %5 {offsets = [0, 0, 0, 0], sizes = [14, 1, 7, 64], strides = [1, 1, 1, 1]} : vector<14x2x7x64xf32> to vector<14x1x7x64xf32>
    %7 = vector.shape_cast %6 : vector<14x1x7x64xf32> to vector<14x7x64xf32>
    %8 = vector.extract_strided_slice %5 {offsets = [0, 1, 0, 0], sizes = [14, 1, 7, 64], strides = [1, 1, 1, 1]} : vector<14x2x7x64xf32> to vector<14x1x7x64xf32>
    %9 = vector.shape_cast %8 : vector<14x1x7x64xf32> to vector<14x7x64xf32>
    %10 = arith.maximumf %7, %9 : vector<14x7x64xf32>
    %11 = arith.truncf %10 : vector<14x7x64xf32> to vector<14x7x64xbf16>
    %c0_2 = arith.constant 0 : index
    %c0_3 = arith.constant 0 : index
    %c0_4 = arith.constant 0 : index
    %12 = vector.load %arg2[%c0_2, %c0_3, %c0_4] : memref<14x7x64xbf16, #tpu.memory_space<vmem>>, vector<14x7x64xbf16>
    tpu.vector_store %arg2[%c0_2, %c0_3, %c0_4], %11 {strides = array<i32>} : memref<14x7x64xbf16, #tpu.memory_space<vmem>>, vector<14x7x64xbf16>,
    return
  }
  func.func @transform_0(%arg0: i32) -> (i32, i32, i32) {
    %c0_i32 = arith.constant 0 : i32
    %c0_i32_0 = arith.constant 0 : i32
    %c0_i32_1 = arith.constant 0 : i32
    return %arg0, %c0_i32, %c0_i32_0 : i32, i32, i32
  }
  func.func @transform_1(%arg0: i32) -> (i32, i32, i32) {
    %c0_i32 = arith.constant 0 : i32
    %c0_i32_0 = arith.constant 0 : i32
    %c0_i32_1 = arith.constant 0 : i32
    return %arg0, %c0_i32, %c0_i32_0 : i32, i32, i32
  }
}

module attributes {stable_mosaic.version = 11 : i64} {
  func.func @_linear_kernel(%arg0: i32, %arg1: memref<2x3136xbf16, #tpu.memory_space<vmem>>, %arg2: memref<3136x512xbf16, #tpu.memory_space<vmem>>, %arg3: memref<1x512xf32, #tpu.memory_space<vmem>>, %arg4: memref<2x512xbf16, #tpu.memory_space<vmem>>) attributes {dimension_semantics = [#tpu.dimension_semantics<parallel>], iteration_bounds = array<i64: 1>, scalar_prefetch = 0 : i64, scratch_operands = 0 : i64, tpu.core_type = #tpu.core_type<tc>, window_params = [{pipeline_mode = #tpu.pipeline_mode<synchronous>, transform_indices = @transform_0, window_bounds = array<i64: 2, 3136>}, {pipeline_mode = #tpu.pipeline_mode<synchronous>, transform_indices = @transform_1, window_bounds = array<i64: 3136, 512>}, {pipeline_mode = #tpu.pipeline_mode<synchronous>, transform_indices = @transform_2, window_bounds = array<i64: 1, 512>}, {pipeline_mode = #tpu.pipeline_mode<synchronous>, transform_indices = @transform_3, window_bounds = array<i64: 2, 512>}]} {
    %c0 = arith.constant 0 : index
    %c0_0 = arith.constant 0 : index
    %0 = vector.load %arg1[%c0, %c0_0] : memref<2x3136xbf16, #tpu.memory_space<vmem>>, vector<2x3136xbf16>
    %c0_1 = arith.constant 0 : index
    %c0_2 = arith.constant 0 : index
    %1 = vector.load %arg2[%c0_1, %c0_2] : memref<3136x512xbf16, #tpu.memory_space<vmem>>, vector<3136x512xbf16>
    %cst = arith.constant dense<0.000000e+00> : vector<2x512xf32>
    %2 = tpu.matmul %0, %1, %cst {dimension_numbers = #tpu.dot_dimension_numbers<[1], [0], [0], [1], [0, 0, 1, 1], [], []>} : vector<2x3136xbf16>, vector<3136x512xbf16>, vector<2x512xf32> -> vector<2x512xf32>
    %c0_3 = arith.constant 0 : index
    %c0_4 = arith.constant 0 : index
    %3 = vector.load %arg3[%c0_3, %c0_4] : memref<1x512xf32, #tpu.memory_space<vmem>>, vector<1x512xf32>
    %4 = vector.broadcast %3 : vector<1x512xf32> to vector<2x512xf32>
    %5 = arith.addf %2, %4 : vector<2x512xf32>
    %cst_5 = arith.constant 0.000000e+00 : f32
    %6 = vector.broadcast %cst_5 : f32 to vector<2x512xf32>
    %7 = arith.maximumf %5, %6 : vector<2x512xf32>
    %8 = arith.truncf %7 : vector<2x512xf32> to vector<2x512xbf16>
    %c0_6 = arith.constant 0 : index
    %c0_7 = arith.constant 0 : index
    %9 = vector.load %arg4[%c0_6, %c0_7] : memref<2x512xbf16, #tpu.memory_space<vmem>>, vector<2x512xbf16>
    tpu.vector_store %arg4[%c0_6, %c0_7], %8 {strides = array<i32>} : memref<2x512xbf16, #tpu.memory_space<vmem>>, vector<2x512xbf16>,
    return
  }
  func.func @transform_0(%arg0: i32) -> (i32, i32) {
    %c0_i32 = arith.constant 0 : i32
    %c0_i32_0 = arith.constant 0 : i32
    %c0_i32_1 = arith.constant 0 : i32
    return %c0_i32, %c0_i32_0 : i32, i32
  }
  func.func @transform_1(%arg0: i32) -> (i32, i32) {
    %c0_i32 = arith.constant 0 : i32
    %c0_i32_0 = arith.constant 0 : i32
    %c0_i32_1 = arith.constant 0 : i32
    return %c0_i32, %c0_i32_0 : i32, i32
  }
  func.func @transform_2(%arg0: i32) -> (i32, i32) {
    %c0_i32 = arith.constant 0 : i32
    %c0_i32_0 = arith.constant 0 : i32
    %c0_i32_1 = arith.constant 0 : i32
    return %c0_i32, %c0_i32_0 : i32, i32
  }
  func.func @transform_3(%arg0: i32) -> (i32, i32) {
    %c0_i32 = arith.constant 0 : i32
    %c0_i32_0 = arith.constant 0 : i32
    %c0_i32_1 = arith.constant 0 : i32
    return %c0_i32, %c0_i32_0 : i32, i32
  }
}

module attributes {stable_mosaic.version = 11 : i64} {
  func.func @_linear_kernel(%arg0: i32, %arg1: memref<2x512xbf16, #tpu.memory_space<vmem>>, %arg2: memref<512x10xbf16, #tpu.memory_space<vmem>>, %arg3: memref<1x10xf32, #tpu.memory_space<vmem>>, %arg4: memref<2x10xf32, #tpu.memory_space<vmem>>) attributes {dimension_semantics = [#tpu.dimension_semantics<parallel>], iteration_bounds = array<i64: 1>, scalar_prefetch = 0 : i64, scratch_operands = 0 : i64, tpu.core_type = #tpu.core_type<tc>, window_params = [{pipeline_mode = #tpu.pipeline_mode<synchronous>, transform_indices = @transform_0, window_bounds = array<i64: 2, 512>}, {pipeline_mode = #tpu.pipeline_mode<synchronous>, transform_indices = @transform_1, window_bounds = array<i64: 512, 10>}, {pipeline_mode = #tpu.pipeline_mode<synchronous>, transform_indices = @transform_2, window_bounds = array<i64: 1, 10>}, {pipeline_mode = #tpu.pipeline_mode<synchronous>, transform_indices = @transform_3, window_bounds = array<i64: 2, 10>}]} {
    %c0 = arith.constant 0 : index
    %c0_0 = arith.constant 0 : index
    %0 = vector.load %arg1[%c0, %c0_0] : memref<2x512xbf16, #tpu.memory_space<vmem>>, vector<2x512xbf16>
    %c0_1 = arith.constant 0 : index
    %c0_2 = arith.constant 0 : index
    %1 = vector.load %arg2[%c0_1, %c0_2] : memref<512x10xbf16, #tpu.memory_space<vmem>>, vector<512x10xbf16>
    %cst = arith.constant dense<0.000000e+00> : vector<2x10xf32>
    %2 = tpu.matmul %0, %1, %cst {dimension_numbers = #tpu.dot_dimension_numbers<[1], [0], [0], [1], [0, 0, 1, 1], [], []>} : vector<2x512xbf16>, vector<512x10xbf16>, vector<2x10xf32> -> vector<2x10xf32>
    %c0_3 = arith.constant 0 : index
    %c0_4 = arith.constant 0 : index
    %3 = vector.load %arg3[%c0_3, %c0_4] : memref<1x10xf32, #tpu.memory_space<vmem>>, vector<1x10xf32>
    %4 = vector.broadcast %3 : vector<1x10xf32> to vector<2x10xf32>
    %5 = arith.addf %2, %4 : vector<2x10xf32>
    %c0_5 = arith.constant 0 : index
    %c0_6 = arith.constant 0 : index
    %6 = vector.load %arg4[%c0_5, %c0_6] : memref<2x10xf32, #tpu.memory_space<vmem>>, vector<2x10xf32>
    tpu.vector_store %arg4[%c0_5, %c0_6], %5 {strides = array<i32>} : memref<2x10xf32, #tpu.memory_space<vmem>>, vector<2x10xf32>,
    return
  }
  func.func @transform_0(%arg0: i32) -> (i32, i32) {
    %c0_i32 = arith.constant 0 : i32
    %c0_i32_0 = arith.constant 0 : i32
    %c0_i32_1 = arith.constant 0 : i32
    return %c0_i32, %c0_i32_0 : i32, i32
  }
  func.func @transform_1(%arg0: i32) -> (i32, i32) {
    %c0_i32 = arith.constant 0 : i32
    %c0_i32_0 = arith.constant 0 : i32
    %c0_i32_1 = arith.constant 0 : i32
    return %c0_i32, %c0_i32_0 : i32, i32
  }
  func.func @transform_2(%arg0: i32) -> (i32, i32) {
    %c0_i32 = arith.constant 0 : i32
    %c0_i32_0 = arith.constant 0 : i32
    %c0_i32_1 = arith.constant 0 : i32
    return %c0_i32, %c0_i32_0 : i32, i32
  }
  func.func @transform_3(%arg0: i32) -> (i32, i32) {
    %c0_i32 = arith.constant 0 : i32
    %c0_i32_0 = arith.constant 0 : i32
    %c0_i32_1 = arith.constant 0 : i32
    return %c0_i32, %c0_i32_0 : i32, i32
  }
}

</mosaic_0001>

<bundles_post_ra>
// kernel: conv4_forward.8
= control target key start
LH: loop header
LB: loop body
LE: loop exit
PB: predicated region body
PF: predicated region fallthrough
CT: control target
= control target key end

     0   :  { %s956_s12 = smov 0   ;;  %s1116_s0 = inlined_call_operand.vmem [shape: bf16[1568,72], index: 0, kind: input, shape index: {}]   ;;  %s1117_s1 = inlined_call_operand.vmem [shape: bf16[72,32], index: 1, kind: input, shape index: {}]   ;;  %s1118_s2 = inlined_call_operand.vmem [shape: f32[1,32], index: 2, kind: input, shape index: {}]   ;;  %s1119_s3 = inlined_call_operand.vmem [shape: bf16[1568,32], index: 3, kind: output, shape index: {}]  }
   0x1 LB: > { %s733_s13 = sadd.s32 4294967295, %s934_s12   ;;  %p737_p0 = scmp.ge.s32.totalorder %s934_s12, 1  ;;  %s934_s12 = sphi %s956_s12, %s13_s12  }
   0x2   : > { %p138_p1 = scmp.lt.s32.totalorder %s934_s12, 8 }
   0x4   : > { %p139_p2 = pnand %p737_p0, %p138_p1 }
   0x5   : > { %v909_v0 = vld [vmem:[%s1117_s1] sm:$0xff] (!%p139_p2)   ;;  %v910_v1 = vld [vmem:[%s1117_s1 + $0x8] sm:$0xff] (!%p139_p2)   ;;  %s162_s18 = smul.u32 (!%p139_p2), 28, %s733_s13  ;;  %v911_v2 = vld [vmem:[%s1117_s1 + $0x10] sm:$0xff] (!%p139_p2)   ;;  %vm316_vm0 = vcmask (!%p139_p2), 588800   ;;  %vm359_vm1 = vcmask (!%p139_p2), 1043456  }
   0x6   : > { %142 = sbr.rel (%p139_p2) target bundleno = 272 (0x110), region = 32  ;;  %851 = vmatprep.subr.bf16.mxu0 (!%p139_p2), %v909_v0  ;;  %889 = vmatprep.subr.bf16.mxu1 (!%p139_p2), %v909_v0  ;;  %v912_v3 = vld [vmem:[%s1117_s1 + $0x18] sm:$0xff] (!%p139_p2)   ;;  %v913_v6 = vld [vmem:[%s1117_s1 + $0x20] ss:$0 sps:$4 sm:$0xff] (!%p139_p2)   ;;  %vm648_vm2 = vcmask (!%p139_p2), 257024  }
   0x7   : > { %852 = vmatpush3.bf16.msra.mxu0 (!%p139_p2), %v909_v0  ;;  %894 = vmatpush3.bf16.msra.mxu1 (!%p139_p2), %v909_v0  ;;  %p163_p3 = scmp.lt.s32.totalorder (!%p139_p2), %s162_s18, 195  ;;  %v361_v7 = vsel (!%p139_p2), %vm359_vm1, %v913_v6, 0  ;;  %v1020_v20 = vld [vmem:[%s1118_s2] ss:$0 sm:$0xff] (!%p139_p2) }
   0x8   : > { %853 = vmatprep.subr.bf16.mxu0 (!%p139_p2), %v910_v1  ;;  %890 = vmatprep.subr.bf16.mxu1 (!%p139_p2), %v910_v1 }
   0xb   : > { %854 = vmatpush3.bf16.msra.mxu0 (!%p139_p2), %v910_v1  ;;  %895 = vmatpush3.bf16.msra.mxu1 (!%p139_p2), %v910_v1 }
   0xc   : > { %855 = vmatprep.subr.bf16.mxu0 (!%p139_p2), %v911_v2  ;;  %891 = vmatprep.subr.bf16.mxu1 (!%p139_p2), %v911_v2 }
   0xd   : > { %s1121_s18 = smov (!%p163_p3, %s162_s18), 195 }
   0xe   : > { %s738_s21 = sshll.u32 %s1121_s18, 2 }
   0xf   : > { %s984_s26 = scalar_lea.vmem %s1116_s0, %s738_s21  ;;  %856 = vmatpush3.bf16.msra.mxu0 %v911_v2  ;;  %896 = vmatpush3.bf16.msra.mxu1 %v911_v2  ;;  %s1033_s6 = scalar_lea.vmem %s1119_s3, %s738_s21 }
  0x10   : > { %v914_v4 = vld [vmem:[%s984_s26] sm:$0xff]   ;;  %857 = vmatprep.subr.bf16.mxu0 %v912_v3  ;;  %892 = vmatprep.subr.bf16.mxu1 %v912_v3  ;;  %v915_v8 = vld [vmem:[%s984_s26 + $0x8] sm:$0xff]   ;;  %v918_v10 = vld [vmem:[%s984_s26 + $0x10] sm:$0xff]  }
  0x11   : > { %v916_v5 = vld [vmem:[%s984_s26 + $0x40] sm:$0xff]   ;;  %861 = vmatprep.mubr.msk.bf16.mxu0 %vm316_vm0, %v914_v4  ;;  %v917_v9 = vld [vmem:[%s984_s26 + $0x48] sm:$0xff]   ;;  %v920_v11 = vld [vmem:[%s984_s26 + $0x50] sm:$0xff]  }
  0x12   : > { %877 = vmatprep.mubr.msk.bf16.mxu1 %vm316_vm0, %v916_v5  ;;  %v919_v12 = vld [vmem:[%s984_s26 + $0x18] sm:$0xff]   ;;  %v922_v14 = vld [vmem:[%s984_s26 + $0x20] sm:$0xff]   ;;  %v923_v16 = vld [vmem:[%s984_s26 + $0x28] sm:$0xff]  }
  0x13   : > { %858 = vmatpush3.bf16.msra.mxu0 %v912_v3  ;;  %897 = vmatpush3.bf16.msra.mxu1 %v912_v3  ;;  %v921_v13 = vld [vmem:[%s984_s26 + $0x58] sm:$0xff]   ;;  %v924_v15 = vld [vmem:[%s984_s26 + $0x60] sm:$0xff]   ;;  %v925_v17 = vld [vmem:[%s984_s26 + $0x68] sm:$0xff]  }
  0x14   : > { %899 = vmatprep.subr.msk.bf16.mxu0 %vm359_vm1, %v913_v6  ;;  %900 = vmatprep.subr.msk.bf16.mxu1 %vm359_vm1, %v913_v6  ;;  %v926_v18 = vld [vmem:[%s984_s26 + $0x30] sm:$0xff]   ;;  %v927_v19 = vld [vmem:[%s984_s26 + $0x38] sm:$0xff]  }
  0x17   : > { %860 = vmatpush3.bf16.msra.mxu0 %v361_v7  ;;  %898 = vmatpush3.bf16.msra.mxu1 %v361_v7 }
  0x1a   : > { %862 = vmatmul.mubr.msk.bf16.vlgmr.msra.gmra.mrb[0].mxu0 %vm316_vm0, %v915_v8  ;;  %878 = vmatmul.mubr.msk.bf16.vlgmr.msra.gmra.mrb[0].mxu1 %vm316_vm0, %v917_v9 }
  0x1b   : > { %865 = vmatprep.mubr.msk.bf16.mxu0 %vm316_vm0, %v918_v10  ;;  %881 = vmatprep.mubr.msk.bf16.mxu1 %vm316_vm0, %v920_v11 }
  0x22   : > { %866 = vmatmul.mubr.msk.bf16.gmra.mrb[4].mxu0 %vm316_vm0, %v919_v12  ;;  %882 = vmatmul.mubr.msk.bf16.gmra.mrb[4].mxu1 %vm316_vm0, %v921_v13 }
  0x23   : > { %869 = vmatprep.mubr.msk.bf16.mxu0 %vm316_vm0, %v922_v14  ;;  %885 = vmatprep.mubr.msk.bf16.mxu1 %vm316_vm0, %v924_v15 }
  0x2a   : > { %870 = vmatmul.mubr.msk.bf16.gmra.mrb[8].mxu0 %vm316_vm0, %v923_v16  ;;  %886 = vmatmul.mubr.msk.bf16.gmra.mrb[8].mxu1 %vm316_vm0, %v925_v17 }
  0x2b   : > { %873 = vmatprep.mubr.msk.bf16.mxu0 %vm316_vm0, %v926_v18 }
  0x32   : > { %874 = vmatmul.mubr.msk.bf16.gmra.mrb[12].mxu0 %vm316_vm0, %v927_v19 }
  0xed   : > { %v863_v21 = vpop.f32.mrb[0].mxu0  ;;  %v879_v22 = vpop.f32.mrb[0].mxu1 }
  0xee   : > { %v406_v23 = vadd.f32 %v863_v21, %v1020_v20  ;;  %v397_v24 = vpop.f32.mrb[1].mxu0  ;;  %v470_v25 = vadd.f32 %v879_v22, %v1020_v20  ;;  %v461_v26 = vpop.f32.mrb[1].mxu1 }
  0xef   : > { %v398_v27 = vadd.f32 %v1020_v20, %v397_v24  ;;  %v864_v28 = vpop.f32.mrb[2].mxu0  ;;  %v462_v29 = vadd.f32 %v1020_v20, %v461_v26  ;;  %v880_v30 = vpop.f32.mrb[2].mxu1 }
  0xf0   : > { %v510_v31 = vmax.f32 %v406_v23, 0.0  ;;  %v409_v32 = vadd.f32 %v864_v28, %v1020_v20  ;;  %v400_v33 = vpop.f32.mrb[3].mxu0  ;;  %v526_v34 = vmax.f32 %v470_v25, 0.0  ;;  %v473_v35 = vadd.f32 %v880_v30, %v1020_v20  ;;  %v464_v36 = vpop.f32.mrb[3].mxu1 }
  0xf1   : > { %v508_v37 = vmax.f32 %v398_v27, 0.0  ;;  %v401_v38 = vadd.f32 %v1020_v20, %v400_v33  ;;  %v524_v39 = vmax.f32 %v462_v29, 0.0  ;;  %v465_v40 = vadd.f32 %v1020_v20, %v464_v36 }
  0xf2   : > { %v806_v41 = vpack.c.bf16 %v510_v31, %v510_v31  ;;  %v511_v42 = vmax.f32 %v409_v32, 0.0  ;;  %v822_v43 = vpack.c.bf16 %v526_v34, %v526_v34  ;;  %v527_v44 = vmax.f32 %v473_v35, 0.0 }
  0xf3   : > { %v804_v45 = vpack.c.bf16 %v508_v37, %v508_v37  ;;  %v509_v46 = vmax.f32 %v401_v38, 0.0  ;;  %v820_v47 = vpack.c.bf16 %v524_v39, %v524_v39  ;;  %v525_v48 = vmax.f32 %v465_v40, 0.0 }
  0xf4   : > { %651 = vst.msk [vmem:[%s1033_s6 + $0x8] sm:$0xf] %vm648_vm2, %v806_v41  ;;  %v807_v49 = vpack.c.bf16 %v511_v42, %v511_v42  ;;  %667 = vst.msk [vmem:[%s1033_s6 + $0x48] sm:$0xf] %vm648_vm2, %v822_v43  ;;  %v823_v50 = vpack.c.bf16 %v527_v44, %v527_v44 }
  0xf5   : > { %649 = vst.msk [vmem:[%s1033_s6] sm:$0xf] %vm648_vm2, %v804_v45  ;;  %v805_v51 = vpack.c.bf16 %v509_v46, %v509_v46  ;;  %665 = vst.msk [vmem:[%s1033_s6 + $0x40] sm:$0xf] %vm648_vm2, %v820_v47  ;;  %v867_v52 = vpop.f32.mrb[4].mxu0  ;;  %v821_v53 = vpack.c.bf16 %v525_v48, %v525_v48  ;;  %v883_v54 = vpop.f32.mrb[4].mxu1 }
  0xf6   : > { %652 = vst.msk [vmem:[%s1033_s6 + $0xc] sm:$0xf] %vm648_vm2, %v807_v49  ;;  %668 = vst.msk [vmem:[%s1033_s6 + $0x4c] sm:$0xf] %vm648_vm2, %v823_v50  ;;  %v422_v55 = vadd.f32 %v867_v52, %v1020_v20  ;;  %v413_v56 = vpop.f32.mrb[5].mxu0  ;;  %v486_v57 = vadd.f32 %v883_v54, %v1020_v20  ;;  %v477_v58 = vpop.f32.mrb[5].mxu1 }
  0xf7   : > { %650 = vst.msk [vmem:[%s1033_s6 + $0x4] sm:$0xf] %vm648_vm2, %v805_v51  ;;  %666 = vst.msk [vmem:[%s1033_s6 + $0x44] sm:$0xf] %vm648_vm2, %v821_v53  ;;  %v414_v59 = vadd.f32 %v1020_v20, %v413_v56  ;;  %v868_v60 = vpop.f32.mrb[6].mxu0  ;;  %v478_v61 = vadd.f32 %v1020_v20, %v477_v58  ;;  %v884_v62 = vpop.f32.mrb[6].mxu1 }
  0xf8   : > { %v514_v63 = vmax.f32 %v422_v55, 0.0  ;;  %v425_v0 = vadd.f32 %v868_v60, %v1020_v20  ;;  %v416_v1 = vpop.f32.mrb[7].mxu0  ;;  %v530_v2 = vmax.f32 %v486_v57, 0.0  ;;  %v489_v3 = vadd.f32 %v884_v62, %v1020_v20  ;;  %v480_v4 = vpop.f32.mrb[7].mxu1 }
  0xf9   : > { %v512_v5 = vmax.f32 %v414_v59, 0.0  ;;  %v417_v6 = vadd.f32 %v1020_v20, %v416_v1  ;;  %v528_v7 = vmax.f32 %v478_v61, 0.0  ;;  %v481_v8 = vadd.f32 %v1020_v20, %v480_v4 }
  0xfa   : > { %v810_v9 = vpack.c.bf16 %v514_v63, %v514_v63  ;;  %v515_v10 = vmax.f32 %v425_v0, 0.0  ;;  %v826_v11 = vpack.c.bf16 %v530_v2, %v530_v2  ;;  %v531_v12 = vmax.f32 %v489_v3, 0.0 }
  0xfb   : > { %v808_v13 = vpack.c.bf16 %v512_v5, %v512_v5  ;;  %v513_v14 = vmax.f32 %v417_v6, 0.0  ;;  %v824_v15 = vpack.c.bf16 %v528_v7, %v528_v7  ;;  %v529_v16 = vmax.f32 %v481_v8, 0.0 }
  0xfc   : > { %655 = vst.msk [vmem:[%s1033_s6 + $0x18] sm:$0xf] %vm648_vm2, %v810_v9  ;;  %v811_v17 = vpack.c.bf16 %v515_v10, %v515_v10  ;;  %671 = vst.msk [vmem:[%s1033_s6 + $0x58] sm:$0xf] %vm648_vm2, %v826_v11  ;;  %v827_v18 = vpack.c.bf16 %v531_v12, %v531_v12 }
  0xfd   : > { %653 = vst.msk [vmem:[%s1033_s6 + $0x10] sm:$0xf] %vm648_vm2, %v808_v13  ;;  %v809_v19 = vpack.c.bf16 %v513_v14, %v513_v14  ;;  %669 = vst.msk [vmem:[%s1033_s6 + $0x50] sm:$0xf] %vm648_vm2, %v824_v15  ;;  %v871_v21 = vpop.f32.mrb[8].mxu0  ;;  %v825_v22 = vpack.c.bf16 %v529_v16, %v529_v16  ;;  %v887_v23 = vpop.f32.mrb[8].mxu1 }
  0xfe   : > { %656 = vst.msk [vmem:[%s1033_s6 + $0x1c] sm:$0xf] %vm648_vm2, %v811_v17  ;;  %672 = vst.msk [vmem:[%s1033_s6 + $0x5c] sm:$0xf] %vm648_vm2, %v827_v18  ;;  %v438_v24 = vadd.f32 %v871_v21, %v1020_v20  ;;  %v429_v25 = vpop.f32.mrb[9].mxu0  ;;  %v502_v26 = vadd.f32 %v887_v23, %v1020_v20  ;;  %v493_v27 = vpop.f32.mrb[9].mxu1 }
  0xff   : > { %654 = vst.msk [vmem:[%s1033_s6 + $0x14] sm:$0xf] %vm648_vm2, %v809_v19  ;;  %670 = vst.msk [vmem:[%s1033_s6 + $0x54] sm:$0xf] %vm648_vm2, %v825_v22  ;;  %v430_v28 = vadd.f32 %v1020_v20, %v429_v25  ;;  %v872_v29 = vpop.f32.mrb[10].mxu0  ;;  %v494_v30 = vadd.f32 %v1020_v20, %v493_v27  ;;  %v888_v31 = vpop.f32.mrb[10].mxu1 }
 0x100   : > { %v518_v32 = vmax.f32 %v438_v24, 0.0  ;;  %v441_v33 = vadd.f32 %v872_v29, %v1020_v20  ;;  %v432_v34 = vpop.f32.mrb[11].mxu0  ;;  %v534_v35 = vmax.f32 %v502_v26, 0.0  ;;  %v505_v36 = vadd.f32 %v888_v31, %v1020_v20  ;;  %v496_v37 = vpop.f32.mrb[11].mxu1 }
 0x101   : > { %v516_v38 = vmax.f32 %v430_v28, 0.0  ;;  %v433_v39 = vadd.f32 %v1020_v20, %v432_v34  ;;  %v532_v40 = vmax.f32 %v494_v30, 0.0  ;;  %v497_v41 = vadd.f32 %v1020_v20, %v496_v37 }
 0x102   : > { %v814_v42 = vpack.c.bf16 %v518_v32, %v518_v32  ;;  %v519_v43 = vmax.f32 %v441_v33, 0.0  ;;  %v830_v44 = vpack.c.bf16 %v534_v35, %v534_v35  ;;  %v535_v45 = vmax.f32 %v505_v36, 0.0 }
 0x103   : > { %v812_v46 = vpack.c.bf16 %v516_v38, %v516_v38  ;;  %v517_v47 = vmax.f32 %v433_v39, 0.0  ;;  %v828_v48 = vpack.c.bf16 %v532_v40, %v532_v40  ;;  %v533_v49 = vmax.f32 %v497_v41, 0.0 }
 0x104   : > { %659 = vst.msk [vmem:[%s1033_s6 + $0x28] sm:$0xf] %vm648_vm2, %v814_v42  ;;  %v815_v50 = vpack.c.bf16 %v519_v43, %v519_v43  ;;  %675 = vst.msk [vmem:[%s1033_s6 + $0x68] sm:$0xf] %vm648_vm2, %v830_v44  ;;  %v831_v51 = vpack.c.bf16 %v535_v45, %v535_v45 }
 0x105   : > { %657 = vst.msk [vmem:[%s1033_s6 + $0x20] sm:$0xf] %vm648_vm2, %v812_v46  ;;  %v813_v52 = vpack.c.bf16 %v517_v47, %v517_v47  ;;  %673 = vst.msk [vmem:[%s1033_s6 + $0x60] sm:$0xf] %vm648_vm2, %v828_v48  ;;  %v875_v53 = vpop.f32.mrb[12].mxu0  ;;  %v829_v54 = vpack.c.bf16 %v533_v49, %v533_v49 }
 0x106   : > { %660 = vst.msk [vmem:[%s1033_s6 + $0x2c] sm:$0xf] %vm648_vm2, %v815_v50  ;;  %676 = vst.msk [vmem:[%s1033_s6 + $0x6c] sm:$0xf] %vm648_vm2, %v831_v51  ;;  %v454_v55 = vadd.f32 %v875_v53, %v1020_v20  ;;  %v445_v56 = vpop.f32.mrb[13].mxu0 }
 0x107   : > { %658 = vst.msk [vmem:[%s1033_s6 + $0x24] sm:$0xf] %vm648_vm2, %v813_v52  ;;  %674 = vst.msk [vmem:[%s1033_s6 + $0x64] sm:$0xf] %vm648_vm2, %v829_v54  ;;  %v446_v57 = vadd.f32 %v1020_v20, %v445_v56  ;;  %v876_v58 = vpop.f32.mrb[14].mxu0 }
 0x108   : > { %v522_v59 = vmax.f32 %v454_v55, 0.0  ;;  %v457_v60 = vadd.f32 %v876_v58, %v1020_v20  ;;  %v448_v61 = vpop.f32.mrb[15].mxu0 }
 0x109   : > { %v520_v62 = vmax.f32 %v446_v57, 0.0  ;;  %v449_v63 = vadd.f32 %v1020_v20, %v448_v61 }
 0x10a   : > { %v818_v0 = vpack.c.bf16 %v522_v59, %v522_v59  ;;  %v523_v1 = vmax.f32 %v457_v60, 0.0 }
 0x10b   : > { %v816_v2 = vpack.c.bf16 %v520_v62, %v520_v62  ;;  %v521_v3 = vmax.f32 %v449_v63, 0.0 }
 0x10c   : > { %663 = vst.msk [vmem:[%s1033_s6 + $0x38] sm:$0xf] %vm648_vm2, %v818_v0  ;;  %v819_v4 = vpack.c.bf16 %v523_v1, %v523_v1 }
 0x10d   : > { %661 = vst.msk [vmem:[%s1033_s6 + $0x30] sm:$0xf] %vm648_vm2, %v816_v2  ;;  %v817_v5 = vpack.c.bf16 %v521_v3, %v521_v3 }
 0x10e   : > { %664 = vst.msk [vmem:[%s1033_s6 + $0x3c] sm:$0xf] %vm648_vm2, %v819_v4 }
 0x10f   : > { %662 = vst.msk [vmem:[%s1033_s6 + $0x34] sm:$0xf] %vm648_vm2, %v817_v5 }
 0x110 PF: > { %s13_s12 = sadd.s32 1, %s934_s12  }
 0x111   : > { %p10_p4 = scmp.ge.s32.totalorder %s13_s12, 9  }
 0x113   :  { %12 = sbr.rel (!%p10_p4) target bundleno = 1 (0x1), region = 62 }

// kernel: conv4_forward.9
= control target key start
LH: loop header
LB: loop body
LE: loop exit
PB: predicated region body
PF: predicated region fallthrough
CT: control target
= control target key end

     0   :  { %s1568_s12 = smov 0   ;;  %s1822_s0 = inlined_call_operand.vmem [shape: bf16[1568,288], index: 0, kind: input, shape index: {}]   ;;  %s1823_s1 = inlined_call_operand.vmem [shape: bf16[288,32], index: 1, kind: input, shape index: {}]   ;;  %s1824_s2 = inlined_call_operand.vmem [shape: f32[1,32], index: 2, kind: input, shape index: {}]   ;;  %s1825_s3 = inlined_call_operand.vmem [shape: bf16[1568,32], index: 3, kind: output, shape index: {}]  }
   0x1 LB: > { %s1153_s13 = sadd.s32 4294967295, %s1546_s12   ;;  %p1157_p0 = scmp.ge.s32.totalorder %s1546_s12, 1  ;;  %s1546_s12 = sphi %s1568_s12, %s13_s12  }
   0x2   : > { %p139_p1 = scmp.lt.s32.totalorder %s1546_s12, 8 }
   0x4   : > { %p140_p2 = pnand %p1157_p0, %p139_p1 }
   0x5   : > { %v1466_v0 = vld [vmem:[%s1823_s1 + $0x40] sm:$0xff] (!%p140_p2)   ;;  %s164_s16 = smul.u32 (!%p140_p2), 28, %s1153_s13  ;;  %v1468_v2 = vld [vmem:[%s1823_s1 + $0x48] sm:$0xff] (!%p140_p2)   ;;  %v1470_v4 = vld [vmem:[%s1823_s1 + $0x50] sm:$0xff] (!%p140_p2)   ;;  %vm595_vm0 = vcmask (!%p140_p2), 261120   ;;  %vm1068_vm1 = vcmask (!%p140_p2), 257024  }
   0x6   : > { %143 = sbr.rel (%p140_p2) target bundleno = 344 (0x158), region = 32  ;;  %v1467_v1 = vld [vmem:[%s1823_s1] sm:$0xff] (!%p140_p2)   ;;  %1293 = vmatprep.subr.bf16.mxu0 (!%p140_p2), %v1466_v0  ;;  %1441 = vmatprep.subr.bf16.mxu1 (!%p140_p2), %v1466_v0  ;;  %v1469_v3 = vld [vmem:[%s1823_s1 + $0x8] sm:$0xff] (!%p140_p2)   ;;  %v1471_v5 = vld [vmem:[%s1823_s1 + $0x10] sm:$0xff] (!%p140_p2)  }
   0x7   : > { %p165_p3 = scmp.lt.s32.totalorder (!%p140_p2), %s164_s16, 195  ;;  %1294 = vmatpush3.bf16.msra.mxu0 (!%p140_p2), %v1467_v1  ;;  %1449 = vmatpush3.bf16.msra.mxu1 (!%p140_p2), %v1467_v1  ;;  %v1472_v6 = vld [vmem:[%s1823_s1 + $0x58] sm:$0xff] (!%p140_p2)   ;;  %v1474_v8 = vld [vmem:[%s1823_s1 + $0x60] sm:$0xff] (!%p140_p2)   ;;  %v1476_v10 = vld [vmem:[%s1823_s1 + $0x68] sm:$0xff] (!%p140_p2)  }
   0x8   : > { %1295 = vmatprep.subr.bf16.mxu0 (!%p140_p2), %v1468_v2  ;;  %1442 = vmatprep.subr.bf16.mxu1 (!%p140_p2), %v1468_v2  ;;  %v1473_v7 = vld [vmem:[%s1823_s1 + $0x18] sm:$0xff] (!%p140_p2)   ;;  %v1475_v9 = vld [vmem:[%s1823_s1 + $0x20] sm:$0xff] (!%p140_p2)   ;;  %v1477_v13 = vld [vmem:[%s1823_s1 + $0x28] sm:$0xff] (!%p140_p2)  }
   0x9   : > { %v1478_v14 = vld [vmem:[%s1823_s1 + $0x70] sm:$0xff] (!%p140_p2)   ;;  %v1480_v16 = vld [vmem:[%s1823_s1 + $0x78] sm:$0xff] (!%p140_p2)   ;;  %v1494_v18 = vld [vmem:[%s1823_s1 + $0x80] sm:$0xff] (!%p140_p2)  }
   0xa   : > { %v1479_v15 = vld [vmem:[%s1823_s1 + $0x30] sm:$0xff] (!%p140_p2)   ;;  %v1481_v17 = vld [vmem:[%s1823_s1 + $0x38] sm:$0xff] (!%p140_p2)   ;;  %v1501_v23 = vld [vmem:[%s1823_s1 + $0x88] sm:$0xff] (!%p140_p2)  }
   0xb   : > { %1296 = vmatpush3.bf16.msra.mxu0 (!%p140_p2), %v1469_v3  ;;  %1450 = vmatpush3.bf16.msra.mxu1 (!%p140_p2), %v1469_v3 }
   0xc   : > { %1297 = vmatprep.subr.bf16.mxu0 (!%p140_p2), %v1470_v4  ;;  %1443 = vmatprep.subr.bf16.mxu1 (!%p140_p2), %v1470_v4 }
   0xd   : > { %s1827_s16 = smov (!%p165_p3, %s164_s16), 195 }
   0xe   : > { %s1457_s29 = smul.u32 12, %s1827_s16  ;;  %s1159_s5 = sshll.u32 %s1827_s16, 2 }
   0xf   : > { %1298 = vmatpush3.bf16.msra.mxu0 %v1471_v5  ;;  %1451 = vmatpush3.bf16.msra.mxu1 %v1471_v5  ;;  %s1719_s8 = scalar_lea.vmem %s1825_s3, %s1159_s5 }
  0x10   : > { %1299 = vmatprep.subr.bf16.mxu0 %v1472_v6  ;;  %1444 = vmatprep.subr.bf16.mxu1 %v1472_v6  ;;  %s1609_s9 = scalar_lea.vmem %s1822_s0, %s1457_s29 }
  0x11   : > { %v1484_v11 = vld [vmem:[%s1609_s9 + $0x4] ss:$12 sps:$4 sm:$0xff]   ;;  %v1487_v12 = vld [vmem:[%s1609_s9 + $0x10c] ss:$12 sps:$4 sm:$0xff]   ;;  %v1485_v20 = vld [vmem:[%s1609_s9 + $0x108] ss:$12 sps:$4 sm:$0xff]  }
  0x12   : > { %670 = vmatprep.mubr.bf16.mxu0 %v1484_v11  ;;  %758 = vmatprep.mubr.bf16.mxu1 %v1487_v12  ;;  %v1482_v19 = vld [vmem:[%s1609_s9] ss:$12 sps:$4 sm:$0xff]   ;;  %v1488_v21 = vld [vmem:[%s1609_s9 + $0x1c] ss:$12 sps:$4 sm:$0xff]   ;;  %v1490_v22 = vld [vmem:[%s1609_s9 + $0x124] ss:$12 sps:$4 sm:$0xff]  }
  0x13   : > { %1300 = vmatpush3.bf16.msra.mxu0 %v1473_v7  ;;  %1452 = vmatpush3.bf16.msra.mxu1 %v1473_v7  ;;  %v1492_v24 = vld [vmem:[%s1609_s9 + $0x18] ss:$12 sps:$4 sm:$0xff]   ;;  %v1493_v25 = vld [vmem:[%s1609_s9 + $0x120] ss:$12 sps:$4 sm:$0xff]   ;;  %v1497_v27 = vld [vmem:[%s1609_s9 + $0x13c] ss:$12 sps:$4 sm:$0xff]  }
  0x14   : > { %1301 = vmatprep.subr.bf16.mxu0 %v1474_v8  ;;  %1445 = vmatprep.subr.bf16.mxu1 %v1474_v8  ;;  %v1495_v26 = vld [vmem:[%s1609_s9 + $0x34] ss:$12 sps:$4 sm:$0xff]   ;;  %v1499_v28 = vld [vmem:[%s1609_s9 + $0x30] ss:$12 sps:$4 sm:$0xff]   ;;  %v1500_v29 = vld [vmem:[%s1609_s9 + $0x138] ss:$12 sps:$4 sm:$0xff]  }
  0x15   : > { %v1502_v30 = vld [vmem:[%s1609_s9 + $0x4c] ss:$12 sps:$4 sm:$0xff]   ;;  %v1504_v31 = vld [vmem:[%s1609_s9 + $0x8] ss:$12 sps:$4 sm:$0xff]   ;;  %v1507_v34 = vld [vmem:[%s1609_s9 + $0x64] ss:$12 sps:$4 sm:$0xff]  }
  0x16   : > { %v1505_v32 = vld [vmem:[%s1609_s9 + $0x48] ss:$12 sps:$4 sm:$0xff]   ;;  %v1506_v33 = vld [vmem:[%s1609_s9 + $0x20] ss:$12 sps:$4 sm:$0xff]   ;;  %v1509_v35 = vld [vmem:[%s1609_s9 + $0x38] ss:$12 sps:$4 sm:$0xff]  }
  0x17   : > { %1302 = vmatpush3.bf16.msra.mxu0 %v1475_v9  ;;  %1453 = vmatpush3.bf16.msra.mxu1 %v1475_v9  ;;  %v1510_v36 = vld [vmem:[%s1609_s9 + $0x60] ss:$12 sps:$4 sm:$0xff]   ;;  %v1511_v37 = vld [vmem:[%s1609_s9 + $0x50] ss:$12 sps:$4 sm:$0xff]   ;;  %v1514_v39 = vld [vmem:[%s1609_s9 + $0x68] ss:$12 sps:$4 sm:$0xff]  }
  0x18   : > { %1303 = vmatprep.subr.bf16.mxu0 %v1476_v10  ;;  %1446 = vmatprep.subr.bf16.mxu1 %v1476_v10  ;;  %v1512_v38 = vld [vmem:[%s1609_s9 + $0x7c] ss:$12 sps:$4 sm:$0xff]   ;;  %v1515_v40 = vld [vmem:[%s1609_s9 + $0x78] ss:$12 sps:$4 sm:$0xff]   ;;  %v1516_v41 = vld [vmem:[%s1609_s9 + $0x80] ss:$12 sps:$4 sm:$0xff]  }
  0x19   : > { %v1517_v42 = vld [vmem:[%s1609_s9 + $0x94] ss:$12 sps:$4 sm:$0xff]   ;;  %v1519_v43 = vld [vmem:[%s1609_s9 + $0x98] ss:$12 sps:$4 sm:$0xff]   ;;  %v1520_v44 = vld [vmem:[%s1609_s9 + $0x90] ss:$12 sps:$4 sm:$0xff]  }
  0x1a   : > { %v1521_v45 = vld [vmem:[%s1609_s9 + $0xb0] ss:$12 sps:$4 sm:$0xff]   ;;  %v1522_v46 = vld [vmem:[%s1609_s9 + $0xac] ss:$12 sps:$4 sm:$0xff]   ;;  %v1524_v47 = vld [vmem:[%s1609_s9 + $0xc8] ss:$12 sps:$4 sm:$0xff]  }
  0x1b   : > { %1304 = vmatpush3.bf16.msra.mxu0 %v1477_v13  ;;  %1454 = vmatpush3.bf16.msra.mxu1 %v1477_v13  ;;  %v1525_v48 = vld [vmem:[%s1609_s9 + $0xa8] ss:$12 sps:$4 sm:$0xff]   ;;  %v1526_v49 = vld [vmem:[%s1609_s9 + $0xe0] ss:$12 sps:$4 sm:$0xff]   ;;  %v1527_v50 = vld [vmem:[%s1609_s9 + $0xc4] ss:$12 sps:$4 sm:$0xff]  }
  0x1c   : > { %1305 = vmatprep.subr.bf16.mxu0 %v1478_v14  ;;  %1447 = vmatprep.subr.bf16.mxu1 %v1478_v14  ;;  %v1529_v51 = vld [vmem:[%s1609_s9 + $0xf8] ss:$12 sps:$4 sm:$0xff]   ;;  %v1530_v52 = vld [vmem:[%s1609_s9 + $0xc0] ss:$12 sps:$4 sm:$0xff]   ;;  %v1531_v53 = vld [vmem:[%s1609_s9 + $0x110] ss:$12 sps:$4 sm:$0xff]  }
  0x1d   : > { %v1532_v54 = vld [vmem:[%s1609_s9 + $0xdc] ss:$12 sps:$4 sm:$0xff]   ;;  %v1535_v56 = vld [vmem:[%s1609_s9 + $0xd8] ss:$12 sps:$4 sm:$0xff]   ;;  %v1536_v57 = vld [vmem:[%s1609_s9 + $0x140] ss:$12 sps:$4 sm:$0xff]  }
  0x1e   : > { %v1534_v55 = vld [vmem:[%s1609_s9 + $0x128] ss:$12 sps:$4 sm:$0xff]   ;;  %v1539_v59 = vld [vmem:[%s1609_s9 + $0xf0] ss:$12 sps:$4 sm:$0xff]  }
  0x1f   : > { %1306 = vmatpush3.bf16.msra.mxu0 %v1479_v15  ;;  %1455 = vmatpush3.bf16.msra.mxu1 %v1479_v15  ;;  %v1537_v58 = vld [vmem:[%s1609_s9 + $0xf4] ss:$12 sps:$4 sm:$0xff]  }
  0x20   : > { %1307 = vmatprep.subr.bf16.mxu0 %v1480_v16  ;;  %1448 = vmatprep.subr.bf16.mxu1 %v1480_v16 }
  0x23   : > { %1308 = vmatpush3.bf16.msra.mxu0 %v1481_v17  ;;  %1456 = vmatpush3.bf16.msra.mxu1 %v1481_v17 }
  0x24   : > { %1409 = vmatprep.subr.bf16.mxu1 %v1494_v18 }
  0x26   : > { %671 = vmatmul.mubr.bf16.vlgmr.msra.gmra.mrb[0].mxu0 %v1482_v19  ;;  %759 = vmatmul.mubr.bf16.vlgmr.msra.gmra.mrb[0].mxu1 %v1485_v20 }
  0x27   : > { %678 = vmatprep.mubr.bf16.mxu0 %v1488_v21  ;;  %766 = vmatprep.mubr.bf16.mxu1 %v1490_v22 }
  0x28   : > { %1410 = vmatpush3.bf16.msra.mxu1 %v1494_v18 }
  0x29   : > { %1411 = vmatprep.subr.bf16.mxu1 %v1501_v23 }
  0x2c   : > { %1412 = vmatpush3.bf16.msra.mxu1 %v1501_v23 }
  0x2e   : > { %679 = vmatmul.mubr.bf16.gmra.mrb[4].mxu0 %v1492_v24  ;;  %767 = vmatmul.mubr.bf16.gmra.mrb[4].mxu1 %v1493_v25 }
  0x2f   : > { %686 = vmatprep.mubr.bf16.mxu0 %v1495_v26  ;;  %774 = vmatprep.mubr.bf16.mxu1 %v1497_v27 }
  0x36   : > { %687 = vmatmul.mubr.bf16.gmra.mrb[8].mxu0 %v1499_v28  ;;  %775 = vmatmul.mubr.bf16.gmra.mrb[8].mxu1 %v1500_v29 }
  0x37   : > { %694 = vmatprep.mubr.bf16.mxu0 %v1502_v30  ;;  %1413 = vmatprep.mubr.msk.bf16.mxu1 %vm595_vm0, %v1504_v31 }
  0x3e   : > { %695 = vmatmul.mubr.bf16.gmra.mrb[12].mxu0 %v1505_v32  ;;  %1414 = vmatmul.mubr.msk.bf16.vlgmr.msra.gmra.mrb[12].mxu1 %vm595_vm0, %v1506_v33  ;;  %v1709_v32 = vld [vmem:[%s1824_s2] ss:$0 sm:$0xff] }
  0x3f   : > { %702 = vmatprep.mubr.bf16.mxu0 %v1507_v34  ;;  %1417 = vmatprep.mubr.msk.bf16.mxu1 %vm595_vm0, %v1509_v35 }
  0x46   : > { %703 = vmatmul.mubr.bf16.gmra.mrb[16].mxu0 %v1510_v36  ;;  %1418 = vmatmul.mubr.msk.bf16.gmra.mrb[16].mxu1 %vm595_vm0, %v1511_v37 }
  0x47   : > { %710 = vmatprep.mubr.bf16.mxu0 %v1512_v38  ;;  %1421 = vmatprep.mubr.msk.bf16.mxu1 %vm595_vm0, %v1514_v39 }
  0x4e   : > { %711 = vmatmul.mubr.bf16.gmra.mrb[20].mxu0 %v1515_v40  ;;  %1422 = vmatmul.mubr.msk.bf16.gmra.mrb[20].mxu1 %vm595_vm0, %v1516_v41 }
  0x4f   : > { %718 = vmatprep.mubr.bf16.mxu0 %v1517_v42  ;;  %1425 = vmatprep.mubr.msk.bf16.mxu1 %vm595_vm0, %v1519_v43 }
  0x56   : > { %719 = vmatmul.mubr.bf16.gmra.mrb[24].mxu0 %v1520_v44  ;;  %1426 = vmatmul.mubr.msk.bf16.gmra.mrb[24].mxu1 %vm595_vm0, %v1521_v45 }
  0x57   : > { %726 = vmatprep.mubr.bf16.mxu0 %v1522_v46  ;;  %1429 = vmatprep.mubr.msk.bf16.mxu1 %vm595_vm0, %v1524_v47 }
  0x5e   : > { %727 = vmatmul.mubr.bf16.gmra.mrb[28].mxu0 %v1525_v48  ;;  %1430 = vmatmul.mubr.msk.bf16.gmra.mrb[28].mxu1 %vm595_vm0, %v1526_v49 }
  0x5f   : > { %734 = vmatprep.mubr.bf16.mxu0 %v1527_v50  ;;  %1433 = vmatprep.mubr.msk.bf16.mxu1 %vm595_vm0, %v1529_v51 }
  0x66   : > { %735 = vmatmul.mubr.bf16.gmra.mrb[32].mxu0 %v1530_v52  ;;  %1434 = vmatmul.mubr.msk.bf16.gmra.mrb[32].mxu1 %vm595_vm0, %v1531_v53 }
  0x67   : > { %742 = vmatprep.mubr.bf16.mxu0 %v1532_v54  ;;  %1437 = vmatprep.mubr.msk.bf16.mxu1 %vm595_vm0, %v1534_v55 }
  0x6e   : > { %743 = vmatmul.mubr.bf16.gmra.mrb[36].mxu0 %v1535_v56  ;;  %1438 = vmatmul.mubr.msk.bf16.gmra.mrb[36].mxu1 %vm595_vm0, %v1536_v57 }
  0x6f   : > { %750 = vmatprep.mubr.bf16.mxu0 %v1537_v58 }
  0x76   : > { %751 = vmatmul.mubr.bf16.gmra.mrb[40].mxu0 %v1539_v59 }
  0xf9   : > { %v1309_v60 = vpop.f32.mrb[0].mxu0  ;;  %v1375_v61 = vpop.f32.mrb[0].mxu1 }
  0xfa   : > { %v1310_v62 = vpop.f32.mrb[1].mxu0  ;;  %v1376_v63 = vpop.f32.mrb[1].mxu1 }
  0xfb   : > { %v1311_v0 = vadd.f32 %v1310_v62, %v1309_v60  ;;  %v1312_v1 = vpop.f32.mrb[2].mxu0  ;;  %v1694_v2 = vadd.f32 %v1376_v63, %v1375_v61  ;;  %v1378_v3 = vpop.f32.mrb[2].mxu1 }
  0xfc   : > { %v1313_v4 = vpop.f32.mrb[3].mxu0  ;;  %v1379_v5 = vpop.f32.mrb[3].mxu1 }
  0xfd   : > { %v1314_v6 = vadd.f32 %v1313_v4, %v1312_v1  ;;  %v1696_v7 = vadd.f32 %v1379_v5, %v1378_v3  ;;  %v673_v36 = vadd.f32 %v1311_v0, %v1709_v32 }
  0xff   : > { %v676_v45 = vadd.f32 %v1314_v6, %v1709_v32 }
 0x101   : > { %v1315_v8 = vpop.f32.mrb[4].mxu0  ;;  %v1381_v9 = vpop.f32.mrb[4].mxu1 }
 0x102   : > { %v1316_v10 = vpop.f32.mrb[5].mxu0  ;;  %v1382_v11 = vpop.f32.mrb[5].mxu1 }
 0x103   : > { %v1317_v12 = vadd.f32 %v1316_v10, %v1315_v8  ;;  %v1318_v13 = vpop.f32.mrb[6].mxu0  ;;  %v1698_v14 = vadd.f32 %v1382_v11, %v1381_v9  ;;  %v1384_v15 = vpop.f32.mrb[6].mxu1 }
 0x104   : > { %v1319_v16 = vpop.f32.mrb[7].mxu0  ;;  %v1385_v17 = vpop.f32.mrb[7].mxu1 }
 0x105   : > { %v1320_v18 = vadd.f32 %v1319_v16, %v1318_v13  ;;  %v1700_v19 = vadd.f32 %v1385_v17, %v1384_v15  ;;  %v681_v33 = vadd.f32 %v1317_v12, %v1709_v32 }
 0x107   : > { %v684_v40 = vadd.f32 %v1320_v18, %v1709_v32 }
 0x109   : > { %v1321_v20 = vpop.f32.mrb[8].mxu0  ;;  %v1387_v21 = vpop.f32.mrb[8].mxu1 }
 0x10a   : > { %v1322_v22 = vpop.f32.mrb[9].mxu0  ;;  %v1388_v23 = vpop.f32.mrb[9].mxu1 }
 0x10b   : > { %v1323_v24 = vadd.f32 %v1322_v22, %v1321_v20  ;;  %v1324_v25 = vpop.f32.mrb[10].mxu0  ;;  %v1702_v26 = vadd.f32 %v1388_v23, %v1387_v21  ;;  %v1390_v27 = vpop.f32.mrb[10].mxu1 }
 0x10c   : > { %v1325_v28 = vpop.f32.mrb[11].mxu0  ;;  %v1391_v29 = vpop.f32.mrb[11].mxu1 }
 0x10d   : > { %v1326_v30 = vadd.f32 %v1325_v28, %v1324_v25  ;;  %v1704_v31 = vadd.f32 %v1391_v29, %v1390_v27  ;;  %v689_v62 = vadd.f32 %v1323_v24, %v1709_v32 }
 0x10f   : > { %v692_v9 = vadd.f32 %v1326_v30, %v1709_v32 }
 0x111   : > { %v1327_v34 = vpop.f32.mrb[12].mxu0  ;;  %v1415_v35 = vpop.f32.mrb[12].mxu1 }
 0x112   : > { %v826_v37 = vadd.f32 %v1415_v35, %v681_v33  ;;  %v1328_v38 = vpop.f32.mrb[13].mxu0  ;;  %v817_v39 = vpop.f32.mrb[13].mxu1 }
 0x113   : > { %v1329_v41 = vadd.f32 %v1328_v38, %v1327_v34  ;;  %v818_v42 = vadd.f32 %v817_v39, %v673_v36  ;;  %v1330_v43 = vpop.f32.mrb[14].mxu0  ;;  %v1416_v44 = vpop.f32.mrb[14].mxu1 }
 0x114   : > { %v930_v46 = vmax.f32 %v826_v37, 0.0  ;;  %v829_v47 = vadd.f32 %v1416_v44, %v684_v40  ;;  %v1331_v48 = vpop.f32.mrb[15].mxu0  ;;  %v820_v49 = vpop.f32.mrb[15].mxu1 }
 0x115   : > { %v928_v50 = vmax.f32 %v818_v42, 0.0  ;;  %v1332_v51 = vadd.f32 %v1331_v48, %v1330_v43  ;;  %v821_v52 = vadd.f32 %v820_v49, %v676_v45  ;;  %v697_v58 = vadd.f32 %v1329_v41, %v1709_v32 }
 0x116   : > { %v1267_v53 = vpack.c.bf16 %v930_v46, %v930_v46  ;;  %v931_v54 = vmax.f32 %v829_v47, 0.0 }
 0x117   : > { %v1265_v55 = vpack.c.bf16 %v928_v50, %v928_v50  ;;  %v929_v56 = vmax.f32 %v821_v52, 0.0  ;;  %v700_v3 = vadd.f32 %v1332_v51, %v1709_v32 }
 0x118   : > { %1071 = vst.msk [vmem:[%s1719_s8 + $0x8] sm:$0xf] %vm1068_vm1, %v1267_v53  ;;  %v1268_v57 = vpack.c.bf16 %v931_v54, %v931_v54 }
 0x119   : > { %1069 = vst.msk [vmem:[%s1719_s8] sm:$0xf] %vm1068_vm1, %v1265_v55  ;;  %v1266_v59 = vpack.c.bf16 %v929_v56, %v929_v56  ;;  %v1333_v60 = vpop.f32.mrb[16].mxu0  ;;  %v1419_v61 = vpop.f32.mrb[16].mxu1 }
 0x11a   : > { %1072 = vst.msk [vmem:[%s1719_s8 + $0xc] sm:$0xf] %vm1068_vm1, %v1268_v57  ;;  %v842_v63 = vadd.f32 %v1419_v61, %v697_v58  ;;  %v1334_v0 = vpop.f32.mrb[17].mxu0  ;;  %v833_v1 = vpop.f32.mrb[17].mxu1 }
 0x11b   : > { %1070 = vst.msk [vmem:[%s1719_s8 + $0x4] sm:$0xf] %vm1068_vm1, %v1266_v59  ;;  %v1335_v4 = vadd.f32 %v1334_v0, %v1333_v60  ;;  %v834_v5 = vadd.f32 %v833_v1, %v689_v62  ;;  %v1336_v6 = vpop.f32.mrb[18].mxu0  ;;  %v1420_v8 = vpop.f32.mrb[18].mxu1 }
 0x11c   : > { %v934_v10 = vmax.f32 %v842_v63, 0.0  ;;  %v845_v11 = vadd.f32 %v1420_v8, %v700_v3  ;;  %v1337_v12 = vpop.f32.mrb[19].mxu0  ;;  %v836_v13 = vpop.f32.mrb[19].mxu1 }
 0x11d   : > { %v932_v15 = vmax.f32 %v834_v5, 0.0  ;;  %v1338_v16 = vadd.f32 %v1337_v12, %v1336_v6  ;;  %v837_v17 = vadd.f32 %v836_v13, %v692_v9  ;;  %v705_v28 = vadd.f32 %v1335_v4, %v1709_v32 }
 0x11e   : > { %v1271_v18 = vpack.c.bf16 %v934_v10, %v934_v10  ;;  %v935_v20 = vmax.f32 %v845_v11, 0.0 }
 0x11f   : > { %v1269_v21 = vpack.c.bf16 %v932_v15, %v932_v15  ;;  %v933_v22 = vmax.f32 %v837_v17, 0.0  ;;  %v708_v37 = vadd.f32 %v1338_v16, %v1709_v32 }
 0x120   : > { %1075 = vst.msk [vmem:[%s1719_s8 + $0x18] sm:$0xf] %vm1068_vm1, %v1271_v18  ;;  %v1272_v23 = vpack.c.bf16 %v935_v20, %v935_v20 }
 0x121   : > { %1073 = vst.msk [vmem:[%s1719_s8 + $0x10] sm:$0xf] %vm1068_vm1, %v1269_v21  ;;  %v1270_v24 = vpack.c.bf16 %v933_v22, %v933_v22  ;;  %v1339_v25 = vpop.f32.mrb[20].mxu0  ;;  %v1423_v27 = vpop.f32.mrb[20].mxu1 }
 0x122   : > { %1076 = vst.msk [vmem:[%s1719_s8 + $0x1c] sm:$0xf] %vm1068_vm1, %v1272_v23  ;;  %v1340_v29 = vpop.f32.mrb[21].mxu0  ;;  %v849_v30 = vpop.f32.mrb[21].mxu1 }
 0x123   : > { %1074 = vst.msk [vmem:[%s1719_s8 + $0x14] sm:$0xf] %vm1068_vm1, %v1270_v24  ;;  %v1341_v33 = vadd.f32 %v1340_v29, %v1339_v25  ;;  %v850_v34 = vadd.f32 %v849_v30, %v705_v28  ;;  %v1342_v35 = vpop.f32.mrb[22].mxu0  ;;  %v1424_v36 = vpop.f32.mrb[22].mxu1  ;;  %v761_v25 = vadd.f32 %v1694_v2, %v1709_v32 }
 0x124   : > { %v1343_v38 = vpop.f32.mrb[23].mxu0  ;;  %v852_v39 = vpop.f32.mrb[23].mxu1 }
 0x125   : > { %v713_v40 = vadd.f32 %v1341_v33, %v1709_v32  ;;  %v936_v41 = vmax.f32 %v850_v34, 0.0  ;;  %v1344_v42 = vadd.f32 %v1343_v38, %v1342_v35  ;;  %v853_v43 = vadd.f32 %v852_v39, %v708_v37 }
 0x127   : > { %v858_v44 = vadd.f32 %v1423_v27, %v713_v40  ;;  %v1273_v45 = vpack.c.bf16 %v936_v41, %v936_v41  ;;  %v716_v46 = vadd.f32 %v1344_v42, %v1709_v32  ;;  %v937_v47 = vmax.f32 %v853_v43, 0.0 }
 0x129   : > { %v938_v48 = vmax.f32 %v858_v44, 0.0  ;;  %1077 = vst.msk [vmem:[%s1719_s8 + $0x20] sm:$0xf] %vm1068_vm1, %v1273_v45  ;;  %v861_v49 = vadd.f32 %v1424_v36, %v716_v46  ;;  %v1274_v50 = vpack.c.bf16 %v937_v47, %v937_v47  ;;  %v1345_v51 = vpop.f32.mrb[24].mxu0  ;;  %v1427_v52 = vpop.f32.mrb[24].mxu1  ;;  %v764_v36 = vadd.f32 %v1696_v7, %v1709_v32 }
 0x12a   : > { %v1346_v53 = vpop.f32.mrb[25].mxu0  ;;  %v865_v54 = vpop.f32.mrb[25].mxu1 }
 0x12b   : > { %v1275_v55 = vpack.c.bf16 %v938_v48, %v938_v48  ;;  %v939_v56 = vmax.f32 %v861_v49, 0.0  ;;  %1078 = vst.msk [vmem:[%s1719_s8 + $0x24] sm:$0xf] %vm1068_vm1, %v1274_v50  ;;  %v1347_v57 = vadd.f32 %v1346_v53, %v1345_v51  ;;  %v1348_v58 = vpop.f32.mrb[26].mxu0  ;;  %v1428_v59 = vpop.f32.mrb[26].mxu1 }
 0x12c   : > { %v1349_v60 = vpop.f32.mrb[27].mxu0  ;;  %v868_v61 = vpop.f32.mrb[27].mxu1 }
 0x12d   : > { %1079 = vst.msk [vmem:[%s1719_s8 + $0x28] sm:$0xf] %vm1068_vm1, %v1275_v55  ;;  %v1276_v62 = vpack.c.bf16 %v939_v56, %v939_v56  ;;  %v1350_v63 = vadd.f32 %v1349_v60, %v1348_v58  ;;  %v721_v0 = vadd.f32 %v1347_v57, %v1709_v32  ;;  %v769_v57 = vadd.f32 %v1698_v14, %v1709_v32 }
 0x12f   : > { %1080 = vst.msk [vmem:[%s1719_s8 + $0x2c] sm:$0xf] %vm1068_vm1, %v1276_v62  ;;  %v866_v1 = vadd.f32 %v865_v54, %v721_v0  ;;  %v724_v3 = vadd.f32 %v1350_v63, %v1709_v32 }
 0x131   : > { %v940_v4 = vmax.f32 %v866_v1, 0.0  ;;  %v869_v5 = vadd.f32 %v868_v61, %v724_v3  ;;  %v1351_v6 = vpop.f32.mrb[28].mxu0  ;;  %v1755_v8 = vpop.f32.mrb[28].mxu1  ;;  %v780_v61 = vadd.f32 %v1704_v31, %v1709_v32 }
 0x132   : > { %v1352_v9 = vpop.f32.mrb[29].mxu0  ;;  %v881_v10 = vpop.f32.mrb[29].mxu1 }
 0x133   : > { %v1277_v11 = vpack.c.bf16 %v940_v4, %v940_v4  ;;  %v941_v12 = vmax.f32 %v869_v5, 0.0  ;;  %v1353_v13 = vadd.f32 %v1352_v9, %v1351_v6  ;;  %v1354_v15 = vpop.f32.mrb[30].mxu0  ;;  %v1757_v16 = vpop.f32.mrb[30].mxu1  ;;  %v772_v6 = vadd.f32 %v1700_v19, %v1709_v32 }
 0x134   : > { %v1355_v17 = vpop.f32.mrb[31].mxu0  ;;  %v884_v18 = vpop.f32.mrb[31].mxu1 }
 0x135   : > { %1081 = vst.msk [vmem:[%s1719_s8 + $0x30] sm:$0xf] %vm1068_vm1, %v1277_v11  ;;  %v1278_v20 = vpack.c.bf16 %v941_v12, %v941_v12  ;;  %v729_v21 = vadd.f32 %v1353_v13, %v1709_v32  ;;  %v1356_v22 = vadd.f32 %v1355_v17, %v1354_v15 }
 0x137   : > { %1082 = vst.msk [vmem:[%s1719_s8 + $0x34] sm:$0xf] %vm1068_vm1, %v1278_v20  ;;  %v874_v23 = vadd.f32 %v1427_v52, %v729_v21  ;;  %v732_v24 = vadd.f32 %v1356_v22, %v1709_v32  ;;  %v777_v52 = vadd.f32 %v1702_v26, %v1709_v32 }
 0x139   : > { %v942_v27 = vmax.f32 %v874_v23, 0.0  ;;  %v877_v28 = vadd.f32 %v1428_v59, %v732_v24  ;;  %v1357_v29 = vpop.f32.mrb[32].mxu0  ;;  %v1435_v30 = vpop.f32.mrb[32].mxu1 }
 0x13a   : > { %v906_v33 = vadd.f32 %v1435_v30, %v761_v25  ;;  %v1358_v34 = vpop.f32.mrb[33].mxu0  ;;  %v1767_v35 = vpop.f32.mrb[33].mxu1 }
 0x13b   : > { %v1279_v37 = vpack.c.bf16 %v942_v27, %v942_v27  ;;  %v943_v38 = vmax.f32 %v877_v28, 0.0  ;;  %v1359_v39 = vadd.f32 %v1358_v34, %v1357_v29  ;;  %v1360_v40 = vpop.f32.mrb[34].mxu0  ;;  %v1436_v41 = vpop.f32.mrb[34].mxu1 }
 0x13c   : > { %v950_v2 = vmax.f32 %v906_v33, 0.0  ;;  %v909_v42 = vadd.f32 %v1436_v41, %v764_v36  ;;  %v1361_v43 = vpop.f32.mrb[35].mxu0  ;;  %v1771_v44 = vpop.f32.mrb[35].mxu1 }
 0x13d   : > { %1083 = vst.msk [vmem:[%s1719_s8 + $0x38] sm:$0xf] %vm1068_vm1, %v1279_v37  ;;  %v1280_v45 = vpack.c.bf16 %v943_v38, %v943_v38  ;;  %v737_v46 = vadd.f32 %v1359_v39, %v1709_v32  ;;  %v1362_v47 = vadd.f32 %v1361_v43, %v1360_v40 }
 0x13e   : > { %v1287_v7 = vpack.c.bf16 %v950_v2, %v950_v2  ;;  %v951_v48 = vmax.f32 %v909_v42, 0.0 }
 0x13f   : > { %1084 = vst.msk [vmem:[%s1719_s8 + $0x3c] sm:$0xf] %vm1068_vm1, %v1280_v45  ;;  %v882_v49 = vadd.f32 %v881_v10, %v737_v46  ;;  %v740_v50 = vadd.f32 %v1362_v47, %v1709_v32 }
 0x140   : > { %1091 = vst.msk [vmem:[%s1719_s8 + $0x58] sm:$0xf] %vm1068_vm1, %v1287_v7  ;;  %v1288_v51 = vpack.c.bf16 %v951_v48, %v951_v48 }
 0x141   : > { %v944_v53 = vmax.f32 %v882_v49, 0.0  ;;  %v885_v54 = vadd.f32 %v884_v18, %v740_v50  ;;  %v1363_v55 = vpop.f32.mrb[36].mxu0  ;;  %v1439_v56 = vpop.f32.mrb[36].mxu1 }
 0x142   : > { %1092 = vst.msk [vmem:[%s1719_s8 + $0x5c] sm:$0xf] %vm1068_vm1, %v1288_v51  ;;  %v922_v58 = vadd.f32 %v1439_v56, %v777_v52  ;;  %v1364_v59 = vpop.f32.mrb[37].mxu0  ;;  %v913_v60 = vpop.f32.mrb[37].mxu1 }
 0x143   : > { %v1281_v62 = vpack.c.bf16 %v944_v53, %v944_v53  ;;  %v945_v63 = vmax.f32 %v885_v54, 0.0  ;;  %v1365_v0 = vadd.f32 %v1364_v59, %v1363_v55  ;;  %v914_v26 = vadd.f32 %v913_v60, %v769_v57  ;;  %v1366_v1 = vpop.f32.mrb[38].mxu0  ;;  %v1440_v3 = vpop.f32.mrb[38].mxu1 }
 0x144   : > { %v954_v4 = vmax.f32 %v922_v58, 0.0  ;;  %v925_v5 = vadd.f32 %v1440_v3, %v780_v61  ;;  %v1367_v14 = vpop.f32.mrb[39].mxu0  ;;  %v916_v9 = vpop.f32.mrb[39].mxu1 }
 0x145   : > { %1085 = vst.msk [vmem:[%s1719_s8 + $0x40] sm:$0xf] %vm1068_vm1, %v1281_v62  ;;  %v1282_v10 = vpack.c.bf16 %v945_v63, %v945_v63  ;;  %v745_v31 = vadd.f32 %v1365_v0, %v1709_v32  ;;  %v952_v11 = vmax.f32 %v914_v26, 0.0  ;;  %v1368_v12 = vadd.f32 %v1367_v14, %v1366_v1 }
 0x146   : > { %v1291_v13 = vpack.c.bf16 %v954_v4, %v954_v4  ;;  %v955_v15 = vmax.f32 %v925_v5, 0.0  ;;  %v917_v17 = vadd.f32 %v916_v9, %v772_v6 }
 0x147   : > { %1086 = vst.msk [vmem:[%s1719_s8 + $0x44] sm:$0xf] %vm1068_vm1, %v1282_v10  ;;  %v890_v18 = vadd.f32 %v1755_v8, %v745_v31  ;;  %v1289_v20 = vpack.c.bf16 %v952_v11, %v952_v11  ;;  %v748_v19 = vadd.f32 %v1368_v12, %v1709_v32 }
 0x148   : > { %1095 = vst.msk [vmem:[%s1719_s8 + $0x68] sm:$0xf] %vm1068_vm1, %v1291_v13  ;;  %v1292_v21 = vpack.c.bf16 %v955_v15, %v955_v15  ;;  %v953_v22 = vmax.f32 %v917_v17, 0.0 }
 0x149   : > { %v946_v23 = vmax.f32 %v890_v18, 0.0  ;;  %1093 = vst.msk [vmem:[%s1719_s8 + $0x60] sm:$0xf] %vm1068_vm1, %v1289_v20  ;;  %v893_v24 = vadd.f32 %v1757_v16, %v748_v19  ;;  %v1369_v25 = vpop.f32.mrb[40].mxu0 }
 0x14a   : > { %1096 = vst.msk [vmem:[%s1719_s8 + $0x6c] sm:$0xf] %vm1068_vm1, %v1292_v21  ;;  %v1290_v27 = vpack.c.bf16 %v953_v22, %v953_v22  ;;  %v1370_v8 = vpop.f32.mrb[41].mxu0 }
 0x14b   : > { %v1283_v28 = vpack.c.bf16 %v946_v23, %v946_v23  ;;  %v947_v29 = vmax.f32 %v893_v24, 0.0  ;;  %v1371_v30 = vadd.f32 %v1370_v8, %v1369_v25  ;;  %v1372_v33 = vpop.f32.mrb[42].mxu0 }
 0x14c   : > { %1094 = vst.msk [vmem:[%s1719_s8 + $0x64] sm:$0xf] %vm1068_vm1, %v1290_v27  ;;  %v1373_v34 = vpop.f32.mrb[43].mxu0 }
 0x14d   : > { %1087 = vst.msk [vmem:[%s1719_s8 + $0x48] sm:$0xf] %vm1068_vm1, %v1283_v28  ;;  %v1284_v36 = vpack.c.bf16 %v947_v29, %v947_v29  ;;  %v753_v37 = vadd.f32 %v1371_v30, %v1709_v32  ;;  %v1374_v16 = vadd.f32 %v1373_v34, %v1372_v33 }
 0x14f   : > { %1088 = vst.msk [vmem:[%s1719_s8 + $0x4c] sm:$0xf] %vm1068_vm1, %v1284_v36  ;;  %v898_v38 = vadd.f32 %v1767_v35, %v753_v37  ;;  %v756_v39 = vadd.f32 %v1374_v16, %v1709_v32 }
 0x151   : > { %v948_v40 = vmax.f32 %v898_v38, 0.0  ;;  %v901_v41 = vadd.f32 %v1771_v44, %v756_v39 }
 0x153   : > { %v1285_v2 = vpack.c.bf16 %v948_v40, %v948_v40  ;;  %v949_v42 = vmax.f32 %v901_v41, 0.0 }
 0x155   : > { %1089 = vst.msk [vmem:[%s1719_s8 + $0x50] sm:$0xf] %vm1068_vm1, %v1285_v2  ;;  %v1286_v43 = vpack.c.bf16 %v949_v42, %v949_v42 }
 0x157   : > { %1090 = vst.msk [vmem:[%s1719_s8 + $0x54] sm:$0xf] %vm1068_vm1, %v1286_v43 }
 0x158 PF: > { %s13_s12 = sadd.s32 1, %s1546_s12  }
 0x159   : > { %p10_p4 = scmp.ge.s32.totalorder %s13_s12, 9  }
 0x15b   :  { %12 = sbr.rel (!%p10_p4) target bundleno = 1 (0x1), region = 62 }

// kernel: conv4_forward.10
= control target key start
LH: loop header
LB: loop body
LE: loop exit
PB: predicated region body
PF: predicated region fallthrough
CT: control target
= control target key end

     0   :  { %s1527_s24 = smov 96   ;;  %vm1072_vm0 = vcmask 257024   ;;  %vm1074_vm1 = vcmask 256000   ;;  %s2798_s0 = inlined_call_operand.vmem [shape: bf16[56,14,64], index: 0, kind: input, shape index: {}]   ;;  %s2799_s1 = inlined_call_operand.vmem [shape: bf16[28,14,32], index: 1, kind: output, shape index: {}]  }
   0x1   :  { %v1541_v0 = vld [vmem:[%s2798_s0] ss:$16 sps:$4 sm:$0xff]   ;;  %v1546_v1 = vld [vmem:[%s2798_s0 + $0x14] sm:$0x7]  ;;  %v1551_v2 = vld [vmem:[%s2798_s0 + $0x4] sm:$0x7] }
   0x2   :  { %v2858_v3 = vunpack.c.h.bf16 %v1541_v0  ;;  %v2863_v4 = vunpack.c.l.bf16 %v1546_v1  ;;  %v2856_v5 = vunpack.c.l.bf16 %v1541_v0  ;;  %v2857_v6 = vunpack.c.l.bf16 %v1551_v2  ;;  %v1560_v7 = vld [vmem:[%s2798_s0 + $0x8] ss:$16 sps:$4 sm:$0xff]   ;;  %v1565_v8 = vld [vmem:[%s2798_s0 + $0x1c] sm:$0x7]  ;;  %v1570_v9 = vld [vmem:[%s2798_s0 + $0xc] sm:$0x7] }
   0x3   :  { %v2850_v10 = vunpack.c.h.bf16 %v1560_v7  ;;  %v2851_v11 = vunpack.c.l.bf16 %v1565_v8  ;;  %v2844_v12 = vunpack.c.l.bf16 %v1560_v7  ;;  %v2849_v13 = vunpack.c.l.bf16 %v1570_v9  ;;  %v1579_v14 = vld [vmem:[%s2798_s0 + $0x20] ss:$8 sps:$4 sm:$0xff]   ;;  %v1584_v15 = vld [vmem:[%s2798_s0 + $0x2c] sm:$0x7]  ;;  %v1589_v16 = vld [vmem:[%s2798_s0 + $0x24] sm:$0x7] }
   0x4   :  { %v1257_v17 = vpack.i.bf16 %v2863_v4, %v2858_v3  ;;  %v1247_v18 = vpack.i.bf16 %v2857_v6, %v2856_v5  ;;  %v2842_v19 = vunpack.c.h.bf16 %v1579_v14  ;;  %v2843_v20 = vunpack.c.l.bf16 %v1584_v15  ;;  %v1616_v25 = vld [vmem:[%s2798_s0 + $0x30] ss:$8 sps:$4 sm:$0xff]   ;;  %v1621_v26 = vld [vmem:[%s2798_s0 + $0x3c] sm:$0x7]  ;;  %v1626_v27 = vld [vmem:[%s2798_s0 + $0x34] sm:$0x7] }
   0x5   :  { %v1262_v21 = vpack.i.bf16 %v2851_v11, %v2850_v10  ;;  %v1252_v22 = vpack.i.bf16 %v2849_v13, %v2844_v12  ;;  %v2836_v23 = vunpack.c.l.bf16 %v1579_v14  ;;  %v2837_v24 = vunpack.c.l.bf16 %v1589_v16  ;;  %v1645_v34 = vld [vmem:[%s2798_s0 + $0x40] ss:$8 sps:$4 sm:$0xff]   ;;  %v1650_v35 = vld [vmem:[%s2798_s0 + $0x4c] sm:$0x7]  ;;  %v1655_v36 = vld [vmem:[%s2798_s0 + $0x44] sm:$0x7] }
   0x6   :  { %1258 = vrot.lane.b32.xlu1 %v1257_v17, %s1527_s24  ;;  %1248 = vrot.lane.b32.xlu0 %v1247_v18, %s1527_s24  ;;  %v1272_v28 = vpack.i.bf16 %v2843_v20, %v2842_v19  ;;  %v2830_v29 = vunpack.c.h.bf16 %v1616_v25  ;;  %v2835_v31 = vunpack.c.l.bf16 %v1621_v26  ;;  %v2828_v32 = vunpack.c.l.bf16 %v1616_v25  ;;  %v1674_v43 = vld [vmem:[%s2798_s0 + $0x50] ss:$8 sps:$4 sm:$0xff]   ;;  %v1679_v44 = vld [vmem:[%s2798_s0 + $0x5c] sm:$0x7] }
   0x7   :  { %v1267_v30 = vpack.i.bf16 %v2837_v24, %v2836_v23  ;;  %v2829_v33 = vunpack.c.l.bf16 %v1626_v27  ;;  %v2822_v37 = vunpack.c.h.bf16 %v1645_v34  ;;  %v2823_v38 = vunpack.c.l.bf16 %v1650_v35  ;;  %v1684_v45 = vld [vmem:[%s2798_s0 + $0x54] sm:$0x7]  ;;  %v1703_v52 = vld [vmem:[%s2798_s0 + $0x60] ss:$8 sps:$4 sm:$0xff]   ;;  %v1708_v53 = vld [vmem:[%s2798_s0 + $0x6c] sm:$0x7] }
   0x8   :  { %v1282_v39 = vpack.i.bf16 %v2835_v31, %v2830_v29  ;;  %v2816_v41 = vunpack.c.l.bf16 %v1645_v34  ;;  %v2821_v42 = vunpack.c.l.bf16 %v1655_v36  ;;  %v2814_v47 = vunpack.c.h.bf16 %v1674_v43  ;;  %v1713_v54 = vld [vmem:[%s2798_s0 + $0x64] sm:$0x7]  ;;  %v1732_v61 = vld [vmem:[%s2798_s0 + $0x70] ss:$8 sps:$4 sm:$0xff]   ;;  %v1737_v62 = vld [vmem:[%s2798_s0 + $0x7c] sm:$0x7] }
   0x9   :  { %v1277_v40 = vpack.i.bf16 %v2829_v33, %v2828_v32  ;;  %v1292_v46 = vpack.i.bf16 %v2823_v38, %v2822_v37  ;;  %v2815_v49 = vunpack.c.l.bf16 %v1679_v44  ;;  %v2808_v50 = vunpack.c.l.bf16 %v1674_v43  ;;  %v1742_v63 = vld [vmem:[%s2798_s0 + $0x74] sm:$0x7] }
   0xa   :  { %1263 = vrot.lane.b32.xlu1 %v1262_v21, %s1527_s24  ;;  %1253 = vrot.lane.b32.xlu0 %v1252_v22, %s1527_s24  ;;  %v1287_v48 = vpack.i.bf16 %v2821_v42, %v2816_v41  ;;  %v2809_v51 = vunpack.c.l.bf16 %v1684_v45  ;;  %v2802_v55 = vunpack.c.h.bf16 %v1703_v52  ;;  %v2807_v56 = vunpack.c.l.bf16 %v1708_v53 }
   0xb   :  { %v1302_v57 = vpack.i.bf16 %v2815_v49, %v2814_v47  ;;  %v2800_v59 = vunpack.c.l.bf16 %v1703_v52  ;;  %v2801_v60 = vunpack.c.l.bf16 %v1713_v54  ;;  %v2803_v18 = vunpack.c.h.bf16 %v1732_v61 }
   0xc   :  { %v1297_v58 = vpack.i.bf16 %v2809_v51, %v2808_v50  ;;  %v1312_v17 = vpack.i.bf16 %v2807_v56, %v2802_v55  ;;  %v2806_v22 = vunpack.c.l.bf16 %v1737_v62 }
   0xd   :  { %v1307_v21 = vpack.i.bf16 %v2801_v60, %v2800_v59 }
   0xe   :  { %1273 = vrot.lane.b32.xlu1 %v1272_v28, %s1527_s24  ;;  %1268 = vrot.lane.b32.xlu0 %v1267_v30, %s1527_s24  ;;  %v2804_v28 = vunpack.c.l.bf16 %v1732_v61  ;;  %v2805_v30 = vunpack.c.l.bf16 %v1742_v63 }
  0x10   :  { %v1317_v59 = vpack.i.bf16 %v2805_v30, %v2804_v28 }
  0x12   :  { %1283 = vrot.lane.b32.xlu1 %v1282_v39, %s1527_s24  ;;  %1278 = vrot.lane.b32.xlu0 %v1277_v40, %s1527_s24  ;;  %v1761_v39 = vld [vmem:[%s2798_s0 + $0x80] ss:$8 sps:$4 sm:$0xff]   ;;  %v1766_v40 = vld [vmem:[%s2798_s0 + $0x8c] sm:$0x7] }
  0x13   :  { %v2811_v60 = vunpack.c.l.bf16 %v1761_v39 }
  0x16   :  { %1293 = vrot.lane.b32.xlu1 %v1292_v46, %s1527_s24  ;;  %1288 = vrot.lane.b32.xlu0 %v1287_v48, %s1527_s24  ;;  %v1771_v46 = vld [vmem:[%s2798_s0 + $0x84] sm:$0x7]  ;;  %v2810_v48 = vunpack.c.h.bf16 %v1761_v39 }
  0x17   :  { %v2812_v55 = vunpack.c.l.bf16 %v1771_v46 }
  0x1a   :  { %1303 = vrot.lane.b32.xlu1 %v1302_v57, %s1527_s24  ;;  %1298 = vrot.lane.b32.xlu0 %v1297_v58, %s1527_s24  ;;  %v2813_v57 = vunpack.c.l.bf16 %v1766_v40  ;;  %v1322_v58 = vpack.i.bf16 %v2806_v22, %v2803_v18  ;;  %v1800_v18 = vld [vmem:[%s2798_s0 + $0x94] sm:$0x7]  ;;  %v1327_v22 = vpack.i.bf16 %v2812_v55, %v2811_v60 }
  0x1b   :  { %v2819_v51 = vunpack.c.l.bf16 %v1800_v18 }
  0x1c   :  { %v1332_v28 = vpack.i.bf16 %v2813_v57, %v2810_v48  ;;  %v1819_v48 = vld [vmem:[%s2798_s0 + $0xa0] ss:$8 sps:$4 sm:$0xff]  }
  0x1d   :  { %v2824_v60 = vunpack.c.h.bf16 %v1819_v48  ;;  %v2825_v49 = vunpack.c.l.bf16 %v1819_v48 }
  0x1e   :  { %1313 = vrot.lane.b32.xlu1 %v1312_v17, %s1527_s24  ;;  %1308 = vrot.lane.b32.xlu0 %v1307_v21, %s1527_s24  ;;  %v1790_v17 = vld [vmem:[%s2798_s0 + $0x90] ss:$8 sps:$4 sm:$0xff]   ;;  %v1795_v21 = vld [vmem:[%s2798_s0 + $0x9c] sm:$0x7] }
  0x1f   :  { %v2817_v30 = vunpack.c.h.bf16 %v1790_v17  ;;  %v2820_v56 = vunpack.c.l.bf16 %v1795_v21  ;;  %v2818_v50 = vunpack.c.l.bf16 %v1790_v17 }
  0x21   :  { %v1342_v57 = vpack.i.bf16 %v2820_v56, %v2817_v30  ;;  %v1337_v47 = vpack.i.bf16 %v2819_v51, %v2818_v50  ;;  %v1858_v30 = vld [vmem:[%s2798_s0 + $0xb4] sm:$0x7] }
  0x22   :  { %1323 = vrot.lane.b32.xlu1 %v1322_v58, %s1527_s24  ;;  %1318 = vrot.lane.b32.xlu0 %v1317_v59, %s1527_s24  ;;  %v1824_v59 = vld [vmem:[%s2798_s0 + $0xac] sm:$0x7]  ;;  %v1829_v58 = vld [vmem:[%s2798_s0 + $0xa4] sm:$0x7]  ;;  %v2833_v38 = vunpack.c.l.bf16 %v1858_v30 }
  0x23   :  { %v2827_v55 = vunpack.c.l.bf16 %v1824_v59  ;;  %v2826_v41 = vunpack.c.l.bf16 %v1829_v58 }
  0x25   :  { %v1352_v50 = vpack.i.bf16 %v2827_v55, %v2824_v60  ;;  %v1347_v56 = vpack.i.bf16 %v2826_v41, %v2825_v49  ;;  %v1877_v60 = vld [vmem:[%s2798_s0 + $0xc0] ss:$8 sps:$4 sm:$0xff]  }
  0x26   :  { %1333 = vrot.lane.b32.xlu1 %v1332_v28, %s1527_s24  ;;  %1328 = vrot.lane.b32.xlu0 %v1327_v22, %s1527_s24  ;;  %v1848_v28 = vld [vmem:[%s2798_s0 + $0xb0] ss:$8 sps:$4 sm:$0xff]   ;;  %v1853_v22 = vld [vmem:[%s2798_s0 + $0xbc] sm:$0x7]  ;;  %v2838_v49 = vunpack.c.h.bf16 %v1877_v60  ;;  %v2839_v33 = vunpack.c.l.bf16 %v1877_v60 }
  0x27   :  { %v2831_v51 = vunpack.c.h.bf16 %v1848_v28  ;;  %v2834_v42 = vunpack.c.l.bf16 %v1853_v22  ;;  %v2832_v37 = vunpack.c.l.bf16 %v1848_v28 }
  0x29   :  { %v1362_v55 = vpack.i.bf16 %v2834_v42, %v2831_v51  ;;  %v1357_v32 = vpack.i.bf16 %v2833_v38, %v2832_v37  ;;  %v1916_v51 = vld [vmem:[%s2798_s0 + $0xd4] sm:$0x7] }
  0x2a   :  { %1343 = vrot.lane.b32.xlu1 %v1342_v57, %s1527_s24  ;;  %1338 = vrot.lane.b32.xlu0 %v1337_v47, %s1527_s24  ;;  %v1882_v47 = vld [vmem:[%s2798_s0 + $0xcc] sm:$0x7]  ;;  %v1887_v57 = vld [vmem:[%s2798_s0 + $0xc4] sm:$0x7]  ;;  %v2847_v24 = vunpack.c.l.bf16 %v1916_v51 }
  0x2b   :  { %v2841_v41 = vunpack.c.l.bf16 %v1882_v47  ;;  %v2840_v29 = vunpack.c.l.bf16 %v1887_v57 }
  0x2d   :  { %v1372_v37 = vpack.i.bf16 %v2841_v41, %v2838_v49  ;;  %v1367_v42 = vpack.i.bf16 %v2840_v29, %v2839_v33  ;;  %v1935_v49 = vld [vmem:[%s2798_s0 + $0xe0] ss:$8 sps:$4 sm:$0xff]  }
  0x2e   :  { %1353 = vrot.lane.b32.xlu1 %v1352_v50, %s1527_s24  ;;  %1348 = vrot.lane.b32.xlu0 %v1347_v56, %s1527_s24  ;;  %v1906_v50 = vld [vmem:[%s2798_s0 + $0xd0] ss:$8 sps:$4 sm:$0xff]   ;;  %v1911_v56 = vld [vmem:[%s2798_s0 + $0xdc] sm:$0x7]  ;;  %2963 = vst [vmem:[#allocation2_spill] sm:$0xff] %v1935_v49  ;;  %v2852_v33 = vunpack.c.h.bf16 %v1935_v49  ;;  %v2853_v20 = vunpack.c.l.bf16 %v1935_v49  ;;  %v3015_v49 = vunpack.c.h.bf16 %v1560_v7 }
  0x2f   :  { %v2845_v38 = vunpack.c.h.bf16 %v1906_v50  ;;  %v2848_v31 = vunpack.c.l.bf16 %v1911_v56  ;;  %v2846_v23 = vunpack.c.l.bf16 %v1906_v50 }
  0x31   :  { %v1382_v41 = vpack.i.bf16 %v2848_v31, %v2845_v38  ;;  %v1377_v19 = vpack.i.bf16 %v2847_v24, %v2846_v23  ;;  %v1974_v38 = vld [vmem:[%s2798_s0 + $0xf4] sm:$0x7] }
  0x32   :  { %1363 = vrot.lane.b32.xlu1 %v1362_v55, %s1527_s24  ;;  %1358 = vrot.lane.b32.xlu0 %v1357_v32, %s1527_s24  ;;  %v1940_v32 = vld [vmem:[%s2798_s0 + $0xec] sm:$0x7]  ;;  %v1945_v55 = vld [vmem:[%s2798_s0 + $0xe4] sm:$0x7]  ;;  %2968 = vst [vmem:[#allocation7_spill] sm:$0xff] %v1974_v38  ;;  %v2861_v11 = vunpack.c.l.bf16 %v1974_v38 }
  0x33   :  { %2964 = vst [vmem:[#allocation3_spill] sm:$0xff] %v1940_v32  ;;  %2965 = vst [vmem:[#allocation4_spill] sm:$0xff] %v1945_v55  ;;  %v2855_v29 = vunpack.c.l.bf16 %v1940_v32  ;;  %v2854_v12 = vunpack.c.l.bf16 %v1945_v55 }
  0x35   :  { %v1392_v23 = vpack.i.bf16 %v2855_v29, %v2852_v33  ;;  %v1387_v31 = vpack.i.bf16 %v2854_v12, %v2853_v20  ;;  %v1993_v33 = vld [vmem:[%s2798_s0 + $0x100] ss:$8 sps:$4 sm:$0xff]  }
  0x36   :  { %1373 = vrot.lane.b32.xlu1 %v1372_v37, %s1527_s24  ;;  %1368 = vrot.lane.b32.xlu0 %v1367_v42, %s1527_s24  ;;  %v1964_v37 = vld [vmem:[%s2798_s0 + $0xf0] ss:$8 sps:$4 sm:$0xff]   ;;  %v1969_v42 = vld [vmem:[%s2798_s0 + $0xfc] sm:$0x7]  ;;  %2969 = vst [vmem:[#allocation8_spill] sm:$0xff] %v1993_v33  ;;  %v2867_v20 = vunpack.c.h.bf16 %v1993_v33  ;;  %v2868_v6 = vunpack.c.l.bf16 %v1993_v33 }
  0x37   :  { %2966 = vst [vmem:[#allocation5_spill] sm:$0xff] %v1964_v37  ;;  %2967 = vst [vmem:[#allocation6_spill] sm:$0xff] %v1969_v42  ;;  %v2859_v24 = vunpack.c.h.bf16 %v1964_v37  ;;  %v2862_v13 = vunpack.c.l.bf16 %v1969_v42  ;;  %v2860_v10 = vunpack.c.l.bf16 %v1964_v37  ;;  %v3013_v42 = vunpack.c.l.bf16 %v1541_v0 }
  0x39   :  { %v1402_v29 = vpack.i.bf16 %v2862_v13, %v2859_v24  ;;  %v1397_v5 = vpack.i.bf16 %v2861_v11, %v2860_v10  ;;  %v2032_v24 = vld [vmem:[%s2798_s0 + $0x114] sm:$0x7] }
  0x3a   :  { %1383 = vrot.lane.b32.xlu1 %v1382_v41, %s1527_s24  ;;  %1378 = vrot.lane.b32.xlu0 %v1377_v19, %s1527_s24  ;;  %v1998_v19 = vld [vmem:[%s2798_s0 + $0x10c] sm:$0x7]  ;;  %v2003_v41 = vld [vmem:[%s2798_s0 + $0x104] sm:$0x7]  ;;  %2974 = vst [vmem:[#allocation13_spill] sm:$0xff] %v2032_v24  ;;  %v2876_v37 = vunpack.c.l.bf16 %v2032_v24 }
  0x3b   :  { %2970 = vst [vmem:[#allocation9_spill] sm:$0xff] %v1998_v19  ;;  %2971 = vst [vmem:[#allocation10_spill] sm:$0xff] %v2003_v41  ;;  %v2870_v12 = vunpack.c.l.bf16 %v1998_v19  ;;  %v2869_v3 = vunpack.c.l.bf16 %v2003_v41 }
  0x3d   :  { %v1412_v10 = vpack.i.bf16 %v2870_v12, %v2867_v20  ;;  %v1407_v13 = vpack.i.bf16 %v2869_v3, %v2868_v6  ;;  %v2051_v20 = vld [vmem:[%s2798_s0 + $0x120] ss:$8 sps:$4 sm:$0xff]  }
  0x3e   :  { %1393 = vrot.lane.b32.xlu1 %v1392_v23, %s1527_s24  ;;  %1388 = vrot.lane.b32.xlu0 %v1387_v31, %s1527_s24  ;;  %v2022_v23 = vld [vmem:[%s2798_s0 + $0x110] ss:$8 sps:$4 sm:$0xff]   ;;  %v2027_v31 = vld [vmem:[%s2798_s0 + $0x11c] sm:$0x7]  ;;  %2975 = vst [vmem:[#allocation14_spill] sm:$0xff] %v2051_v20  ;;  %v2883_v33 = vunpack.c.l.bf16 %v2051_v20 }
  0x3f   :  { %2972 = vst [vmem:[#allocation11_spill] sm:$0xff] %v2022_v23  ;;  %2973 = vst [vmem:[#allocation12_spill] sm:$0xff] %v2027_v31  ;;  %v2874_v11 = vunpack.c.h.bf16 %v2022_v23  ;;  %v2877_v4 = vunpack.c.l.bf16 %v2027_v31  ;;  %v2875_v38 = vunpack.c.l.bf16 %v2022_v23 }
  0x41   :  { %v1422_v12 = vpack.i.bf16 %v2877_v4, %v2874_v11  ;;  %v1417_v41 = vpack.i.bf16 %v2876_v37, %v2875_v38  ;;  %v2090_v11 = vld [vmem:[%s2798_s0 + $0x134] sm:$0x7]  ;;  %v2981_v38 = vunpack.c.h.bf16 %v2051_v20 }
  0x42   :  { %1403 = vrot.lane.b32.xlu1 %v1402_v29, %s1527_s24  ;;  %1398 = vrot.lane.b32.xlu0 %v1397_v5, %s1527_s24  ;;  %v2056_v5 = vld [vmem:[%s2798_s0 + $0x12c] sm:$0x7]  ;;  %v2061_v29 = vld [vmem:[%s2798_s0 + $0x124] sm:$0x7]  ;;  %2980 = vst [vmem:[#allocation19_spill] sm:$0xff] %v2090_v11  ;;  %v2891_v19 = vunpack.c.l.bf16 %v2090_v11 }
  0x43   :  { %2976 = vst [vmem:[#allocation15_spill] sm:$0xff] %v2056_v5  ;;  %2977 = vst [vmem:[#allocation16_spill] sm:$0xff] %v2061_v29  ;;  %v2885_v3 = vunpack.c.l.bf16 %v2056_v5  ;;  %v2884_v6 = vunpack.c.l.bf16 %v2061_v29 }
  0x45   :  { %v1432_v37 = vpack.i.bf16 %v2885_v3, %v2981_v38  ;;  %v1427_v24 = vpack.i.bf16 %v2884_v6, %v2883_v33  ;;  %v2109_v38 = vld [vmem:[%s2798_s0 + $0x140] ss:$8 sps:$4 sm:$0xff]  }
  0x46   :  { %1413 = vrot.lane.b32.xlu1 %v1412_v10, %s1527_s24  ;;  %1408 = vrot.lane.b32.xlu0 %v1407_v13, %s1527_s24  ;;  %v2080_v10 = vld [vmem:[%s2798_s0 + $0x130] ss:$8 sps:$4 sm:$0xff]   ;;  %v2085_v13 = vld [vmem:[%s2798_s0 + $0x13c] sm:$0x7]  ;;  %2982 = vst [vmem:[#allocation20_spill] sm:$0xff] %v2109_v38  ;;  %v2898_v20 = vunpack.c.l.bf16 %v2109_v38 }
  0x47   :  { %2978 = vst [vmem:[#allocation17_spill] sm:$0xff] %v2080_v10  ;;  %2979 = vst [vmem:[#allocation18_spill] sm:$0xff] %v2085_v13  ;;  %v2889_v4 = vunpack.c.h.bf16 %v2080_v10  ;;  %v2892_v23 = vunpack.c.l.bf16 %v2085_v13  ;;  %v2890_v31 = vunpack.c.l.bf16 %v2080_v10 }
  0x49   :  { %v1442_v3 = vpack.i.bf16 %v2892_v23, %v2889_v4  ;;  %v1437_v29 = vpack.i.bf16 %v2891_v19, %v2890_v31  ;;  %v2148_v4 = vld [vmem:[%s2798_s0 + $0x154] sm:$0x7]  ;;  %v2988_v31 = vunpack.c.h.bf16 %v2109_v38 }
  0x4a   :  { %1423 = vrot.lane.b32.xlu1 %v1422_v12, %s1527_s24  ;;  %1418 = vrot.lane.b32.xlu0 %v1417_v41, %s1527_s24  ;;  %v2114_v12 = vld [vmem:[%s2798_s0 + $0x14c] sm:$0x7]  ;;  %v2119_v41 = vld [vmem:[%s2798_s0 + $0x144] sm:$0x7]  ;;  %2987 = vst [vmem:[#allocation25_spill] sm:$0xff] %v2148_v4  ;;  %v2906_v5 = vunpack.c.l.bf16 %v2148_v4 }
  0x4b   :  { %2983 = vst [vmem:[#allocation21_spill] sm:$0xff] %v2114_v12  ;;  %2984 = vst [vmem:[#allocation22_spill] sm:$0xff] %v2119_v41  ;;  %v2900_v6 = vunpack.c.l.bf16 %v2114_v12  ;;  %v2899_v33 = vunpack.c.l.bf16 %v2119_v41 }
  0x4d   :  { %v1452_v19 = vpack.i.bf16 %v2900_v6, %v2988_v31  ;;  %v1447_v11 = vpack.i.bf16 %v2899_v33, %v2898_v20  ;;  %v2167_v31 = vld [vmem:[%s2798_s0 + $0x160] ss:$8 sps:$4 sm:$0xff]  }
  0x4e   :  { %1433 = vrot.lane.b32.xlu1 %v1432_v37, %s1527_s24  ;;  %1428 = vrot.lane.b32.xlu0 %v1427_v24, %s1527_s24  ;;  %v2138_v37 = vld [vmem:[%s2798_s0 + $0x150] ss:$8 sps:$4 sm:$0xff]   ;;  %v2143_v24 = vld [vmem:[%s2798_s0 + $0x15c] sm:$0x7]  ;;  %2989 = vst [vmem:[#allocation26_spill] sm:$0xff] %v2167_v31  ;;  %v2913_v38 = vunpack.c.l.bf16 %v2167_v31 }
  0x4f   :  { %2985 = vst [vmem:[#allocation23_spill] sm:$0xff] %v2138_v37  ;;  %2986 = vst [vmem:[#allocation24_spill] sm:$0xff] %v2143_v24  ;;  %v2904_v23 = vunpack.c.h.bf16 %v2138_v37  ;;  %v2907_v10 = vunpack.c.l.bf16 %v2143_v24  ;;  %v2905_v13 = vunpack.c.l.bf16 %v2138_v37 }
  0x51   :  { %v1462_v6 = vpack.i.bf16 %v2907_v10, %v2904_v23  ;;  %v1457_v41 = vpack.i.bf16 %v2906_v5, %v2905_v13  ;;  %v2206_v23 = vld [vmem:[%s2798_s0 + $0x174] sm:$0x7]  ;;  %v2995_v13 = vunpack.c.h.bf16 %v2167_v31 }
  0x52   :  { %1443 = vrot.lane.b32.xlu1 %v1442_v3, %s1527_s24  ;;  %1438 = vrot.lane.b32.xlu0 %v1437_v29, %s1527_s24  ;;  %v2172_v3 = vld [vmem:[%s2798_s0 + $0x16c] sm:$0x7]  ;;  %v2177_v29 = vld [vmem:[%s2798_s0 + $0x164] sm:$0x7]  ;;  %2994 = vst [vmem:[#allocation31_spill] sm:$0xff] %v2206_v23  ;;  %v2921_v12 = vunpack.c.l.bf16 %v2206_v23 }
  0x53   :  { %2990 = vst [vmem:[#allocation27_spill] sm:$0xff] %v2172_v3  ;;  %2991 = vst [vmem:[#allocation28_spill] sm:$0xff] %v2177_v29  ;;  %v2915_v33 = vunpack.c.l.bf16 %v2172_v3  ;;  %v2914_v20 = vunpack.c.l.bf16 %v2177_v29 }
  0x55   :  { %v1472_v5 = vpack.i.bf16 %v2915_v33, %v2995_v13  ;;  %v1467_v4 = vpack.i.bf16 %v2914_v20, %v2913_v38  ;;  %v2225_v13 = vld [vmem:[%s2798_s0 + $0x180] ss:$8 sps:$4 sm:$0xff]  }
  0x56   :  { %1453 = vrot.lane.b32.xlu1 %v1452_v19, %s1527_s24  ;;  %1448 = vrot.lane.b32.xlu0 %v1447_v11, %s1527_s24  ;;  %v2196_v19 = vld [vmem:[%s2798_s0 + $0x170] ss:$8 sps:$4 sm:$0xff]   ;;  %v2201_v11 = vld [vmem:[%s2798_s0 + $0x17c] sm:$0x7]  ;;  %2996 = vst [vmem:[#allocation32_spill] sm:$0xff] %v2225_v13  ;;  %v2928_v31 = vunpack.c.l.bf16 %v2225_v13 }
  0x57   :  { %2992 = vst [vmem:[#allocation29_spill] sm:$0xff] %v2196_v19  ;;  %2993 = vst [vmem:[#allocation30_spill] sm:$0xff] %v2201_v11  ;;  %v2919_v10 = vunpack.c.h.bf16 %v2196_v19  ;;  %v2922_v37 = vunpack.c.l.bf16 %v2201_v11  ;;  %v2920_v24 = vunpack.c.l.bf16 %v2196_v19 }
  0x59   :  { %v1482_v33 = vpack.i.bf16 %v2922_v37, %v2919_v10  ;;  %v1477_v29 = vpack.i.bf16 %v2921_v12, %v2920_v24  ;;  %v2264_v10 = vld [vmem:[%s2798_s0 + $0x194] sm:$0x7]  ;;  %v3002_v24 = vunpack.c.h.bf16 %v2225_v13 }
  0x5a   :  { %1463 = vrot.lane.b32.xlu1 %v1462_v6, %s1527_s24  ;;  %1458 = vrot.lane.b32.xlu0 %v1457_v41, %s1527_s24  ;;  %v2230_v6 = vld [vmem:[%s2798_s0 + $0x18c] sm:$0x7]  ;;  %v2235_v41 = vld [vmem:[%s2798_s0 + $0x184] sm:$0x7]  ;;  %3001 = vst [vmem:[#allocation37_spill] sm:$0xff] %v2264_v10  ;;  %v2936_v3 = vunpack.c.l.bf16 %v2264_v10 }
  0x5b   :  { %2997 = vst [vmem:[#allocation33_spill] sm:$0xff] %v2230_v6  ;;  %2998 = vst [vmem:[#allocation34_spill] sm:$0xff] %v2235_v41  ;;  %v2930_v20 = vunpack.c.l.bf16 %v2230_v6  ;;  %v2929_v38 = vunpack.c.l.bf16 %v2235_v41 }
  0x5d   :  { %v1492_v12 = vpack.i.bf16 %v2930_v20, %v3002_v24  ;;  %v1487_v23 = vpack.i.bf16 %v2929_v38, %v2928_v31  ;;  %v2283_v24 = vld [vmem:[%s2798_s0 + $0x1a0] ss:$8 sps:$4 sm:$0xff]  }
  0x5e   :  { %1473 = vrot.lane.b32.xlu1 %v1472_v5, %s1527_s24  ;;  %1468 = vrot.lane.b32.xlu0 %v1467_v4, %s1527_s24  ;;  %v2254_v5 = vld [vmem:[%s2798_s0 + $0x190] ss:$8 sps:$4 sm:$0xff]   ;;  %v2259_v4 = vld [vmem:[%s2798_s0 + $0x19c] sm:$0x7]  ;;  %3003 = vst [vmem:[#allocation38_spill] sm:$0xff] %v2283_v24  ;;  %v2943_v13 = vunpack.c.l.bf16 %v2283_v24 }
  0x5f   :  { %2999 = vst [vmem:[#allocation35_spill] sm:$0xff] %v2254_v5  ;;  %3000 = vst [vmem:[#allocation36_spill] sm:$0xff] %v2259_v4  ;;  %v2934_v37 = vunpack.c.h.bf16 %v2254_v5  ;;  %v2937_v19 = vunpack.c.l.bf16 %v2259_v4  ;;  %v2935_v11 = vunpack.c.l.bf16 %v2254_v5 }
  0x61   :  { %v1502_v20 = vpack.i.bf16 %v2937_v19, %v2934_v37  ;;  %v1497_v41 = vpack.i.bf16 %v2936_v3, %v2935_v11  ;;  %v2322_v37 = vld [vmem:[%s2798_s0 + $0x1b4] sm:$0x7]  ;;  %v3009_v11 = vunpack.c.h.bf16 %v2283_v24 }
  0x62   :  { %1483 = vrot.lane.b32.xlu1 %v1482_v33, %s1527_s24  ;;  %1478 = vrot.lane.b32.xlu0 %v1477_v29, %s1527_s24  ;;  %v2288_v33 = vld [vmem:[%s2798_s0 + $0x1ac] sm:$0x7]  ;;  %v2293_v29 = vld [vmem:[%s2798_s0 + $0x1a4] sm:$0x7]  ;;  %3008 = vst [vmem:[#allocation43_spill] sm:$0xff] %v2322_v37  ;;  %v2957_v6 = vunpack.c.l.bf16 %v2322_v37 }
  0x63   :  { %3004 = vst [vmem:[#allocation39_spill] sm:$0xff] %v2288_v33  ;;  %3005 = vst [vmem:[#allocation40_spill] sm:$0xff] %v2293_v29  ;;  %v2945_v38 = vunpack.c.l.bf16 %v2288_v33  ;;  %v2944_v31 = vunpack.c.l.bf16 %v2293_v29 }
  0x65   :  { %v1512_v3 = vpack.i.bf16 %v2945_v38, %v3009_v11  ;;  %v1507_v10 = vpack.i.bf16 %v2944_v31, %v2943_v13 }
  0x66   :  { %1493 = vrot.lane.b32.xlu1 %v1492_v12, %s1527_s24  ;;  %1488 = vrot.lane.b32.xlu0 %v1487_v23, %s1527_s24  ;;  %v2312_v12 = vld [vmem:[%s2798_s0 + $0x1b0] ss:$8 sps:$4 sm:$0xff]   ;;  %v2317_v23 = vld [vmem:[%s2798_s0 + $0x1bc] sm:$0x7] }
  0x67   :  { %3006 = vst [vmem:[#allocation41_spill] sm:$0xff] %v2312_v12  ;;  %3007 = vst [vmem:[#allocation42_spill] sm:$0xff] %v2317_v23  ;;  %v2951_v19 = vunpack.c.h.bf16 %v2312_v12  ;;  %v2952_v5 = vunpack.c.l.bf16 %v2317_v23  ;;  %v2956_v4 = vunpack.c.l.bf16 %v2312_v12  ;;  %v3010_v12 = vunpack.c.l.bf16 %v1546_v1 }
  0x68   :  { %v3017_v1 = vunpack.c.l.bf16 %v1560_v7 }
  0x69   :  { %v1517_v11 = vpack.i.bf16 %v2957_v6, %v2956_v4  ;;  %v3011_v4 = vunpack.c.h.bf16 %v1541_v0 }
  0x6a   :  { %1503 = vrot.lane.b32.xlu1 %v1502_v20, %s1527_s24  ;;  %1498 = vrot.lane.b32.xlu0 %v1497_v41, %s1527_s24  ;;  %v1522_v20 = vpack.i.bf16 %v2952_v5, %v2951_v19 }
  0x6e   :  { %1513 = vrot.lane.b32.xlu1 %v1512_v3, %s1527_s24  ;;  %1508 = vrot.lane.b32.xlu0 %v1507_v10, %s1527_s24 }
  0x72   :  { %1523 = vrot.lane.b32.xlu1 %v1522_v20, %s1527_s24  ;;  %1518 = vrot.lane.b32.xlu0 %v1517_v11, %s1527_s24  ;;  %v3012_v11 = vunpack.c.l.bf16 %v1551_v2 }
  0x78   :  { %v1259_v41 = vpop.permute.xlu1 %1258  ;;  %v1249_v13 = vpop.permute.xlu0 %1248 }
  0x79   :  { %v1261_v31 = vunpack.i.h.bf16 %v1259_v41  ;;  %v1260_v3 = vunpack.i.l.bf16 %v1259_v41  ;;  %v1251_v38 = vunpack.i.h.bf16 %v1249_v13  ;;  %v1250_v10 = vunpack.i.l.bf16 %v1249_v13 }
  0x7a   :  { %v3014_v13 = vunpack.c.l.bf16 %v1565_v8 }
  0x7b   :  { %v685_v37 = vmax.f32 %v3010_v12, %v1261_v31  ;;  %v684_v20 = vmax.f32 %v3011_v4, %v1260_v3  ;;  %v681_v6 = vmax.f32 %v3012_v11, %v1251_v38  ;;  %v680_v41 = vmax.f32 %v3013_v42, %v1250_v10 }
  0x7c   :  { %v1264_v29 = vpop.permute.xlu1 %1263  ;;  %v1254_v24 = vpop.permute.xlu0 %1253 }
  0x7d   :  { %v1266_v33 = vunpack.i.h.bf16 %v1264_v29  ;;  %v1265_v23 = vunpack.i.l.bf16 %v1264_v29  ;;  %v1256_v19 = vunpack.i.h.bf16 %v1254_v24  ;;  %v1255_v5 = vunpack.i.l.bf16 %v1254_v24 }
  0x7e   :  { %v3016_v24 = vunpack.c.l.bf16 %v1570_v9 }
  0x7f   :  { %v687_v55 = vmax.f32 %v3014_v13, %v1266_v33  ;;  %v686_v29 = vmax.f32 %v3015_v49, %v1265_v23  ;;  %v682_v31 = vmax.f32 %v3017_v1, %v1255_v5  ;;  %v3019_v5 = vunpack.c.h.bf16 %v1579_v14 }
  0x80   :  { %v683_v32 = vmax.f32 %v3016_v24, %v1256_v19  ;;  %v1274_v4 = vpop.permute.xlu1 %1273  ;;  %v1269_v2 = vpop.permute.xlu0 %1268  ;;  %v3018_v19 = vunpack.c.l.bf16 %v1584_v15  ;;  %v3020_v24 = vunpack.c.l.bf16 %v1589_v16 }
  0x81   :  { %v794_v38 = vmax.f32 %v684_v20, %v686_v29  ;;  %v795_v12 = vmax.f32 %v685_v37, %v687_v55  ;;  %v792_v0 = vmax.f32 %v680_v41, %v682_v31  ;;  %v1276_v3 = vunpack.i.h.bf16 %v1274_v4 }
  0x82   :  { %v793_v42 = vmax.f32 %v681_v6, %v683_v32  ;;  %v1275_v8 = vunpack.i.l.bf16 %v1274_v4  ;;  %v1271_v33 = vunpack.i.h.bf16 %v1269_v2  ;;  %v1270_v10 = vunpack.i.l.bf16 %v1269_v2 }
  0x83   :  { %v1192_v11 = vpack.c.bf16 %v794_v38, %v794_v38  ;;  %v1193_v49 = vpack.c.bf16 %v795_v12, %v795_v12  ;;  %v1190_v23 = vpack.c.bf16 %v792_v0, %v792_v0  ;;  %v691_v7 = vmax.f32 %v3018_v19, %v1276_v3 }
  0x84   :  { %v1191_v9 = vpack.c.bf16 %v793_v42, %v793_v42  ;;  %v690_v13 = vmax.f32 %v3019_v5, %v1275_v8  ;;  %v689_v20 = vmax.f32 %v3020_v24, %v1271_v33  ;;  %v3021_v55 = vunpack.c.l.bf16 %v1579_v14  ;;  %v1284_v37 = vpop.permute.xlu1 %1283  ;;  %v1279_v6 = vpop.permute.xlu0 %1278 }
  0x85   :  { %1076 = vst.msk [vmem:[%s2799_s1 + $0x8] sm:$0xf] %vm1072_vm0, %v1192_v11  ;;  %1073 = vst.msk [vmem:[%s2799_s1] sm:$0xf] %vm1072_vm0, %v1190_v23  ;;  %v1286_v14 = vunpack.i.h.bf16 %v1284_v37  ;;  %v1285_v15 = vunpack.i.l.bf16 %v1284_v37  ;;  %v1281_v16 = vunpack.i.h.bf16 %v1279_v6  ;;  %v1280_v41 = vunpack.i.l.bf16 %v1279_v6 }
  0x86   :  { %v688_v32 = vmax.f32 %v3021_v55, %v1270_v10  ;;  %1077 = vst.msk [vmem:[%s2799_s1 + $0xc] sm:$0x7] %vm1074_vm1, %v1193_v49  ;;  %1075 = vst.msk [vmem:[%s2799_s1 + $0x4] sm:$0x7] %vm1074_vm1, %v1191_v9  ;;  %v797_v29 = vmax.f32 %v689_v20, %v691_v7  ;;  %v3022_v31 = vunpack.c.l.bf16 %v1621_v26  ;;  %v3023_v2 = vunpack.c.h.bf16 %v1616_v25 }
  0x87   :  { %v3024_v12 = vunpack.c.l.bf16 %v1626_v27  ;;  %v3025_v42 = vunpack.c.l.bf16 %v1616_v25  ;;  %v3026_v5 = vunpack.c.l.bf16 %v1650_v35  ;;  %v3027_v24 = vunpack.c.h.bf16 %v1645_v34 }
  0x88   :  { %v796_v1 = vmax.f32 %v688_v32, %v690_v13  ;;  %v695_v4 = vmax.f32 %v3022_v31, %v1286_v14  ;;  %v694_v38 = vmax.f32 %v3023_v2, %v1285_v15  ;;  %v1195_v8 = vpack.c.bf16 %v797_v29, %v797_v29  ;;  %v1294_v10 = vpop.permute.xlu1 %1293  ;;  %v1289_v11 = vpop.permute.xlu0 %1288 }
  0x89   :  { %v693_v0 = vmax.f32 %v3024_v12, %v1281_v16  ;;  %v692_v3 = vmax.f32 %v3025_v42, %v1280_v41  ;;  %v1296_v9 = vunpack.i.h.bf16 %v1294_v10  ;;  %v1295_v19 = vunpack.i.l.bf16 %v1294_v10 }
  0x8a   :  { %v1194_v33 = vpack.c.bf16 %v796_v1, %v796_v1  ;;  %1079 = vst.msk [vmem:[%s2799_s1 + $0x14] sm:$0x7] %vm1074_vm1, %v1195_v8  ;;  %v1291_v25 = vunpack.i.h.bf16 %v1289_v11  ;;  %v1290_v26 = vunpack.i.l.bf16 %v1289_v11  ;;  %v3028_v55 = vunpack.c.l.bf16 %v1655_v36 }
  0x8b   :  { %v799_v49 = vmax.f32 %v693_v0, %v695_v4  ;;  %v798_v23 = vmax.f32 %v692_v3, %v694_v38  ;;  %v699_v13 = vmax.f32 %v3026_v5, %v1296_v9  ;;  %v698_v20 = vmax.f32 %v3027_v24, %v1295_v19 }
  0x8c   :  { %1078 = vst.msk [vmem:[%s2799_s1 + $0x10] sm:$0xf] %vm1072_vm0, %v1194_v33  ;;  %v697_v32 = vmax.f32 %v3028_v55, %v1291_v25  ;;  %v3029_v37 = vunpack.c.l.bf16 %v1645_v34  ;;  %v1304_v14 = vpop.permute.xlu1 %1303  ;;  %v1299_v15 = vpop.permute.xlu0 %1298  ;;  %v3030_v34 = vunpack.c.l.bf16 %v1679_v44  ;;  %v3031_v4 = vunpack.c.h.bf16 %v1674_v43 }
  0x8d   :  { %v1197_v27 = vpack.c.bf16 %v799_v49, %v799_v49  ;;  %v1196_v7 = vpack.c.bf16 %v798_v23, %v798_v23  ;;  %v1306_v35 = vunpack.i.h.bf16 %v1304_v14  ;;  %v1305_v16 = vunpack.i.l.bf16 %v1304_v14 }
  0x8e   :  { %v696_v6 = vmax.f32 %v3029_v37, %v1290_v26  ;;  %v1301_v41 = vunpack.i.h.bf16 %v1299_v15  ;;  %v1300_v36 = vunpack.i.l.bf16 %v1299_v15  ;;  %v801_v29 = vmax.f32 %v697_v32, %v699_v13 }
  0x8f   :  { %1081 = vst.msk [vmem:[%s2799_s1 + $0x1c] sm:$0x7] %vm1074_vm1, %v1197_v27  ;;  %v703_v31 = vmax.f32 %v3030_v34, %v1306_v35  ;;  %v702_v2 = vmax.f32 %v3031_v4, %v1305_v16  ;;  %v3032_v38 = vunpack.c.l.bf16 %v1684_v45  ;;  %v3033_v0 = vunpack.c.l.bf16 %v1674_v43 }
  0x90   :  { %1080 = vst.msk [vmem:[%s2799_s1 + $0x18] sm:$0xf] %vm1072_vm0, %v1196_v7  ;;  %v800_v1 = vmax.f32 %v696_v6, %v698_v20  ;;  %v1199_v3 = vpack.c.bf16 %v801_v29, %v801_v29  ;;  %v1314_v33 = vpop.permute.xlu1 %1313  ;;  %v1309_v10 = vpop.permute.xlu0 %1308  ;;  %v3034_v25 = vunpack.c.l.bf16 %v1708_v53  ;;  %v3035_v27 = vunpack.c.h.bf16 %v1703_v52 }
  0x91   :  { %v701_v12 = vmax.f32 %v3032_v38, %v1301_v41  ;;  %v700_v42 = vmax.f32 %v3033_v0, %v1300_v36  ;;  %v1316_v23 = vunpack.i.h.bf16 %v1314_v33  ;;  %v1315_v9 = vunpack.i.l.bf16 %v1314_v33 }
  0x92   :  { %v1198_v8 = vpack.c.bf16 %v800_v1, %v800_v1  ;;  %1083 = vst.msk [vmem:[%s2799_s1 + $0x24] sm:$0x7] %vm1074_vm1, %v1199_v3  ;;  %v1311_v43 = vunpack.i.h.bf16 %v1309_v10  ;;  %v1310_v44 = vunpack.i.l.bf16 %v1309_v10  ;;  %v3036_v5 = vunpack.c.l.bf16 %v1713_v54 }
  0x93   :  { %v803_v11 = vmax.f32 %v701_v12, %v703_v31  ;;  %v802_v49 = vmax.f32 %v700_v42, %v702_v2  ;;  %v707_v26 = vmax.f32 %v3034_v25, %v1316_v23  ;;  %v706_v7 = vmax.f32 %v3035_v27, %v1315_v9 }
  0x94   :  { %1082 = vst.msk [vmem:[%s2799_s1 + $0x20] sm:$0xf] %vm1072_vm0, %v1198_v8  ;;  %v705_v13 = vmax.f32 %v3036_v5, %v1311_v43  ;;  %v3037_v24 = vunpack.c.l.bf16 %v1703_v52  ;;  %v1324_v55 = vpop.permute.xlu1 %1323  ;;  %v1319_v32 = vpop.permute.xlu0 %1318  ;;  %v3038_v52 = vunpack.c.l.bf16 %v1737_v62  ;;  %v3039_v16 = vunpack.c.h.bf16 %v1732_v61 }
  0x95   :  { %v1201_v45 = vpack.c.bf16 %v803_v11, %v803_v11  ;;  %v1200_v19 = vpack.c.bf16 %v802_v49, %v802_v49  ;;  %v1326_v53 = vunpack.i.h.bf16 %v1324_v55  ;;  %v1325_v37 = vunpack.i.l.bf16 %v1324_v55 }
  0x96   :  { %v704_v20 = vmax.f32 %v3037_v24, %v1310_v44  ;;  %v1321_v6 = vunpack.i.h.bf16 %v1319_v32  ;;  %v1320_v54 = vunpack.i.l.bf16 %v1319_v32  ;;  %v805_v14 = vmax.f32 %v705_v13, %v707_v26 }
  0x97   :  { %1085 = vst.msk [vmem:[%s2799_s1 + $0x2c] sm:$0x7] %vm1074_vm1, %v1201_v45  ;;  %v711_v35 = vmax.f32 %v3038_v52, %v1326_v53  ;;  %v710_v41 = vmax.f32 %v3039_v16, %v1325_v37  ;;  %v3040_v36 = vunpack.c.l.bf16 %v1742_v63  ;;  %v3041_v1 = vunpack.c.l.bf16 %v1732_v61 }
  0x98   :  { %1084 = vst.msk [vmem:[%s2799_s1 + $0x28] sm:$0xf] %vm1072_vm0, %v1200_v19  ;;  %v804_v15 = vmax.f32 %v704_v20, %v706_v7  ;;  %v1203_v31 = vpack.c.bf16 %v805_v14, %v805_v14  ;;  %v1334_v2 = vpop.permute.xlu1 %1333  ;;  %v1329_v38 = vpop.permute.xlu0 %1328  ;;  %v3042_v33 = vunpack.c.l.bf16 %v1766_v40  ;;  %v3043_v11 = vunpack.c.h.bf16 %v1761_v39 }
  0x99   :  { %v709_v29 = vmax.f32 %v3040_v36, %v1321_v6  ;;  %v708_v34 = vmax.f32 %v3041_v1, %v1320_v54  ;;  %v1336_v42 = vunpack.i.h.bf16 %v1334_v2  ;;  %v1335_v3 = vunpack.i.l.bf16 %v1334_v2 }
  0x9a   :  { %v1202_v4 = vpack.c.bf16 %v804_v15, %v804_v15  ;;  %1087 = vst.msk [vmem:[%s2799_s1 + $0x34] sm:$0x7] %vm1074_vm1, %v1203_v31  ;;  %v1331_v61 = vunpack.i.h.bf16 %v1329_v38  ;;  %v1330_v62 = vunpack.i.l.bf16 %v1329_v38  ;;  %v3044_v23 = vunpack.c.l.bf16 %v1771_v46 }
  0x9b   :  { %v807_v12 = vmax.f32 %v709_v29, %v711_v35  ;;  %v806_v0 = vmax.f32 %v708_v34, %v710_v41  ;;  %v715_v10 = vmax.f32 %v3042_v33, %v1336_v42  ;;  %v714_v49 = vmax.f32 %v3043_v11, %v1335_v3 }
  0x9c   :  { %1086 = vst.msk [vmem:[%s2799_s1 + $0x30] sm:$0xf] %vm1072_vm0, %v1202_v4  ;;  %v713_v9 = vmax.f32 %v3044_v23, %v1331_v61  ;;  %v3045_v43 = vunpack.c.l.bf16 %v1761_v39  ;;  %v1344_v45 = vpop.permute.xlu1 %1343  ;;  %v1339_v19 = vpop.permute.xlu0 %1338  ;;  %v3046_v39 = vunpack.c.l.bf16 %v1795_v21  ;;  %v3047_v13 = vunpack.c.h.bf16 %v1790_v17 }
  0x9d   :  { %v1205_v63 = vpack.c.bf16 %v807_v12, %v807_v12  ;;  %v1204_v8 = vpack.c.bf16 %v806_v0, %v806_v0  ;;  %v1346_v40 = vunpack.i.h.bf16 %v1344_v45  ;;  %v1345_v25 = vunpack.i.l.bf16 %v1344_v45 }
  0x9e   :  { %v712_v44 = vmax.f32 %v3045_v43, %v1330_v62  ;;  %v1341_v26 = vunpack.i.h.bf16 %v1339_v19  ;;  %v1340_v46 = vunpack.i.l.bf16 %v1339_v19  ;;  %v809_v27 = vmax.f32 %v713_v9, %v715_v10 }
  0x9f   :  { %1089 = vst.msk [vmem:[%s2799_s1 + $0x3c] sm:$0x7] %vm1074_vm1, %v1205_v63  ;;  %v719_v5 = vmax.f32 %v3046_v39, %v1346_v40  ;;  %v718_v24 = vmax.f32 %v3047_v13, %v1345_v25  ;;  %v3048_v20 = vunpack.c.l.bf16 %v1800_v18  ;;  %v3049_v32 = vunpack.c.l.bf16 %v1790_v17 }
  0xa0   :  { %1088 = vst.msk [vmem:[%s2799_s1 + $0x38] sm:$0xf] %vm1072_vm0, %v1204_v8  ;;  %v808_v7 = vmax.f32 %v712_v44, %v714_v49  ;;  %v1207_v37 = vpack.c.bf16 %v809_v27, %v809_v27  ;;  %v1354_v54 = vpop.permute.xlu1 %1353  ;;  %v1349_v14 = vpop.permute.xlu0 %1348  ;;  %v3050_v36 = vunpack.c.l.bf16 %v1824_v59  ;;  %v3051_v1 = vunpack.c.h.bf16 %v1819_v48 }
  0xa1   :  { %v717_v55 = vmax.f32 %v3048_v20, %v1341_v26  ;;  %v716_v53 = vmax.f32 %v3049_v32, %v1340_v46  ;;  %v1356_v35 = vunpack.i.h.bf16 %v1354_v54  ;;  %v1355_v16 = vunpack.i.l.bf16 %v1354_v54 }
  0xa2   :  { %v1206_v6 = vpack.c.bf16 %v808_v7, %v808_v7  ;;  %1091 = vst.msk [vmem:[%s2799_s1 + $0x44] sm:$0x7] %vm1074_vm1, %v1207_v37  ;;  %v1351_v18 = vunpack.i.h.bf16 %v1349_v14  ;;  %v1350_v17 = vunpack.i.l.bf16 %v1349_v14  ;;  %v3052_v31 = vunpack.c.l.bf16 %v1829_v58 }
  0xa3   :  { %v811_v15 = vmax.f32 %v717_v55, %v719_v5  ;;  %v810_v52 = vmax.f32 %v716_v53, %v718_v24  ;;  %v723_v29 = vmax.f32 %v3050_v36, %v1356_v35  ;;  %v722_v34 = vmax.f32 %v3051_v1, %v1355_v16 }
  0xa4   :  { %1090 = vst.msk [vmem:[%s2799_s1 + $0x40] sm:$0xf] %vm1072_vm0, %v1206_v6  ;;  %v721_v4 = vmax.f32 %v3052_v31, %v1351_v18  ;;  %v3053_v2 = vunpack.c.l.bf16 %v1819_v48  ;;  %v1364_v12 = vpop.permute.xlu1 %1363  ;;  %v1359_v0 = vpop.permute.xlu0 %1358  ;;  %v3054_v48 = vunpack.c.l.bf16 %v1853_v22  ;;  %v3055_v8 = vunpack.c.h.bf16 %v1848_v28 }
  0xa5   :  { %v1209_v21 = vpack.c.bf16 %v811_v15, %v811_v15  ;;  %v1208_v41 = vpack.c.bf16 %v810_v52, %v810_v52  ;;  %v1366_v59 = vunpack.i.h.bf16 %v1364_v12  ;;  %v1365_v42 = vunpack.i.l.bf16 %v1364_v12  ;;  %v3066_v12 = vld [vmem:[#allocation3_spill] sm:$0xff] }
  0xa6   :  { %v720_v38 = vmax.f32 %v3053_v2, %v1350_v17  ;;  %v1361_v3 = vunpack.i.h.bf16 %v1359_v0  ;;  %v1360_v58 = vunpack.i.l.bf16 %v1359_v0  ;;  %v813_v61 = vmax.f32 %v721_v4, %v723_v29 }
  0xa7   :  { %1093 = vst.msk [vmem:[%s2799_s1 + $0x4c] sm:$0x7] %vm1074_vm1, %v1209_v21  ;;  %v727_v63 = vmax.f32 %v3054_v48, %v1366_v59  ;;  %v726_v33 = vmax.f32 %v3055_v8, %v1365_v42  ;;  %v3056_v10 = vunpack.c.l.bf16 %v1858_v30  ;;  %v3057_v49 = vunpack.c.l.bf16 %v1848_v28  ;;  %v3068_v42 = vld [vmem:[#allocation2_spill] sm:$0xff] }
  0xa8   :  { %1092 = vst.msk [vmem:[%s2799_s1 + $0x48] sm:$0xf] %vm1072_vm0, %v1208_v41  ;;  %v812_v62 = vmax.f32 %v720_v38, %v722_v34  ;;  %v1211_v9 = vpack.c.bf16 %v813_v61, %v813_v61  ;;  %v1374_v44 = vpop.permute.xlu1 %1373  ;;  %v1369_v45 = vpop.permute.xlu0 %1368  ;;  %v3058_v27 = vunpack.c.l.bf16 %v1882_v47  ;;  %v3059_v39 = vunpack.c.h.bf16 %v1877_v60  ;;  %v3070_v61 = vld [vmem:[#allocation4_spill] sm:$0xff] }
  0xa9   :  { %v725_v11 = vmax.f32 %v3056_v10, %v1361_v3  ;;  %v724_v23 = vmax.f32 %v3057_v49, %v1360_v58  ;;  %v1376_v25 = vunpack.i.h.bf16 %v1374_v44  ;;  %v1375_v26 = vunpack.i.l.bf16 %v1374_v44 }
  0xaa   :  { %v1210_v43 = vpack.c.bf16 %v812_v62, %v812_v62  ;;  %1095 = vst.msk [vmem:[%s2799_s1 + $0x54] sm:$0x7] %vm1074_vm1, %v1211_v9  ;;  %v1371_v30 = vunpack.i.h.bf16 %v1369_v45  ;;  %v1370_v28 = vunpack.i.l.bf16 %v1369_v45  ;;  %v3060_v13 = vunpack.c.l.bf16 %v1887_v57  ;;  %v3073_v45 = vld [vmem:[#allocation6_spill] sm:$0xff] }
  0xab   :  { %v815_v19 = vmax.f32 %v725_v11, %v727_v63  ;;  %v814_v40 = vmax.f32 %v724_v23, %v726_v33  ;;  %v731_v7 = vmax.f32 %v3058_v27, %v1376_v25  ;;  %v730_v5 = vmax.f32 %v3059_v39, %v1375_v26  ;;  %v3075_v25 = vld [vmem:[#allocation5_spill] sm:$0xff] }
  0xac   :  { %1094 = vst.msk [vmem:[%s2799_s1 + $0x50] sm:$0xf] %vm1072_vm0, %v1210_v43  ;;  %v729_v24 = vmax.f32 %v3060_v13, %v1371_v30  ;;  %v3061_v20 = vunpack.c.l.bf16 %v1877_v60  ;;  %v1384_v32 = vpop.permute.xlu1 %1383  ;;  %v1379_v53 = vpop.permute.xlu0 %1378  ;;  %v3062_v60 = vunpack.c.l.bf16 %v1911_v56  ;;  %v3063_v52 = vunpack.c.h.bf16 %v1906_v50 }
  0xad   :  { %v1213_v22 = vpack.c.bf16 %v815_v19, %v815_v19  ;;  %v1212_v46 = vpack.c.bf16 %v814_v40, %v814_v40  ;;  %v1386_v47 = vunpack.i.h.bf16 %v1384_v32  ;;  %v1385_v37 = vunpack.i.l.bf16 %v1384_v32 }
  0xae   :  { %v728_v55 = vmax.f32 %v3061_v20, %v1370_v28  ;;  %v1381_v6 = vunpack.i.h.bf16 %v1379_v53  ;;  %v1380_v57 = vunpack.i.l.bf16 %v1379_v53  ;;  %v817_v54 = vmax.f32 %v729_v24, %v731_v7  ;;  %v3077_v28 = vld [vmem:[#allocation7_spill] sm:$0xff] }
  0xaf   :  { %1097 = vst.msk [vmem:[%s2799_s1 + $0x5c] sm:$0x7] %vm1074_vm1, %v1213_v22  ;;  %v735_v15 = vmax.f32 %v3062_v60, %v1386_v47  ;;  %v734_v35 = vmax.f32 %v3063_v52, %v1385_v37  ;;  %v3064_v16 = vunpack.c.l.bf16 %v1916_v51  ;;  %v3065_v17 = vunpack.c.l.bf16 %v1906_v50 }
  0xb0   :  { %1096 = vst.msk [vmem:[%s2799_s1 + $0x58] sm:$0xf] %vm1072_vm0, %v1212_v46  ;;  %v816_v14 = vmax.f32 %v728_v55, %v730_v5  ;;  %v1215_v41 = vpack.c.bf16 %v817_v54, %v817_v54  ;;  %v1394_v29 = vpop.permute.xlu1 %1393  ;;  %v1389_v1 = vpop.permute.xlu0 %1388  ;;  %v3067_v0 = vunpack.c.l.bf16 %v3066_v12  ;;  %v3069_v3 = vunpack.c.h.bf16 %v3068_v42  ;;  %v3080_v54 = vld [vmem:[#allocation9_spill] sm:$0xff]  ;;  %v3089_v12 = vld [vmem:[#allocation11_spill] sm:$0xff] }
  0xb1   :  { %v733_v18 = vmax.f32 %v3064_v16, %v1381_v6  ;;  %v732_v21 = vmax.f32 %v3065_v17, %v1380_v57  ;;  %v1396_v4 = vunpack.i.h.bf16 %v1394_v29  ;;  %v1395_v2 = vunpack.i.l.bf16 %v1394_v29  ;;  %v3084_v16 = vld [vmem:[#allocation10_spill] sm:$0xff] }
  0xb2   :  { %v1214_v36 = vpack.c.bf16 %v816_v14, %v816_v14  ;;  %1099 = vst.msk [vmem:[%s2799_s1 + $0x64] sm:$0x7] %vm1074_vm1, %v1215_v41  ;;  %v1391_v51 = vunpack.i.h.bf16 %v1389_v1  ;;  %v1390_v50 = vunpack.i.l.bf16 %v1389_v1  ;;  %v3071_v62 = vunpack.c.l.bf16 %v3070_v61 }
  0xb3   :  { %v819_v34 = vmax.f32 %v733_v18, %v735_v15  ;;  %v818_v31 = vmax.f32 %v732_v21, %v734_v35  ;;  %v739_v59 = vmax.f32 %v3067_v0, %v1396_v4  ;;  %v738_v58 = vmax.f32 %v3069_v3, %v1395_v2  ;;  %v3082_v15 = vld [vmem:[#allocation8_spill] sm:$0xff] }
  0xb4   :  { %1098 = vst.msk [vmem:[%s2799_s1 + $0x60] sm:$0xf] %vm1072_vm0, %v1214_v36  ;;  %v737_v48 = vmax.f32 %v3071_v62, %v1391_v51  ;;  %v3072_v63 = vunpack.c.l.bf16 %v3068_v42  ;;  %v1404_v33 = vpop.permute.xlu1 %1403  ;;  %v1399_v10 = vpop.permute.xlu0 %1398  ;;  %v3074_v19 = vunpack.c.l.bf16 %v3073_v45  ;;  %v3076_v26 = vunpack.c.h.bf16 %v3075_v25  ;;  %v3091_v42 = vld [vmem:[#allocation13_spill] sm:$0xff] }
  0xb5   :  { %v1217_v56 = vpack.c.bf16 %v819_v34, %v819_v34  ;;  %v1216_v38 = vpack.c.bf16 %v818_v31, %v818_v31  ;;  %v1406_v11 = vunpack.i.h.bf16 %v1404_v33  ;;  %v1405_v49 = vunpack.i.l.bf16 %v1404_v33 }
  0xb6   :  { %v736_v8 = vmax.f32 %v3072_v63, %v1390_v50  ;;  %v1401_v23 = vunpack.i.h.bf16 %v1399_v10  ;;  %v1400_v9 = vunpack.i.l.bf16 %v1399_v10  ;;  %v821_v43 = vmax.f32 %v737_v48, %v739_v59  ;;  %v3087_v50 = vld [vmem:[#allocation12_spill] sm:$0xff] }
  0xb7   :  { %1101 = vst.msk [vmem:[%s2799_s1 + $0x6c] sm:$0x7] %vm1074_vm1, %v1217_v56  ;;  %v743_v40 = vmax.f32 %v3074_v19, %v1406_v11  ;;  %v742_v30 = vmax.f32 %v3076_v26, %v1405_v49  ;;  %v3078_v22 = vunpack.c.l.bf16 %v3077_v28  ;;  %v3079_v27 = vunpack.c.l.bf16 %v3075_v25  ;;  %v3094_v19 = vld [vmem:[#allocation15_spill] sm:$0xff]  ;;  %v3096_v26 = vld [vmem:[#allocation14_spill] sm:$0xff] }
  0xb8   :  { %1100 = vst.msk [vmem:[%s2799_s1 + $0x68] sm:$0xf] %vm1072_vm0, %v1216_v38  ;;  %v820_v44 = vmax.f32 %v736_v8, %v738_v58  ;;  %v1219_v39 = vpack.c.bf16 %v821_v43, %v821_v43  ;;  %v1414_v13 = vpop.permute.xlu1 %1413  ;;  %v1409_v24 = vpop.permute.xlu0 %1408  ;;  %v3081_v14 = vunpack.c.l.bf16 %v3080_v54  ;;  %v3083_v52 = vunpack.c.h.bf16 %v3082_v15  ;;  %v3103_v54 = vld [vmem:[#allocation17_spill] sm:$0xff] }
  0xb9   :  { %v741_v46 = vmax.f32 %v3078_v22, %v1401_v23  ;;  %v740_v7 = vmax.f32 %v3079_v27, %v1400_v9  ;;  %v1416_v32 = vunpack.i.h.bf16 %v1414_v13  ;;  %v1415_v53 = vunpack.i.l.bf16 %v1414_v13  ;;  %v3098_v22 = vld [vmem:[#allocation16_spill] sm:$0xff] }
  0xba   :  { %v1218_v5 = vpack.c.bf16 %v820_v44, %v820_v44  ;;  %1103 = vst.msk [vmem:[%s2799_s1 + $0x74] sm:$0x7] %vm1074_vm1, %v1219_v39  ;;  %v1411_v47 = vunpack.i.h.bf16 %v1409_v24  ;;  %v1410_v37 = vunpack.i.l.bf16 %v1409_v24  ;;  %v3085_v18 = vunpack.c.l.bf16 %v3084_v16 }
  0xbb   :  { %v823_v20 = vmax.f32 %v741_v46, %v743_v40  ;;  %v822_v55 = vmax.f32 %v740_v7, %v742_v30  ;;  %v747_v60 = vmax.f32 %v3081_v14, %v1416_v32  ;;  %v746_v35 = vmax.f32 %v3083_v52, %v1415_v53 }
  0xbc   :  { %1102 = vst.msk [vmem:[%s2799_s1 + $0x70] sm:$0xf] %vm1072_vm0, %v1218_v5  ;;  %v745_v17 = vmax.f32 %v3085_v18, %v1411_v47  ;;  %v3086_v21 = vunpack.c.l.bf16 %v3082_v15  ;;  %v1424_v36 = vpop.permute.xlu1 %1423  ;;  %v1419_v29 = vpop.permute.xlu0 %1418  ;;  %v3088_v56 = vunpack.c.l.bf16 %v3087_v50  ;;  %v3090_v0 = vunpack.c.h.bf16 %v3089_v12  ;;  %v3105_v15 = vld [vmem:[#allocation19_spill] sm:$0xff] }
  0xbd   :  { %v1221_v6 = vpack.c.bf16 %v823_v20, %v823_v20  ;;  %v1220_v57 = vpack.c.bf16 %v822_v55, %v822_v55  ;;  %v1426_v1 = vunpack.i.h.bf16 %v1424_v36  ;;  %v1425_v34 = vunpack.i.l.bf16 %v1424_v36 }
  0xbe   :  { %v744_v41 = vmax.f32 %v3086_v21, %v1410_v37  ;;  %v1421_v31 = vunpack.i.h.bf16 %v1419_v29  ;;  %v1420_v4 = vunpack.i.l.bf16 %v1419_v29  ;;  %v825_v2 = vmax.f32 %v745_v17, %v747_v60  ;;  %v3101_v37 = vld [vmem:[#allocation18_spill] sm:$0xff] }
  0xbf   :  { %1105 = vst.msk [vmem:[%s2799_s1 + $0x7c] sm:$0x7] %vm1074_vm1, %v1221_v6  ;;  %v751_v38 = vmax.f32 %v3088_v56, %v1426_v1  ;;  %v750_v59 = vmax.f32 %v3090_v0, %v1425_v34  ;;  %v3092_v3 = vunpack.c.l.bf16 %v3091_v42  ;;  %v3093_v61 = vunpack.c.l.bf16 %v3089_v12  ;;  %v3108_v56 = vld [vmem:[#allocation21_spill] sm:$0xff]  ;;  %v3110_v0 = vld [vmem:[#allocation20_spill] sm:$0xff] }
  0xc0   :  { %1104 = vst.msk [vmem:[%s2799_s1 + $0x78] sm:$0xf] %vm1072_vm0, %v1220_v57  ;;  %v824_v51 = vmax.f32 %v744_v41, %v746_v35  ;;  %v1223_v48 = vpack.c.bf16 %v825_v2, %v825_v2  ;;  %v1434_v8 = vpop.permute.xlu1 %1433  ;;  %v1429_v33 = vpop.permute.xlu0 %1428  ;;  %v3095_v40 = vunpack.c.l.bf16 %v3094_v19  ;;  %v3097_v30 = vunpack.c.h.bf16 %v3096_v26  ;;  %v3117_v19 = vld [vmem:[#allocation23_spill] sm:$0xff] }
  0xc1   :  { %v749_v58 = vmax.f32 %v3092_v3, %v1421_v31  ;;  %v748_v62 = vmax.f32 %v3093_v61, %v1420_v4  ;;  %v1436_v49 = vunpack.i.h.bf16 %v1434_v8  ;;  %v1435_v23 = vunpack.i.l.bf16 %v1434_v8  ;;  %v3112_v3 = vld [vmem:[#allocation22_spill] sm:$0xff] }
  0xc2   :  { %v1222_v63 = vpack.c.bf16 %v824_v51, %v824_v51  ;;  %1107 = vst.msk [vmem:[%s2799_s1 + $0x84] sm:$0x7] %vm1074_vm1, %v1223_v48  ;;  %v1431_v9 = vunpack.i.h.bf16 %v1429_v33  ;;  %v1430_v43 = vunpack.i.l.bf16 %v1429_v33  ;;  %v3099_v46 = vunpack.c.l.bf16 %v3098_v22 }
  0xc3   :  { %v827_v10 = vmax.f32 %v749_v58, %v751_v38  ;;  %v826_v11 = vmax.f32 %v748_v62, %v750_v59  ;;  %v755_v25 = vmax.f32 %v3095_v40, %v1436_v49  ;;  %v754_v28 = vmax.f32 %v3097_v30, %v1435_v23 }
  0xc4   :  { %1106 = vst.msk [vmem:[%s2799_s1 + $0x80] sm:$0xf] %vm1072_vm0, %v1222_v63  ;;  %v753_v27 = vmax.f32 %v3099_v46, %v1431_v9  ;;  %v3100_v7 = vunpack.c.l.bf16 %v3096_v26  ;;  %v1444_v5 = vpop.permute.xlu1 %1443  ;;  %v1439_v13 = vpop.permute.xlu0 %1438  ;;  %v3102_v6 = vunpack.c.l.bf16 %v3101_v37  ;;  %v3104_v14 = vunpack.c.h.bf16 %v3103_v54  ;;  %v3119_v26 = vld [vmem:[#allocation25_spill] sm:$0xff] }
  0xc5   :  { %v1225_v44 = vpack.c.bf16 %v827_v10, %v827_v10  ;;  %v1224_v45 = vpack.c.bf16 %v826_v11, %v826_v11  ;;  %v1446_v24 = vunpack.i.h.bf16 %v1444_v5  ;;  %v1445_v20 = vunpack.i.l.bf16 %v1444_v5 }
  0xc6   :  { %v752_v39 = vmax.f32 %v3100_v7, %v1430_v43  ;;  %v1441_v55 = vunpack.i.h.bf16 %v1439_v13  ;;  %v1440_v32 = vunpack.i.l.bf16 %v1439_v13  ;;  %v829_v53 = vmax.f32 %v753_v27, %v755_v25  ;;  %v3115_v43 = vld [vmem:[#allocation24_spill] sm:$0xff] }
  0xc7   :  { %1109 = vst.msk [vmem:[%s2799_s1 + $0x8c] sm:$0x7] %vm1074_vm1, %v1225_v44  ;;  %v759_v57 = vmax.f32 %v3102_v6, %v1446_v24  ;;  %v758_v60 = vmax.f32 %v3104_v14, %v1445_v20  ;;  %v3106_v52 = vunpack.c.l.bf16 %v3105_v15  ;;  %v3107_v16 = vunpack.c.l.bf16 %v3103_v54  ;;  %v3122_v6 = vld [vmem:[#allocation27_spill] sm:$0xff]  ;;  %v3124_v14 = vld [vmem:[#allocation26_spill] sm:$0xff] }
  0xc8   :  { %1108 = vst.msk [vmem:[%s2799_s1 + $0x88] sm:$0xf] %vm1072_vm0, %v1224_v45  ;;  %v828_v47 = vmax.f32 %v752_v39, %v754_v28  ;;  %v1227_v17 = vpack.c.bf16 %v829_v53, %v829_v53  ;;  %v1454_v41 = vpop.permute.xlu1 %1453  ;;  %v1449_v36 = vpop.permute.xlu0 %1448  ;;  %v3109_v38 = vunpack.c.l.bf16 %v3108_v56  ;;  %v3111_v59 = vunpack.c.h.bf16 %v3110_v0  ;;  %v3131_v56 = vld [vmem:[#allocation29_spill] sm:$0xff] }
  0xc9   :  { %v757_v35 = vmax.f32 %v3106_v52, %v1441_v55  ;;  %v756_v18 = vmax.f32 %v3107_v16, %v1440_v32  ;;  %v1456_v34 = vunpack.i.h.bf16 %v1454_v41  ;;  %v1455_v31 = vunpack.i.l.bf16 %v1454_v41  ;;  %v3126_v52 = vld [vmem:[#allocation28_spill] sm:$0xff] }
  0xca   :  { %v1226_v21 = vpack.c.bf16 %v828_v47, %v828_v47  ;;  %1111 = vst.msk [vmem:[%s2799_s1 + $0x94] sm:$0x7] %vm1074_vm1, %v1227_v17  ;;  %v1451_v4 = vunpack.i.h.bf16 %v1449_v36  ;;  %v1450_v2 = vunpack.i.l.bf16 %v1449_v36  ;;  %v3113_v58 = vunpack.c.l.bf16 %v3112_v3 }
  0xcb   :  { %v831_v29 = vmax.f32 %v757_v35, %v759_v57  ;;  %v830_v1 = vmax.f32 %v756_v18, %v758_v60  ;;  %v763_v12 = vmax.f32 %v3109_v38, %v1456_v34  ;;  %v762_v42 = vmax.f32 %v3111_v59, %v1455_v31 }
  0xcc   :  { %1110 = vst.msk [vmem:[%s2799_s1 + $0x90] sm:$0xf] %vm1072_vm0, %v1226_v21  ;;  %v761_v61 = vmax.f32 %v3113_v58, %v1451_v4  ;;  %v3114_v62 = vunpack.c.l.bf16 %v3110_v0  ;;  %v1464_v63 = vpop.permute.xlu1 %1463  ;;  %v1459_v8 = vpop.permute.xlu0 %1458  ;;  %v3116_v44 = vunpack.c.l.bf16 %v3115_v43  ;;  %v3118_v40 = vunpack.c.h.bf16 %v3117_v19  ;;  %v3133_v0 = vld [vmem:[#allocation31_spill] sm:$0xff] }
  0xcd   :  { %v1229_v51 = vpack.c.bf16 %v831_v29, %v831_v29  ;;  %v1228_v50 = vpack.c.bf16 %v830_v1, %v830_v1  ;;  %v1466_v33 = vunpack.i.h.bf16 %v1464_v63  ;;  %v1465_v10 = vunpack.i.l.bf16 %v1464_v63 }
  0xce   :  { %v760_v48 = vmax.f32 %v3114_v62, %v1450_v2  ;;  %v1461_v11 = vunpack.i.h.bf16 %v1459_v8  ;;  %v1460_v49 = vunpack.i.l.bf16 %v1459_v8  ;;  %v833_v23 = vmax.f32 %v761_v61, %v763_v12  ;;  %v3129_v2 = vld [vmem:[#allocation30_spill] sm:$0xff] }
  0xcf   :  { %1113 = vst.msk [vmem:[%s2799_s1 + $0x9c] sm:$0x7] %vm1074_vm1, %v1229_v51  ;;  %v767_v45 = vmax.f32 %v3116_v44, %v1466_v33  ;;  %v766_v25 = vmax.f32 %v3118_v40, %v1465_v10  ;;  %v3120_v30 = vunpack.c.l.bf16 %v3119_v26  ;;  %v3121_v22 = vunpack.c.l.bf16 %v3117_v19  ;;  %v3136_v44 = vld [vmem:[#allocation33_spill] sm:$0xff]  ;;  %v3138_v40 = vld [vmem:[#allocation32_spill] sm:$0xff] }
  0xd0   :  { %1112 = vst.msk [vmem:[%s2799_s1 + $0x98] sm:$0xf] %vm1072_vm0, %v1228_v50  ;;  %v832_v9 = vmax.f32 %v760_v48, %v762_v42  ;;  %v1231_v27 = vpack.c.bf16 %v833_v23, %v833_v23  ;;  %v1474_v39 = vpop.permute.xlu1 %1473  ;;  %v1469_v5 = vpop.permute.xlu0 %1468  ;;  %v3123_v57 = vunpack.c.l.bf16 %v3122_v6  ;;  %v3125_v60 = vunpack.c.h.bf16 %v3124_v14  ;;  %v3145_v6 = vld [vmem:[#allocation35_spill] sm:$0xff] }
  0xd1   :  { %v765_v28 = vmax.f32 %v3120_v30, %v1461_v11  ;;  %v764_v46 = vmax.f32 %v3121_v22, %v1460_v49  ;;  %v1476_v20 = vunpack.i.h.bf16 %v1474_v39  ;;  %v1475_v55 = vunpack.i.l.bf16 %v1474_v39  ;;  %v3140_v30 = vld [vmem:[#allocation34_spill] sm:$0xff] }
  0xd2   :  { %v1230_v7 = vpack.c.bf16 %v832_v9, %v832_v9  ;;  %1115 = vst.msk [vmem:[%s2799_s1 + $0xa4] sm:$0x7] %vm1074_vm1, %v1231_v27  ;;  %v1471_v32 = vunpack.i.h.bf16 %v1469_v5  ;;  %v1470_v53 = vunpack.i.l.bf16 %v1469_v5  ;;  %v3127_v35 = vunpack.c.l.bf16 %v3126_v52 }
  0xd3   :  { %v835_v13 = vmax.f32 %v765_v28, %v767_v45  ;;  %v834_v24 = vmax.f32 %v764_v46, %v766_v25  ;;  %v771_v54 = vmax.f32 %v3123_v57, %v1476_v20  ;;  %v770_v15 = vmax.f32 %v3125_v60, %v1475_v55 }
  0xd4   :  { %1114 = vst.msk [vmem:[%s2799_s1 + $0xa0] sm:$0xf] %vm1072_vm0, %v1230_v7  ;;  %v769_v16 = vmax.f32 %v3127_v35, %v1471_v32  ;;  %v3128_v18 = vunpack.c.l.bf16 %v3124_v14  ;;  %v1484_v21 = vpop.permute.xlu1 %1483  ;;  %v1479_v41 = vpop.permute.xlu0 %1478  ;;  %v3130_v51 = vunpack.c.l.bf16 %v3129_v2  ;;  %v3132_v38 = vunpack.c.h.bf16 %v3131_v56  ;;  %v3147_v14 = vld [vmem:[#allocation37_spill] sm:$0xff] }
  0xd5   :  { %v1233_v47 = vpack.c.bf16 %v835_v13, %v835_v13  ;;  %v1232_v37 = vpack.c.bf16 %v834_v24, %v834_v24  ;;  %v1486_v36 = vunpack.i.h.bf16 %v1484_v21  ;;  %v1485_v29 = vunpack.i.l.bf16 %v1484_v21 }
  0xd6   :  { %v768_v17 = vmax.f32 %v3128_v18, %v1470_v53  ;;  %v1481_v1 = vunpack.i.h.bf16 %v1479_v41  ;;  %v1480_v34 = vunpack.i.l.bf16 %v1479_v41  ;;  %v837_v31 = vmax.f32 %v769_v16, %v771_v54  ;;  %v3143_v53 = vld [vmem:[#allocation36_spill] sm:$0xff] }
  0xd7   :  { %1117 = vst.msk [vmem:[%s2799_s1 + $0xac] sm:$0x7] %vm1074_vm1, %v1233_v47  ;;  %v775_v50 = vmax.f32 %v3130_v51, %v1486_v36  ;;  %v774_v12 = vmax.f32 %v3132_v38, %v1485_v29  ;;  %v3134_v59 = vunpack.c.l.bf16 %v3133_v0  ;;  %v3135_v3 = vunpack.c.l.bf16 %v3131_v56  ;;  %v3150_v51 = vld [vmem:[#allocation39_spill] sm:$0xff]  ;;  %v3152_v38 = vld [vmem:[#allocation38_spill] sm:$0xff] }
  0xd8   :  { %1116 = vst.msk [vmem:[%s2799_s1 + $0xa8] sm:$0xf] %vm1072_vm0, %v1232_v37  ;;  %v836_v4 = vmax.f32 %v768_v17, %v770_v15  ;;  %v1235_v61 = vpack.c.bf16 %v837_v31, %v837_v31  ;;  %v1494_v48 = vpop.permute.xlu1 %1493  ;;  %v1489_v63 = vpop.permute.xlu0 %1488  ;;  %v3137_v45 = vunpack.c.l.bf16 %v3136_v44  ;;  %v3139_v25 = vunpack.c.h.bf16 %v3138_v40  ;;  %v3159_v44 = vld [vmem:[#allocation41_spill] sm:$0xff] }
  0xd9   :  { %v773_v42 = vmax.f32 %v3134_v59, %v1481_v1  ;;  %v772_v58 = vmax.f32 %v3135_v3, %v1480_v34  ;;  %v1496_v10 = vunpack.i.h.bf16 %v1494_v48  ;;  %v1495_v11 = vunpack.i.l.bf16 %v1494_v48  ;;  %v3154_v59 = vld [vmem:[#allocation40_spill] sm:$0xff] }
  0xda   :  { %v1234_v62 = vpack.c.bf16 %v836_v4, %v836_v4  ;;  %1119 = vst.msk [vmem:[%s2799_s1 + $0xb4] sm:$0x7] %vm1074_vm1, %v1235_v61  ;;  %v1491_v49 = vunpack.i.h.bf16 %v1489_v63  ;;  %v1490_v23 = vunpack.i.l.bf16 %v1489_v63  ;;  %v3141_v28 = vunpack.c.l.bf16 %v3140_v30 }
  0xdb   :  { %v839_v8 = vmax.f32 %v773_v42, %v775_v50  ;;  %v838_v33 = vmax.f32 %v772_v58, %v774_v12  ;;  %v779_v19 = vmax.f32 %v3137_v45, %v1496_v10  ;;  %v778_v26 = vmax.f32 %v3139_v25, %v1495_v11 }
  0xdc   :  { %1118 = vst.msk [vmem:[%s2799_s1 + $0xb0] sm:$0xf] %vm1072_vm0, %v1234_v62  ;;  %v777_v22 = vmax.f32 %v3141_v28, %v1491_v49  ;;  %v3142_v46 = vunpack.c.l.bf16 %v3138_v40  ;;  %v1504_v7 = vpop.permute.xlu1 %1503  ;;  %v1499_v39 = vpop.permute.xlu0 %1498  ;;  %v3144_v47 = vunpack.c.l.bf16 %v3143_v53  ;;  %v3146_v57 = vunpack.c.h.bf16 %v3145_v6  ;;  %v3161_v40 = vld [vmem:[#allocation43_spill] sm:$0xff] }
  0xdd   :  { %v1237_v9 = vpack.c.bf16 %v839_v8, %v839_v8  ;;  %v1236_v43 = vpack.c.bf16 %v838_v33, %v838_v33  ;;  %v1506_v5 = vunpack.i.h.bf16 %v1504_v7  ;;  %v1505_v13 = vunpack.i.l.bf16 %v1504_v7 }
  0xde   :  { %v776_v27 = vmax.f32 %v3142_v46, %v1490_v23  ;;  %v1501_v24 = vunpack.i.h.bf16 %v1499_v39  ;;  %v1500_v20 = vunpack.i.l.bf16 %v1499_v39  ;;  %v841_v55 = vmax.f32 %v777_v22, %v779_v19  ;;  %v3157_v23 = vld [vmem:[#allocation42_spill] sm:$0xff] }
  0xdf   :  { %1121 = vst.msk [vmem:[%s2799_s1 + $0xbc] sm:$0x7] %vm1074_vm1, %v1237_v9  ;;  %v783_v37 = vmax.f32 %v3144_v47, %v1506_v5  ;;  %v782_v54 = vmax.f32 %v3146_v57, %v1505_v13  ;;  %v3148_v60 = vunpack.c.l.bf16 %v3147_v14  ;;  %v3149_v52 = vunpack.c.l.bf16 %v3145_v6 }
  0xe0   :  { %1120 = vst.msk [vmem:[%s2799_s1 + $0xb8] sm:$0xf] %vm1072_vm0, %v1236_v43  ;;  %v840_v32 = vmax.f32 %v776_v27, %v778_v26  ;;  %v1239_v16 = vpack.c.bf16 %v841_v55, %v841_v55  ;;  %v1514_v17 = vpop.permute.xlu1 %1513  ;;  %v1509_v21 = vpop.permute.xlu0 %1508  ;;  %v3151_v50 = vunpack.c.l.bf16 %v3150_v51  ;;  %v3153_v12 = vunpack.c.h.bf16 %v3152_v38 }
  0xe1   :  { %v781_v15 = vmax.f32 %v3148_v60, %v1501_v24  ;;  %v780_v35 = vmax.f32 %v3149_v52, %v1500_v20  ;;  %v1516_v29 = vunpack.i.h.bf16 %v1514_v17  ;;  %v1515_v1 = vunpack.i.l.bf16 %v1514_v17 }
  0xe2   :  { %v1238_v18 = vpack.c.bf16 %v840_v32, %v840_v32  ;;  %1123 = vst.msk [vmem:[%s2799_s1 + $0xc4] sm:$0x7] %vm1074_vm1, %v1239_v16  ;;  %v1511_v34 = vunpack.i.h.bf16 %v1509_v21  ;;  %v1510_v31 = vunpack.i.l.bf16 %v1509_v21  ;;  %v3155_v42 = vunpack.c.l.bf16 %v3154_v59 }
  0xe3   :  { %v843_v41 = vmax.f32 %v781_v15, %v783_v37  ;;  %v842_v36 = vmax.f32 %v780_v35, %v782_v54  ;;  %v787_v56 = vmax.f32 %v3151_v50, %v1516_v29  ;;  %v786_v0 = vmax.f32 %v3153_v12, %v1515_v1 }
  0xe4   :  { %1122 = vst.msk [vmem:[%s2799_s1 + $0xc0] sm:$0xf] %vm1072_vm0, %v1238_v18  ;;  %v785_v3 = vmax.f32 %v3155_v42, %v1511_v34  ;;  %v3156_v58 = vunpack.c.l.bf16 %v3152_v38  ;;  %v1524_v62 = vpop.permute.xlu1 %1523  ;;  %v1519_v48 = vpop.permute.xlu0 %1518  ;;  %v3158_v9 = vunpack.c.l.bf16 %v3157_v23  ;;  %v3160_v45 = vunpack.c.h.bf16 %v3159_v44 }
  0xe5   :  { %v1241_v4 = vpack.c.bf16 %v843_v41, %v843_v41  ;;  %v1240_v2 = vpack.c.bf16 %v842_v36, %v842_v36  ;;  %v1526_v63 = vunpack.i.h.bf16 %v1524_v62  ;;  %v1525_v8 = vunpack.i.l.bf16 %v1524_v62 }
  0xe6   :  { %v784_v61 = vmax.f32 %v3156_v58, %v1510_v31  ;;  %v1521_v33 = vunpack.i.h.bf16 %v1519_v48  ;;  %v1520_v10 = vunpack.i.l.bf16 %v1519_v48  ;;  %v845_v11 = vmax.f32 %v785_v3, %v787_v56 }
  0xe7   :  { %1125 = vst.msk [vmem:[%s2799_s1 + $0xcc] sm:$0x7] %vm1074_vm1, %v1241_v4  ;;  %v791_v43 = vmax.f32 %v3158_v9, %v1526_v63  ;;  %v790_v19 = vmax.f32 %v3160_v45, %v1525_v8  ;;  %v3162_v25 = vunpack.c.l.bf16 %v3161_v40  ;;  %v3163_v30 = vunpack.c.l.bf16 %v3159_v44 }
  0xe8   :  { %1124 = vst.msk [vmem:[%s2799_s1 + $0xc8] sm:$0xf] %vm1072_vm0, %v1240_v2  ;;  %v844_v49 = vmax.f32 %v784_v61, %v786_v0  ;;  %v1243_v22 = vpack.c.bf16 %v845_v11, %v845_v11 }
  0xe9   :  { %v789_v26 = vmax.f32 %v3162_v25, %v1521_v33  ;;  %v788_v28 = vmax.f32 %v3163_v30, %v1520_v10 }
  0xea   :  { %v1242_v46 = vpack.c.bf16 %v844_v49, %v844_v49  ;;  %1127 = vst.msk [vmem:[%s2799_s1 + $0xd4] sm:$0x7] %vm1074_vm1, %v1243_v22 }
  0xeb   :  { %v847_v27 = vmax.f32 %v789_v26, %v791_v43  ;;  %v846_v7 = vmax.f32 %v788_v28, %v790_v19 }
  0xec   :  { %1126 = vst.msk [vmem:[%s2799_s1 + $0xd0] sm:$0xf] %vm1072_vm0, %v1242_v46 }
  0xed   :  { %v1245_v39 = vpack.c.bf16 %v847_v27, %v847_v27  ;;  %v1244_v5 = vpack.c.bf16 %v846_v7, %v846_v7 }
  0xef   :  { %1129 = vst.msk [vmem:[%s2799_s1 + $0xdc] sm:$0x7] %vm1074_vm1, %v1245_v39 }
  0xf0   :  { %1128 = vst.msk [vmem:[%s2799_s1 + $0xd8] sm:$0xf] %vm1072_vm0, %v1244_v5 }

// kernel: conv4_forward.11
= control target key start
LH: loop header
LB: loop body
LE: loop exit
PB: predicated region body
PF: predicated region fallthrough
CT: control target
= control target key end

     0   :  { %v2040_v0 = vmov 0   ;;  %v2041_v2 = vmov 0.0   ;;  %vm2042_vm0 = vmmov 0   ;;  %vm634_vm1 = vcmask 261120   ;;  %s2814_s1 = inlined_call_operand.vmem [shape: bf16[288,64], index: 1, kind: input, shape index: {}]   ;;  %s2815_s0 = inlined_call_operand.vmem [shape: bf16[392,288], index: 0, kind: input, shape index: {}]   ;;  %s2816_s2 = inlined_call_operand.vmem [shape: f32[1,64], index: 2, kind: input, shape index: {}]   ;;  %s2817_s3 = inlined_call_operand.vmem [shape: bf16[392,64], index: 3, kind: output, shape index: {}]  }
   0x1   :  { %710 = vmatprep.subr.bf16.mxu1 %v2040_v0  ;;  %v1923_v1 = vld [vmem:[%s2814_s1] sm:$0xff]   ;;  %1718 = vmatprep.subr.bf16.mxu0 %v2041_v2  ;;  %v1924_v3 = vld [vmem:[%s2814_s1 + $0x8] sm:$0xff]   ;;  %v1925_v4 = vld [vmem:[%s2814_s1 + $0x10] sm:$0xff]   ;;  %vm1420_vm2 = vcmask 519168  }
   0x2   :  { %1722 = vmatprep.mubr.msk.bf16.mxu0 %vm2042_vm0, %v2041_v2  ;;  %711 = vmatpush1.bf16.msra.mxu1 %v1923_v1  ;;  %v1926_v5 = vld [vmem:[%s2814_s1 + $0x18] sm:$0xff]   ;;  %v1927_v6 = vld [vmem:[%s2814_s1 + $0x20] sm:$0xff]   ;;  %v1939_v8 = vld [vmem:[%s2814_s1 + $0x88] sm:$0xff]  }
   0x3   :  { %712 = vmatprep.subr.bf16.mxu1 %v2040_v0  ;;  %v1937_v7 = vld [vmem:[%s2814_s1 + $0x80] sm:$0xff]   ;;  %v1928_v9 = vld [vmem:[%s2814_s1 + $0x28] sm:$0xff]   ;;  %v1929_v12 = vld [vmem:[%s2814_s1 + $0x30] sm:$0xff]  }
   0x4   :  { %1719 = vmatpush3.bf16.msra.mxu0 %v1937_v7  ;;  %v1943_v10 = vld [vmem:[%s2815_s0 + $0x4] ss:$12 sps:$4 sm:$0xff]   ;;  %v1944_v11 = vld [vmem:[%s2815_s0 + $0x8] ss:$12 sps:$4 sm:$0xff]   ;;  %v1930_v13 = vld [vmem:[%s2814_s1 + $0x38] sm:$0xff]  }
   0x5   :  { %1720 = vmatprep.subr.bf16.mxu0 %v2041_v2  ;;  %742 = vmatprep.mubr.bf16.mxu1 %v1943_v10  ;;  %v1947_v14 = vld [vmem:[%s2815_s0 + $0x20] ss:$12 sps:$4 sm:$0xff]   ;;  %v1951_v17 = vld [vmem:[%s2815_s0 + $0x38] ss:$12 sps:$4 sm:$0xff]   ;;  %v1933_v18 = vld [vmem:[%s2814_s1 + $0x50] sm:$0xff]  }
   0x6   :  { %713 = vmatpush1.bf16.msra.mxu1 %v1924_v3  ;;  %v1931_v15 = vld [vmem:[%s2814_s1 + $0x40] sm:$0xff]   ;;  %v1932_v16 = vld [vmem:[%s2814_s1 + $0x48] sm:$0xff]   ;;  %v1934_v19 = vld [vmem:[%s2814_s1 + $0x58] sm:$0xff]  }
   0x7   :  { %714 = vmatprep.subr.bf16.mxu1 %v2040_v0  ;;  %v1955_v20 = vld [vmem:[%s2815_s0 + $0x50] ss:$12 sps:$4 sm:$0xff]   ;;  %v1935_v21 = vld [vmem:[%s2814_s1 + $0x60] sm:$0xff]   ;;  %v1936_v22 = vld [vmem:[%s2814_s1 + $0x68] sm:$0xff]  }
   0x8   :  { %1721 = vmatpush3.bf16.msra.mxu0 %v1939_v8  ;;  %v1959_v23 = vld [vmem:[%s2815_s0 + $0x68] ss:$12 sps:$4 sm:$0xff]   ;;  %v1940_v25 = vld [vmem:[%s2814_s1 + $0x78] sm:$0xff]   ;;  %v1963_v26 = vld [vmem:[%s2815_s0 + $0x80] ss:$12 sps:$4 sm:$0xff]  }
   0x9   :  { %v1938_v24 = vld [vmem:[%s2814_s1 + $0x70] sm:$0xff]   ;;  %v1941_v27 = vld [vmem:[%s2815_s0] ss:$12 sps:$4 sm:$0xff]   ;;  %v1945_v28 = vld [vmem:[%s2815_s0 + $0x1c] ss:$12 sps:$4 sm:$0xff]  }
   0xa   :  { %715 = vmatpush1.bf16.msra.mxu1 %v1925_v4  ;;  %v1967_v29 = vld [vmem:[%s2815_s0 + $0x98] ss:$12 sps:$4 sm:$0xff]   ;;  %v1949_v31 = vld [vmem:[%s2815_s0 + $0x34] ss:$12 sps:$4 sm:$0xff]   ;;  %v1971_v32 = vld [vmem:[%s2815_s0 + $0xb0] ss:$12 sps:$4 sm:$0xff]  }
   0xb   :  { %716 = vmatprep.subr.bf16.mxu1 %v2040_v0  ;;  %1723 = vmatmul.mubr.msk.bf16.vlgmr.msra.gmra.mrb[0].mxu0 %vm634_vm1, %v1944_v11  ;;  %v1948_v30 = vld [vmem:[%s2815_s0 + $0x18] ss:$12 sps:$4 sm:$0xff]   ;;  %v1952_v33 = vld [vmem:[%s2815_s0 + $0x30] ss:$12 sps:$4 sm:$0xff]   ;;  %v1975_v35 = vld [vmem:[%s2815_s0 + $0xc8] ss:$12 sps:$4 sm:$0xff]  }
   0xc   :  { %1726 = vmatprep.mubr.msk.bf16.mxu0 %vm2042_vm0, %v2041_v2  ;;  %v1953_v34 = vld [vmem:[%s2815_s0 + $0x4c] ss:$12 sps:$4 sm:$0xff]   ;;  %v1956_v36 = vld [vmem:[%s2815_s0 + $0x48] ss:$12 sps:$4 sm:$0xff]   ;;  %v1957_v37 = vld [vmem:[%s2815_s0 + $0x64] ss:$12 sps:$4 sm:$0xff]  }
   0xd   :  { %v1979_v38 = vld [vmem:[%s2815_s0 + $0xe0] ss:$12 sps:$4 sm:$0xff]   ;;  %v1961_v40 = vld [vmem:[%s2815_s0 + $0x7c] ss:$12 sps:$4 sm:$0xff]   ;;  %v1983_v41 = vld [vmem:[%s2815_s0 + $0xf8] ss:$12 sps:$4 sm:$0xff]  }
   0xe   :  { %717 = vmatpush1.bf16.msra.mxu1 %v1926_v5  ;;  %v1960_v39 = vld [vmem:[%s2815_s0 + $0x60] ss:$12 sps:$4 sm:$0xff]   ;;  %v1964_v42 = vld [vmem:[%s2815_s0 + $0x78] ss:$12 sps:$4 sm:$0xff]   ;;  %v1987_v44 = vld [vmem:[%s2815_s0 + $0x110] ss:$12 sps:$4 sm:$0xff]  }
   0xf   :  { %718 = vmatprep.subr.bf16.mxu1 %v2040_v0  ;;  %v1965_v43 = vld [vmem:[%s2815_s0 + $0x94] ss:$12 sps:$4 sm:$0xff]   ;;  %v1968_v45 = vld [vmem:[%s2815_s0 + $0x90] ss:$12 sps:$4 sm:$0xff]   ;;  %v1969_v46 = vld [vmem:[%s2815_s0 + $0xac] ss:$12 sps:$4 sm:$0xff]  }
  0x10   :  { %v1991_v47 = vld [vmem:[%s2815_s0 + $0x128] ss:$12 sps:$4 sm:$0xff]   ;;  %v1973_v49 = vld [vmem:[%s2815_s0 + $0xc4] ss:$12 sps:$4 sm:$0xff]   ;;  %v1995_v50 = vld [vmem:[%s2815_s0 + $0x140] ss:$12 sps:$4 sm:$0xff]  }
  0x11   :  { %v1972_v48 = vld [vmem:[%s2815_s0 + $0xa8] ss:$12 sps:$4 sm:$0xff]   ;;  %v1976_v51 = vld [vmem:[%s2815_s0 + $0xc0] ss:$12 sps:$4 sm:$0xff]   ;;  %v1999_v53 = vld [vmem:[%s2815_s0 + $0x158] ss:$12 sps:$4 sm:$0xff]  }
  0x12   :  { %719 = vmatpush1.bf16.msra.mxu1 %v1927_v6  ;;  %v1977_v52 = vld [vmem:[%s2815_s0 + $0xdc] ss:$12 sps:$4 sm:$0xff]   ;;  %v1980_v54 = vld [vmem:[%s2815_s0 + $0xd8] ss:$12 sps:$4 sm:$0xff]   ;;  %v1981_v55 = vld [vmem:[%s2815_s0 + $0xf4] ss:$12 sps:$4 sm:$0xff]  }
  0x13   :  { %720 = vmatprep.subr.bf16.mxu1 %v2040_v0  ;;  %1727 = vmatmul.mubr.msk.bf16.gmra.mrb[4].mxu0 %vm634_vm1, %v1947_v14  ;;  %v2003_v56 = vld [vmem:[%s2815_s0 + $0x170] ss:$12 sps:$4 sm:$0xff]   ;;  %v1985_v58 = vld [vmem:[%s2815_s0 + $0x10c] ss:$12 sps:$4 sm:$0xff]   ;;  %v2007_v59 = vld [vmem:[%s2815_s0 + $0x188] ss:$12 sps:$4 sm:$0xff]  }
  0x14   :  { %1730 = vmatprep.mubr.msk.bf16.mxu0 %vm2042_vm0, %v2041_v2  ;;  %v1984_v57 = vld [vmem:[%s2815_s0 + $0xf0] ss:$12 sps:$4 sm:$0xff]   ;;  %v1988_v60 = vld [vmem:[%s2815_s0 + $0x108] ss:$12 sps:$4 sm:$0xff]   ;;  %v2011_v62 = vld [vmem:[%s2815_s0 + $0x1a0] ss:$12 sps:$4 sm:$0xff]  }
  0x15   :  { %v1989_v61 = vld [vmem:[%s2815_s0 + $0x124] ss:$12 sps:$4 sm:$0xff]   ;;  %v1992_v63 = vld [vmem:[%s2815_s0 + $0x120] ss:$12 sps:$4 sm:$0xff]   ;;  %v2023_v8 = vld [vmem:[%s2815_s0 + $0x1e8] ss:$12 sps:$4 sm:$0xff]  }
  0x16   :  { %721 = vmatpush1.bf16.msra.mxu1 %v1928_v9  ;;  %v2015_v1 = vld [vmem:[%s2815_s0 + $0x1b8] ss:$12 sps:$4 sm:$0xff]   ;;  %v1997_v4 = vld [vmem:[%s2815_s0 + $0x154] ss:$12 sps:$4 sm:$0xff]   ;;  %v2019_v5 = vld [vmem:[%s2815_s0 + $0x1d0] ss:$12 sps:$4 sm:$0xff]  }
  0x17   :  { %722 = vmatprep.subr.bf16.mxu1 %v2040_v0  ;;  %v1996_v3 = vld [vmem:[%s2815_s0 + $0x138] ss:$12 sps:$4 sm:$0xff]   ;;  %v2000_v6 = vld [vmem:[%s2815_s0 + $0x150] ss:$12 sps:$4 sm:$0xff]   ;;  %v2004_v9 = vld [vmem:[%s2815_s0 + $0x168] ss:$12 sps:$4 sm:$0xff]  }
  0x18   :  { %v2001_v7 = vld [vmem:[%s2815_s0 + $0x16c] ss:$12 sps:$4 sm:$0xff]   ;;  %v2005_v10 = vld [vmem:[%s2815_s0 + $0x184] ss:$12 sps:$4 sm:$0xff]  }
  0x19   :  { %v2027_v11 = vld [vmem:[%s2815_s0 + $0x200] ss:$12 sps:$4 sm:$0xff]   ;;  %v2031_v14 = vld [vmem:[%s2815_s0 + $0x218] ss:$12 sps:$4 sm:$0xff]  }
  0x1a   :  { %723 = vmatpush1.bf16.msra.mxu1 %v1929_v12  ;;  %v2008_v12 = vld [vmem:[%s2815_s0 + $0x180] ss:$12 sps:$4 sm:$0xff]  }
  0x1b   :  { %724 = vmatprep.subr.bf16.mxu1 %v2040_v0  ;;  %1731 = vmatmul.mubr.msk.bf16.gmra.mrb[8].mxu0 %vm634_vm1, %v1951_v17  ;;  %v2035_v17 = vld [vmem:[%s2815_s0 + $0x230] ss:$12 sps:$4 sm:$0xff]  }
  0x1c   :  { %1734 = vmatprep.mubr.msk.bf16.mxu0 %vm2042_vm0, %v2041_v2 }
  0x1e   :  { %725 = vmatpush1.bf16.msra.mxu1 %v1930_v13  ;;  %v2009_v13 = vld [vmem:[%s2815_s0 + $0x19c] ss:$12 sps:$4 sm:$0xff]  }
  0x1f   :  { %726 = vmatprep.subr.bf16.mxu1 %v2040_v0 }
  0x22   :  { %727 = vmatpush1.bf16.msra.mxu1 %v1931_v15  ;;  %v2012_v15 = vld [vmem:[%s2815_s0 + $0x198] ss:$12 sps:$4 sm:$0xff]  }
  0x23   :  { %728 = vmatprep.subr.bf16.mxu1 %v2040_v0  ;;  %1735 = vmatmul.mubr.msk.bf16.gmra.mrb[12].mxu0 %vm634_vm1, %v1955_v20  ;;  %v2038_v20 = vld [vmem:[%s2815_s0 + $0x248] ss:$0 sps:$4 sm:$0xff]  }
  0x24   :  { %1738 = vmatprep.mubr.msk.bf16.mxu0 %vm2042_vm0, %v2041_v2 }
  0x26   :  { %729 = vmatpush1.bf16.msra.mxu1 %v1932_v16  ;;  %v2013_v16 = vld [vmem:[%s2815_s0 + $0x1b4] ss:$12 sps:$4 sm:$0xff]  }
  0x27   :  { %730 = vmatprep.subr.bf16.mxu1 %v2040_v0 }
  0x2a   :  { %731 = vmatpush1.bf16.msra.mxu1 %v1933_v18  ;;  %v2016_v18 = vld [vmem:[%s2815_s0 + $0x1b0] ss:$12 sps:$4 sm:$0xff]  }
  0x2b   :  { %732 = vmatprep.subr.bf16.mxu1 %v2040_v0  ;;  %1739 = vmatmul.mubr.msk.bf16.gmra.mrb[16].mxu0 %vm634_vm1, %v1959_v23  ;;  %v2025_v23 = vld [vmem:[%s2815_s0 + $0x1fc] ss:$12 sps:$4 sm:$0xff]  }
  0x2c   :  { %1742 = vmatprep.mubr.msk.bf16.mxu0 %vm2042_vm0, %v2041_v2 }
  0x2e   :  { %733 = vmatpush1.bf16.msra.mxu1 %v1934_v19  ;;  %v2017_v19 = vld [vmem:[%s2815_s0 + $0x1cc] ss:$12 sps:$4 sm:$0xff]  }
  0x2f   :  { %734 = vmatprep.subr.bf16.mxu1 %v2040_v0 }
  0x32   :  { %735 = vmatpush1.bf16.msra.mxu1 %v1935_v21  ;;  %v2020_v21 = vld [vmem:[%s2815_s0 + $0x1c8] ss:$12 sps:$4 sm:$0xff]  }
  0x33   :  { %736 = vmatprep.subr.bf16.mxu1 %v2040_v0  ;;  %1743 = vmatmul.mubr.msk.bf16.gmra.mrb[20].mxu0 %vm634_vm1, %v1963_v26 }
  0x34   :  { %1746 = vmatprep.mubr.msk.bf16.mxu0 %vm2042_vm0, %v2041_v2 }
  0x36   :  { %737 = vmatpush1.bf16.msra.mxu1 %v1936_v22  ;;  %v2021_v22 = vld [vmem:[%s2815_s0 + $0x1e4] ss:$12 sps:$4 sm:$0xff]  }
  0x37   :  { %738 = vmatprep.subr.bf16.mxu1 %v2040_v0 }
  0x3a   :  { %739 = vmatpush1.bf16.msra.mxu1 %v1938_v24  ;;  %v2028_v24 = vld [vmem:[%s2815_s0 + $0x1f8] ss:$12 sps:$4 sm:$0xff]  }
  0x3b   :  { %740 = vmatprep.subr.bf16.mxu1 %v2040_v0  ;;  %1747 = vmatmul.mubr.msk.bf16.gmra.mrb[24].mxu0 %vm634_vm1, %v1967_v29  ;;  %v1993_v0 = vld [vmem:[%s2815_s0 + $0x13c] ss:$12 sps:$4 sm:$0xff]  }
  0x3c   :  { %1750 = vmatprep.mubr.msk.bf16.mxu0 %vm2042_vm0, %v2041_v2  ;;  %v2032_v29 = vld [vmem:[%s2815_s0 + $0x210] ss:$12 sps:$4 sm:$0xff]  }
  0x3e   :  { %741 = vmatpush1.bf16.msra.mxu1 %v1940_v25  ;;  %v2029_v25 = vld [vmem:[%s2815_s0 + $0x214] ss:$12 sps:$4 sm:$0xff]  }
  0x41   :  { %743 = vmatmul.mubr.bf16.vlgmr.msra.gmra.mrb[0].mxu1 %v1941_v27 }
  0x42   :  { %750 = vmatprep.mubr.bf16.mxu1 %v1945_v28 }
  0x43   :  { %1751 = vmatmul.mubr.msk.bf16.gmra.mrb[28].mxu0 %vm634_vm1, %v1971_v32 }
  0x44   :  { %1754 = vmatprep.mubr.msk.bf16.mxu0 %vm2042_vm0, %v2041_v2 }
  0x49   :  { %751 = vmatmul.mubr.bf16.gmra.mrb[4].mxu1 %v1948_v30 }
  0x4a   :  { %758 = vmatprep.mubr.bf16.mxu1 %v1949_v31  ;;  %v2033_v31 = vld [vmem:[%s2815_s0 + $0x22c] ss:$12 sps:$4 sm:$0xff]  }
  0x4b   :  { %1755 = vmatmul.mubr.msk.bf16.gmra.mrb[32].mxu0 %vm634_vm1, %v1975_v35 }
  0x4c   :  { %1758 = vmatprep.mubr.msk.bf16.mxu0 %vm2042_vm0, %v2041_v2 }
  0x51   :  { %759 = vmatmul.mubr.bf16.gmra.mrb[8].mxu1 %v1952_v33  ;;  %v111_v33 = vld [vmem:[%s2815_s0 + $0x240] sm:$0xff] }
  0x52   :  { %766 = vmatprep.mubr.bf16.mxu1 %v1953_v34 }
  0x53   :  { %1759 = vmatmul.mubr.msk.bf16.gmra.mrb[36].mxu0 %vm634_vm1, %v1979_v38  ;;  %v1548_v38 = vcombine.high %v111_v33, %v111_v33 }
  0x54   :  { %1762 = vmatprep.mubr.msk.bf16.mxu0 %vm2042_vm0, %v2041_v2 }
  0x59   :  { %767 = vmatmul.mubr.bf16.gmra.mrb[12].mxu1 %v1956_v36  ;;  %v2036_v36 = vld [vmem:[%s2815_s0 + $0x228] ss:$12 sps:$4 sm:$0xff]  }
  0x5a   :  { %774 = vmatprep.mubr.bf16.mxu1 %v1957_v37 }
  0x5b   :  { %1763 = vmatmul.mubr.msk.bf16.gmra.mrb[40].mxu0 %vm634_vm1, %v1983_v41 }
  0x5c   :  { %1766 = vmatprep.mubr.msk.bf16.mxu0 %vm2042_vm0, %v2041_v2 }
  0x61   :  { %775 = vmatmul.mubr.bf16.gmra.mrb[16].mxu1 %v1960_v39 }
  0x62   :  { %782 = vmatprep.mubr.bf16.mxu1 %v1961_v40 }
  0x63   :  { %1767 = vmatmul.mubr.msk.bf16.gmra.mrb[44].mxu0 %vm634_vm1, %v1987_v44 }
  0x64   :  { %1770 = vmatprep.mubr.msk.bf16.mxu0 %vm2042_vm0, %v2041_v2 }
  0x69   :  { %783 = vmatmul.mubr.bf16.gmra.mrb[20].mxu1 %v1964_v42  ;;  %v1547_v42 = vcombine.low %v111_v33, %v111_v33 }
  0x6a   :  { %790 = vmatprep.mubr.bf16.mxu1 %v1965_v43 }
  0x6b   :  { %1771 = vmatmul.mubr.msk.bf16.gmra.mrb[48].mxu0 %vm634_vm1, %v1991_v47 }
  0x6c   :  { %1774 = vmatprep.mubr.msk.bf16.mxu0 %vm2042_vm0, %v2041_v2 }
  0x71   :  { %791 = vmatmul.mubr.bf16.gmra.mrb[24].mxu1 %v1968_v45 }
  0x72   :  { %798 = vmatprep.mubr.bf16.mxu1 %v1969_v46 }
  0x73   :  { %1775 = vmatmul.mubr.msk.bf16.gmra.mrb[52].mxu0 %vm634_vm1, %v1995_v50 }
  0x74   :  { %1778 = vmatprep.mubr.msk.bf16.mxu0 %vm2042_vm0, %v2041_v2 }
  0x79   :  { %799 = vmatmul.mubr.bf16.gmra.mrb[28].mxu1 %v1972_v48 }
  0x7a   :  { %806 = vmatprep.mubr.bf16.mxu1 %v1973_v49 }
  0x7b   :  { %1779 = vmatmul.mubr.msk.bf16.gmra.mrb[56].mxu0 %vm634_vm1, %v1999_v53 }
  0x7c   :  { %1782 = vmatprep.mubr.msk.bf16.mxu0 %vm2042_vm0, %v2041_v2 }
  0x81   :  { %807 = vmatmul.mubr.bf16.gmra.mrb[32].mxu1 %v1976_v51 }
  0x82   :  { %814 = vmatprep.mubr.bf16.mxu1 %v1977_v52  ;;  %v2445_v52 = vld [vmem:[%s2816_s2] ss:$0 sm:$0xff] }
  0x83   :  { %1783 = vmatmul.mubr.msk.bf16.gmra.mrb[60].mxu0 %vm634_vm1, %v2003_v56 }
  0x84   :  { %1786 = vmatprep.mubr.msk.bf16.mxu0 %vm2042_vm0, %v2041_v2 }
  0x89   :  { %815 = vmatmul.mubr.bf16.gmra.mrb[36].mxu1 %v1980_v54 }
  0x8a   :  { %822 = vmatprep.mubr.bf16.mxu1 %v1981_v55 }
  0x8b   :  { %1787 = vmatmul.mubr.msk.bf16.gmra.mrb[64].mxu0 %vm634_vm1, %v2007_v59 }
  0x8c   :  { %1790 = vmatprep.mubr.msk.bf16.mxu0 %vm2042_vm0, %v2041_v2 }
  0x91   :  { %823 = vmatmul.mubr.bf16.gmra.mrb[40].mxu1 %v1984_v57 }
  0x92   :  { %830 = vmatprep.mubr.bf16.mxu1 %v1985_v58 }
  0x93   :  { %1791 = vmatmul.mubr.msk.bf16.gmra.mrb[68].mxu0 %vm634_vm1, %v2011_v62 }
  0x94   :  { %1794 = vmatprep.mubr.msk.bf16.mxu0 %vm2042_vm0, %v2041_v2 }
  0x99   :  { %831 = vmatmul.mubr.bf16.gmra.mrb[44].mxu1 %v1988_v60 }
  0x9a   :  { %838 = vmatprep.mubr.bf16.mxu1 %v1989_v61 }
  0x9b   :  { %1795 = vmatmul.mubr.msk.bf16.gmra.mrb[72].mxu0 %vm634_vm1, %v2015_v1 }
  0x9c   :  { %1798 = vmatprep.mubr.msk.bf16.mxu0 %vm2042_vm0, %v2041_v2 }
  0xa1   :  { %839 = vmatmul.mubr.bf16.gmra.mrb[48].mxu1 %v1992_v63 }
  0xa2   :  { %846 = vmatprep.mubr.bf16.mxu1 %v1993_v0 }
  0xa3   :  { %1799 = vmatmul.mubr.msk.bf16.gmra.mrb[76].mxu0 %vm634_vm1, %v2019_v5 }
  0xa4   :  { %1802 = vmatprep.mubr.msk.bf16.mxu0 %vm2042_vm0, %v2041_v2 }
  0xa9   :  { %847 = vmatmul.mubr.bf16.gmra.mrb[52].mxu1 %v1996_v3 }
  0xaa   :  { %854 = vmatprep.mubr.bf16.mxu1 %v1997_v4 }
  0xab   :  { %1803 = vmatmul.mubr.msk.bf16.gmra.mrb[80].mxu0 %vm634_vm1, %v2023_v8 }
  0xac   :  { %1806 = vmatprep.mubr.msk.bf16.mxu0 %vm2042_vm0, %v2041_v2 }
  0xb1   :  { %855 = vmatmul.mubr.bf16.gmra.mrb[56].mxu1 %v2000_v6 }
  0xb2   :  { %862 = vmatprep.mubr.bf16.mxu1 %v2001_v7 }
  0xb3   :  { %1807 = vmatmul.mubr.msk.bf16.gmra.mrb[84].mxu0 %vm634_vm1, %v2027_v11 }
  0xb4   :  { %1810 = vmatprep.mubr.msk.bf16.mxu0 %vm2042_vm0, %v2041_v2 }
  0xb9   :  { %863 = vmatmul.mubr.bf16.gmra.mrb[60].mxu1 %v2004_v9 }
  0xba   :  { %870 = vmatprep.mubr.bf16.mxu1 %v2005_v10 }
  0xbb   :  { %1811 = vmatmul.mubr.msk.bf16.gmra.mrb[88].mxu0 %vm634_vm1, %v2031_v14 }
  0xbc   :  { %1814 = vmatprep.mubr.msk.bf16.mxu0 %vm2042_vm0, %v2041_v2 }
  0xc1   :  { %871 = vmatmul.mubr.bf16.gmra.mrb[64].mxu1 %v2008_v12 }
  0xc2   :  { %878 = vmatprep.mubr.bf16.mxu1 %v2009_v13 }
  0xc3   :  { %1815 = vmatmul.mubr.msk.bf16.gmra.mrb[92].mxu0 %vm634_vm1, %v2035_v17 }
  0xc4   :  { %1818 = vmatprep.mubr.msk.bf16.mxu0 %vm2042_vm0, %v2041_v2  ;;  %v2024_v2 = vld [vmem:[%s2815_s0 + $0x1e0] ss:$12 sps:$4 sm:$0xff]  }
  0xc9   :  { %879 = vmatmul.mubr.bf16.gmra.mrb[68].mxu1 %v2012_v15 }
  0xca   :  { %886 = vmatprep.mubr.bf16.mxu1 %v2013_v16 }
  0xcb   :  { %1819 = vmatmul.mubr.msk.bf16.gmra.mrb[96].mxu0 %vm634_vm1, %v2038_v20 }
  0xd1   :  { %887 = vmatmul.mubr.bf16.gmra.mrb[72].mxu1 %v2016_v18 }
  0xd2   :  { %894 = vmatprep.mubr.bf16.mxu1 %v2017_v19 }
  0xd9   :  { %895 = vmatmul.mubr.bf16.gmra.mrb[76].mxu1 %v2020_v21 }
  0xda   :  { %902 = vmatprep.mubr.bf16.mxu1 %v2021_v22 }
  0xde   :  { %v976_v26 = vpop.f32.mrb[0].mxu0 }
  0xdf   :  { %v1724_v27 = vpop.f32.mrb[1].mxu0 }
  0xe0   :  { %v979_v28 = vpop.f32.mrb[2].mxu0 }
  0xe1   :  { %903 = vmatmul.mubr.bf16.gmra.mrb[80].mxu1 %v2024_v2  ;;  %v1725_v30 = vpop.f32.mrb[3].mxu0 }
  0xe2   :  { %910 = vmatprep.mubr.bf16.mxu1 %v2025_v23 }
  0xe6   :  { %v984_v32 = vpop.f32.mrb[4].mxu0 }
  0xe7   :  { %v1728_v34 = vpop.f32.mrb[5].mxu0 }
  0xe8   :  { %v987_v35 = vpop.f32.mrb[6].mxu0 }
  0xe9   :  { %911 = vmatmul.mubr.bf16.gmra.mrb[84].mxu1 %v2028_v24  ;;  %v1729_v37 = vpop.f32.mrb[7].mxu0 }
  0xea   :  { %918 = vmatprep.mubr.bf16.mxu1 %v2029_v25 }
  0xee   :  { %v992_v39 = vpop.f32.mrb[8].mxu0 }
  0xef   :  { %v1732_v40 = vpop.f32.mrb[9].mxu0 }
  0xf0   :  { %v2432_v41 = vpop.f32.mrb[10].mxu0 }
  0xf1   :  { %919 = vmatmul.mubr.bf16.gmra.mrb[88].mxu1 %v2032_v29  ;;  %v1733_v43 = vpop.f32.mrb[11].mxu0 }
  0xf2   :  { %926 = vmatprep.mubr.bf16.mxu1 %v2033_v31 }
  0xf6   :  { %v2434_v44 = vpop.f32.mrb[12].mxu0 }
  0xf7   :  { %v1736_v45 = vpop.f32.mrb[13].mxu0 }
  0xf8   :  { %v2436_v46 = vpop.f32.mrb[14].mxu0 }
  0xf9   :  { %927 = vmatmul.mubr.bf16.gmra.mrb[92].mxu1 %v2036_v36  ;;  %v1737_v47 = vpop.f32.mrb[15].mxu0 }
  0xfa   :  { %934 = vmatprep.mubr.bf16.mxu1 %v1548_v38 }
  0xfe   :  { %v2438_v48 = vpop.f32.mrb[16].mxu0 }
  0xff   :  { %v1740_v49 = vpop.f32.mrb[17].mxu0 }
 0x100   :  { %v2440_v50 = vpop.f32.mrb[18].mxu0 }
 0x101   :  { %935 = vmatmul.mubr.bf16.gmra.mrb[96].mxu1 %v1547_v42  ;;  %v1741_v51 = vpop.f32.mrb[19].mxu0 }
 0x106   :  { %v2447_v53 = vpop.f32.mrb[20].mxu0 }
 0x107   :  { %v1744_v54 = vpop.f32.mrb[21].mxu0 }
 0x108   :  { %v2449_v56 = vpop.f32.mrb[22].mxu0 }
 0x109   :  { %v1745_v59 = vpop.f32.mrb[23].mxu0 }
 0x10e   :  { %v2453_v3 = vpop.f32.mrb[24].mxu0 }
 0x10f   :  { %v1748_v6 = vpop.f32.mrb[25].mxu0 }
 0x110   :  { %v2455_v8 = vpop.f32.mrb[26].mxu0 }
 0x111   :  { %v1749_v12 = vpop.f32.mrb[27].mxu0 }
 0x114   :  { %v744_v55 = vpop.f32.mrb[0].mxu1 }
 0x115   :  { %v745_v57 = vadd.f32 %v2445_v52, %v744_v55  ;;  %v746_v58 = vpop.f32.mrb[1].mxu1 }
 0x116   :  { %v747_v60 = vpop.f32.mrb[2].mxu1  ;;  %v2467_v19 = vpop.f32.mrb[28].mxu0 }
 0x117   :  { %v977_v61 = vadd.f32 %v976_v26, %v745_v57  ;;  %v748_v62 = vadd.f32 %v2445_v52, %v747_v60  ;;  %v749_v63 = vpop.f32.mrb[3].mxu1  ;;  %v1752_v22 = vpop.f32.mrb[29].mxu0 }
 0x118   :  { %v2469_v23 = vpop.f32.mrb[30].mxu0 }
 0x119   :  { %v1174_v0 = vmax.f32 %v977_v61, 0.0  ;;  %v980_v1 = vadd.f32 %v979_v28, %v748_v62  ;;  %v1753_v27 = vpop.f32.mrb[31].mxu0 }
 0x11b   :  { %v1642_v4 = vpack.c.bf16 %v1174_v0, %v1174_v0  ;;  %v1175_v5 = vmax.f32 %v980_v1, 0.0 }
 0x11c   :  { %v752_v7 = vpop.f32.mrb[4].mxu1 }
 0x11d   :  { %1421 = vst.msk [vmem:[%s2817_s3] sm:$0xf] %vm1420_vm2, %v1642_v4  ;;  %v1643_v9 = vpack.c.bf16 %v1175_v5, %v1175_v5  ;;  %v753_v10 = vadd.f32 %v2445_v52, %v752_v7  ;;  %v754_v11 = vpop.f32.mrb[5].mxu1 }
 0x11e   :  { %v755_v13 = vpop.f32.mrb[6].mxu1  ;;  %v2482_v34 = vpop.f32.mrb[32].mxu0 }
 0x11f   :  { %1422 = vst.msk [vmem:[%s2817_s3 + $0x4] sm:$0xf] %vm1420_vm2, %v1643_v9  ;;  %v985_v14 = vadd.f32 %v984_v32, %v753_v10  ;;  %v756_v15 = vadd.f32 %v2445_v52, %v755_v13  ;;  %v757_v16 = vpop.f32.mrb[7].mxu1  ;;  %v1756_v37 = vpop.f32.mrb[33].mxu0 }
 0x120   :  { %v2484_v40 = vpop.f32.mrb[34].mxu0 }
 0x121   :  { %v1176_v17 = vmax.f32 %v985_v14, 0.0  ;;  %v988_v18 = vadd.f32 %v987_v35, %v756_v15  ;;  %v1757_v45 = vpop.f32.mrb[35].mxu0 }
 0x123   :  { %v1644_v20 = vpack.c.bf16 %v1176_v17, %v1176_v17  ;;  %v1177_v21 = vmax.f32 %v988_v18, 0.0 }
 0x124   :  { %v760_v2 = vpop.f32.mrb[8].mxu1 }
 0x125   :  { %1423 = vst.msk [vmem:[%s2817_s3 + $0x8] sm:$0xf] %vm1420_vm2, %v1644_v20  ;;  %v1645_v24 = vpack.c.bf16 %v1177_v21, %v1177_v21  ;;  %v761_v25 = vadd.f32 %v2445_v52, %v760_v2  ;;  %v762_v26 = vpop.f32.mrb[9].mxu1 }
 0x126   :  { %v763_v28 = vpop.f32.mrb[10].mxu1  ;;  %v2498_v57 = vpop.f32.mrb[36].mxu0 }
 0x127   :  { %1424 = vst.msk [vmem:[%s2817_s3 + $0xc] sm:$0xf] %vm1420_vm2, %v1645_v24  ;;  %v993_v29 = vadd.f32 %v992_v39, %v761_v25  ;;  %v764_v30 = vadd.f32 %v2445_v52, %v763_v28  ;;  %v765_v31 = vpop.f32.mrb[11].mxu1  ;;  %v1760_v60 = vpop.f32.mrb[37].mxu0 }
 0x128   :  { %v2500_v62 = vpop.f32.mrb[38].mxu0 }
 0x129   :  { %v1178_v32 = vmax.f32 %v993_v29, 0.0  ;;  %v996_v33 = vadd.f32 %v2432_v41, %v764_v30  ;;  %v1761_v1 = vpop.f32.mrb[39].mxu0 }
 0x12b   :  { %v1646_v35 = vpack.c.bf16 %v1178_v32, %v1178_v32  ;;  %v1179_v36 = vmax.f32 %v996_v33, 0.0 }
 0x12c   :  { %v768_v38 = vpop.f32.mrb[12].mxu1 }
 0x12d   :  { %1425 = vst.msk [vmem:[%s2817_s3 + $0x10] sm:$0xf] %vm1420_vm2, %v1646_v35  ;;  %v1647_v39 = vpack.c.bf16 %v1179_v36, %v1179_v36  ;;  %v769_v42 = vadd.f32 %v2445_v52, %v768_v38  ;;  %v770_v43 = vpop.f32.mrb[13].mxu1 }
 0x12e   :  { %v771_v47 = vpop.f32.mrb[14].mxu1  ;;  %v2514_v10 = vpop.f32.mrb[40].mxu0 }
 0x12f   :  { %1426 = vst.msk [vmem:[%s2817_s3 + $0x14] sm:$0xf] %vm1420_vm2, %v1647_v39  ;;  %v1001_v41 = vadd.f32 %v2434_v44, %v769_v42  ;;  %v772_v49 = vadd.f32 %v2445_v52, %v771_v47  ;;  %v773_v51 = vpop.f32.mrb[15].mxu1  ;;  %v1764_v13 = vpop.f32.mrb[41].mxu0 }
 0x130   :  { %v2516_v15 = vpop.f32.mrb[42].mxu0 }
 0x131   :  { %v1180_v54 = vmax.f32 %v1001_v41, 0.0  ;;  %v1004_v55 = vadd.f32 %v2436_v46, %v772_v49  ;;  %v1765_v18 = vpop.f32.mrb[43].mxu0 }
 0x133   :  { %v1648_v58 = vpack.c.bf16 %v1180_v54, %v1180_v54  ;;  %v1181_v59 = vmax.f32 %v1004_v55, 0.0 }
 0x134   :  { %v776_v61 = vpop.f32.mrb[16].mxu1 }
 0x135   :  { %1427 = vst.msk [vmem:[%s2817_s3 + $0x18] sm:$0xf] %vm1420_vm2, %v1648_v58  ;;  %v1649_v44 = vpack.c.bf16 %v1181_v59, %v1181_v59  ;;  %v777_v63 = vadd.f32 %v2445_v52, %v776_v61  ;;  %v778_v0 = vpop.f32.mrb[17].mxu1 }
 0x136   :  { %v779_v4 = vpop.f32.mrb[18].mxu1  ;;  %v2530_v25 = vpop.f32.mrb[44].mxu0 }
 0x137   :  { %1428 = vst.msk [vmem:[%s2817_s3 + $0x1c] sm:$0xf] %vm1420_vm2, %v1649_v44  ;;  %v1009_v46 = vadd.f32 %v2438_v48, %v777_v63  ;;  %v780_v5 = vadd.f32 %v2445_v52, %v779_v4  ;;  %v781_v6 = vpop.f32.mrb[19].mxu1  ;;  %v1768_v28 = vpop.f32.mrb[45].mxu0 }
 0x138   :  { %v2532_v30 = vpop.f32.mrb[46].mxu0 }
 0x139   :  { %v1182_v7 = vmax.f32 %v1009_v46, 0.0  ;;  %v1012_v9 = vadd.f32 %v2440_v50, %v780_v5  ;;  %v1769_v33 = vpop.f32.mrb[47].mxu0 }
 0x13b   :  { %v1650_v11 = vpack.c.bf16 %v1182_v7, %v1182_v7  ;;  %v1183_v12 = vmax.f32 %v1012_v9, 0.0 }
 0x13c   :  { %v784_v14 = vpop.f32.mrb[20].mxu1 }
 0x13d   :  { %1429 = vst.msk [vmem:[%s2817_s3 + $0x20] sm:$0xf] %vm1420_vm2, %v1650_v11  ;;  %v1651_v48 = vpack.c.bf16 %v1183_v12, %v1183_v12  ;;  %v785_v16 = vadd.f32 %v2445_v52, %v784_v14  ;;  %v786_v17 = vpop.f32.mrb[21].mxu1 }
 0x13e   :  { %v787_v20 = vpop.f32.mrb[22].mxu1  ;;  %v2546_v42 = vpop.f32.mrb[48].mxu0 }
 0x13f   :  { %1430 = vst.msk [vmem:[%s2817_s3 + $0x24] sm:$0xf] %vm1420_vm2, %v1651_v48  ;;  %v1017_v50 = vadd.f32 %v2447_v53, %v785_v16  ;;  %v788_v21 = vadd.f32 %v2445_v52, %v787_v20  ;;  %v789_v22 = vpop.f32.mrb[23].mxu1  ;;  %v1772_v47 = vpop.f32.mrb[49].mxu0 }
 0x140   :  { %v2548_v49 = vpop.f32.mrb[50].mxu0 }
 0x141   :  { %v1184_v2 = vmax.f32 %v1017_v50, 0.0  ;;  %v1020_v24 = vadd.f32 %v2449_v56, %v788_v21  ;;  %v1773_v55 = vpop.f32.mrb[51].mxu0 }
 0x143   :  { %v1652_v26 = vpack.c.bf16 %v1184_v2, %v1184_v2  ;;  %v1185_v27 = vmax.f32 %v1020_v24, 0.0 }
 0x144   :  { %v792_v29 = vpop.f32.mrb[24].mxu1 }
 0x145   :  { %1431 = vst.msk [vmem:[%s2817_s3 + $0x28] sm:$0xf] %vm1420_vm2, %v1652_v26  ;;  %v1653_v53 = vpack.c.bf16 %v1185_v27, %v1185_v27  ;;  %v793_v31 = vadd.f32 %v2445_v52, %v792_v29  ;;  %v794_v32 = vpop.f32.mrb[25].mxu1 }
 0x146   :  { %v795_v35 = vpop.f32.mrb[26].mxu1  ;;  %v2562_v63 = vpop.f32.mrb[52].mxu0 }
 0x147   :  { %1432 = vst.msk [vmem:[%s2817_s3 + $0x2c] sm:$0xf] %vm1420_vm2, %v1653_v53  ;;  %v1025_v56 = vadd.f32 %v2453_v3, %v793_v31  ;;  %v796_v36 = vadd.f32 %v2445_v52, %v795_v35  ;;  %v797_v37 = vpop.f32.mrb[27].mxu1  ;;  %v1776_v4 = vpop.f32.mrb[53].mxu0 }
 0x148   :  { %v2564_v5 = vpop.f32.mrb[54].mxu0 }
 0x149   :  { %v1186_v38 = vmax.f32 %v1025_v56, 0.0  ;;  %v1028_v39 = vadd.f32 %v2455_v8, %v796_v36  ;;  %v1777_v9 = vpop.f32.mrb[55].mxu0 }
 0x14b   :  { %v1654_v43 = vpack.c.bf16 %v1186_v38, %v1186_v38  ;;  %v1187_v45 = vmax.f32 %v1028_v39, 0.0 }
 0x14c   :  { %v800_v41 = vpop.f32.mrb[28].mxu1 }
 0x14d   :  { %1433 = vst.msk [vmem:[%s2817_s3 + $0x30] sm:$0xf] %vm1420_vm2, %v1654_v43  ;;  %v1655_v3 = vpack.c.bf16 %v1187_v45, %v1187_v45  ;;  %v801_v51 = vadd.f32 %v2445_v52, %v800_v41  ;;  %v802_v54 = vpop.f32.mrb[29].mxu1 }
 0x14e   :  { %v803_v58 = vpop.f32.mrb[30].mxu1  ;;  %v2578_v16 = vpop.f32.mrb[56].mxu0 }
 0x14f   :  { %1434 = vst.msk [vmem:[%s2817_s3 + $0x34] sm:$0xf] %vm1420_vm2, %v1655_v3  ;;  %v1033_v8 = vadd.f32 %v2467_v19, %v801_v51  ;;  %v804_v59 = vadd.f32 %v2445_v52, %v803_v58  ;;  %v805_v60 = vpop.f32.mrb[31].mxu1  ;;  %v1780_v20 = vpop.f32.mrb[57].mxu0 }
 0x150   :  { %v2580_v21 = vpop.f32.mrb[58].mxu0 }
 0x151   :  { %v1188_v61 = vmax.f32 %v1033_v8, 0.0  ;;  %v1036_v44 = vadd.f32 %v2469_v23, %v804_v59  ;;  %v1781_v24 = vpop.f32.mrb[59].mxu0 }
 0x153   :  { %v1656_v0 = vpack.c.bf16 %v1188_v61, %v1188_v61  ;;  %v1189_v1 = vmax.f32 %v1036_v44, 0.0 }
 0x154   :  { %v808_v46 = vpop.f32.mrb[32].mxu1 }
 0x155   :  { %1435 = vst.msk [vmem:[%s2817_s3 + $0x38] sm:$0xf] %vm1420_vm2, %v1656_v0  ;;  %v1657_v19 = vpack.c.bf16 %v1189_v1, %v1189_v1  ;;  %v809_v6 = vadd.f32 %v2445_v52, %v808_v46  ;;  %v810_v7 = vpop.f32.mrb[33].mxu1 }
 0x156   :  { %v811_v11 = vpop.f32.mrb[34].mxu1  ;;  %v2594_v31 = vpop.f32.mrb[60].mxu0 }
 0x157   :  { %1436 = vst.msk [vmem:[%s2817_s3 + $0x3c] sm:$0xf] %vm1420_vm2, %v1657_v19  ;;  %v1041_v23 = vadd.f32 %v2482_v34, %v809_v6  ;;  %v812_v12 = vadd.f32 %v2445_v52, %v811_v11  ;;  %v813_v13 = vpop.f32.mrb[35].mxu1  ;;  %v1784_v35 = vpop.f32.mrb[61].mxu0 }
 0x158   :  { %v2596_v36 = vpop.f32.mrb[62].mxu0 }
 0x159   :  { %v1190_v14 = vmax.f32 %v1041_v23, 0.0  ;;  %v1044_v48 = vadd.f32 %v2484_v40, %v812_v12  ;;  %v1785_v39 = vpop.f32.mrb[63].mxu0 }
 0x15b   :  { %v1658_v17 = vpack.c.bf16 %v1190_v14, %v1190_v14  ;;  %v1191_v18 = vmax.f32 %v1044_v48, 0.0 }
 0x15c   :  { %v816_v50 = vpop.f32.mrb[36].mxu1 }
 0x15d   :  { %1437 = vst.msk [vmem:[%s2817_s3 + $0x40] sm:$0xf] %vm1420_vm2, %v1658_v17  ;;  %v1659_v34 = vpack.c.bf16 %v1191_v18, %v1191_v18  ;;  %v817_v22 = vadd.f32 %v2445_v52, %v816_v50  ;;  %v818_v2 = vpop.f32.mrb[37].mxu1 }
 0x15e   :  { %v819_v26 = vpop.f32.mrb[38].mxu1  ;;  %v2610_v51 = vpop.f32.mrb[64].mxu0 }
 0x15f   :  { %1438 = vst.msk [vmem:[%s2817_s3 + $0x44] sm:$0xf] %vm1420_vm2, %v1659_v34  ;;  %v1049_v40 = vadd.f32 %v2498_v57, %v817_v22  ;;  %v820_v27 = vadd.f32 %v2445_v52, %v819_v26  ;;  %v821_v28 = vpop.f32.mrb[39].mxu1  ;;  %v1788_v58 = vpop.f32.mrb[65].mxu0 }
 0x160   :  { %v2612_v59 = vpop.f32.mrb[66].mxu0 }
 0x161   :  { %v1192_v29 = vmax.f32 %v1049_v40, 0.0  ;;  %v1052_v53 = vadd.f32 %v2500_v62, %v820_v27  ;;  %v1789_v44 = vpop.f32.mrb[67].mxu0 }
 0x163   :  { %v1660_v32 = vpack.c.bf16 %v1192_v29, %v1192_v29  ;;  %v1193_v33 = vmax.f32 %v1052_v53, 0.0 }
 0x164   :  { %v824_v56 = vpop.f32.mrb[40].mxu1 }
 0x165   :  { %1439 = vst.msk [vmem:[%s2817_s3 + $0x48] sm:$0xf] %vm1420_vm2, %v1660_v32  ;;  %v1661_v57 = vpack.c.bf16 %v1193_v33, %v1193_v33  ;;  %v825_v37 = vadd.f32 %v2445_v52, %v824_v56  ;;  %v826_v38 = vpop.f32.mrb[41].mxu1 }
 0x166   :  { %v827_v43 = vpop.f32.mrb[42].mxu1  ;;  %v2626_v6 = vpop.f32.mrb[68].mxu0 }
 0x167   :  { %1440 = vst.msk [vmem:[%s2817_s3 + $0x4c] sm:$0xf] %vm1420_vm2, %v1661_v57  ;;  %v1057_v62 = vadd.f32 %v2514_v10, %v825_v37  ;;  %v828_v45 = vadd.f32 %v2445_v52, %v827_v43  ;;  %v829_v47 = vpop.f32.mrb[43].mxu1  ;;  %v1792_v11 = vpop.f32.mrb[69].mxu0 }
 0x168   :  { %v2628_v12 = vpop.f32.mrb[70].mxu0 }
 0x169   :  { %v1194_v41 = vmax.f32 %v1057_v62, 0.0  ;;  %v1060_v3 = vadd.f32 %v2516_v15, %v828_v45  ;;  %v1793_v48 = vpop.f32.mrb[71].mxu0 }
 0x16b   :  { %v1662_v54 = vpack.c.bf16 %v1194_v41, %v1194_v41  ;;  %v1195_v55 = vmax.f32 %v1060_v3, 0.0 }
 0x16c   :  { %v832_v8 = vpop.f32.mrb[44].mxu1 }
 0x16d   :  { %1441 = vst.msk [vmem:[%s2817_s3 + $0x50] sm:$0xf] %vm1420_vm2, %v1662_v54  ;;  %v1663_v10 = vpack.c.bf16 %v1195_v55, %v1195_v55  ;;  %v833_v60 = vadd.f32 %v2445_v52, %v832_v8  ;;  %v834_v61 = vpop.f32.mrb[45].mxu1 }
 0x16e   :  { %v835_v0 = vpop.f32.mrb[46].mxu1  ;;  %v2642_v22 = vpop.f32.mrb[72].mxu0 }
 0x16f   :  { %1442 = vst.msk [vmem:[%s2817_s3 + $0x54] sm:$0xf] %vm1420_vm2, %v1663_v10  ;;  %v1065_v15 = vadd.f32 %v2530_v25, %v833_v60  ;;  %v836_v1 = vadd.f32 %v2445_v52, %v835_v0  ;;  %v837_v4 = vpop.f32.mrb[47].mxu1  ;;  %v1796_v26 = vpop.f32.mrb[73].mxu0 }
 0x170   :  { %v2644_v27 = vpop.f32.mrb[74].mxu0 }
 0x171   :  { %v1196_v46 = vmax.f32 %v1065_v15, 0.0  ;;  %v1068_v19 = vadd.f32 %v2532_v30, %v836_v1  ;;  %v1797_v53 = vpop.f32.mrb[75].mxu0 }
 0x173   :  { %v1664_v7 = vpack.c.bf16 %v1196_v46, %v1196_v46  ;;  %v1197_v9 = vmax.f32 %v1068_v19, 0.0 }
 0x174   :  { %v840_v23 = vpop.f32.mrb[48].mxu1 }
 0x175   :  { %1443 = vst.msk [vmem:[%s2817_s3 + $0x58] sm:$0xf] %vm1420_vm2, %v1664_v7  ;;  %v1665_v25 = vpack.c.bf16 %v1197_v9, %v1197_v9  ;;  %v841_v13 = vadd.f32 %v2445_v52, %v840_v23  ;;  %v842_v14 = vpop.f32.mrb[49].mxu1 }
 0x176   :  { %v843_v17 = vpop.f32.mrb[50].mxu1  ;;  %v2658_v37 = vpop.f32.mrb[76].mxu0 }
 0x177   :  { %1444 = vst.msk [vmem:[%s2817_s3 + $0x5c] sm:$0xf] %vm1420_vm2, %v1665_v25  ;;  %v1073_v30 = vadd.f32 %v2546_v42, %v841_v13  ;;  %v844_v18 = vadd.f32 %v2445_v52, %v843_v17  ;;  %v845_v20 = vpop.f32.mrb[51].mxu1  ;;  %v1800_v43 = vpop.f32.mrb[77].mxu0 }
 0x178   :  { %v2660_v45 = vpop.f32.mrb[78].mxu0 }
 0x179   :  { %v1198_v50 = vmax.f32 %v1073_v30, 0.0  ;;  %v1076_v34 = vadd.f32 %v2548_v49, %v844_v18  ;;  %v1801_v3 = vpop.f32.mrb[79].mxu0 }
 0x17b   :  { %v1666_v2 = vpack.c.bf16 %v1198_v50, %v1198_v50  ;;  %v1199_v24 = vmax.f32 %v1076_v34, 0.0 }
 0x17c   :  { %v848_v40 = vpop.f32.mrb[52].mxu1 }
 0x17d   :  { %1445 = vst.msk [vmem:[%s2817_s3 + $0x60] sm:$0xf] %vm1420_vm2, %v1666_v2  ;;  %v1667_v42 = vpack.c.bf16 %v1199_v24, %v1199_v24  ;;  %v849_v28 = vadd.f32 %v2445_v52, %v848_v40  ;;  %v850_v29 = vpop.f32.mrb[53].mxu1 }
 0x17e   :  { %v851_v32 = vpop.f32.mrb[54].mxu1  ;;  %v2674_v60 = vpop.f32.mrb[80].mxu0 }
 0x17f   :  { %1446 = vst.msk [vmem:[%s2817_s3 + $0x64] sm:$0xf] %vm1420_vm2, %v1667_v42  ;;  %v1081_v49 = vadd.f32 %v2562_v63, %v849_v28  ;;  %v852_v33 = vadd.f32 %v2445_v52, %v851_v32  ;;  %v853_v35 = vpop.f32.mrb[55].mxu1  ;;  %v1804_v0 = vpop.f32.mrb[81].mxu0 }
 0x180   :  { %v2676_v1 = vpop.f32.mrb[82].mxu0 }
 0x181   :  { %v1200_v56 = vmax.f32 %v1081_v49, 0.0  ;;  %v1084_v57 = vadd.f32 %v2564_v5, %v852_v33  ;;  %v1805_v19 = vpop.f32.mrb[83].mxu0 }
 0x183   :  { %v1668_v38 = vpack.c.bf16 %v1200_v56, %v1200_v56  ;;  %v1201_v39 = vmax.f32 %v1084_v57, 0.0 }
 0x184   :  { %v856_v62 = vpop.f32.mrb[56].mxu1 }
 0x185   :  { %1447 = vst.msk [vmem:[%s2817_s3 + $0x68] sm:$0xf] %vm1420_vm2, %v1668_v38  ;;  %v1669_v63 = vpack.c.bf16 %v1201_v39, %v1201_v39  ;;  %v857_v47 = vadd.f32 %v2445_v52, %v856_v62  ;;  %v858_v41 = vpop.f32.mrb[57].mxu1 }
 0x186   :  { %v859_v54 = vpop.f32.mrb[58].mxu1  ;;  %v2690_v13 = vpop.f32.mrb[84].mxu0 }
 0x187   :  { %1448 = vst.msk [vmem:[%s2817_s3 + $0x6c] sm:$0xf] %vm1420_vm2, %v1669_v63  ;;  %v1089_v5 = vadd.f32 %v2578_v16, %v857_v47  ;;  %v860_v55 = vadd.f32 %v2445_v52, %v859_v54  ;;  %v861_v58 = vpop.f32.mrb[59].mxu1  ;;  %v1808_v17 = vpop.f32.mrb[85].mxu0 }
 0x188   :  { %v2692_v18 = vpop.f32.mrb[86].mxu0 }
 0x189   :  { %v1202_v8 = vmax.f32 %v1089_v5, 0.0  ;;  %v1092_v10 = vadd.f32 %v2580_v21, %v860_v55  ;;  %v1809_v34 = vpop.f32.mrb[87].mxu0 }
 0x18b   :  { %v1670_v61 = vpack.c.bf16 %v1202_v8, %v1202_v8  ;;  %v1203_v44 = vmax.f32 %v1092_v10, 0.0 }
 0x18c   :  { %v864_v15 = vpop.f32.mrb[60].mxu1 }
 0x18d   :  { %1449 = vst.msk [vmem:[%s2817_s3 + $0x70] sm:$0xf] %vm1420_vm2, %v1670_v61  ;;  %v1671_v16 = vpack.c.bf16 %v1203_v44, %v1203_v44  ;;  %v865_v4 = vadd.f32 %v2445_v52, %v864_v15  ;;  %v866_v46 = vpop.f32.mrb[61].mxu1 }
 0x18e   :  { %v867_v7 = vpop.f32.mrb[62].mxu1  ;;  %v2706_v28 = vpop.f32.mrb[88].mxu0 }
 0x18f   :  { %1450 = vst.msk [vmem:[%s2817_s3 + $0x74] sm:$0xf] %vm1420_vm2, %v1671_v16  ;;  %v1097_v21 = vadd.f32 %v2594_v31, %v865_v4  ;;  %v868_v9 = vadd.f32 %v2445_v52, %v867_v7  ;;  %v869_v11 = vpop.f32.mrb[63].mxu1  ;;  %v1812_v32 = vpop.f32.mrb[89].mxu0 }
 0x190   :  { %v2708_v33 = vpop.f32.mrb[90].mxu0 }
 0x191   :  { %v1204_v23 = vmax.f32 %v1097_v21, 0.0  ;;  %v1100_v25 = vadd.f32 %v2596_v36, %v868_v9  ;;  %v1813_v57 = vpop.f32.mrb[91].mxu0 }
 0x193   :  { %v1672_v14 = vpack.c.bf16 %v1204_v23, %v1204_v23  ;;  %v1205_v48 = vmax.f32 %v1100_v25, 0.0 }
 0x194   :  { %v872_v30 = vpop.f32.mrb[64].mxu1 }
 0x195   :  { %1451 = vst.msk [vmem:[%s2817_s3 + $0x78] sm:$0xf] %vm1420_vm2, %v1672_v14  ;;  %v1673_v31 = vpack.c.bf16 %v1205_v48, %v1205_v48  ;;  %v873_v20 = vadd.f32 %v2445_v52, %v872_v30  ;;  %v874_v50 = vpop.f32.mrb[65].mxu1 }
 0x196   :  { %v875_v2 = vpop.f32.mrb[66].mxu1  ;;  %v2722_v47 = vpop.f32.mrb[92].mxu0 }
 0x197   :  { %1452 = vst.msk [vmem:[%s2817_s3 + $0x7c] sm:$0xf] %vm1420_vm2, %v1673_v31  ;;  %v1105_v36 = vadd.f32 %v2610_v51, %v873_v20  ;;  %v876_v24 = vadd.f32 %v2445_v52, %v875_v2  ;;  %v877_v26 = vpop.f32.mrb[67].mxu1  ;;  %v1816_v54 = vpop.f32.mrb[93].mxu0 }
 0x198   :  { %v2724_v55 = vpop.f32.mrb[94].mxu0 }
 0x199   :  { %v1206_v40 = vmax.f32 %v1105_v36, 0.0  ;;  %v1108_v42 = vadd.f32 %v2612_v59, %v876_v24  ;;  %v1817_v10 = vpop.f32.mrb[95].mxu0 }
 0x19b   :  { %v1674_v29 = vpack.c.bf16 %v1206_v40, %v1206_v40  ;;  %v1207_v53 = vmax.f32 %v1108_v42, 0.0 }
 0x19c   :  { %v880_v49 = vpop.f32.mrb[68].mxu1 }
 0x19d   :  { %1453 = vst.msk [vmem:[%s2817_s3 + $0x80] sm:$0xf] %vm1420_vm2, %v1674_v29  ;;  %v1675_v51 = vpack.c.bf16 %v1207_v53, %v1207_v53  ;;  %v881_v35 = vadd.f32 %v2445_v52, %v880_v49  ;;  %v882_v56 = vpop.f32.mrb[69].mxu1 }
 0x19e   :  { %v883_v38 = vpop.f32.mrb[70].mxu1  ;;  %v2738_v4 = vpop.f32.mrb[96].mxu0 }
 0x19f   :  { %1454 = vst.msk [vmem:[%s2817_s3 + $0x84] sm:$0xf] %vm1420_vm2, %v1675_v51  ;;  %v1113_v59 = vadd.f32 %v2626_v6, %v881_v35  ;;  %v884_v39 = vadd.f32 %v2445_v52, %v883_v38  ;;  %v885_v43 = vpop.f32.mrb[71].mxu1  ;;  %v1820_v7 = vpop.f32.mrb[97].mxu0 }
 0x1a0   :  { %v1171_v9 = vpop.f32.mrb[98].mxu0 }
 0x1a1   :  { %v1208_v62 = vmax.f32 %v1113_v59, 0.0  ;;  %v1116_v63 = vadd.f32 %v2628_v12, %v884_v39  ;;  %v1821_v25 = vpop.f32.mrb[99].mxu0 }
 0x1a3   :  { %v1676_v41 = vpack.c.bf16 %v1208_v62, %v1208_v62  ;;  %v1209_v3 = vmax.f32 %v1116_v63, 0.0 }
 0x1a4   :  { %v888_v5 = vpop.f32.mrb[72].mxu1 }
 0x1a5   :  { %1455 = vst.msk [vmem:[%s2817_s3 + $0x88] sm:$0xf] %vm1420_vm2, %v1676_v41  ;;  %v1677_v6 = vpack.c.bf16 %v1209_v3, %v1209_v3  ;;  %v889_v58 = vadd.f32 %v2445_v52, %v888_v5  ;;  %v890_v8 = vpop.f32.mrb[73].mxu1 }
 0x1a6   :  { %v891_v61 = vpop.f32.mrb[74].mxu1 }
 0x1a7   :  { %1456 = vst.msk [vmem:[%s2817_s3 + $0x8c] sm:$0xf] %vm1420_vm2, %v1677_v6  ;;  %v1121_v12 = vadd.f32 %v2642_v22, %v889_v58  ;;  %v892_v44 = vadd.f32 %v2445_v52, %v891_v61  ;;  %v893_v0 = vpop.f32.mrb[75].mxu1 }
 0x1a9   :  { %v1210_v15 = vmax.f32 %v1121_v12, 0.0  ;;  %v1124_v16 = vadd.f32 %v2644_v27, %v892_v44 }
 0x1ab   :  { %v1678_v46 = vpack.c.bf16 %v1210_v15, %v1210_v15  ;;  %v1211_v19 = vmax.f32 %v1124_v16, 0.0 }
 0x1ac   :  { %v896_v21 = vpop.f32.mrb[76].mxu1 }
 0x1ad   :  { %1457 = vst.msk [vmem:[%s2817_s3 + $0x90] sm:$0xf] %vm1420_vm2, %v1678_v46  ;;  %v1679_v11 = vpack.c.bf16 %v1211_v19, %v1211_v19  ;;  %v897_v22 = vadd.f32 %v2445_v52, %v896_v21  ;;  %v898_v23 = vpop.f32.mrb[77].mxu1 }
 0x1ae   :  { %v899_v14 = vpop.f32.mrb[78].mxu1 }
 0x1af   :  { %1458 = vst.msk [vmem:[%s2817_s3 + $0x94] sm:$0xf] %vm1420_vm2, %v1679_v11  ;;  %v1129_v27 = vadd.f32 %v2658_v37, %v897_v22  ;;  %v900_v48 = vadd.f32 %v2445_v52, %v899_v14  ;;  %v901_v17 = vpop.f32.mrb[79].mxu1 }
 0x1b1   :  { %v1212_v30 = vmax.f32 %v1129_v27, 0.0  ;;  %v1132_v31 = vadd.f32 %v2660_v45, %v900_v48 }
 0x1b3   :  { %v1680_v20 = vpack.c.bf16 %v1212_v30, %v1212_v30  ;;  %v1213_v50 = vmax.f32 %v1132_v31, 0.0 }
 0x1b4   :  { %v904_v34 = vpop.f32.mrb[80].mxu1 }
 0x1b5   :  { %1459 = vst.msk [vmem:[%s2817_s3 + $0x98] sm:$0xf] %vm1420_vm2, %v1680_v20  ;;  %v1681_v2 = vpack.c.bf16 %v1213_v50, %v1213_v50  ;;  %v905_v36 = vadd.f32 %v2445_v52, %v904_v34  ;;  %v906_v24 = vpop.f32.mrb[81].mxu1 }
 0x1b6   :  { %v907_v26 = vpop.f32.mrb[82].mxu1 }
 0x1b7   :  { %1460 = vst.msk [vmem:[%s2817_s3 + $0x9c] sm:$0xf] %vm1420_vm2, %v1681_v2  ;;  %v1137_v37 = vadd.f32 %v2674_v60, %v905_v36  ;;  %v908_v45 = vadd.f32 %v2445_v52, %v907_v26  ;;  %v909_v40 = vpop.f32.mrb[83].mxu1 }
 0x1b9   :  { %v1214_v42 = vmax.f32 %v1137_v37, 0.0  ;;  %v1140_v29 = vadd.f32 %v2676_v1, %v908_v45 }
 0x1bb   :  { %v1682_v53 = vpack.c.bf16 %v1214_v42, %v1214_v42  ;;  %v1215_v32 = vmax.f32 %v1140_v29, 0.0 }
 0x1bc   :  { %v912_v49 = vpop.f32.mrb[84].mxu1 }
 0x1bd   :  { %1461 = vst.msk [vmem:[%s2817_s3 + $0xa0] sm:$0xf] %vm1420_vm2, %v1682_v53  ;;  %v1683_v51 = vpack.c.bf16 %v1215_v32, %v1215_v32  ;;  %v913_v35 = vadd.f32 %v2445_v52, %v912_v49  ;;  %v914_v56 = vpop.f32.mrb[85].mxu1 }
 0x1be   :  { %v915_v57 = vpop.f32.mrb[86].mxu1 }
 0x1bf   :  { %1462 = vst.msk [vmem:[%s2817_s3 + $0xa4] sm:$0xf] %vm1420_vm2, %v1683_v51  ;;  %v1145_v60 = vadd.f32 %v2690_v13, %v913_v35  ;;  %v916_v1 = vadd.f32 %v2445_v52, %v915_v57  ;;  %v917_v38 = vpop.f32.mrb[87].mxu1 }
 0x1c1   :  { %v1216_v59 = vmax.f32 %v1145_v60, 0.0  ;;  %v1148_v39 = vadd.f32 %v2692_v18, %v916_v1 }
 0x1c3   :  { %v1684_v43 = vpack.c.bf16 %v1216_v59, %v1216_v59  ;;  %v1217_v62 = vmax.f32 %v1148_v39, 0.0 }
 0x1c4   :  { %v920_v63 = vpop.f32.mrb[88].mxu1 }
 0x1c5   :  { %1463 = vst.msk [vmem:[%s2817_s3 + $0xa8] sm:$0xf] %vm1420_vm2, %v1684_v43  ;;  %v1685_v41 = vpack.c.bf16 %v1217_v62, %v1217_v62  ;;  %v921_v3 = vadd.f32 %v2445_v52, %v920_v63  ;;  %v922_v54 = vpop.f32.mrb[89].mxu1 }
 0x1c6   :  { %v923_v5 = vpop.f32.mrb[90].mxu1 }
 0x1c7   :  { %1464 = vst.msk [vmem:[%s2817_s3 + $0xac] sm:$0xf] %vm1420_vm2, %v1685_v41  ;;  %v1153_v13 = vadd.f32 %v2706_v28, %v921_v3  ;;  %v924_v18 = vadd.f32 %v2445_v52, %v923_v5  ;;  %v925_v6 = vpop.f32.mrb[91].mxu1 }
 0x1c9   :  { %v1218_v58 = vmax.f32 %v1153_v13, 0.0  ;;  %v1156_v8 = vadd.f32 %v2708_v33, %v924_v18 }
 0x1cb   :  { %v1686_v10 = vpack.c.bf16 %v1218_v58, %v1218_v58  ;;  %v1219_v61 = vmax.f32 %v1156_v8, 0.0 }
 0x1cc   :  { %v928_v12 = vpop.f32.mrb[92].mxu1 }
 0x1cd   :  { %1465 = vst.msk [vmem:[%s2817_s3 + $0xb0] sm:$0xf] %vm1420_vm2, %v1686_v10  ;;  %v1687_v44 = vpack.c.bf16 %v1219_v61, %v1219_v61  ;;  %v929_v0 = vadd.f32 %v2445_v52, %v928_v12  ;;  %v930_v15 = vpop.f32.mrb[93].mxu1 }
 0x1ce   :  { %v931_v16 = vpop.f32.mrb[94].mxu1 }
 0x1cf   :  { %1466 = vst.msk [vmem:[%s2817_s3 + $0xb4] sm:$0xf] %vm1420_vm2, %v1687_v44  ;;  %v1161_v28 = vadd.f32 %v2722_v47, %v929_v0  ;;  %v932_v33 = vadd.f32 %v2445_v52, %v931_v16  ;;  %v933_v46 = vpop.f32.mrb[95].mxu1 }
 0x1d1   :  { %v1220_v19 = vmax.f32 %v1161_v28, 0.0  ;;  %v1164_v7 = vadd.f32 %v2724_v55, %v932_v33 }
 0x1d3   :  { %v1688_v21 = vpack.c.bf16 %v1220_v19, %v1220_v19  ;;  %v1221_v9 = vmax.f32 %v1164_v7, 0.0 }
 0x1d4   :  { %v936_v11 = vpop.f32.mrb[96].mxu1 }
 0x1d5   :  { %1467 = vst.msk [vmem:[%s2817_s3 + $0xb8] sm:$0xf] %vm1420_vm2, %v1688_v21  ;;  %v1689_v22 = vpack.c.bf16 %v1221_v9, %v1221_v9  ;;  %v937_v23 = vadd.f32 %v2445_v52, %v936_v11  ;;  %v938_v25 = vpop.f32.mrb[97].mxu1 }
 0x1d6   :  { %v939_v14 = vpop.f32.mrb[98].mxu1 }
 0x1d7   :  { %1468 = vst.msk [vmem:[%s2817_s3 + $0xbc] sm:$0xf] %vm1420_vm2, %v1689_v22  ;;  %v1169_v47 = vadd.f32 %v2738_v4, %v937_v23  ;;  %v940_v55 = vpop.f32.mrb[99].mxu1 }
 0x1d9   :  { %v1222_v27 = vmax.f32 %v1169_v47, 0.0 }
 0x1db   :  { %v1690_v48 = vpack.c.bf16 %v1222_v27, %v1222_v27 }
 0x1dd   :  { %1469 = vst.msk [vmem:[%s2817_s3 + $0xc0] sm:$0xf] %vm1420_vm2, %v1690_v48 }

// kernel: conv4_forward.12
= control target key start
LH: loop header
LB: loop body
LE: loop exit
PB: predicated region body
PF: predicated region fallthrough
CT: control target
= control target key end

     0   :  { %v3010_v0 = vmov 0   ;;  %v3011_v39 = vmov 0.0   ;;  %vm3012_vm0 = vmmov 0   ;;  %vm1074_vm1 = vcmask 523264   ;;  %s4029_s1 = inlined_call_operand.vmem [shape: bf16[576,64], index: 1, kind: input, shape index: {}]   ;;  %s4030_s0 = inlined_call_operand.vmem [shape: bf16[392,576], index: 0, kind: input, shape index: {}]   ;;  %s4031_s2 = inlined_call_operand.vmem [shape: f32[1,64], index: 2, kind: input, shape index: {}]   ;;  %s4032_s3 = inlined_call_operand.vmem [shape: bf16[392,64], index: 3, kind: output, shape index: {}]  }
   0x1   :  { %1150 = vmatprep.subr.bf16.mxu1 %v3010_v0  ;;  %1382 = vmatprep.subr.bf16.mxu0 %v3010_v0  ;;  %v2801_v1 = vld [vmem:[%s4029_s1] sm:$0xff]   ;;  %v2803_v3 = vld [vmem:[%s4029_s1 + $0x8] sm:$0xff]   ;;  %v2805_v5 = vld [vmem:[%s4029_s1 + $0x10] sm:$0xff]   ;;  %vm2092_vm2 = vcmask 519168  }
   0x2   :  { %v3041_v2 = vld [vmem:[%s4029_s1 + $0x80] sm:$0xff]   ;;  %1151 = vmatpush1.bf16.msra.mxu1 %v2801_v1  ;;  %v3051_v4 = vld [vmem:[%s4029_s1 + $0x88] sm:$0xff]   ;;  %v3062_v6 = vld [vmem:[%s4029_s1 + $0x90] sm:$0xff]  }
   0x3   :  { %1383 = vmatpush1.bf16.msra.mxu0 %v3041_v2  ;;  %1152 = vmatprep.subr.bf16.mxu1 %v3010_v0  ;;  %v2807_v7 = vld [vmem:[%s4029_s1 + $0x18] sm:$0xff]   ;;  %v2809_v9 = vld [vmem:[%s4029_s1 + $0x20] sm:$0xff]   ;;  %v2811_v11 = vld [vmem:[%s4029_s1 + $0x28] sm:$0xff]  }
   0x4   :  { %1384 = vmatprep.subr.bf16.mxu0 %v3010_v0  ;;  %v3073_v8 = vld [vmem:[%s4029_s1 + $0x98] sm:$0xff]   ;;  %v3084_v10 = vld [vmem:[%s4029_s1 + $0xa0] sm:$0xff]   ;;  %v3095_v12 = vld [vmem:[%s4029_s1 + $0xa8] sm:$0xff]  }
   0x5   :  { %v2813_v13 = vld [vmem:[%s4029_s1 + $0x30] sm:$0xff]   ;;  %v2815_v15 = vld [vmem:[%s4029_s1 + $0x38] sm:$0xff]   ;;  %v2817_v17 = vld [vmem:[%s4029_s1 + $0x40] sm:$0xff]  }
   0x6   :  { %1153 = vmatpush1.bf16.msra.mxu1 %v2803_v3  ;;  %v3106_v14 = vld [vmem:[%s4029_s1 + $0xb0] sm:$0xff]   ;;  %v3117_v16 = vld [vmem:[%s4029_s1 + $0xb8] sm:$0xff]   ;;  %v3128_v18 = vld [vmem:[%s4029_s1 + $0xc0] sm:$0xff]  }
   0x7   :  { %1385 = vmatpush1.bf16.msra.mxu0 %v3051_v4  ;;  %1154 = vmatprep.subr.bf16.mxu1 %v3010_v0  ;;  %v2835_v19 = vld [vmem:[%s4030_s0 + $0x4] ss:$20 sps:$4 sm:$0xff]   ;;  %v2819_v20 = vld [vmem:[%s4029_s1 + $0x48] sm:$0xff]   ;;  %v2821_v23 = vld [vmem:[%s4029_s1 + $0x50] sm:$0xff]  }
   0x8   :  { %1386 = vmatprep.subr.bf16.mxu0 %v3010_v0  ;;  %v2838_v21 = vld [vmem:[%s4030_s0 + $0xc] ss:$20 sps:$4 sm:$0xff]   ;;  %1182 = vmatprep.mubr.bf16.mxu1 %v2835_v19  ;;  %v3156_v24 = vld [vmem:[%s4029_s1 + $0xd0] sm:$0xff]   ;;  %v2823_v25 = vld [vmem:[%s4029_s1 + $0x58] sm:$0xff]  }
   0x9   :  { %v3145_v22 = vld [vmem:[%s4029_s1 + $0xc8] sm:$0xff]   ;;  %1414 = vmatprep.mubr.bf16.mxu0 %v2838_v21  ;;  %v3167_v26 = vld [vmem:[%s4029_s1 + $0xd8] sm:$0xff]   ;;  %v2825_v27 = vld [vmem:[%s4029_s1 + $0x60] sm:$0xff]  }
   0xa   :  { %1155 = vmatpush1.bf16.msra.mxu1 %v2805_v5  ;;  %v3178_v28 = vld [vmem:[%s4029_s1 + $0xe0] sm:$0xff]   ;;  %v2827_v29 = vld [vmem:[%s4029_s1 + $0x68] sm:$0xff]   ;;  %v2829_v31 = vld [vmem:[%s4029_s1 + $0x70] sm:$0xff]  }
   0xb   :  { %1387 = vmatpush1.bf16.msra.mxu0 %v3062_v6  ;;  %1156 = vmatprep.subr.bf16.mxu1 %v3010_v0  ;;  %v3189_v30 = vld [vmem:[%s4029_s1 + $0xe8] sm:$0xff]   ;;  %v3200_v32 = vld [vmem:[%s4029_s1 + $0xf0] sm:$0xff]   ;;  %v2831_v33 = vld [vmem:[%s4029_s1 + $0x78] sm:$0xff]  }
   0xc   :  { %1388 = vmatprep.subr.bf16.mxu0 %v3010_v0  ;;  %v3211_v34 = vld [vmem:[%s4029_s1 + $0xf8] sm:$0xff]   ;;  %v2833_v35 = vld [vmem:[%s4030_s0] ss:$20 sps:$4 sm:$0xff]   ;;  %v2858_v41 = vld [vmem:[%s4029_s1 + $0x108] sm:$0xff]  }
   0xd   :  { %v2836_v36 = vld [vmem:[%s4030_s0 + $0x8] ss:$20 sps:$4 sm:$0xff]   ;;  %v2840_v37 = vld [vmem:[%s4030_s0 + $0x2c] ss:$20 sps:$4 sm:$0xff]   ;;  %v2845_v43 = vld [vmem:[%s4030_s0 + $0x30] ss:$20 sps:$4 sm:$0xff]  }
   0xe   :  { %1157 = vmatpush1.bf16.msra.mxu1 %v2807_v7  ;;  %v2839_v38 = vld [vmem:[%s4029_s1 + $0x100] sm:$0xff]   ;;  %v2842_v40 = vld [vmem:[%s4030_s0 + $0x34] ss:$20 sps:$4 sm:$0xff]   ;;  %v2848_v45 = vld [vmem:[%s4030_s0 + $0x5c] ss:$20 sps:$4 sm:$0xff]  }
   0xf   :  { %1389 = vmatpush1.bf16.msra.mxu0 %v3073_v8  ;;  %1158 = vmatprep.subr.bf16.mxu1 %v3010_v0  ;;  %v2844_v42 = vld [vmem:[%s4030_s0 + $0x28] ss:$20 sps:$4 sm:$0xff]   ;;  %v2877_v46 = vld [vmem:[%s4029_s1 + $0x110] sm:$0xff]   ;;  %v2851_v49 = vld [vmem:[%s4030_s0 + $0x58] ss:$20 sps:$4 sm:$0xff]  }
  0x10   :  { %1390 = vmatprep.subr.bf16.mxu0 %v3010_v0  ;;  %v2846_v44 = vld [vmem:[%s4030_s0 + $0x54] ss:$20 sps:$4 sm:$0xff]   ;;  %v2900_v47 = vld [vmem:[%s4029_s1 + $0x118] sm:$0xff]   ;;  %v2850_v48 = vld [vmem:[%s4030_s0 + $0x50] ss:$20 sps:$4 sm:$0xff]  }
  0x11   :  { %v2852_v50 = vld [vmem:[%s4030_s0 + $0x7c] ss:$20 sps:$4 sm:$0xff]   ;;  %v2854_v51 = vld [vmem:[%s4030_s0 + $0x84] ss:$20 sps:$4 sm:$0xff]   ;;  %v2857_v53 = vld [vmem:[%s4030_s0 + $0x80] ss:$20 sps:$4 sm:$0xff]  }
  0x12   :  { %1159 = vmatpush1.bf16.msra.mxu1 %v2809_v9  ;;  %v2856_v52 = vld [vmem:[%s4030_s0 + $0x78] ss:$20 sps:$4 sm:$0xff]   ;;  %v2863_v56 = vld [vmem:[%s4030_s0 + $0xa0] ss:$20 sps:$4 sm:$0xff]   ;;  %v2864_v57 = vld [vmem:[%s4030_s0 + $0xa8] ss:$20 sps:$4 sm:$0xff]  }
  0x13   :  { %1391 = vmatpush1.bf16.msra.mxu0 %v3084_v10  ;;  %1160 = vmatprep.subr.bf16.mxu1 %v3010_v0  ;;  %v2859_v54 = vld [vmem:[%s4030_s0 + $0xa4] ss:$20 sps:$4 sm:$0xff]   ;;  %v2861_v55 = vld [vmem:[%s4030_s0 + $0xac] ss:$20 sps:$4 sm:$0xff]   ;;  %v2867_v59 = vld [vmem:[%s4030_s0 + $0xd4] ss:$20 sps:$4 sm:$0xff]  }
  0x14   :  { %1392 = vmatprep.subr.bf16.mxu0 %v3010_v0  ;;  %v2865_v58 = vld [vmem:[%s4030_s0 + $0xcc] ss:$20 sps:$4 sm:$0xff]   ;;  %v2869_v60 = vld [vmem:[%s4030_s0 + $0xc8] ss:$20 sps:$4 sm:$0xff]   ;;  %v2870_v61 = vld [vmem:[%s4030_s0 + $0xd0] ss:$20 sps:$4 sm:$0xff]  }
  0x15   :  { %v2871_v62 = vld [vmem:[%s4030_s0 + $0xf4] ss:$20 sps:$4 sm:$0xff]   ;;  %v2873_v63 = vld [vmem:[%s4030_s0 + $0xfc] ss:$20 sps:$4 sm:$0xff]   ;;  %v2882_v5 = vld [vmem:[%s4030_s0 + $0x118] ss:$20 sps:$4 sm:$0xff]  }
  0x16   :  { %1161 = vmatpush1.bf16.msra.mxu1 %v2811_v11  ;;  %v2875_v1 = vld [vmem:[%s4030_s0 + $0xf0] ss:$20 sps:$4 sm:$0xff]   ;;  %v2888_v9 = vld [vmem:[%s4030_s0 + $0x140] ss:$20 sps:$4 sm:$0xff]  }
  0x17   :  { %1393 = vmatpush1.bf16.msra.mxu0 %v3095_v12  ;;  %1162 = vmatprep.subr.bf16.mxu1 %v3010_v0  ;;  %v2878_v3 = vld [vmem:[%s4030_s0 + $0x11c] ss:$20 sps:$4 sm:$0xff]   ;;  %v2884_v7 = vld [vmem:[%s4030_s0 + $0x144] ss:$20 sps:$4 sm:$0xff]   ;;  %v2890_v11 = vld [vmem:[%s4030_s0 + $0x16c] ss:$20 sps:$4 sm:$0xff]  }
  0x18   :  { %1394 = vmatprep.subr.bf16.mxu0 %v3010_v0  ;;  %v2905_v19 = vld [vmem:[%s4030_s0 + $0x1c4] ss:$20 sps:$4 sm:$0xff]   ;;  %v2908_v21 = vld [vmem:[%s4030_s0 + $0x1c0] ss:$20 sps:$4 sm:$0xff]  }
  0x1a   :  { %1163 = vmatpush1.bf16.msra.mxu1 %v2813_v13  ;;  %v2895_v13 = vld [vmem:[%s4030_s0 + $0x170] ss:$20 sps:$4 sm:$0xff]  }
  0x1b   :  { %1395 = vmatpush1.bf16.msra.mxu0 %v3106_v14  ;;  %1164 = vmatprep.subr.bf16.mxu1 %v3010_v0 }
  0x1c   :  { %1396 = vmatprep.subr.bf16.mxu0 %v3010_v0 }
  0x1e   :  { %1165 = vmatpush1.bf16.msra.mxu1 %v2815_v15  ;;  %v2898_v15 = vld [vmem:[%s4030_s0 + $0x19c] ss:$20 sps:$4 sm:$0xff]  }
  0x1f   :  { %1397 = vmatpush1.bf16.msra.mxu0 %v3117_v16  ;;  %1166 = vmatprep.subr.bf16.mxu1 %v3010_v0 }
  0x20   :  { %1398 = vmatprep.subr.bf16.mxu0 %v3010_v0 }
  0x22   :  { %1167 = vmatpush1.bf16.msra.mxu1 %v2817_v17  ;;  %v2902_v17 = vld [vmem:[%s4030_s0 + $0x198] ss:$20 sps:$4 sm:$0xff]  }
  0x23   :  { %1399 = vmatpush1.bf16.msra.mxu0 %v3128_v18  ;;  %1168 = vmatprep.subr.bf16.mxu1 %v3010_v0 }
  0x24   :  { %1400 = vmatprep.subr.bf16.mxu0 %v3010_v0 }
  0x26   :  { %1169 = vmatpush1.bf16.msra.mxu1 %v2819_v20  ;;  %v2907_v20 = vld [vmem:[%s4030_s0 + $0x1b8] ss:$20 sps:$4 sm:$0xff]  }
  0x27   :  { %1401 = vmatpush1.bf16.msra.mxu0 %v3145_v22  ;;  %1170 = vmatprep.subr.bf16.mxu1 %v3010_v0 }
  0x28   :  { %1402 = vmatprep.subr.bf16.mxu0 %v3010_v0 }
  0x2a   :  { %1171 = vmatpush1.bf16.msra.mxu1 %v2821_v23  ;;  %v2911_v23 = vld [vmem:[%s4030_s0 + $0x1ec] ss:$20 sps:$4 sm:$0xff]  }
  0x2b   :  { %1403 = vmatpush1.bf16.msra.mxu0 %v3156_v24  ;;  %1172 = vmatprep.subr.bf16.mxu1 %v3010_v0 }
  0x2c   :  { %1404 = vmatprep.subr.bf16.mxu0 %v3010_v0 }
  0x2e   :  { %1173 = vmatpush1.bf16.msra.mxu1 %v2823_v25  ;;  %v2914_v25 = vld [vmem:[%s4030_s0 + $0x1e8] ss:$20 sps:$4 sm:$0xff]  }
  0x2f   :  { %1405 = vmatpush1.bf16.msra.mxu0 %v3167_v26  ;;  %1174 = vmatprep.subr.bf16.mxu1 %v3010_v0 }
  0x30   :  { %1406 = vmatprep.subr.bf16.mxu0 %v3010_v0 }
  0x32   :  { %1175 = vmatpush1.bf16.msra.mxu1 %v2825_v27  ;;  %v2917_v27 = vld [vmem:[%s4030_s0 + $0x208] ss:$20 sps:$4 sm:$0xff]  }
  0x33   :  { %1407 = vmatpush1.bf16.msra.mxu0 %v3178_v28  ;;  %1176 = vmatprep.subr.bf16.mxu1 %v3010_v0 }
  0x34   :  { %1408 = vmatprep.subr.bf16.mxu0 %v3010_v0 }
  0x36   :  { %1177 = vmatpush1.bf16.msra.mxu1 %v2827_v29  ;;  %v2919_v29 = vld [vmem:[%s4030_s0 + $0x234] ss:$20 sps:$4 sm:$0xff]  }
  0x37   :  { %1409 = vmatpush1.bf16.msra.mxu0 %v3189_v30  ;;  %1178 = vmatprep.subr.bf16.mxu1 %v3010_v0 }
  0x38   :  { %1410 = vmatprep.subr.bf16.mxu0 %v3010_v0 }
  0x3a   :  { %1179 = vmatpush1.bf16.msra.mxu1 %v2829_v31  ;;  %v2922_v31 = vld [vmem:[%s4030_s0 + $0x38] ss:$20 sps:$4 sm:$0xff]  }
  0x3b   :  { %1411 = vmatpush1.bf16.msra.mxu0 %v3200_v32  ;;  %1180 = vmatprep.subr.bf16.mxu1 %v3010_v0 }
  0x3c   :  { %1412 = vmatprep.subr.bf16.mxu0 %v3010_v0 }
  0x3e   :  { %1181 = vmatpush1.bf16.msra.mxu1 %v2831_v33  ;;  %v2925_v33 = vld [vmem:[%s4030_s0 + $0x258] ss:$20 sps:$4 sm:$0xff]  }
  0x3f   :  { %1413 = vmatpush1.bf16.msra.mxu0 %v3211_v34  ;;  %2568 = vmatprep.subr.bf16.mxu1 %v3010_v0 }
  0x40   :  { %2460 = vmatprep.subr.bf16.mxu0 %v3011_v39 }
  0x41   :  { %1183 = vmatmul.mubr.bf16.vlgmr.msra.gmra.mrb[0].mxu1 %v2833_v35  ;;  %v2927_v35 = vld [vmem:[%s4030_s0 + $0x284] ss:$20 sps:$4 sm:$0xff]  }
  0x42   :  { %1415 = vmatmul.mubr.bf16.vlgmr.msra.gmra.mrb[0].mxu0 %v2836_v36  ;;  %1190 = vmatprep.mubr.bf16.mxu1 %v2840_v37  ;;  %v2929_v36 = vld [vmem:[%s4030_s0 + $0x280] ss:$20 sps:$4 sm:$0xff]   ;;  %v2930_v37 = vld [vmem:[%s4030_s0 + $0x88] ss:$20 sps:$4 sm:$0xff]  }
  0x43   :  { %2461 = vmatpush3.bf16.msra.mxu0 %v2839_v38  ;;  %2584 = vmatpush1.bf16.msra.mxu1 %v3041_v2  ;;  %v2876_v2 = vld [vmem:[%s4030_s0 + $0xf8] ss:$20 sps:$4 sm:$0xff]  }
  0x44   :  { %1422 = vmatprep.mubr.bf16.mxu0 %v2842_v40  ;;  %2569 = vmatprep.subr.bf16.mxu1 %v3010_v0  ;;  %v2931_v38 = vld [vmem:[%s4030_s0 + $0x2ac] ss:$20 sps:$4 sm:$0xff]   ;;  %v2933_v40 = vld [vmem:[%s4030_s0 + $0x2a8] ss:$20 sps:$4 sm:$0xff]  }
  0x45   :  { %2462 = vmatprep.subr.bf16.mxu0 %v3011_v39 }
  0x47   :  { %2585 = vmatpush1.bf16.msra.mxu1 %v3051_v4  ;;  %2463 = vmatpush3.bf16.msra.mxu0 %v2858_v41  ;;  %v2880_v4 = vld [vmem:[%s4030_s0 + $0x124] ss:$20 sps:$4 sm:$0xff]  }
  0x48   :  { %2570 = vmatprep.subr.bf16.mxu1 %v3010_v0  ;;  %2464 = vmatprep.subr.bf16.mxu0 %v3011_v39  ;;  %v2934_v41 = vld [vmem:[%s4030_s0 + $0xb0] ss:$20 sps:$4 sm:$0xff]  }
  0x49   :  { %1191 = vmatmul.mubr.bf16.gmra.mrb[4].mxu1 %v2844_v42  ;;  %v2935_v42 = vld [vmem:[%s4030_s0 + $0x2d4] ss:$20 sps:$4 sm:$0xff]  }
  0x4a   :  { %1423 = vmatmul.mubr.bf16.gmra.mrb[4].mxu0 %v2845_v43  ;;  %1198 = vmatprep.mubr.bf16.mxu1 %v2846_v44  ;;  %v2937_v43 = vld [vmem:[%s4030_s0 + $0x2d0] ss:$20 sps:$4 sm:$0xff]   ;;  %v2938_v44 = vld [vmem:[%s4030_s0 + $0xd8] ss:$20 sps:$4 sm:$0xff]  }
  0x4b   :  { %1430 = vmatprep.mubr.bf16.mxu0 %v2848_v45  ;;  %2586 = vmatpush1.bf16.msra.mxu1 %v3062_v6  ;;  %v2883_v6 = vld [vmem:[%s4030_s0 + $0x120] ss:$20 sps:$4 sm:$0xff]   ;;  %v2939_v45 = vld [vmem:[%s4030_s0 + $0x2fc] ss:$20 sps:$4 sm:$0xff]  }
  0x4c   :  { %2571 = vmatprep.subr.bf16.mxu1 %v3010_v0  ;;  %2465 = vmatpush3.bf16.msra.mxu0 %v2877_v46  ;;  %v2941_v46 = vld [vmem:[%s4030_s0 + $0x2f8] ss:$20 sps:$4 sm:$0xff]  }
  0x4d   :  { %2466 = vmatprep.subr.bf16.mxu0 %v3011_v39 }
  0x4f   :  { %2587 = vmatpush1.bf16.msra.mxu1 %v3073_v8  ;;  %v2886_v8 = vld [vmem:[%s4030_s0 + $0x14c] ss:$20 sps:$4 sm:$0xff]  }
  0x50   :  { %2572 = vmatprep.subr.bf16.mxu1 %v3010_v0  ;;  %2467 = vmatpush3.bf16.msra.mxu0 %v2900_v47  ;;  %v2942_v47 = vld [vmem:[%s4030_s0 + $0x100] ss:$20 sps:$4 sm:$0xff]  }
  0x51   :  { %1199 = vmatmul.mubr.bf16.gmra.mrb[8].mxu1 %v2850_v48  ;;  %v2943_v48 = vld [vmem:[%s4030_s0 + $0x324] ss:$20 sps:$4 sm:$0xff]  }
  0x52   :  { %1431 = vmatmul.mubr.bf16.gmra.mrb[8].mxu0 %v2851_v49  ;;  %1206 = vmatprep.mubr.bf16.mxu1 %v2852_v50  ;;  %v2945_v49 = vld [vmem:[%s4030_s0 + $0x320] ss:$20 sps:$4 sm:$0xff]   ;;  %v2946_v50 = vld [vmem:[%s4030_s0 + $0x128] ss:$20 sps:$4 sm:$0xff]  }
  0x53   :  { %1438 = vmatprep.mubr.bf16.mxu0 %v2854_v51  ;;  %2588 = vmatpush1.bf16.msra.mxu1 %v3084_v10  ;;  %v2889_v10 = vld [vmem:[%s4030_s0 + $0x148] ss:$20 sps:$4 sm:$0xff]   ;;  %v2947_v51 = vld [vmem:[%s4030_s0 + $0x34c] ss:$20 sps:$4 sm:$0xff]  }
  0x54   :  { %2573 = vmatprep.subr.bf16.mxu1 %v3010_v0 }
  0x57   :  { %2589 = vmatpush1.bf16.msra.mxu1 %v3095_v12  ;;  %v2892_v12 = vld [vmem:[%s4030_s0 + $0x174] ss:$20 sps:$4 sm:$0xff]  }
  0x58   :  { %2574 = vmatprep.subr.bf16.mxu1 %v3010_v0 }
  0x59   :  { %1207 = vmatmul.mubr.bf16.gmra.mrb[12].mxu1 %v2856_v52  ;;  %v2949_v52 = vld [vmem:[%s4030_s0 + $0x348] ss:$20 sps:$4 sm:$0xff]  }
  0x5a   :  { %1439 = vmatmul.mubr.bf16.gmra.mrb[12].mxu0 %v2857_v53  ;;  %1214 = vmatprep.mubr.bf16.mxu1 %v2859_v54  ;;  %v2950_v53 = vld [vmem:[%s4030_s0 + $0x150] ss:$20 sps:$4 sm:$0xff]   ;;  %v2951_v54 = vld [vmem:[%s4030_s0 + $0x374] ss:$20 sps:$4 sm:$0xff]  }
  0x5b   :  { %1446 = vmatprep.mubr.bf16.mxu0 %v2861_v55  ;;  %2590 = vmatpush1.bf16.msra.mxu1 %v3106_v14  ;;  %v2896_v14 = vld [vmem:[%s4030_s0 + $0x194] ss:$20 sps:$4 sm:$0xff]   ;;  %v2953_v55 = vld [vmem:[%s4030_s0 + $0x370] ss:$20 sps:$4 sm:$0xff]  }
  0x5c   :  { %2575 = vmatprep.subr.bf16.mxu1 %v3010_v0 }
  0x5f   :  { %2591 = vmatpush1.bf16.msra.mxu1 %v3117_v16  ;;  %v2901_v16 = vld [vmem:[%s4030_s0 + $0x190] ss:$20 sps:$4 sm:$0xff]  }
  0x60   :  { %2576 = vmatprep.subr.bf16.mxu1 %v3010_v0 }
  0x61   :  { %1215 = vmatmul.mubr.bf16.gmra.mrb[16].mxu1 %v2863_v56  ;;  %v2954_v56 = vld [vmem:[%s4030_s0 + $0x178] ss:$20 sps:$4 sm:$0xff]  }
  0x62   :  { %1447 = vmatmul.mubr.bf16.gmra.mrb[16].mxu0 %v2864_v57  ;;  %1222 = vmatprep.mubr.bf16.mxu1 %v2865_v58  ;;  %v2955_v57 = vld [vmem:[%s4030_s0 + $0x39c] ss:$20 sps:$4 sm:$0xff]   ;;  %v159_v58 = vld [vmem:[%s4030_s0 + $0x3c0] sm:$0xff] }
  0x63   :  { %1454 = vmatprep.mubr.bf16.mxu0 %v2867_v59  ;;  %2592 = vmatpush1.bf16.msra.mxu1 %v3128_v18  ;;  %v2903_v18 = vld [vmem:[%s4030_s0 + $0x1bc] ss:$20 sps:$4 sm:$0xff]   ;;  %v2957_v59 = vld [vmem:[%s4030_s0 + $0x398] ss:$20 sps:$4 sm:$0xff]  }
  0x64   :  { %2577 = vmatprep.subr.bf16.mxu1 %v3010_v0 }
  0x67   :  { %2593 = vmatpush1.bf16.msra.mxu1 %v3145_v22  ;;  %v2909_v22 = vld [vmem:[%s4030_s0 + $0x1e4] ss:$20 sps:$4 sm:$0xff]  }
  0x68   :  { %2578 = vmatprep.subr.bf16.mxu1 %v3010_v0 }
  0x69   :  { %1223 = vmatmul.mubr.bf16.gmra.mrb[20].mxu1 %v2869_v60  ;;  %v2958_v60 = vld [vmem:[%s4030_s0 + $0x1a0] ss:$20 sps:$4 sm:$0xff]  }
  0x6a   :  { %1455 = vmatmul.mubr.bf16.gmra.mrb[20].mxu0 %v2870_v61  ;;  %1230 = vmatprep.mubr.bf16.mxu1 %v2871_v62  ;;  %v2268_v61 = vcombine.high %v159_v58, %v159_v58  ;;  %v2267_v62 = vcombine.low %v159_v58, %v159_v58 }
  0x6b   :  { %1462 = vmatprep.mubr.bf16.mxu0 %v2873_v63  ;;  %2594 = vmatpush1.bf16.msra.mxu1 %v3156_v24  ;;  %v2913_v24 = vld [vmem:[%s4030_s0 + $0x1e0] ss:$20 sps:$4 sm:$0xff]   ;;  %v2961_v63 = vld [vmem:[%s4030_s0 + $0x1c8] ss:$20 sps:$4 sm:$0xff]  }
  0x6c   :  { %2579 = vmatprep.subr.bf16.mxu1 %v3010_v0 }
  0x6f   :  { %2595 = vmatpush1.bf16.msra.mxu1 %v3167_v26  ;;  %v2915_v26 = vld [vmem:[%s4030_s0 + $0x20c] ss:$20 sps:$4 sm:$0xff]  }
  0x70   :  { %2580 = vmatprep.subr.bf16.mxu1 %v3010_v0 }
  0x71   :  { %1231 = vmatmul.mubr.bf16.gmra.mrb[24].mxu1 %v2875_v1  ;;  %v2964_v1 = vld [vmem:[%s4030_s0 + $0x214] ss:$20 sps:$4 sm:$0xff]  }
  0x72   :  { %1463 = vmatmul.mubr.bf16.gmra.mrb[24].mxu0 %v2876_v2  ;;  %1238 = vmatprep.mubr.bf16.mxu1 %v2878_v3  ;;  %v2962_v2 = vld [vmem:[%s4030_s0 + $0x210] ss:$20 sps:$4 sm:$0xff]  }
  0x73   :  { %1470 = vmatprep.mubr.bf16.mxu0 %v2880_v4  ;;  %2596 = vmatpush1.bf16.msra.mxu1 %v3178_v28  ;;  %v2918_v28 = vld [vmem:[%s4030_s0 + $0x10] ss:$20 sps:$4 sm:$0xff]  }
  0x74   :  { %2581 = vmatprep.subr.bf16.mxu1 %v3010_v0  ;;  %v2965_v3 = vld [vmem:[%s4030_s0 + $0x1f0] ss:$20 sps:$4 sm:$0xff]  }
  0x75   :  { %v2966_v4 = vld [vmem:[%s4030_s0 + $0x23c] ss:$20 sps:$4 sm:$0xff]  }
  0x77   :  { %2597 = vmatpush1.bf16.msra.mxu1 %v3189_v30  ;;  %v2921_v30 = vld [vmem:[%s4030_s0 + $0x230] ss:$20 sps:$4 sm:$0xff]  }
  0x78   :  { %2582 = vmatprep.subr.bf16.mxu1 %v3010_v0 }
  0x79   :  { %1239 = vmatmul.mubr.bf16.gmra.mrb[28].mxu1 %v2882_v5  ;;  %v2968_v5 = vld [vmem:[%s4030_s0 + $0x238] ss:$20 sps:$4 sm:$0xff]  }
  0x7a   :  { %1471 = vmatmul.mubr.bf16.gmra.mrb[28].mxu0 %v2883_v6  ;;  %1246 = vmatprep.mubr.bf16.mxu1 %v2884_v7  ;;  %v2969_v6 = vld [vmem:[%s4030_s0 + $0x218] ss:$20 sps:$4 sm:$0xff]  }
  0x7b   :  { %1478 = vmatprep.mubr.bf16.mxu0 %v2886_v8  ;;  %2598 = vmatpush1.bf16.msra.mxu1 %v3200_v32  ;;  %v2923_v32 = vld [vmem:[%s4030_s0 + $0x25c] ss:$20 sps:$4 sm:$0xff]   ;;  %v2970_v7 = vld [vmem:[%s4030_s0 + $0x264] ss:$20 sps:$4 sm:$0xff]  }
  0x7c   :  { %2583 = vmatprep.subr.bf16.mxu1 %v3010_v0  ;;  %v2894_v0 = vld [vmem:[%s4030_s0 + $0x168] ss:$20 sps:$4 sm:$0xff]  }
  0x7f   :  { %2599 = vmatpush1.bf16.msra.mxu1 %v3211_v34  ;;  %v2926_v34 = vld [vmem:[%s4030_s0 + $0x60] ss:$20 sps:$4 sm:$0xff]  }
  0x81   :  { %1247 = vmatmul.mubr.bf16.gmra.mrb[32].mxu1 %v2888_v9 }
  0x82   :  { %1479 = vmatmul.mubr.bf16.gmra.mrb[32].mxu0 %v2889_v10  ;;  %1254 = vmatprep.mubr.bf16.mxu1 %v2890_v11  ;;  %v2972_v10 = vld [vmem:[%s4030_s0 + $0x260] ss:$20 sps:$4 sm:$0xff]  }
  0x83   :  { %1486 = vmatprep.mubr.bf16.mxu0 %v2892_v12  ;;  %v2973_v11 = vld [vmem:[%s4030_s0 + $0x240] ss:$20 sps:$4 sm:$0xff]  }
  0x89   :  { %1255 = vmatmul.mubr.bf16.gmra.mrb[36].mxu1 %v2894_v0  ;;  %v2974_v0 = vld [vmem:[%s4030_s0 + $0x28c] ss:$20 sps:$4 sm:$0xff]  }
  0x8a   :  { %1487 = vmatmul.mubr.bf16.gmra.mrb[36].mxu0 %v2895_v13  ;;  %1262 = vmatprep.mubr.bf16.mxu1 %v2896_v14 }
  0x8b   :  { %1494 = vmatprep.mubr.bf16.mxu0 %v2898_v15 }
  0x91   :  { %1263 = vmatmul.mubr.bf16.gmra.mrb[40].mxu1 %v2901_v16  ;;  %v2976_v16 = vld [vmem:[%s4030_s0 + $0x288] ss:$20 sps:$4 sm:$0xff]  }
  0x92   :  { %1495 = vmatmul.mubr.bf16.gmra.mrb[40].mxu0 %v2902_v17  ;;  %1270 = vmatprep.mubr.bf16.mxu1 %v2903_v18  ;;  %v2977_v17 = vld [vmem:[%s4030_s0 + $0x268] ss:$20 sps:$4 sm:$0xff]  }
  0x93   :  { %1502 = vmatprep.mubr.bf16.mxu0 %v2905_v19  ;;  %v2978_v19 = vld [vmem:[%s4030_s0 + $0x2b4] ss:$20 sps:$4 sm:$0xff]  }
  0x99   :  { %1271 = vmatmul.mubr.bf16.gmra.mrb[44].mxu1 %v2907_v20 }
  0x9a   :  { %1503 = vmatmul.mubr.bf16.gmra.mrb[44].mxu0 %v2908_v21  ;;  %1278 = vmatprep.mubr.bf16.mxu1 %v2909_v22 }
  0x9b   :  { %1510 = vmatprep.mubr.bf16.mxu0 %v2911_v23  ;;  %v2980_v23 = vld [vmem:[%s4030_s0 + $0x2b0] ss:$20 sps:$4 sm:$0xff]  }
  0xa1   :  { %1279 = vmatmul.mubr.bf16.gmra.mrb[48].mxu1 %v2913_v24  ;;  %v2981_v24 = vld [vmem:[%s4030_s0 + $0x290] ss:$20 sps:$4 sm:$0xff]  }
  0xa2   :  { %1511 = vmatmul.mubr.bf16.gmra.mrb[48].mxu0 %v2914_v25  ;;  %1286 = vmatprep.mubr.bf16.mxu1 %v2915_v26  ;;  %v2982_v26 = vld [vmem:[%s4030_s0 + $0x2dc] ss:$20 sps:$4 sm:$0xff]  }
  0xa3   :  { %2468 = vmatprep.mubr.msk.bf16.mxu0 %vm3012_vm0, %v3011_v39 }
  0xa9   :  { %1287 = vmatmul.mubr.bf16.gmra.mrb[52].mxu1 %v2917_v27 }
  0xaa   :  { %2469 = vmatmul.mubr.msk.bf16.vlgmr.msra.gmra.mrb[0].mxu0 %vm1074_vm1, %v2918_v28  ;;  %1294 = vmatprep.mubr.bf16.mxu1 %v2919_v29 }
  0xab   :  { %2472 = vmatprep.mubr.msk.bf16.mxu0 %vm3012_vm0, %v3011_v39 }
  0xb1   :  { %1295 = vmatmul.mubr.bf16.gmra.mrb[56].mxu1 %v2921_v30  ;;  %v2984_v30 = vld [vmem:[%s4030_s0 + $0x2d8] ss:$20 sps:$4 sm:$0xff]  }
  0xb2   :  { %2473 = vmatmul.mubr.msk.bf16.gmra.mrb[4].mxu0 %vm1074_vm1, %v2922_v31  ;;  %1302 = vmatprep.mubr.bf16.mxu1 %v2923_v32  ;;  %v2985_v31 = vld [vmem:[%s4030_s0 + $0x2b8] ss:$20 sps:$4 sm:$0xff]  }
  0xb3   :  { %2476 = vmatprep.mubr.msk.bf16.mxu0 %vm3012_vm0, %v3011_v39 }
  0xb9   :  { %1303 = vmatmul.mubr.bf16.gmra.mrb[60].mxu1 %v2925_v33  ;;  %v2986_v33 = vld [vmem:[%s4030_s0 + $0x304] ss:$20 sps:$4 sm:$0xff]  }
  0xba   :  { %2477 = vmatmul.mubr.msk.bf16.gmra.mrb[8].mxu0 %vm1074_vm1, %v2926_v34  ;;  %1310 = vmatprep.mubr.bf16.mxu1 %v2927_v35 }
  0xbb   :  { %2480 = vmatprep.mubr.msk.bf16.mxu0 %vm3012_vm0, %v3011_v39 }
  0xc1   :  { %1311 = vmatmul.mubr.bf16.gmra.mrb[64].mxu1 %v2929_v36 }
  0xc2   :  { %2481 = vmatmul.mubr.msk.bf16.gmra.mrb[12].mxu0 %vm1074_vm1, %v2930_v37  ;;  %1318 = vmatprep.mubr.bf16.mxu1 %v2931_v38  ;;  %v2988_v37 = vld [vmem:[%s4030_s0 + $0x300] ss:$20 sps:$4 sm:$0xff]  }
  0xc3   :  { %2484 = vmatprep.mubr.msk.bf16.mxu0 %vm3012_vm0, %v3011_v39  ;;  %v2989_v38 = vld [vmem:[%s4030_s0 + $0x2e0] ss:$20 sps:$4 sm:$0xff]  }
  0xc9   :  { %1319 = vmatmul.mubr.bf16.gmra.mrb[68].mxu1 %v2933_v40 }
  0xca   :  { %2485 = vmatmul.mubr.msk.bf16.gmra.mrb[16].mxu0 %vm1074_vm1, %v2934_v41  ;;  %1326 = vmatprep.mubr.bf16.mxu1 %v2935_v42  ;;  %v2990_v41 = vld [vmem:[%s4030_s0 + $0x32c] ss:$20 sps:$4 sm:$0xff]  }
  0xcb   :  { %2488 = vmatprep.mubr.msk.bf16.mxu0 %vm3012_vm0, %v3011_v39 }
  0xd1   :  { %1327 = vmatmul.mubr.bf16.gmra.mrb[72].mxu1 %v2937_v43 }
  0xd2   :  { %2489 = vmatmul.mubr.msk.bf16.gmra.mrb[20].mxu0 %vm1074_vm1, %v2938_v44  ;;  %1334 = vmatprep.mubr.bf16.mxu1 %v2939_v45  ;;  %v2992_v45 = vld [vmem:[%s4030_s0 + $0x328] ss:$20 sps:$4 sm:$0xff]  }
  0xd3   :  { %2492 = vmatprep.mubr.msk.bf16.mxu0 %vm3012_vm0, %v3011_v39 }
  0xd9   :  { %1335 = vmatmul.mubr.bf16.gmra.mrb[76].mxu1 %v2941_v46  ;;  %v2993_v46 = vld [vmem:[%s4030_s0 + $0x308] ss:$20 sps:$4 sm:$0xff]  }
  0xda   :  { %2493 = vmatmul.mubr.msk.bf16.gmra.mrb[24].mxu0 %vm1074_vm1, %v2942_v47  ;;  %1342 = vmatprep.mubr.bf16.mxu1 %v2943_v48  ;;  %v2994_v48 = vld [vmem:[%s4030_s0 + $0x354] ss:$20 sps:$4 sm:$0xff]  }
  0xdb   :  { %2496 = vmatprep.mubr.msk.bf16.mxu0 %vm3012_vm0, %v3011_v39 }
  0xe1   :  { %1343 = vmatmul.mubr.bf16.gmra.mrb[80].mxu1 %v2945_v49 }
  0xe2   :  { %2497 = vmatmul.mubr.msk.bf16.gmra.mrb[28].mxu0 %vm1074_vm1, %v2946_v50  ;;  %1350 = vmatprep.mubr.bf16.mxu1 %v2947_v51 }
  0xe3   :  { %2500 = vmatprep.mubr.msk.bf16.mxu0 %vm3012_vm0, %v3011_v39 }
  0xe9   :  { %1351 = vmatmul.mubr.bf16.gmra.mrb[84].mxu1 %v2949_v52  ;;  %v2996_v52 = vld [vmem:[%s4030_s0 + $0x350] ss:$20 sps:$4 sm:$0xff]  }
  0xea   :  { %2501 = vmatmul.mubr.msk.bf16.gmra.mrb[32].mxu0 %vm1074_vm1, %v2950_v53  ;;  %1358 = vmatprep.mubr.bf16.mxu1 %v2951_v54  ;;  %v2997_v53 = vld [vmem:[%s4030_s0 + $0x330] ss:$20 sps:$4 sm:$0xff]  }
  0xeb   :  { %2504 = vmatprep.mubr.msk.bf16.mxu0 %vm3012_vm0, %v3011_v39 }
  0xf1   :  { %1359 = vmatmul.mubr.bf16.gmra.mrb[88].mxu1 %v2953_v55  ;;  %v2998_v55 = vld [vmem:[%s4030_s0 + $0x37c] ss:$20 sps:$4 sm:$0xff]  }
  0xf2   :  { %2505 = vmatmul.mubr.msk.bf16.gmra.mrb[36].mxu0 %vm1074_vm1, %v2954_v56  ;;  %1366 = vmatprep.mubr.bf16.mxu1 %v2955_v57 }
  0xf3   :  { %2508 = vmatprep.mubr.msk.bf16.mxu0 %vm3012_vm0, %v3011_v39 }
  0xf9   :  { %1367 = vmatmul.mubr.bf16.gmra.mrb[92].mxu1 %v2957_v59  ;;  %v3000_v59 = vld [vmem:[%s4030_s0 + $0x378] ss:$20 sps:$4 sm:$0xff]  }
  0xfa   :  { %2509 = vmatmul.mubr.msk.bf16.gmra.mrb[40].mxu0 %vm1074_vm1, %v2958_v60  ;;  %1374 = vmatprep.mubr.bf16.mxu1 %v2268_v61  ;;  %v3001_v60 = vld [vmem:[%s4030_s0 + $0x358] ss:$20 sps:$4 sm:$0xff]  }
  0xfb   :  { %2512 = vmatprep.mubr.msk.bf16.mxu0 %vm3012_vm0, %v3011_v39 }
 0x101   :  { %1375 = vmatmul.mubr.bf16.gmra.mrb[96].mxu1 %v2267_v62  ;;  %v3002_v62 = vld [vmem:[%s4030_s0 + $0x3a4] ss:$20 sps:$4 sm:$0xff]  }
 0x102   :  { %2513 = vmatmul.mubr.msk.bf16.gmra.mrb[44].mxu0 %vm1074_vm1, %v2961_v63  ;;  %1518 = vmatprep.mubr.bf16.mxu1 %v2964_v1  ;;  %v160_v1 = vld [vmem:[%s4030_s0 + $0x3c8] sm:$0xff] }
 0x103   :  { %2516 = vmatprep.mubr.msk.bf16.mxu0 %vm3012_vm0, %v3011_v39 }
 0x109   :  { %1519 = vmatmul.mubr.bf16.vlgmr.msra.gmra.mrb[52].mxu1 %v2962_v2 }
 0x10a   :  { %2517 = vmatmul.mubr.msk.bf16.gmra.mrb[48].mxu0 %vm1074_vm1, %v2965_v3  ;;  %1526 = vmatprep.mubr.bf16.mxu1 %v2966_v4  ;;  %v3004_v4 = vld [vmem:[%s4030_s0 + $0x3a0] ss:$20 sps:$4 sm:$0xff]  }
 0x10b   :  { %2520 = vmatprep.mubr.msk.bf16.mxu0 %vm3012_vm0, %v3011_v39 }
 0x111   :  { %1527 = vmatmul.mubr.bf16.gmra.mrb[56].mxu1 %v2968_v5  ;;  %v3005_v5 = vld [vmem:[%s4030_s0 + $0x380] ss:$20 sps:$4 sm:$0xff]  }
 0x112   :  { %2521 = vmatmul.mubr.msk.bf16.gmra.mrb[52].mxu0 %vm1074_vm1, %v2969_v6  ;;  %1534 = vmatprep.mubr.bf16.mxu1 %v2970_v7  ;;  %v2270_v7 = vcombine.high %v160_v1, %v160_v1 }
 0x113   :  { %2524 = vmatprep.mubr.msk.bf16.mxu0 %vm3012_vm0, %v3011_v39 }
 0x114   :  { %v3583_v8 = vpop.f32.mrb[0].mxu1 }
 0x115   :  { %v1186_v9 = vpop.f32.mrb[1].mxu1 }
 0x116   :  { %v3591_v12 = vpop.f32.mrb[2].mxu1 }
 0x117   :  { %v1189_v13 = vpop.f32.mrb[3].mxu1 }
 0x118   :  { %v3008_v13 = vld [vmem:[%s4030_s0 + $0x3a8] ss:$20 sps:$4 sm:$0xff]  }
 0x119   :  { %1535 = vmatmul.mubr.bf16.gmra.mrb[60].mxu1 %v2972_v10 }
 0x11a   :  { %2525 = vmatmul.mubr.msk.bf16.gmra.mrb[56].mxu0 %vm1074_vm1, %v2973_v11  ;;  %1542 = vmatprep.mubr.bf16.mxu1 %v2974_v0  ;;  %v2269_v0 = vcombine.low %v160_v1, %v160_v1 }
 0x11b   :  { %2528 = vmatprep.mubr.msk.bf16.mxu0 %vm3012_vm0, %v3011_v39 }
 0x11c   :  { %v3599_v14 = vpop.f32.mrb[4].mxu1 }
 0x11d   :  { %v1194_v15 = vpop.f32.mrb[5].mxu1 }
 0x11e   :  { %v3607_v18 = vpop.f32.mrb[6].mxu1 }
 0x11f   :  { %v1197_v20 = vpop.f32.mrb[7].mxu1 }
 0x120   :  { %v3009_v20 = vld [vmem:[%s4030_s0 + $0x3d0] ss:$0 sps:$4 sm:$0xff]  }
 0x121   :  { %1543 = vmatmul.mubr.bf16.gmra.mrb[64].mxu1 %v2976_v16 }
 0x122   :  { %2529 = vmatmul.mubr.msk.bf16.gmra.mrb[60].mxu0 %vm1074_vm1, %v2977_v17  ;;  %1550 = vmatprep.mubr.bf16.mxu1 %v2978_v19 }
 0x123   :  { %2532 = vmatprep.mubr.msk.bf16.mxu0 %vm3012_vm0, %v3011_v39 }
 0x124   :  { %v3615_v21 = vpop.f32.mrb[8].mxu1 }
 0x125   :  { %v1202_v22 = vpop.f32.mrb[9].mxu1 }
 0x126   :  { %v3623_v25 = vpop.f32.mrb[10].mxu1 }
 0x127   :  { %v1205_v27 = vpop.f32.mrb[11].mxu1 }
 0x129   :  { %1551 = vmatmul.mubr.bf16.gmra.mrb[68].mxu1 %v2980_v23 }
 0x12a   :  { %2533 = vmatmul.mubr.msk.bf16.gmra.mrb[64].mxu0 %vm1074_vm1, %v2981_v24  ;;  %1558 = vmatprep.mubr.bf16.mxu1 %v2982_v26 }
 0x12b   :  { %2536 = vmatprep.mubr.msk.bf16.mxu0 %vm3012_vm0, %v3011_v39 }
 0x12c   :  { %v3631_v28 = vpop.f32.mrb[12].mxu1 }
 0x12d   :  { %v1210_v29 = vpop.f32.mrb[13].mxu1 }
 0x12e   :  { %v3639_v32 = vpop.f32.mrb[14].mxu1 }
 0x12f   :  { %v1213_v34 = vpop.f32.mrb[15].mxu1 }
 0x130   :  { %v3756_v34 = vld [vmem:[%s4031_s2] ss:$0 sm:$0xff] }
 0x131   :  { %1559 = vmatmul.mubr.bf16.gmra.mrb[72].mxu1 %v2984_v30  ;;  %v1201_v1 = vadd.f32 %v3756_v34, %v3615_v21 }
 0x132   :  { %2537 = vmatmul.mubr.msk.bf16.gmra.mrb[68].mxu0 %vm1074_vm1, %v2985_v31  ;;  %1566 = vmatprep.mubr.bf16.mxu1 %v2986_v33 }
 0x133   :  { %2540 = vmatprep.mubr.msk.bf16.mxu0 %vm3012_vm0, %v3011_v39 }
 0x134   :  { %v3647_v35 = vpop.f32.mrb[16].mxu1 }
 0x135   :  { %v1218_v36 = vpop.f32.mrb[17].mxu1 }
 0x136   :  { %v3655_v40 = vpop.f32.mrb[18].mxu1  ;;  %v1185_v36 = vadd.f32 %v3756_v34, %v3583_v8 }
 0x137   :  { %v1221_v42 = vpop.f32.mrb[19].mxu1 }
 0x139   :  { %1567 = vmatmul.mubr.bf16.gmra.mrb[76].mxu1 %v2988_v37 }
 0x13a   :  { %2541 = vmatmul.mubr.msk.bf16.gmra.mrb[72].mxu0 %vm1074_vm1, %v2989_v38  ;;  %1574 = vmatprep.mubr.bf16.mxu1 %v2990_v41  ;;  %v1188_v38 = vadd.f32 %v3756_v34, %v3591_v12  ;;  %v1196_v12 = vadd.f32 %v3756_v34, %v3607_v18 }
 0x13b   :  { %2544 = vmatprep.mubr.msk.bf16.mxu0 %vm3012_vm0, %v3011_v39 }
 0x13c   :  { %v3663_v43 = vpop.f32.mrb[20].mxu1 }
 0x13d   :  { %v1226_v44 = vpop.f32.mrb[21].mxu1 }
 0x13e   :  { %v3671_v47 = vpop.f32.mrb[22].mxu1 }
 0x13f   :  { %v1229_v49 = vpop.f32.mrb[23].mxu1 }
 0x141   :  { %1575 = vmatmul.mubr.bf16.gmra.mrb[80].mxu1 %v2992_v45 }
 0x142   :  { %2545 = vmatmul.mubr.msk.bf16.gmra.mrb[76].mxu0 %vm1074_vm1, %v2993_v46  ;;  %1582 = vmatprep.mubr.bf16.mxu1 %v2994_v48 }
 0x143   :  { %2548 = vmatprep.mubr.msk.bf16.mxu0 %vm3012_vm0, %v3011_v39 }
 0x144   :  { %v3679_v50 = vpop.f32.mrb[24].mxu1 }
 0x145   :  { %v1234_v51 = vpop.f32.mrb[25].mxu1 }
 0x146   :  { %v3687_v54 = vpop.f32.mrb[26].mxu1 }
 0x147   :  { %v1237_v56 = vpop.f32.mrb[27].mxu1 }
 0x149   :  { %1583 = vmatmul.mubr.bf16.gmra.mrb[84].mxu1 %v2996_v52  ;;  %v1193_v52 = vadd.f32 %v3756_v34, %v3599_v14 }
 0x14a   :  { %2549 = vmatmul.mubr.msk.bf16.gmra.mrb[80].mxu0 %vm1074_vm1, %v2997_v53  ;;  %1590 = vmatprep.mubr.bf16.mxu1 %v2998_v55 }
 0x14b   :  { %2552 = vmatprep.mubr.msk.bf16.mxu0 %vm3012_vm0, %v3011_v39 }
 0x14c   :  { %v3695_v57 = vpop.f32.mrb[28].mxu1 }
 0x14d   :  { %v1242_v58 = vpop.f32.mrb[29].mxu1 }
 0x14e   :  { %v3703_v61 = vpop.f32.mrb[30].mxu1 }
 0x14f   :  { %v1245_v63 = vpop.f32.mrb[31].mxu1 }
 0x151   :  { %1591 = vmatmul.mubr.bf16.gmra.mrb[88].mxu1 %v3000_v59 }
 0x152   :  { %2553 = vmatmul.mubr.msk.bf16.gmra.mrb[84].mxu0 %vm1074_vm1, %v3001_v60  ;;  %1598 = vmatprep.mubr.bf16.mxu1 %v3002_v62 }
 0x153   :  { %2556 = vmatprep.mubr.msk.bf16.mxu0 %vm3012_vm0, %v3011_v39 }
 0x154   :  { %v3714_v2 = vpop.f32.mrb[32].mxu1 }
 0x155   :  { %v1250_v3 = vpop.f32.mrb[33].mxu1 }
 0x156   :  { %v3722_v6 = vpop.f32.mrb[34].mxu1 }
 0x157   :  { %v1253_v9 = vpop.f32.mrb[35].mxu1 }
 0x159   :  { %1599 = vmatmul.mubr.bf16.gmra.mrb[92].mxu1 %v3004_v4  ;;  %v1204_v4 = vadd.f32 %v3756_v34, %v3623_v25 }
 0x15a   :  { %2557 = vmatmul.mubr.msk.bf16.gmra.mrb[88].mxu0 %vm1074_vm1, %v3005_v5  ;;  %1606 = vmatprep.mubr.bf16.mxu1 %v2270_v7 }
 0x15b   :  { %2560 = vmatprep.mubr.msk.bf16.mxu0 %vm3012_vm0, %v3011_v39 }
 0x15c   :  { %v3727_v10 = vpop.f32.mrb[36].mxu1 }
 0x15d   :  { %v1258_v11 = vpop.f32.mrb[37].mxu1 }
 0x15e   :  { %v3732_v15 = vpop.f32.mrb[38].mxu1 }
 0x15f   :  { %v1261_v16 = vpop.f32.mrb[39].mxu1 }
 0x161   :  { %1607 = vmatmul.mubr.bf16.gmra.mrb[96].mxu1 %v2269_v0 }
 0x162   :  { %2561 = vmatmul.mubr.msk.bf16.gmra.mrb[92].mxu0 %vm1074_vm1, %v3008_v13 }
 0x163   :  { %2564 = vmatprep.mubr.msk.bf16.mxu0 %vm3012_vm0, %v3011_v39 }
 0x164   :  { %v3737_v17 = vpop.f32.mrb[40].mxu1 }
 0x165   :  { %v1266_v19 = vpop.f32.mrb[41].mxu1 }
 0x166   :  { %v3742_v22 = vpop.f32.mrb[42].mxu1  ;;  %v1209_v19 = vadd.f32 %v3756_v34, %v3631_v28 }
 0x167   :  { %v1269_v23 = vpop.f32.mrb[43].mxu1 }
 0x168   :  { %v1212_v23 = vadd.f32 %v3756_v34, %v3639_v32 }
 0x16a   :  { %2565 = vmatmul.mubr.msk.bf16.gmra.mrb[96].mxu0 %vm1074_vm1, %v3009_v20 }
 0x16c   :  { %v3745_v24 = vpop.f32.mrb[44].mxu1 }
 0x16d   :  { %v1274_v26 = vpop.f32.mrb[45].mxu1 }
 0x16e   :  { %v3747_v27 = vpop.f32.mrb[46].mxu1 }
 0x16f   :  { %v1277_v29 = vpop.f32.mrb[47].mxu1 }
 0x174   :  { %v3749_v30 = vpop.f32.mrb[48].mxu1 }
 0x175   :  { %v1282_v39 = vpop.f32.mrb[49].mxu1 }
 0x176   :  { %v3751_v31 = vpop.f32.mrb[50].mxu1 }
 0x177   :  { %v1285_v33 = vpop.f32.mrb[51].mxu1 }
 0x17d   :  { %v1648_v37 = vpop.f32.mrb[0].mxu0 }
 0x17e   :  { %v2601_v41 = vadd.f32 %v1648_v37, %v1185_v36  ;;  %v2470_v42 = vpop.f32.mrb[1].mxu0 }
 0x17f   :  { %v1651_v44 = vpop.f32.mrb[2].mxu0 }
 0x180   :  { %v1846_v45 = vmax.f32 %v2601_v41, 0.0  ;;  %v2603_v46 = vadd.f32 %v1651_v44, %v1188_v38  ;;  %v2471_v48 = vpop.f32.mrb[3].mxu0  ;;  %v1217_v41 = vadd.f32 %v3756_v34, %v3647_v35  ;;  %v1220_v44 = vadd.f32 %v3756_v34, %v3655_v40 }
 0x182   :  { %v2382_v49 = vpack.c.bf16 %v1846_v45, %v1846_v45  ;;  %v1847_v51 = vmax.f32 %v2603_v46, 0.0 }
 0x184   :  { %2093 = vst.msk [vmem:[%s4032_s3] sm:$0xf] %vm2092_vm2, %v2382_v49  ;;  %v2383_v8 = vpack.c.bf16 %v1847_v51, %v1847_v51 }
 0x185   :  { %v1656_v53 = vpop.f32.mrb[4].mxu0 }
 0x186   :  { %2094 = vst.msk [vmem:[%s4032_s3 + $0x4] sm:$0xf] %vm2092_vm2, %v2383_v8  ;;  %v2605_v55 = vadd.f32 %v1656_v53, %v1193_v52  ;;  %v2474_v56 = vpop.f32.mrb[5].mxu0  ;;  %v1225_v53 = vadd.f32 %v3756_v34, %v3663_v43 }
 0x187   :  { %v1659_v58 = vpop.f32.mrb[6].mxu0 }
 0x188   :  { %v1848_v59 = vmax.f32 %v2605_v55, 0.0  ;;  %v2607_v14 = vadd.f32 %v1659_v58, %v1196_v12  ;;  %v2475_v60 = vpop.f32.mrb[7].mxu0  ;;  %v1228_v55 = vadd.f32 %v3756_v34, %v3671_v47 }
 0x18a   :  { %v2384_v62 = vpack.c.bf16 %v1848_v59, %v1848_v59  ;;  %v1849_v63 = vmax.f32 %v2607_v14, 0.0 }
 0x18c   :  { %2095 = vst.msk [vmem:[%s4032_s3 + $0x8] sm:$0xf] %vm2092_vm2, %v2384_v62  ;;  %v2385_v18 = vpack.c.bf16 %v1849_v63, %v1849_v63 }
 0x18d   :  { %v1664_v3 = vpop.f32.mrb[8].mxu0 }
 0x18e   :  { %2096 = vst.msk [vmem:[%s4032_s3 + $0xc] sm:$0xf] %vm2092_vm2, %v2385_v18  ;;  %v2609_v5 = vadd.f32 %v1664_v3, %v1201_v1  ;;  %v2478_v7 = vpop.f32.mrb[9].mxu0  ;;  %v1233_v1 = vadd.f32 %v3756_v34, %v3679_v50  ;;  %v1236_v3 = vadd.f32 %v3756_v34, %v3687_v54 }
 0x18f   :  { %v1667_v9 = vpop.f32.mrb[10].mxu0 }
 0x190   :  { %v1850_v11 = vmax.f32 %v2609_v5, 0.0  ;;  %v2611_v21 = vadd.f32 %v1667_v9, %v1204_v4  ;;  %v2479_v0 = vpop.f32.mrb[11].mxu0 }
 0x192   :  { %v2386_v13 = vpack.c.bf16 %v1850_v11, %v1850_v11  ;;  %v1851_v16 = vmax.f32 %v2611_v21, 0.0 }
 0x194   :  { %2097 = vst.msk [vmem:[%s4032_s3 + $0x10] sm:$0xf] %vm2092_vm2, %v2386_v13  ;;  %v2387_v25 = vpack.c.bf16 %v1851_v16, %v1851_v16  ;;  %v1241_v13 = vadd.f32 %v3756_v34, %v3695_v57 }
 0x195   :  { %v1672_v20 = vpop.f32.mrb[12].mxu0 }
 0x196   :  { %2098 = vst.msk [vmem:[%s4032_s3 + $0x14] sm:$0xf] %vm2092_vm2, %v2387_v25  ;;  %v2613_v26 = vadd.f32 %v1672_v20, %v1209_v19  ;;  %v2482_v29 = vpop.f32.mrb[13].mxu0  ;;  %v1244_v19 = vadd.f32 %v3756_v34, %v3703_v61 }
 0x197   :  { %v1675_v39 = vpop.f32.mrb[14].mxu0 }
 0x198   :  { %v1852_v33 = vmax.f32 %v2613_v26, 0.0  ;;  %v2615_v28 = vadd.f32 %v1675_v39, %v1212_v23  ;;  %v2483_v36 = vpop.f32.mrb[15].mxu0 }
 0x19a   :  { %v2388_v37 = vpack.c.bf16 %v1852_v33, %v1852_v33  ;;  %v1853_v38 = vmax.f32 %v2615_v28, 0.0  ;;  %v1249_v28 = vadd.f32 %v3756_v34, %v3714_v2 }
 0x19c   :  { %2099 = vst.msk [vmem:[%s4032_s3 + $0x18] sm:$0xf] %vm2092_vm2, %v2388_v37  ;;  %v2389_v32 = vpack.c.bf16 %v1853_v38, %v1853_v38  ;;  %v1252_v37 = vadd.f32 %v3756_v34, %v3722_v6 }
 0x19d   :  { %v1680_v42 = vpop.f32.mrb[16].mxu0 }
 0x19e   :  { %2100 = vst.msk [vmem:[%s4032_s3 + $0x1c] sm:$0xf] %vm2092_vm2, %v2389_v32  ;;  %v2617_v45 = vadd.f32 %v1680_v42, %v1217_v41  ;;  %v2486_v46 = vpop.f32.mrb[17].mxu0 }
 0x19f   :  { %v1683_v48 = vpop.f32.mrb[18].mxu0 }
 0x1a0   :  { %v1854_v49 = vmax.f32 %v2617_v45, 0.0  ;;  %v2619_v35 = vadd.f32 %v1683_v48, %v1220_v44  ;;  %v2487_v51 = vpop.f32.mrb[19].mxu0  ;;  %v1257_v48 = vadd.f32 %v3756_v34, %v3727_v10 }
 0x1a2   :  { %v2390_v52 = vpack.c.bf16 %v1854_v49, %v1854_v49  ;;  %v1855_v8 = vmax.f32 %v2619_v35, 0.0  ;;  %v1260_v35 = vadd.f32 %v3756_v34, %v3732_v15 }
 0x1a4   :  { %2101 = vst.msk [vmem:[%s4032_s3 + $0x20] sm:$0xf] %vm2092_vm2, %v2390_v52  ;;  %v2391_v40 = vpack.c.bf16 %v1855_v8, %v1855_v8 }
 0x1a5   :  { %v1688_v12 = vpop.f32.mrb[20].mxu0 }
 0x1a6   :  { %2102 = vst.msk [vmem:[%s4032_s3 + $0x24] sm:$0xf] %vm2092_vm2, %v2391_v40  ;;  %v2621_v56 = vadd.f32 %v1688_v12, %v1225_v53  ;;  %v2490_v58 = vpop.f32.mrb[21].mxu0 }
 0x1a7   :  { %v1691_v59 = vpop.f32.mrb[22].mxu0 }
 0x1a8   :  { %v1856_v14 = vmax.f32 %v2621_v56, 0.0  ;;  %v2623_v43 = vadd.f32 %v1691_v59, %v1228_v55  ;;  %v2491_v60 = vpop.f32.mrb[23].mxu0  ;;  %v1265_v56 = vadd.f32 %v3756_v34, %v3737_v17  ;;  %v1268_v59 = vadd.f32 %v3756_v34, %v3742_v22 }
 0x1aa   :  { %v2392_v62 = vpack.c.bf16 %v1856_v14, %v1856_v14  ;;  %v1857_v63 = vmax.f32 %v2623_v43, 0.0 }
 0x1ac   :  { %2103 = vst.msk [vmem:[%s4032_s3 + $0x28] sm:$0xf] %vm2092_vm2, %v2392_v62  ;;  %v2393_v47 = vpack.c.bf16 %v1857_v63, %v1857_v63 }
 0x1ad   :  { %v1696_v18 = vpop.f32.mrb[24].mxu0 }
 0x1ae   :  { %2104 = vst.msk [vmem:[%s4032_s3 + $0x2c] sm:$0xf] %vm2092_vm2, %v2393_v47  ;;  %v2625_v4 = vadd.f32 %v1696_v18, %v1233_v1  ;;  %v2494_v5 = vpop.f32.mrb[25].mxu0  ;;  %v1273_v18 = vadd.f32 %v3756_v34, %v3745_v24 }
 0x1af   :  { %v1699_v7 = vpop.f32.mrb[26].mxu0 }
 0x1b0   :  { %v1858_v9 = vmax.f32 %v2625_v4, 0.0  ;;  %v2627_v50 = vadd.f32 %v1699_v7, %v1236_v3  ;;  %v2495_v11 = vpop.f32.mrb[27].mxu0  ;;  %v1276_v4 = vadd.f32 %v3756_v34, %v3747_v27 }
 0x1b2   :  { %v2394_v21 = vpack.c.bf16 %v1858_v9, %v1858_v9  ;;  %v1859_v0 = vmax.f32 %v2627_v50, 0.0 }
 0x1b4   :  { %2105 = vst.msk [vmem:[%s4032_s3 + $0x30] sm:$0xf] %vm2092_vm2, %v2394_v21  ;;  %v2395_v54 = vpack.c.bf16 %v1859_v0, %v1859_v0 }
 0x1b5   :  { %v1704_v16 = vpop.f32.mrb[28].mxu0 }
 0x1b6   :  { %2106 = vst.msk [vmem:[%s4032_s3 + $0x34] sm:$0xf] %vm2092_vm2, %v2395_v54  ;;  %v2629_v25 = vadd.f32 %v1704_v16, %v1241_v13  ;;  %v2498_v20 = vpop.f32.mrb[29].mxu0  ;;  %v1281_v13 = vadd.f32 %v3756_v34, %v3749_v30 }
 0x1b7   :  { %v1707_v23 = vpop.f32.mrb[30].mxu0 }
 0x1b8   :  { %v1860_v26 = vmax.f32 %v2629_v25, 0.0  ;;  %v2631_v57 = vadd.f32 %v1707_v23, %v1244_v19  ;;  %v2499_v29 = vpop.f32.mrb[31].mxu0  ;;  %v1284_v25 = vadd.f32 %v3756_v34, %v3751_v31 }
 0x1ba   :  { %v2396_v39 = vpack.c.bf16 %v1860_v26, %v1860_v26  ;;  %v1861_v33 = vmax.f32 %v2631_v57, 0.0 }
 0x1bc   :  { %2107 = vst.msk [vmem:[%s4032_s3 + $0x38] sm:$0xf] %vm2092_vm2, %v2396_v39  ;;  %v2397_v61 = vpack.c.bf16 %v1861_v33, %v1861_v33 }
 0x1bd   :  { %v1712_v36 = vpop.f32.mrb[32].mxu0 }
 0x1be   :  { %2108 = vst.msk [vmem:[%s4032_s3 + $0x3c] sm:$0xf] %vm2092_vm2, %v2397_v61  ;;  %v2633_v38 = vadd.f32 %v1712_v36, %v1249_v28  ;;  %v2502_v41 = vpop.f32.mrb[33].mxu0 }
 0x1bf   :  { %v1715_v32 = vpop.f32.mrb[34].mxu0 }
 0x1c0   :  { %v1862_v42 = vmax.f32 %v2633_v38, 0.0  ;;  %v2635_v2 = vadd.f32 %v1715_v32, %v1252_v37  ;;  %v2503_v44 = vpop.f32.mrb[35].mxu0 }
 0x1c2   :  { %v2398_v45 = vpack.c.bf16 %v1862_v42, %v1862_v42  ;;  %v1863_v46 = vmax.f32 %v2635_v2, 0.0 }
 0x1c4   :  { %2109 = vst.msk [vmem:[%s4032_s3 + $0x40] sm:$0xf] %vm2092_vm2, %v2398_v45  ;;  %v2399_v6 = vpack.c.bf16 %v1863_v46, %v1863_v46 }
 0x1c5   :  { %v1720_v49 = vpop.f32.mrb[36].mxu0 }
 0x1c6   :  { %2110 = vst.msk [vmem:[%s4032_s3 + $0x44] sm:$0xf] %vm2092_vm2, %v2399_v6  ;;  %v2637_v51 = vadd.f32 %v1720_v49, %v1257_v48  ;;  %v2506_v52 = vpop.f32.mrb[37].mxu0 }
 0x1c7   :  { %v1723_v8 = vpop.f32.mrb[38].mxu0 }
 0x1c8   :  { %v1864_v53 = vmax.f32 %v2637_v51, 0.0  ;;  %v2639_v10 = vadd.f32 %v1723_v8, %v1260_v35  ;;  %v2507_v40 = vpop.f32.mrb[39].mxu0 }
 0x1ca   :  { %v2400_v12 = vpack.c.bf16 %v1864_v53, %v1864_v53  ;;  %v1865_v55 = vmax.f32 %v2639_v10, 0.0 }
 0x1cc   :  { %2111 = vst.msk [vmem:[%s4032_s3 + $0x48] sm:$0xf] %vm2092_vm2, %v2400_v12  ;;  %v2401_v15 = vpack.c.bf16 %v1865_v55, %v1865_v55 }
 0x1cd   :  { %v1728_v58 = vpop.f32.mrb[40].mxu0 }
 0x1ce   :  { %2112 = vst.msk [vmem:[%s4032_s3 + $0x4c] sm:$0xf] %vm2092_vm2, %v2401_v15  ;;  %v2641_v14 = vadd.f32 %v1728_v58, %v1265_v56  ;;  %v2510_v43 = vpop.f32.mrb[41].mxu0 }
 0x1cf   :  { %v1731_v60 = vpop.f32.mrb[42].mxu0 }
 0x1d0   :  { %v1866_v62 = vmax.f32 %v2641_v14, 0.0  ;;  %v2643_v17 = vadd.f32 %v1731_v60, %v1268_v59  ;;  %v2511_v63 = vpop.f32.mrb[43].mxu0 }
 0x1d2   :  { %v2402_v1 = vpack.c.bf16 %v1866_v62, %v1866_v62  ;;  %v1867_v47 = vmax.f32 %v2643_v17, 0.0 }
 0x1d4   :  { %2113 = vst.msk [vmem:[%s4032_s3 + $0x50] sm:$0xf] %vm2092_vm2, %v2402_v1  ;;  %v2403_v22 = vpack.c.bf16 %v1867_v47, %v1867_v47 }
 0x1d5   :  { %v1736_v3 = vpop.f32.mrb[44].mxu0 }
 0x1d6   :  { %2114 = vst.msk [vmem:[%s4032_s3 + $0x54] sm:$0xf] %vm2092_vm2, %v2403_v22  ;;  %v2645_v5 = vadd.f32 %v1736_v3, %v1273_v18  ;;  %v2514_v7 = vpop.f32.mrb[45].mxu0 }
 0x1d7   :  { %v1739_v9 = vpop.f32.mrb[46].mxu0 }
 0x1d8   :  { %v1868_v50 = vmax.f32 %v2645_v5, 0.0  ;;  %v2647_v24 = vadd.f32 %v1739_v9, %v1276_v4  ;;  %v2515_v11 = vpop.f32.mrb[47].mxu0 }
 0x1da   :  { %v2404_v21 = vpack.c.bf16 %v1868_v50, %v1868_v50  ;;  %v1869_v0 = vmax.f32 %v2647_v24, 0.0 }
 0x1dc   :  { %2115 = vst.msk [vmem:[%s4032_s3 + $0x58] sm:$0xf] %vm2092_vm2, %v2404_v21  ;;  %v2405_v27 = vpack.c.bf16 %v1869_v0, %v1869_v0  ;;  %v1520_v54 = vpop.f32.mrb[52].mxu1 }
 0x1dd   :  { %v1744_v16 = vpop.f32.mrb[48].mxu0  ;;  %v1522_v19 = vpop.f32.mrb[53].mxu1  ;;  %v2652_v36 = vadd.f32 %v3756_v34, %v1520_v54 }
 0x1de   :  { %2116 = vst.msk [vmem:[%s4032_s3 + $0x5c] sm:$0xf] %vm2092_vm2, %v2405_v27  ;;  %v2649_v20 = vadd.f32 %v1744_v16, %v1281_v13  ;;  %v2518_v23 = vpop.f32.mrb[49].mxu0  ;;  %v1523_v30 = vpop.f32.mrb[54].mxu1 }
 0x1df   :  { %v1747_v26 = vpop.f32.mrb[50].mxu0  ;;  %v1525_v57 = vpop.f32.mrb[55].mxu1  ;;  %v2654_v32 = vadd.f32 %v3756_v34, %v1523_v30 }
 0x1e0   :  { %v1870_v29 = vmax.f32 %v2649_v20, 0.0  ;;  %v2651_v39 = vadd.f32 %v1747_v26, %v1284_v25  ;;  %v2519_v33 = vpop.f32.mrb[51].mxu0 }
 0x1e2   :  { %v2406_v28 = vpack.c.bf16 %v1870_v29, %v1870_v29  ;;  %v1871_v61 = vmax.f32 %v2651_v39, 0.0 }
 0x1e4   :  { %2117 = vst.msk [vmem:[%s4032_s3 + $0x60] sm:$0xf] %vm2092_vm2, %v2406_v28  ;;  %v2407_v31 = vpack.c.bf16 %v1871_v61, %v1871_v61  ;;  %v1528_v37 = vpop.f32.mrb[56].mxu1 }
 0x1e5   :  { %v1752_v38 = vpop.f32.mrb[52].mxu0  ;;  %v1530_v41 = vpop.f32.mrb[57].mxu1  ;;  %v2656_v52 = vadd.f32 %v3756_v34, %v1528_v37 }
 0x1e6   :  { %2118 = vst.msk [vmem:[%s4032_s3 + $0x64] sm:$0xf] %vm2092_vm2, %v2407_v31  ;;  %v2653_v42 = vadd.f32 %v2652_v36, %v1752_v38  ;;  %v2522_v2 = vpop.f32.mrb[53].mxu0  ;;  %v1531_v44 = vpop.f32.mrb[58].mxu1 }
 0x1e7   :  { %v1755_v45 = vpop.f32.mrb[54].mxu0  ;;  %v1533_v46 = vpop.f32.mrb[59].mxu1  ;;  %v2658_v12 = vadd.f32 %v3756_v34, %v1531_v44 }
 0x1e8   :  { %v1872_v48 = vmax.f32 %v2653_v42, 0.0  ;;  %v2655_v6 = vadd.f32 %v2654_v32, %v1755_v45  ;;  %v2523_v49 = vpop.f32.mrb[55].mxu0 }
 0x1ea   :  { %v2408_v35 = vpack.c.bf16 %v1872_v48, %v1872_v48  ;;  %v1873_v51 = vmax.f32 %v2655_v6, 0.0 }
 0x1ec   :  { %2119 = vst.msk [vmem:[%s4032_s3 + $0x68] sm:$0xf] %vm2092_vm2, %v2408_v35  ;;  %v2409_v8 = vpack.c.bf16 %v1873_v51, %v1873_v51  ;;  %v1536_v53 = vpop.f32.mrb[60].mxu1 }
 0x1ed   :  { %v1760_v10 = vpop.f32.mrb[56].mxu0  ;;  %v1538_v40 = vpop.f32.mrb[61].mxu1  ;;  %v2660_v63 = vadd.f32 %v3756_v34, %v1536_v53 }
 0x1ee   :  { %2120 = vst.msk [vmem:[%s4032_s3 + $0x6c] sm:$0xf] %vm2092_vm2, %v2409_v8  ;;  %v2657_v55 = vadd.f32 %v2656_v52, %v1760_v10  ;;  %v2526_v56 = vpop.f32.mrb[57].mxu0  ;;  %v1539_v15 = vpop.f32.mrb[62].mxu1 }
 0x1ef   :  { %v1763_v58 = vpop.f32.mrb[58].mxu0  ;;  %v1541_v59 = vpop.f32.mrb[63].mxu1  ;;  %v2662_v3 = vadd.f32 %v3756_v34, %v1539_v15 }
 0x1f0   :  { %v1874_v14 = vmax.f32 %v2657_v55, 0.0  ;;  %v2659_v43 = vadd.f32 %v2658_v12, %v1763_v58  ;;  %v2527_v60 = vpop.f32.mrb[59].mxu0 }
 0x1f2   :  { %v2410_v62 = vpack.c.bf16 %v1874_v14, %v1874_v14  ;;  %v1875_v17 = vmax.f32 %v2659_v43, 0.0 }
 0x1f4   :  { %2121 = vst.msk [vmem:[%s4032_s3 + $0x70] sm:$0xf] %vm2092_vm2, %v2410_v62  ;;  %v2411_v1 = vpack.c.bf16 %v1875_v17, %v1875_v17  ;;  %v1544_v47 = vpop.f32.mrb[64].mxu1 }
 0x1f5   :  { %v1768_v18 = vpop.f32.mrb[60].mxu0  ;;  %v1546_v22 = vpop.f32.mrb[65].mxu1  ;;  %v2664_v27 = vadd.f32 %v3756_v34, %v1544_v47 }
 0x1f6   :  { %2122 = vst.msk [vmem:[%s4032_s3 + $0x74] sm:$0xf] %vm2092_vm2, %v2411_v1  ;;  %v2661_v4 = vadd.f32 %v2660_v63, %v1768_v18  ;;  %v2530_v5 = vpop.f32.mrb[61].mxu0  ;;  %v1547_v7 = vpop.f32.mrb[66].mxu1 }
 0x1f7   :  { %v1771_v9 = vpop.f32.mrb[62].mxu0  ;;  %v1549_v50 = vpop.f32.mrb[67].mxu1  ;;  %v2666_v20 = vadd.f32 %v3756_v34, %v1547_v7 }
 0x1f8   :  { %v1876_v24 = vmax.f32 %v2661_v4, 0.0  ;;  %v2663_v11 = vadd.f32 %v2662_v3, %v1771_v9  ;;  %v2531_v21 = vpop.f32.mrb[63].mxu0 }
 0x1fa   :  { %v2412_v0 = vpack.c.bf16 %v1876_v24, %v1876_v24  ;;  %v1877_v13 = vmax.f32 %v2663_v11, 0.0 }
 0x1fc   :  { %2123 = vst.msk [vmem:[%s4032_s3 + $0x78] sm:$0xf] %vm2092_vm2, %v2412_v0  ;;  %v2413_v54 = vpack.c.bf16 %v1877_v13, %v1877_v13  ;;  %v1552_v16 = vpop.f32.mrb[68].mxu1 }
 0x1fd   :  { %v1776_v19 = vpop.f32.mrb[64].mxu0  ;;  %v1554_v25 = vpop.f32.mrb[69].mxu1  ;;  %v2668_v31 = vadd.f32 %v3756_v34, %v1552_v16 }
 0x1fe   :  { %2124 = vst.msk [vmem:[%s4032_s3 + $0x7c] sm:$0xf] %vm2092_vm2, %v2413_v54  ;;  %v2665_v23 = vadd.f32 %v2664_v27, %v1776_v19  ;;  %v2534_v30 = vpop.f32.mrb[65].mxu0  ;;  %v1555_v26 = vpop.f32.mrb[70].mxu1 }
 0x1ff   :  { %v1779_v57 = vpop.f32.mrb[66].mxu0  ;;  %v1557_v29 = vpop.f32.mrb[71].mxu1  ;;  %v2670_v42 = vadd.f32 %v3756_v34, %v1555_v26 }
 0x200   :  { %v1878_v39 = vmax.f32 %v2665_v23, 0.0  ;;  %v2667_v33 = vadd.f32 %v2666_v20, %v1779_v57  ;;  %v2535_v28 = vpop.f32.mrb[67].mxu0 }
 0x202   :  { %v2414_v61 = vpack.c.bf16 %v1878_v39, %v1878_v39  ;;  %v1879_v36 = vmax.f32 %v2667_v33, 0.0 }
 0x204   :  { %2125 = vst.msk [vmem:[%s4032_s3 + $0x80] sm:$0xf] %vm2092_vm2, %v2414_v61  ;;  %v2415_v37 = vpack.c.bf16 %v1879_v36, %v1879_v36  ;;  %v1560_v38 = vpop.f32.mrb[72].mxu1 }
 0x205   :  { %v1784_v41 = vpop.f32.mrb[68].mxu0  ;;  %v1562_v32 = vpop.f32.mrb[73].mxu1  ;;  %v2672_v8 = vadd.f32 %v3756_v34, %v1560_v38 }
 0x206   :  { %2126 = vst.msk [vmem:[%s4032_s3 + $0x84] sm:$0xf] %vm2092_vm2, %v2415_v37  ;;  %v2669_v2 = vadd.f32 %v2668_v31, %v1784_v41  ;;  %v2538_v44 = vpop.f32.mrb[69].mxu0  ;;  %v1563_v45 = vpop.f32.mrb[74].mxu1 }
 0x207   :  { %v1787_v46 = vpop.f32.mrb[70].mxu0  ;;  %v1565_v48 = vpop.f32.mrb[75].mxu1  ;;  %v2674_v55 = vadd.f32 %v3756_v34, %v1563_v45 }
 0x208   :  { %v1880_v6 = vmax.f32 %v2669_v2, 0.0  ;;  %v2671_v49 = vadd.f32 %v2670_v42, %v1787_v46  ;;  %v2539_v35 = vpop.f32.mrb[71].mxu0 }
 0x20a   :  { %v2416_v51 = vpack.c.bf16 %v1880_v6, %v1880_v6  ;;  %v1881_v52 = vmax.f32 %v2671_v49, 0.0 }
 0x20c   :  { %2127 = vst.msk [vmem:[%s4032_s3 + $0x88] sm:$0xf] %vm2092_vm2, %v2416_v51  ;;  %v2417_v53 = vpack.c.bf16 %v1881_v52, %v1881_v52  ;;  %v1568_v10 = vpop.f32.mrb[76].mxu1 }
 0x20d   :  { %v1792_v40 = vpop.f32.mrb[72].mxu0  ;;  %v1570_v12 = vpop.f32.mrb[77].mxu1  ;;  %v2676_v1 = vadd.f32 %v3756_v34, %v1568_v10 }
 0x20e   :  { %2128 = vst.msk [vmem:[%s4032_s3 + $0x8c] sm:$0xf] %vm2092_vm2, %v2417_v53  ;;  %v2673_v56 = vadd.f32 %v2672_v8, %v1792_v40  ;;  %v2542_v15 = vpop.f32.mrb[73].mxu0  ;;  %v1571_v58 = vpop.f32.mrb[78].mxu1 }
 0x20f   :  { %v1795_v59 = vpop.f32.mrb[74].mxu0  ;;  %v1573_v14 = vpop.f32.mrb[79].mxu1  ;;  %v2678_v4 = vadd.f32 %v3756_v34, %v1571_v58 }
 0x210   :  { %v1882_v43 = vmax.f32 %v2673_v56, 0.0  ;;  %v2675_v60 = vadd.f32 %v2674_v55, %v1795_v59  ;;  %v2543_v62 = vpop.f32.mrb[75].mxu0 }
 0x212   :  { %v2418_v17 = vpack.c.bf16 %v1882_v43, %v1882_v43  ;;  %v1883_v63 = vmax.f32 %v2675_v60, 0.0 }
 0x214   :  { %2129 = vst.msk [vmem:[%s4032_s3 + $0x90] sm:$0xf] %vm2092_vm2, %v2418_v17  ;;  %v2419_v47 = vpack.c.bf16 %v1883_v63, %v1883_v63  ;;  %v1576_v18 = vpop.f32.mrb[80].mxu1 }
 0x215   :  { %v1800_v22 = vpop.f32.mrb[76].mxu0  ;;  %v1578_v3 = vpop.f32.mrb[81].mxu1  ;;  %v2680_v54 = vadd.f32 %v3756_v34, %v1576_v18 }
 0x216   :  { %2130 = vst.msk [vmem:[%s4032_s3 + $0x94] sm:$0xf] %vm2092_vm2, %v2419_v47  ;;  %v2677_v5 = vadd.f32 %v2676_v1, %v1800_v22  ;;  %v2546_v7 = vpop.f32.mrb[77].mxu0  ;;  %v1579_v9 = vpop.f32.mrb[82].mxu1 }
 0x217   :  { %v1803_v50 = vpop.f32.mrb[78].mxu0  ;;  %v1581_v24 = vpop.f32.mrb[83].mxu1  ;;  %v2682_v23 = vadd.f32 %v3756_v34, %v1579_v9 }
 0x218   :  { %v1884_v11 = vmax.f32 %v2677_v5, 0.0  ;;  %v2679_v21 = vadd.f32 %v2678_v4, %v1803_v50  ;;  %v2547_v0 = vpop.f32.mrb[79].mxu0 }
 0x21a   :  { %v2420_v13 = vpack.c.bf16 %v1884_v11, %v1884_v11  ;;  %v1885_v27 = vmax.f32 %v2679_v21, 0.0 }
 0x21c   :  { %2131 = vst.msk [vmem:[%s4032_s3 + $0x98] sm:$0xf] %vm2092_vm2, %v2420_v13  ;;  %v2421_v16 = vpack.c.bf16 %v1885_v27, %v1885_v27  ;;  %v1584_v19 = vpop.f32.mrb[84].mxu1 }
 0x21d   :  { %v1808_v25 = vpop.f32.mrb[80].mxu0  ;;  %v1586_v20 = vpop.f32.mrb[85].mxu1  ;;  %v2684_v37 = vadd.f32 %v3756_v34, %v1584_v19 }
 0x21e   :  { %2132 = vst.msk [vmem:[%s4032_s3 + $0x9c] sm:$0xf] %vm2092_vm2, %v2421_v16  ;;  %v2681_v30 = vadd.f32 %v2680_v54, %v1808_v25  ;;  %v2550_v26 = vpop.f32.mrb[81].mxu0  ;;  %v1587_v57 = vpop.f32.mrb[86].mxu1 }
 0x21f   :  { %v1811_v29 = vpop.f32.mrb[82].mxu0  ;;  %v1589_v39 = vpop.f32.mrb[87].mxu1  ;;  %v2686_v2 = vadd.f32 %v3756_v34, %v1587_v57 }
 0x220   :  { %v1886_v33 = vmax.f32 %v2681_v30, 0.0  ;;  %v2683_v28 = vadd.f32 %v2682_v23, %v1811_v29  ;;  %v2551_v61 = vpop.f32.mrb[83].mxu0 }
 0x222   :  { %v2422_v36 = vpack.c.bf16 %v1886_v33, %v1886_v33  ;;  %v1887_v31 = vmax.f32 %v2683_v28, 0.0 }
 0x224   :  { %2133 = vst.msk [vmem:[%s4032_s3 + $0xa0] sm:$0xf] %vm2092_vm2, %v2422_v36  ;;  %v2423_v38 = vpack.c.bf16 %v1887_v31, %v1887_v31  ;;  %v1592_v41 = vpop.f32.mrb[88].mxu1 }
 0x225   :  { %v1816_v32 = vpop.f32.mrb[84].mxu0  ;;  %v1594_v42 = vpop.f32.mrb[89].mxu1  ;;  %v2688_v53 = vadd.f32 %v3756_v34, %v1592_v41 }
 0x226   :  { %2134 = vst.msk [vmem:[%s4032_s3 + $0xa4] sm:$0xf] %vm2092_vm2, %v2423_v38  ;;  %v2685_v44 = vadd.f32 %v2684_v37, %v1816_v32  ;;  %v2554_v45 = vpop.f32.mrb[85].mxu0  ;;  %v1595_v46 = vpop.f32.mrb[90].mxu1 }
 0x227   :  { %v1819_v48 = vpop.f32.mrb[86].mxu0  ;;  %v1597_v6 = vpop.f32.mrb[91].mxu1  ;;  %v2690_v56 = vadd.f32 %v3756_v34, %v1595_v46 }
 0x228   :  { %v1888_v49 = vmax.f32 %v2685_v44, 0.0  ;;  %v2687_v35 = vadd.f32 %v2686_v2, %v1819_v48  ;;  %v2555_v51 = vpop.f32.mrb[87].mxu0 }
 0x22a   :  { %v2424_v52 = vpack.c.bf16 %v1888_v49, %v1888_v49  ;;  %v1889_v8 = vmax.f32 %v2687_v35, 0.0 }
 0x22c   :  { %2135 = vst.msk [vmem:[%s4032_s3 + $0xa8] sm:$0xf] %vm2092_vm2, %v2424_v52  ;;  %v2425_v10 = vpack.c.bf16 %v1889_v8, %v1889_v8  ;;  %v1600_v40 = vpop.f32.mrb[92].mxu1 }
 0x22d   :  { %v1824_v12 = vpop.f32.mrb[88].mxu0  ;;  %v1602_v55 = vpop.f32.mrb[93].mxu1  ;;  %v2692_v47 = vadd.f32 %v3756_v34, %v1600_v40 }
 0x22e   :  { %2136 = vst.msk [vmem:[%s4032_s3 + $0xac] sm:$0xf] %vm2092_vm2, %v2425_v10  ;;  %v2689_v15 = vadd.f32 %v2688_v53, %v1824_v12  ;;  %v2558_v58 = vpop.f32.mrb[89].mxu0  ;;  %v1603_v59 = vpop.f32.mrb[94].mxu1 }
 0x22f   :  { %v1827_v14 = vpop.f32.mrb[90].mxu0  ;;  %v1605_v43 = vpop.f32.mrb[95].mxu1  ;;  %v2694_v5 = vadd.f32 %v3756_v34, %v1603_v59 }
 0x230   :  { %v1890_v60 = vmax.f32 %v2689_v15, 0.0  ;;  %v2691_v62 = vadd.f32 %v2690_v56, %v1827_v14  ;;  %v2559_v17 = vpop.f32.mrb[91].mxu0 }
 0x232   :  { %v2426_v63 = vpack.c.bf16 %v1890_v60, %v1890_v60  ;;  %v1891_v1 = vmax.f32 %v2691_v62, 0.0 }
 0x234   :  { %2137 = vst.msk [vmem:[%s4032_s3 + $0xb0] sm:$0xf] %vm2092_vm2, %v2426_v63  ;;  %v2427_v18 = vpack.c.bf16 %v1891_v1, %v1891_v1  ;;  %v1608_v22 = vpop.f32.mrb[96].mxu1 }
 0x235   :  { %v1832_v3 = vpop.f32.mrb[92].mxu0  ;;  %v1610_v4 = vpop.f32.mrb[97].mxu1  ;;  %v2696_v16 = vadd.f32 %v3756_v34, %v1608_v22 }
 0x236   :  { %2138 = vst.msk [vmem:[%s4032_s3 + $0xb4] sm:$0xf] %vm2092_vm2, %v2427_v18  ;;  %v2693_v7 = vadd.f32 %v2692_v47, %v1832_v3  ;;  %v2562_v9 = vpop.f32.mrb[93].mxu0  ;;  %v1611_v50 = vpop.f32.mrb[98].mxu1 }
 0x237   :  { %v1835_v24 = vpop.f32.mrb[94].mxu0  ;;  %v1612_v11 = vpop.f32.mrb[99].mxu1 }
 0x238   :  { %v1892_v21 = vmax.f32 %v2693_v7, 0.0  ;;  %v2695_v0 = vadd.f32 %v2694_v5, %v1835_v24  ;;  %v2563_v13 = vpop.f32.mrb[95].mxu0 }
 0x23a   :  { %v2428_v27 = vpack.c.bf16 %v1892_v21, %v1892_v21  ;;  %v1893_v54 = vmax.f32 %v2695_v0, 0.0 }
 0x23c   :  { %2139 = vst.msk [vmem:[%s4032_s3 + $0xb8] sm:$0xf] %vm2092_vm2, %v2428_v27  ;;  %v2429_v19 = vpack.c.bf16 %v1893_v54, %v1893_v54 }
 0x23d   :  { %v1840_v25 = vpop.f32.mrb[96].mxu0 }
 0x23e   :  { %2140 = vst.msk [vmem:[%s4032_s3 + $0xbc] sm:$0xf] %vm2092_vm2, %v2429_v19  ;;  %v2697_v20 = vadd.f32 %v2696_v16, %v1840_v25  ;;  %v2566_v23 = vpop.f32.mrb[97].mxu0 }
 0x23f   :  { %v1843_v30 = vpop.f32.mrb[98].mxu0 }
 0x240   :  { %v1894_v26 = vmax.f32 %v2697_v20, 0.0  ;;  %v2567_v57 = vpop.f32.mrb[99].mxu0 }
 0x242   :  { %v2430_v29 = vpack.c.bf16 %v1894_v26, %v1894_v26 }
 0x244   :  { %2141 = vst.msk [vmem:[%s4032_s3 + $0xc0] sm:$0xf] %vm2092_vm2, %v2430_v29 }

// kernel: conv4_forward.13
= control target key start
LH: loop header
LB: loop body
LE: loop exit
PB: predicated region body
PF: predicated region fallthrough
CT: control target
= control target key end

     0   :  { %s421_s18 = smov 64   ;;  %vm232_vm0 = vcmask 519168   ;;  %vm233_vm1 = vsmask.f32 3328  ;;  %s772_s0 = inlined_call_operand.vmem [shape: bf16[28,7,128], index: 0, kind: input, shape index: {}]   ;;  %s773_s1 = inlined_call_operand.vmem [shape: bf16[14,7,64], index: 1, kind: output, shape index: {}]  }
   0x1   :  { %v435_v0 = vld [vmem:[%s772_s0 + $0x10] sm:$0xff]   ;;  %v440_v1 = vld [vmem:[%s772_s0] sm:$0xff]   ;;  %v445_v2 = vld [vmem:[%s772_s0 + $0x18] sm:$0xff]  }
   0x2   :  { %v291_v3 = vunpack.c.l.bf16 %v435_v0  ;;  %v292_v4 = vunpack.c.h.bf16 %v435_v0  ;;  %v283_v5 = vunpack.c.l.bf16 %v440_v1  ;;  %v284_v6 = vunpack.c.h.bf16 %v440_v1  ;;  %v454_v7 = vld [vmem:[%s772_s0 + $0x8] sm:$0xff]   ;;  %v468_v13 = vld [vmem:[%s772_s0 + $0x20] sm:$0xff]   ;;  %v495_v22 = vld [vmem:[%s772_s0 + $0x38] sm:$0xff]  }
   0x3   :  { %v459_v8 = vld [vmem:[%s772_s0 + $0x28] sm:$0xff]   ;;  %v295_v9 = vunpack.c.l.bf16 %v445_v2  ;;  %v296_v10 = vunpack.c.h.bf16 %v445_v2  ;;  %v287_v11 = vunpack.c.l.bf16 %v454_v7  ;;  %v288_v12 = vunpack.c.h.bf16 %v454_v7  ;;  %v500_v23 = vld [vmem:[%s772_s0 + $0x30] sm:$0xff]   ;;  %v524_v31 = vld [vmem:[%s772_s0 + $0x40] sm:$0xff]  }
   0x4   :  { %v361_v14 = vpack.i.bf16 %v292_v4, %v291_v3  ;;  %v351_v15 = vpack.i.bf16 %v284_v6, %v283_v5  ;;  %v303_v16 = vunpack.c.l.bf16 %v459_v8  ;;  %v304_v17 = vunpack.c.h.bf16 %v459_v8  ;;  %v519_v30 = vld [vmem:[%s772_s0 + $0x48] sm:$0xff]   ;;  %v543_v38 = vld [vmem:[%s772_s0 + $0x58] sm:$0xff]   ;;  %v548_v39 = vld [vmem:[%s772_s0 + $0x50] sm:$0xff]  }
   0x5   :  { %v366_v18 = vpack.i.bf16 %v296_v10, %v295_v9  ;;  %v356_v19 = vpack.i.bf16 %v288_v12, %v287_v11  ;;  %v299_v20 = vunpack.c.l.bf16 %v468_v13  ;;  %v300_v21 = vunpack.c.h.bf16 %v468_v13  ;;  %v567_v46 = vld [vmem:[%s772_s0 + $0x68] sm:$0xff]   ;;  %v572_v47 = vld [vmem:[%s772_s0 + $0x60] sm:$0xff]   ;;  %vm608_vm2 = vmand %vm232_vm0, %vm233_vm1 }
   0x6   :  { %362 = vrot.lane.b32.xlu1 %v361_v14, %s421_s18  ;;  %352 = vrot.lane.b32.xlu0 %v351_v15, %s421_s18  ;;  %v376_v24 = vpack.i.bf16 %v304_v17, %v303_v16  ;;  %v311_v25 = vunpack.c.l.bf16 %v495_v22  ;;  %v312_v27 = vunpack.c.h.bf16 %v495_v22  ;;  %v307_v28 = vunpack.c.l.bf16 %v500_v23  ;;  %v241_v0 = vld [vmem:[%s773_s1 + $0x8] sm:$0xf]  ;;  %v244_v2 = vld [vmem:[%s773_s1 + $0xc] sm:$0xf] }
   0x7   :  { %v371_v26 = vpack.i.bf16 %v300_v21, %v299_v20  ;;  %v308_v29 = vunpack.c.h.bf16 %v500_v23  ;;  %v319_v32 = vunpack.c.l.bf16 %v519_v30  ;;  %v320_v33 = vunpack.c.h.bf16 %v519_v30  ;;  %v250_v13 = vld [vmem:[%s773_s1 + $0x14] sm:$0xf] }
   0x8   :  { %v386_v34 = vpack.i.bf16 %v312_v27, %v311_v25  ;;  %v315_v36 = vunpack.c.l.bf16 %v524_v31  ;;  %v316_v37 = vunpack.c.h.bf16 %v524_v31  ;;  %v327_v41 = vunpack.c.l.bf16 %v543_v38  ;;  %v262_v31 = vld [vmem:[%s773_s1 + $0x24] sm:$0xf] }
   0x9   :  { %v381_v35 = vpack.i.bf16 %v308_v29, %v307_v28  ;;  %v396_v40 = vpack.i.bf16 %v320_v33, %v319_v32  ;;  %v328_v43 = vunpack.c.h.bf16 %v543_v38  ;;  %v323_v44 = vunpack.c.l.bf16 %v548_v39 }
   0xa   :  { %367 = vrot.lane.b32.xlu1 %v366_v18, %s421_s18  ;;  %357 = vrot.lane.b32.xlu0 %v356_v19, %s421_s18  ;;  %v391_v42 = vpack.i.bf16 %v316_v37, %v315_v36  ;;  %v324_v45 = vunpack.c.h.bf16 %v548_v39  ;;  %v335_v48 = vunpack.c.l.bf16 %v567_v46  ;;  %v336_v49 = vunpack.c.h.bf16 %v567_v46  ;;  %v268_v39 = vld [vmem:[%s773_s1 + $0x2c] sm:$0xf]  ;;  %v274_v46 = vld [vmem:[%s773_s1 + $0x34] sm:$0xf] }
   0xb   :  { %v406_v50 = vpack.i.bf16 %v328_v43, %v327_v41  ;;  %v331_v52 = vunpack.c.l.bf16 %v572_v47  ;;  %v332_v53 = vunpack.c.h.bf16 %v572_v47 }
   0xc   :  { %v401_v51 = vpack.i.bf16 %v324_v45, %v323_v44  ;;  %v416_v54 = vpack.i.bf16 %v336_v49, %v335_v48 }
   0xd   :  { %v411_v55 = vpack.i.bf16 %v332_v53, %v331_v52 }
   0xe   :  { %377 = vrot.lane.b32.xlu1 %v376_v24, %s421_s18  ;;  %372 = vrot.lane.b32.xlu0 %v371_v26, %s421_s18 }
  0x12   :  { %387 = vrot.lane.b32.xlu1 %v386_v34, %s421_s18  ;;  %382 = vrot.lane.b32.xlu0 %v381_v35, %s421_s18 }
  0x16   :  { %397 = vrot.lane.b32.xlu1 %v396_v40, %s421_s18  ;;  %392 = vrot.lane.b32.xlu0 %v391_v42, %s421_s18 }
  0x1a   :  { %407 = vrot.lane.b32.xlu1 %v406_v50, %s421_s18  ;;  %402 = vrot.lane.b32.xlu0 %v401_v51, %s421_s18 }
  0x1e   :  { %417 = vrot.lane.b32.xlu1 %v416_v54, %s421_s18  ;;  %412 = vrot.lane.b32.xlu0 %v411_v55, %s421_s18 }
  0x78   :  { %v363_v56 = vpop.permute.xlu1 %362  ;;  %v353_v57 = vpop.permute.xlu0 %352 }
  0x79   :  { %v365_v58 = vunpack.i.h.bf16 %v363_v56  ;;  %v364_v59 = vunpack.i.l.bf16 %v363_v56  ;;  %v355_v60 = vunpack.i.h.bf16 %v353_v57  ;;  %v354_v61 = vunpack.i.l.bf16 %v353_v57 }
  0x7b   :  { %v181_v62 = vmax.f32 %v292_v4, %v365_v58  ;;  %v180_v63 = vmax.f32 %v291_v3, %v364_v59  ;;  %v177_v14 = vmax.f32 %v284_v6, %v355_v60  ;;  %v176_v15 = vmax.f32 %v283_v5, %v354_v61  ;;  %v235_v3 = vld [vmem:[%s773_s1] sm:$0xf]  ;;  %v238_v61 = vld [vmem:[%s773_s1 + $0x4] sm:$0xf] }
  0x7c   :  { %v368_v18 = vpop.permute.xlu1 %367  ;;  %v358_v19 = vpop.permute.xlu0 %357 }
  0x7d   :  { %v206_v24 = vmax.f32 %v180_v63, %v181_v62  ;;  %v204_v26 = vmax.f32 %v176_v15, %v177_v14  ;;  %v370_v34 = vunpack.i.h.bf16 %v368_v18  ;;  %v369_v35 = vunpack.i.l.bf16 %v368_v18 }
  0x7e   :  { %v360_v1 = vunpack.i.h.bf16 %v358_v19  ;;  %v359_v4 = vunpack.i.l.bf16 %v358_v19 }
  0x7f   :  { %v220_v5 = vpack.c.bf16 %v206_v24, %v206_v24  ;;  %v218_v6 = vpack.c.bf16 %v204_v26, %v204_v26  ;;  %v183_v42 = vmax.f32 %v296_v10, %v370_v34  ;;  %v182_v50 = vmax.f32 %v295_v9, %v369_v35 }
  0x80   :  { %v179_v51 = vmax.f32 %v288_v12, %v360_v1  ;;  %v178_v54 = vmax.f32 %v287_v11, %v359_v4  ;;  %v378_v55 = vpop.permute.xlu1 %377  ;;  %v373_v56 = vpop.permute.xlu0 %372 }
  0x81   :  { %v242_v57 = vsel %vm608_vm2, %v220_v5, %v241_v0  ;;  %v236_v58 = vsel %vm608_vm2, %v218_v6, %v235_v3  ;;  %v207_v59 = vmax.f32 %v182_v50, %v183_v42  ;;  %v380_v60 = vunpack.i.h.bf16 %v378_v55 }
  0x82   :  { %243 = vst [vmem:[%s773_s1 + $0x8] sm:$0xf] %v242_v57  ;;  %237 = vst [vmem:[%s773_s1] sm:$0xf] %v236_v58  ;;  %v205_v7 = vmax.f32 %v178_v54, %v179_v51  ;;  %v379_v9 = vunpack.i.l.bf16 %v378_v55  ;;  %v375_v10 = vunpack.i.h.bf16 %v373_v56  ;;  %v374_v11 = vunpack.i.l.bf16 %v373_v56 }
  0x83   :  { %v221_v12 = vpack.c.bf16 %v207_v59, %v207_v59  ;;  %v187_v62 = vmax.f32 %v304_v17, %v380_v60 }
  0x84   :  { %v219_v63 = vpack.c.bf16 %v205_v7, %v205_v7  ;;  %v186_v14 = vmax.f32 %v303_v16, %v379_v9  ;;  %v185_v15 = vmax.f32 %v300_v21, %v375_v10  ;;  %v184_v18 = vmax.f32 %v299_v20, %v374_v11  ;;  %v388_v19 = vpop.permute.xlu1 %387  ;;  %v383_v24 = vpop.permute.xlu0 %382  ;;  %v247_v20 = vld [vmem:[%s773_s1 + $0x10] sm:$0xf] }
  0x85   :  { %v245_v26 = vsel %vm608_vm2, %v221_v12, %v244_v2  ;;  %v390_v34 = vunpack.i.h.bf16 %v388_v19  ;;  %v389_v35 = vunpack.i.l.bf16 %v388_v19  ;;  %v385_v0 = vunpack.i.h.bf16 %v383_v24 }
  0x86   :  { %246 = vst [vmem:[%s773_s1 + $0xc] sm:$0xf] %v245_v26  ;;  %v239_v8 = vsel %vm608_vm2, %v219_v63, %v238_v61  ;;  %v209_v16 = vmax.f32 %v186_v14, %v187_v62  ;;  %v208_v17 = vmax.f32 %v184_v18, %v185_v15  ;;  %v384_v21 = vunpack.i.l.bf16 %v383_v24  ;;  %v259_v14 = vld [vmem:[%s773_s1 + $0x20] sm:$0xf] }
  0x87   :  { %240 = vst [vmem:[%s773_s1 + $0x4] sm:$0xf] %v239_v8  ;;  %v191_v3 = vmax.f32 %v312_v27, %v390_v34  ;;  %v190_v1 = vmax.f32 %v311_v25, %v389_v35  ;;  %v189_v4 = vmax.f32 %v308_v29, %v385_v0  ;;  %v256_v25 = vld [vmem:[%s773_s1 + $0x1c] sm:$0xf] }
  0x88   :  { %v223_v5 = vpack.c.bf16 %v209_v16, %v209_v16  ;;  %v222_v6 = vpack.c.bf16 %v208_v17, %v208_v17  ;;  %v188_v42 = vmax.f32 %v307_v28, %v384_v21  ;;  %v398_v50 = vpop.permute.xlu1 %397  ;;  %v393_v51 = vpop.permute.xlu0 %392  ;;  %v253_v28 = vld [vmem:[%s773_s1 + $0x18] sm:$0xf]  ;;  %v265_v21 = vld [vmem:[%s773_s1 + $0x28] sm:$0xf] }
  0x89   :  { %v211_v54 = vmax.f32 %v190_v1, %v191_v3  ;;  %v400_v55 = vunpack.i.h.bf16 %v398_v50  ;;  %v399_v56 = vunpack.i.l.bf16 %v398_v50  ;;  %v395_v57 = vunpack.i.h.bf16 %v393_v51 }
  0x8a   :  { %v251_v27 = vsel %vm608_vm2, %v223_v5, %v250_v13  ;;  %v248_v22 = vsel %vm608_vm2, %v222_v6, %v247_v20  ;;  %v210_v29 = vmax.f32 %v188_v42, %v189_v4  ;;  %v394_v58 = vunpack.i.l.bf16 %v393_v51 }
  0x8b   :  { %252 = vst [vmem:[%s773_s1 + $0x14] sm:$0xf] %v251_v27  ;;  %249 = vst [vmem:[%s773_s1 + $0x10] sm:$0xf] %v248_v22  ;;  %v225_v23 = vpack.c.bf16 %v211_v54, %v211_v54  ;;  %v195_v59 = vmax.f32 %v320_v33, %v400_v55  ;;  %v194_v60 = vmax.f32 %v319_v32, %v399_v56 }
  0x8c   :  { %v193_v2 = vmax.f32 %v316_v37, %v395_v57  ;;  %v224_v7 = vpack.c.bf16 %v210_v29, %v210_v29  ;;  %v192_v9 = vmax.f32 %v315_v36, %v394_v58  ;;  %v408_v10 = vpop.permute.xlu1 %407  ;;  %v403_v11 = vpop.permute.xlu0 %402 }
  0x8d   :  { %v257_v12 = vsel %vm608_vm2, %v225_v23, %v256_v25  ;;  %v213_v61 = vmax.f32 %v194_v60, %v195_v59  ;;  %v410_v62 = vunpack.i.h.bf16 %v408_v10  ;;  %v409_v63 = vunpack.i.l.bf16 %v408_v10 }
  0x8e   :  { %258 = vst [vmem:[%s773_s1 + $0x1c] sm:$0xf] %v257_v12  ;;  %v254_v30 = vsel %vm608_vm2, %v224_v7, %v253_v28  ;;  %v212_v32 = vmax.f32 %v192_v9, %v193_v2  ;;  %v405_v33 = vunpack.i.h.bf16 %v403_v11  ;;  %v404_v36 = vunpack.i.l.bf16 %v403_v11 }
  0x8f   :  { %255 = vst [vmem:[%s773_s1 + $0x18] sm:$0xf] %v254_v30  ;;  %v227_v37 = vpack.c.bf16 %v213_v61, %v213_v61  ;;  %v199_v15 = vmax.f32 %v328_v43, %v410_v62  ;;  %v198_v18 = vmax.f32 %v327_v41, %v409_v63 }
  0x90   :  { %v226_v19 = vpack.c.bf16 %v212_v32, %v212_v32  ;;  %v197_v24 = vmax.f32 %v324_v45, %v405_v33  ;;  %v196_v26 = vmax.f32 %v323_v44, %v404_v36  ;;  %v418_v34 = vpop.permute.xlu1 %417  ;;  %v413_v35 = vpop.permute.xlu0 %412 }
  0x91   :  { %v263_v0 = vsel %vm608_vm2, %v227_v37, %v262_v31  ;;  %v215_v8 = vmax.f32 %v198_v18, %v199_v15  ;;  %v420_v16 = vunpack.i.h.bf16 %v418_v34  ;;  %v419_v17 = vunpack.i.l.bf16 %v418_v34 }
  0x92   :  { %264 = vst [vmem:[%s773_s1 + $0x24] sm:$0xf] %v263_v0  ;;  %v260_v38 = vsel %vm608_vm2, %v226_v19, %v259_v14  ;;  %v214_v41 = vmax.f32 %v196_v26, %v197_v24  ;;  %v415_v43 = vunpack.i.h.bf16 %v413_v35  ;;  %v414_v44 = vunpack.i.l.bf16 %v413_v35 }
  0x93   :  { %261 = vst [vmem:[%s773_s1 + $0x20] sm:$0xf] %v260_v38  ;;  %v229_v45 = vpack.c.bf16 %v215_v8, %v215_v8  ;;  %v203_v13 = vmax.f32 %v336_v49, %v420_v16  ;;  %v202_v20 = vmax.f32 %v335_v48, %v419_v17 }
  0x94   :  { %v228_v3 = vpack.c.bf16 %v214_v41, %v214_v41  ;;  %v201_v1 = vmax.f32 %v332_v53, %v415_v43  ;;  %v200_v4 = vmax.f32 %v331_v52, %v414_v44  ;;  %v271_v52 = vld [vmem:[%s773_s1 + $0x30] sm:$0xf] }
  0x95   :  { %v269_v5 = vsel %vm608_vm2, %v229_v45, %v268_v39  ;;  %v217_v6 = vmax.f32 %v202_v20, %v203_v13 }
  0x96   :  { %270 = vst [vmem:[%s773_s1 + $0x2c] sm:$0xf] %v269_v5  ;;  %v266_v49 = vsel %vm608_vm2, %v228_v3, %v265_v21  ;;  %v216_v48 = vmax.f32 %v200_v4, %v201_v1 }
  0x97   :  { %267 = vst [vmem:[%s773_s1 + $0x28] sm:$0xf] %v266_v49  ;;  %v231_v47 = vpack.c.bf16 %v217_v6, %v217_v6 }
  0x98   :  { %v230_v53 = vpack.c.bf16 %v216_v48, %v216_v48 }
  0x99   :  { %v275_v42 = vsel %vm608_vm2, %v231_v47, %v274_v46 }
  0x9a   :  { %276 = vst [vmem:[%s773_s1 + $0x34] sm:$0xf] %v275_v42  ;;  %v272_v50 = vsel %vm608_vm2, %v230_v53, %v271_v52 }
  0x9b   :  { %273 = vst [vmem:[%s773_s1 + $0x30] sm:$0xf] %v272_v50 }

// kernel: conv4_forward.15
= control target key start
LH: loop header
LB: loop body
LE: loop exit
PB: predicated region body
PF: predicated region fallthrough
CT: control target
= control target key end

     0   :  { %v100_v30 = vlaneseq  ;;  %v541_v34 = vmov 1966171168   ;;  %s677_s0 = inlined_call_operand.vmem [shape: bf16[2,512], index: 0, kind: input, shape index: {}]   ;;  %s678_s1 = inlined_call_operand.vmem [shape: bf16[512,10], index: 1, kind: input, shape index: {}]   ;;  %s679_s2 = inlined_call_operand.vmem [shape: f32[1,10], index: 2, kind: input, shape index: {}]   ;;  %s680_s3 = inlined_call_operand.hbm [shape: f32[2,10], index: 3, kind: output, shape index: {}]  }
   0x1   :  { %v485_v0 = vld [vmem:[%s678_s1 + $0x40] sm:$0xff]   ;;  %v489_v4 = vld [vmem:[%s678_s1 + $0x48] sm:$0xff]   ;;  %v493_v8 = vld [vmem:[%s678_s1 + $0x50] sm:$0xff]   ;;  %v98_v35 = vunpack.c.l.s4 %v541_v34 }
   0x2   :  { %v486_v1 = vld [vmem:[%s678_s1 + $0xc0] sm:$0xff]   ;;  %439 = vmatprep.subr.bf16.mxu0 %v485_v0  ;;  %v490_v5 = vld [vmem:[%s678_s1 + $0xc8] sm:$0xff]   ;;  %v494_v9 = vld [vmem:[%s678_s1 + $0xd0] sm:$0xff]   ;;  %v101_v36 = vshrl.u32 %v100_v30, 7 }
   0x3   :  { %v487_v2 = vld [vmem:[%s678_s1] sm:$0xff]   ;;  %461 = vmatprep.subr.bf16.mxu1 %v486_v1  ;;  %v491_v6 = vld [vmem:[%s678_s1 + $0x8] sm:$0xff]   ;;  %v495_v10 = vld [vmem:[%s678_s1 + $0x10] sm:$0xff]  }
   0x4   :  { %v488_v3 = vld [vmem:[%s678_s1 + $0x80] sm:$0xff]   ;;  %440 = vmatpush3.bf16.msra.mxu0 %v487_v2  ;;  %v492_v7 = vld [vmem:[%s678_s1 + $0x88] sm:$0xff]   ;;  %v496_v11 = vld [vmem:[%s678_s1 + $0x90] sm:$0xff]  }
   0x5   :  { %462 = vmatpush3.bf16.msra.mxu1 %v488_v3  ;;  %441 = vmatprep.subr.bf16.mxu0 %v489_v4  ;;  %v497_v12 = vld [vmem:[%s678_s1 + $0x58] sm:$0xff]   ;;  %v501_v16 = vld [vmem:[%s678_s1 + $0x60] sm:$0xff]   ;;  %v505_v20 = vld [vmem:[%s678_s1 + $0x68] sm:$0xff]  }
   0x6   :  { %463 = vmatprep.subr.bf16.mxu1 %v490_v5  ;;  %v498_v13 = vld [vmem:[%s678_s1 + $0xd8] sm:$0xff]   ;;  %v502_v17 = vld [vmem:[%s678_s1 + $0xe0] sm:$0xff]   ;;  %v506_v21 = vld [vmem:[%s678_s1 + $0xe8] sm:$0xff]  }
   0x7   :  { %v499_v14 = vld [vmem:[%s678_s1 + $0x18] sm:$0xff]   ;;  %v503_v18 = vld [vmem:[%s678_s1 + $0x20] sm:$0xff]   ;;  %v507_v22 = vld [vmem:[%s678_s1 + $0x28] sm:$0xff]  }
   0x8   :  { %442 = vmatpush3.bf16.msra.mxu0 %v491_v6  ;;  %v500_v15 = vld [vmem:[%s678_s1 + $0x98] sm:$0xff]   ;;  %v504_v19 = vld [vmem:[%s678_s1 + $0xa0] sm:$0xff]   ;;  %v508_v23 = vld [vmem:[%s678_s1 + $0xa8] sm:$0xff]  }
   0x9   :  { %464 = vmatpush3.bf16.msra.mxu1 %v492_v7  ;;  %443 = vmatprep.subr.bf16.mxu0 %v493_v8  ;;  %v509_v24 = vld [vmem:[%s678_s1 + $0x70] sm:$0xff]   ;;  %v513_v28 = vld [vmem:[%s678_s1 + $0x78] sm:$0xff]   ;;  %v406_v33 = vld.sshfl [vmem:[%s677_s0] sm:$0x33 pattern:$0x75316420] }
   0xa   :  { %465 = vmatprep.subr.bf16.mxu1 %v494_v9  ;;  %v510_v25 = vld [vmem:[%s678_s1 + $0xf0] sm:$0xff]   ;;  %v514_v29 = vld [vmem:[%s678_s1 + $0xf8] sm:$0xff]  }
   0xb   :  { %v511_v26 = vld [vmem:[%s678_s1 + $0x30] sm:$0xff]   ;;  %v515_v31 = vld [vmem:[%s678_s1 + $0x38] sm:$0xff]  }
   0xc   :  { %444 = vmatpush3.bf16.msra.mxu0 %v495_v10  ;;  %v512_v27 = vld [vmem:[%s678_s1 + $0xb0] sm:$0xff]   ;;  %v516_v32 = vld [vmem:[%s678_s1 + $0xb8] sm:$0xff]  }
   0xd   :  { %466 = vmatpush3.bf16.msra.mxu1 %v496_v11  ;;  %445 = vmatprep.subr.bf16.mxu0 %v497_v12 }
   0xe   :  { %467 = vmatprep.subr.bf16.mxu1 %v498_v13 }
  0x10   :  { %446 = vmatpush3.bf16.msra.mxu0 %v499_v14 }
  0x11   :  { %468 = vmatpush3.bf16.msra.mxu1 %v500_v15  ;;  %447 = vmatprep.subr.bf16.mxu0 %v501_v16 }
  0x12   :  { %469 = vmatprep.subr.bf16.mxu1 %v502_v17 }
  0x14   :  { %448 = vmatpush3.bf16.msra.mxu0 %v503_v18 }
  0x15   :  { %470 = vmatpush3.bf16.msra.mxu1 %v504_v19  ;;  %449 = vmatprep.subr.bf16.mxu0 %v505_v20 }
  0x16   :  { %471 = vmatprep.subr.bf16.mxu1 %v506_v21 }
  0x18   :  { %450 = vmatpush3.bf16.msra.mxu0 %v507_v22 }
  0x19   :  { %472 = vmatpush3.bf16.msra.mxu1 %v508_v23  ;;  %451 = vmatprep.subr.bf16.mxu0 %v509_v24 }
  0x1a   :  { %473 = vmatprep.subr.bf16.mxu1 %v510_v25 }
  0x1c   :  { %452 = vmatpush3.bf16.msra.mxu0 %v511_v26 }
  0x1d   :  { %474 = vmatpush3.bf16.msra.mxu1 %v512_v27  ;;  %453 = vmatprep.subr.bf16.mxu0 %v513_v28 }
  0x1e   :  { %475 = vmatprep.subr.bf16.mxu1 %v514_v29 }
  0x20   :  { %454 = vmatpush3.bf16.msra.mxu0 %v515_v31 }
  0x21   :  { %476 = vmatpush3.bf16.msra.mxu1 %v516_v32 }
  0x22   :  { %8 = vsyncpa [#allocation3], 0  ;;  %v96_v37 = vcombine.high %v406_v33, %v406_v33  ;;  %v99_v38 = vunpack.c.0.s8 %v98_v35  ;;  %v405_v45 = vld [vmem:[%s679_s2] ss:$0 sm:$0xff]  ;;  %s542_s0 = smov [#allocation2]   ;;  %vm389_vm0 = vcmask 74752  }
  0x23   :  { %s397_s25 = sshll.u32 %s542_s0, 4  ;;  %s398_s25 = int_to_ptr.vmem [resolvable:$true] %s397_s25 }
  0x24   :  { %v102_v39 = vsub.s32 %v99_v38, %v101_v36  ;;  %s517_s26 = scalar_lea.vmem %s398_s25, 32  ;;  %p522_p1 = scmp.lt.s32.totalorder %s398_s25, %s398_s25 }
  0x25   :  { %p518_p0 = scmp.ne.s32.totalorder %s398_s25, %s517_s26  ;;  %p523_p2 = scmp.lt.s32.totalorder %s517_s26, %s517_s26 }
  0x26   :  { %v110_v40 = vrot.slane %v96_v37, %v102_v39  ;;  %v103_v41 = vrot.slane %v406_v33, %v102_v39 }
  0x27   :  { %p524_p3 = por %p523_p2, %p522_p1 }
  0x28   :  { %341 = vmatprep.mubr.bf16.mxu0 %v110_v40  ;;  %v112_v42 = vcombine.high %v110_v40, %v110_v40  ;;  %v111_v43 = vcombine.high %v103_v41, %v103_v41 }
  0x29   :  { %342 = vmatmul.mubr.bf16.vlgmr.msra.gmra.mrb[0].mxu0 %v103_v41  ;;  %p525_p4 = pnand %p524_p3, %p518_p0 }
  0x2a   :  { %381 = vmatprep.mubr.bf16.mxu1 %v112_v42 }
  0x2b   :  { %382 = vmatmul.mubr.bf16.vlgmr.msra.gmra.mrb[0].mxu1 %v111_v43 }
  0xfc   :  { %v455_v44 = vpop.f32.mrb[0].mxu0 }
  0xfd   :  { %v456_v46 = vpop.f32.mrb[1].mxu0 }
  0xfe   :  { %v477_v47 = vpop.f32.mrb[0].mxu1  ;;  %v457_v48 = vadd.f32 %v456_v46, %v455_v44  ;;  %v458_v49 = vpop.f32.mrb[2].mxu0 }
  0xff   :  { %v478_v50 = vpop.f32.mrb[1].mxu1  ;;  %v459_v51 = vpop.f32.mrb[3].mxu0 }
 0x100   :  { %v344_v52 = vadd.f32 %v457_v48, %v405_v45  ;;  %v479_v53 = vadd.f32 %v478_v50, %v477_v47  ;;  %v480_v54 = vpop.f32.mrb[2].mxu1 }
 0x101   :  { %v481_v55 = vpop.f32.mrb[3].mxu1 }
 0x102   :  { %v384_v56 = vadd.f32 %v479_v53, %v344_v52 }
 0x104   :  { %390 = vst.msk [vmem:[#allocation2] sm:$0x3] %vm389_vm0, %v384_v56 }
 0x105   :  { %528 = shalt.err (!%p525_p4)
}
 0x106   :  { %s529_s28 = scalar_lea.hbm %s680_s3, 32 }
 0x107   :  { %p530_p5 = scmp.ne.s32.totalorder %s680_s3, %s529_s28  ;;  %p533_p6 = scmp.lt.u32.totalorder %s529_s28, %s680_s3 }
 0x109   :  { %p535_p7 = pnand %p533_p6, %p530_p5 }
 0x10b   :  { %538 = shalt.err (!%p535_p7)
}
 0x10c   :  { %400 = dma.vmem_to_hbm [thread:$0]  %s398_s25, 32, %s680_s3, [#allocation3]  }
 0x10d   :  { %539 = dma.done.wait [#allocation3], 32  }
 0x10e   :  { %540 = vsyncadd [#allocation3], 4294967264 }
 0x10f   :  { %404 = vsyncpa [#allocation3], 1 }

// kernel: conv4_forward.14
= control target key start
LH: loop header
LB: loop body
LE: loop exit
PB: predicated region body
PF: predicated region fallthrough
CT: control target
= control target key end

     0   :  { %v805_v36 = vlaneseq  ;;  %v8119_v37 = vmov 1966171168   ;;  %vm4934_vm0 = vcmask 523264   ;;  %s10644_s1 = inlined_call_operand.vmem [shape: bf16[3136,512], index: 1, kind: input, shape index: {}]   ;;  %s10645_s0 = inlined_call_operand.vmem [shape: bf16[2,3136], index: 0, kind: input, shape index: {}]   ;;  %s10646_s2 = inlined_call_operand.vmem [shape: f32[1,512], index: 2, kind: input, shape index: {}]   ;;  %s10647_s3 = inlined_call_operand.vmem [shape: bf16[2,512], index: 3, kind: output, shape index: {}]  }
   0x1   :  { %v6938_v0 = vld [vmem:[%s10644_s1 + $0x4] ss:$16 sps:$4 sm:$0xff]   ;;  %v6940_v1 = vld [vmem:[%s10644_s1 + $0xc] ss:$16 sps:$4 sm:$0xff]   ;;  %v6942_v2 = vld [vmem:[%s10644_s1] ss:$16 sps:$4 sm:$0xff]   ;;  %v831_v38 = vunpack.c.l.s4 %v8119_v37 }
   0x2   :  { %4938 = vmatprep.subr.bf16.mxu0 %v6938_v0  ;;  %v6943_v3 = vld [vmem:[%s10644_s1 + $0x8] ss:$16 sps:$4 sm:$0xff]   ;;  %5471 = vmatprep.subr.bf16.mxu1 %v6940_v1  ;;  %v6944_v4 = vld [vmem:[%s10644_s1 + $0x24] ss:$16 sps:$4 sm:$0xff]   ;;  %v6946_v5 = vld [vmem:[%s10644_s1 + $0x2c] ss:$16 sps:$4 sm:$0xff]  }
   0x3   :  { %4939 = vmatpush1.bf16.msra.mxu0 %v6942_v2  ;;  %5472 = vmatpush1.bf16.msra.mxu1 %v6943_v3  ;;  %v6948_v6 = vld [vmem:[%s10644_s1 + $0x20] ss:$16 sps:$4 sm:$0xff]   ;;  %v6949_v7 = vld [vmem:[%s10644_s1 + $0x28] ss:$16 sps:$4 sm:$0xff]   ;;  %v6950_v8 = vld [vmem:[%s10644_s1 + $0x44] ss:$16 sps:$4 sm:$0xff]   ;;  %v832_v43 = vunpack.c.0.s8 %v831_v38 }
   0x4   :  { %4940 = vmatprep.subr.bf16.mxu0 %v6944_v4  ;;  %5473 = vmatprep.subr.bf16.mxu1 %v6946_v5  ;;  %v6952_v9 = vld [vmem:[%s10644_s1 + $0x4c] ss:$16 sps:$4 sm:$0xff]   ;;  %v6954_v10 = vld [vmem:[%s10644_s1 + $0x40] ss:$16 sps:$4 sm:$0xff]   ;;  %v6955_v11 = vld [vmem:[%s10644_s1 + $0x48] ss:$16 sps:$4 sm:$0xff]  }
   0x5   :  { %v6956_v12 = vld [vmem:[%s10644_s1 + $0x64] ss:$16 sps:$4 sm:$0xff]   ;;  %v6958_v13 = vld [vmem:[%s10644_s1 + $0x6c] ss:$16 sps:$4 sm:$0xff]   ;;  %v6960_v14 = vld [vmem:[%s10644_s1 + $0x60] ss:$16 sps:$4 sm:$0xff]  }
   0x6   :  { %v6961_v15 = vld [vmem:[%s10644_s1 + $0x68] ss:$16 sps:$4 sm:$0xff]   ;;  %v6962_v16 = vld [vmem:[%s10644_s1 + $0x84] ss:$16 sps:$4 sm:$0xff]   ;;  %v6964_v17 = vld [vmem:[%s10644_s1 + $0x8c] ss:$16 sps:$4 sm:$0xff]  }
   0x7   :  { %4941 = vmatpush1.bf16.msra.mxu0 %v6948_v6  ;;  %5474 = vmatpush1.bf16.msra.mxu1 %v6949_v7  ;;  %v6966_v18 = vld [vmem:[%s10644_s1 + $0x80] ss:$16 sps:$4 sm:$0xff]   ;;  %v6967_v19 = vld [vmem:[%s10644_s1 + $0x88] ss:$16 sps:$4 sm:$0xff]   ;;  %v6968_v20 = vld [vmem:[%s10644_s1 + $0xa4] ss:$16 sps:$4 sm:$0xff]  }
   0x8   :  { %4942 = vmatprep.subr.bf16.mxu0 %v6950_v8  ;;  %5475 = vmatprep.subr.bf16.mxu1 %v6952_v9  ;;  %v6970_v21 = vld [vmem:[%s10644_s1 + $0xac] ss:$16 sps:$4 sm:$0xff]   ;;  %v6972_v22 = vld [vmem:[%s10644_s1 + $0xa0] ss:$16 sps:$4 sm:$0xff]   ;;  %v6973_v23 = vld [vmem:[%s10644_s1 + $0xa8] ss:$16 sps:$4 sm:$0xff]  }
   0x9   :  { %v6974_v24 = vld [vmem:[%s10644_s1 + $0xc4] ss:$16 sps:$4 sm:$0xff]   ;;  %v6976_v25 = vld [vmem:[%s10644_s1 + $0xcc] ss:$16 sps:$4 sm:$0xff]   ;;  %v6978_v26 = vld [vmem:[%s10644_s1 + $0xc0] ss:$16 sps:$4 sm:$0xff]  }
   0xa   :  { %v6979_v27 = vld [vmem:[%s10644_s1 + $0xc8] ss:$16 sps:$4 sm:$0xff]   ;;  %v6980_v28 = vld [vmem:[%s10644_s1 + $0xe4] ss:$16 sps:$4 sm:$0xff]   ;;  %v6982_v29 = vld [vmem:[%s10644_s1 + $0xec] ss:$16 sps:$4 sm:$0xff]  }
   0xb   :  { %4943 = vmatpush1.bf16.msra.mxu0 %v6954_v10  ;;  %5476 = vmatpush1.bf16.msra.mxu1 %v6955_v11  ;;  %v6984_v30 = vld [vmem:[%s10644_s1 + $0xe0] ss:$16 sps:$4 sm:$0xff]   ;;  %v6985_v31 = vld [vmem:[%s10644_s1 + $0xe8] ss:$16 sps:$4 sm:$0xff]   ;;  %v6986_v32 = vld [vmem:[%s10644_s1 + $0x104] ss:$16 sps:$4 sm:$0xff]  }
   0xc   :  { %4944 = vmatprep.subr.bf16.mxu0 %v6956_v12  ;;  %5477 = vmatprep.subr.bf16.mxu1 %v6958_v13  ;;  %v6988_v33 = vld [vmem:[%s10644_s1 + $0x10c] ss:$16 sps:$4 sm:$0xff]   ;;  %v6990_v34 = vld [vmem:[%s10644_s1 + $0x100] ss:$16 sps:$4 sm:$0xff]   ;;  %v6991_v35 = vld [vmem:[%s10644_s1 + $0x108] ss:$16 sps:$4 sm:$0xff]  }
   0xd   :  { %v6992_v39 = vld [vmem:[%s10644_s1 + $0x124] ss:$16 sps:$4 sm:$0xff]   ;;  %v6994_v40 = vld [vmem:[%s10644_s1 + $0x12c] ss:$16 sps:$4 sm:$0xff]   ;;  %v6996_v41 = vld [vmem:[%s10644_s1 + $0x120] ss:$16 sps:$4 sm:$0xff]  }
   0xe   :  { %v8258_v42 = vshrl.u32 %v805_v36, 7  ;;  %v6997_v44 = vld [vmem:[%s10644_s1 + $0x128] ss:$16 sps:$4 sm:$0xff]   ;;  %v6998_v45 = vld [vmem:[%s10644_s1 + $0x144] ss:$16 sps:$4 sm:$0xff]  }
   0xf   :  { %4945 = vmatpush1.bf16.msra.mxu0 %v6960_v14  ;;  %5478 = vmatpush1.bf16.msra.mxu1 %v6961_v15  ;;  %v7000_v46 = vld [vmem:[%s10644_s1 + $0x14c] ss:$16 sps:$4 sm:$0xff]   ;;  %v7002_v47 = vld [vmem:[%s10644_s1 + $0x140] ss:$16 sps:$4 sm:$0xff]   ;;  %v7003_v48 = vld [vmem:[%s10644_s1 + $0x148] ss:$16 sps:$4 sm:$0xff]  }
  0x10   :  { %4946 = vmatprep.subr.bf16.mxu0 %v6962_v16  ;;  %5479 = vmatprep.subr.bf16.mxu1 %v6964_v17  ;;  %v8276_v49 = vsub.s32 %v832_v43, %v8258_v42  ;;  %v7004_v50 = vld [vmem:[%s10644_s1 + $0x164] ss:$16 sps:$4 sm:$0xff]   ;;  %v7006_v51 = vld [vmem:[%s10644_s1 + $0x16c] ss:$16 sps:$4 sm:$0xff]   ;;  %v7008_v53 = vld [vmem:[%s10644_s1 + $0x160] ss:$16 sps:$4 sm:$0xff]  }
  0x11   :  { %v8287_v52 = vld [vmem:[%s10645_s0] sm:$0xff]  ;;  %v7009_v55 = vld [vmem:[%s10644_s1 + $0x168] ss:$16 sps:$4 sm:$0xff]   ;;  %v7012_v57 = vld [vmem:[%s10644_s1 + $0x18c] ss:$16 sps:$4 sm:$0xff]  }
  0x12   :  { %v836_v54 = vrot.slane %v8287_v52, %v8276_v49  ;;  %v7010_v56 = vld [vmem:[%s10644_s1 + $0x184] ss:$16 sps:$4 sm:$0xff]   ;;  %v7014_v59 = vld [vmem:[%s10644_s1 + $0x180] ss:$16 sps:$4 sm:$0xff]   ;;  %v7015_v61 = vld [vmem:[%s10644_s1 + $0x188] ss:$16 sps:$4 sm:$0xff]  }
  0x13   :  { %4947 = vmatpush1.bf16.msra.mxu0 %v6966_v18  ;;  %5480 = vmatpush1.bf16.msra.mxu1 %v6967_v19  ;;  %v7016_v62 = vld [vmem:[%s10644_s1 + $0x1a4] ss:$16 sps:$4 sm:$0xff]   ;;  %v7018_v63 = vld [vmem:[%s10644_s1 + $0x1ac] ss:$16 sps:$4 sm:$0xff]   ;;  %v7020_v0 = vld [vmem:[%s10644_s1 + $0x1a0] ss:$16 sps:$4 sm:$0xff]  }
  0x14   :  { %4948 = vmatprep.subr.bf16.mxu0 %v6968_v20  ;;  %5481 = vmatprep.subr.bf16.mxu1 %v6970_v21  ;;  %v844_v58 = vcombine.high %v836_v54, %v836_v54  ;;  %v7021_v1 = vld [vmem:[%s10644_s1 + $0x1a8] ss:$16 sps:$4 sm:$0xff]   ;;  %v7022_v2 = vld [vmem:[%s10644_s1 + $0x1c4] ss:$16 sps:$4 sm:$0xff]   ;;  %v7024_v3 = vld [vmem:[%s10644_s1 + $0x1cc] ss:$16 sps:$4 sm:$0xff]   ;;  %v8356_v13 = vrot.slane %v836_v54, %v8276_v49 }
  0x15   :  { %v7026_v4 = vld [vmem:[%s10644_s1 + $0x1c0] ss:$16 sps:$4 sm:$0xff]   ;;  %v7027_v5 = vld [vmem:[%s10644_s1 + $0x1c8] ss:$16 sps:$4 sm:$0xff]   ;;  %v7028_v6 = vld [vmem:[%s10644_s1 + $0x1e4] ss:$16 sps:$4 sm:$0xff]  }
  0x16   :  { %v866_v60 = vrot.slane %v844_v58, %v8276_v49  ;;  %v7030_v7 = vld [vmem:[%s10644_s1 + $0x1ec] ss:$16 sps:$4 sm:$0xff]   ;;  %v7032_v8 = vld [vmem:[%s10644_s1 + $0x1e0] ss:$16 sps:$4 sm:$0xff]   ;;  %v7033_v9 = vld [vmem:[%s10644_s1 + $0x1e8] ss:$16 sps:$4 sm:$0xff]  }
  0x17   :  { %4949 = vmatpush1.bf16.msra.mxu0 %v6972_v22  ;;  %5482 = vmatpush1.bf16.msra.mxu1 %v6973_v23  ;;  %v7036_v10 = vld [vmem:[%s10644_s1 + $0x204] ss:$16 sps:$4 sm:$0xff]   ;;  %v7039_v11 = vld [vmem:[%s10644_s1 + $0x20c] ss:$16 sps:$4 sm:$0xff]   ;;  %v7034_v12 = vld [vmem:[%s10644_s1 + $0x200] ss:$16 sps:$4 sm:$0xff]  }
  0x18   :  { %4950 = vmatprep.subr.bf16.mxu0 %v6974_v24  ;;  %5483 = vmatprep.subr.bf16.mxu1 %v6976_v25  ;;  %v7037_v14 = vld [vmem:[%s10644_s1 + $0x208] ss:$16 sps:$4 sm:$0xff]   ;;  %v7042_v15 = vld [vmem:[%s10644_s1 + $0x224] ss:$16 sps:$4 sm:$0xff]   ;;  %v7045_v16 = vld [vmem:[%s10644_s1 + $0x22c] ss:$16 sps:$4 sm:$0xff]   ;;  %v876_v17 = vcombine.high %v866_v60, %v866_v60 }
  0x19   :  { %4970 = vmatprep.mubr.bf16.mxu0 %v866_v60  ;;  %5503 = vmatprep.mubr.bf16.mxu1 %v866_v60  ;;  %v7040_v18 = vld [vmem:[%s10644_s1 + $0x220] ss:$16 sps:$4 sm:$0xff]   ;;  %v7043_v19 = vld [vmem:[%s10644_s1 + $0x228] ss:$16 sps:$4 sm:$0xff]   ;;  %v7048_v20 = vld [vmem:[%s10644_s1 + $0x244] ss:$16 sps:$4 sm:$0xff]  }
  0x1a   :  { %v7051_v21 = vld [vmem:[%s10644_s1 + $0x24c] ss:$16 sps:$4 sm:$0xff]   ;;  %v7046_v22 = vld [vmem:[%s10644_s1 + $0x240] ss:$16 sps:$4 sm:$0xff]   ;;  %v7049_v23 = vld [vmem:[%s10644_s1 + $0x248] ss:$16 sps:$4 sm:$0xff]  }
  0x1b   :  { %4951 = vmatpush1.bf16.msra.mxu0 %v6978_v26  ;;  %5484 = vmatpush1.bf16.msra.mxu1 %v6979_v27  ;;  %v7054_v24 = vld [vmem:[%s10644_s1 + $0x264] ss:$16 sps:$4 sm:$0xff]   ;;  %v7057_v25 = vld [vmem:[%s10644_s1 + $0x26c] ss:$16 sps:$4 sm:$0xff]   ;;  %v7052_v26 = vld [vmem:[%s10644_s1 + $0x260] ss:$16 sps:$4 sm:$0xff]  }
  0x1c   :  { %4952 = vmatprep.subr.bf16.mxu0 %v6980_v28  ;;  %5485 = vmatprep.subr.bf16.mxu1 %v6982_v29  ;;  %v7055_v27 = vld [vmem:[%s10644_s1 + $0x268] ss:$16 sps:$4 sm:$0xff]   ;;  %v7060_v28 = vld [vmem:[%s10644_s1 + $0x284] ss:$16 sps:$4 sm:$0xff]   ;;  %v7063_v29 = vld [vmem:[%s10644_s1 + $0x28c] ss:$16 sps:$4 sm:$0xff]  }
  0x1d   :  { %v7072_v36 = vld [vmem:[%s10644_s1 + $0x2c4] ss:$16 sps:$4 sm:$0xff]   ;;  %v7075_v37 = vld [vmem:[%s10644_s1 + $0x2cc] ss:$16 sps:$4 sm:$0xff]   ;;  %v7070_v38 = vld [vmem:[%s10644_s1 + $0x2c0] ss:$16 sps:$4 sm:$0xff]  }
  0x1e   :  { %v7076_v43 = vld [vmem:[%s10644_s1 + $0x2e0] ss:$16 sps:$4 sm:$0xff]   ;;  %v7091_v54 = vld [vmem:[%s10644_s1 + $0x328] ss:$16 sps:$4 sm:$0xff]   ;;  %v7105_v60 = vld [vmem:[%s10644_s1 + $0x36c] ss:$16 sps:$4 sm:$0xff]  }
  0x1f   :  { %4953 = vmatpush1.bf16.msra.mxu0 %v6984_v30  ;;  %5486 = vmatpush1.bf16.msra.mxu1 %v6985_v31  ;;  %v7058_v30 = vld [vmem:[%s10644_s1 + $0x280] ss:$16 sps:$4 sm:$0xff]   ;;  %v7061_v31 = vld [vmem:[%s10644_s1 + $0x288] ss:$16 sps:$4 sm:$0xff]  }
  0x20   :  { %4954 = vmatprep.subr.bf16.mxu0 %v6986_v32  ;;  %5487 = vmatprep.subr.bf16.mxu1 %v6988_v33  ;;  %v7066_v32 = vld [vmem:[%s10644_s1 + $0x2a4] ss:$16 sps:$4 sm:$0xff]   ;;  %v7069_v33 = vld [vmem:[%s10644_s1 + $0x2ac] ss:$16 sps:$4 sm:$0xff]   ;;  %v7097_v58 = vld [vmem:[%s10644_s1 + $0x348] ss:$16 sps:$4 sm:$0xff]  }
  0x23   :  { %4955 = vmatpush1.bf16.msra.mxu0 %v6990_v34  ;;  %5488 = vmatpush1.bf16.msra.mxu1 %v6991_v35  ;;  %v7064_v34 = vld [vmem:[%s10644_s1 + $0x2a0] ss:$16 sps:$4 sm:$0xff]   ;;  %v7067_v35 = vld [vmem:[%s10644_s1 + $0x2a8] ss:$16 sps:$4 sm:$0xff]  }
  0x24   :  { %4956 = vmatprep.subr.bf16.mxu0 %v6992_v39  ;;  %5489 = vmatprep.subr.bf16.mxu1 %v6994_v40  ;;  %v7073_v39 = vld [vmem:[%s10644_s1 + $0x2c8] ss:$16 sps:$4 sm:$0xff]   ;;  %v7078_v40 = vld [vmem:[%s10644_s1 + $0x2e4] ss:$16 sps:$4 sm:$0xff]  }
  0x27   :  { %4957 = vmatpush1.bf16.msra.mxu0 %v6996_v41  ;;  %5490 = vmatpush1.bf16.msra.mxu1 %v6997_v44  ;;  %v7081_v41 = vld [vmem:[%s10644_s1 + $0x2ec] ss:$16 sps:$4 sm:$0xff]   ;;  %v7079_v44 = vld [vmem:[%s10644_s1 + $0x2e8] ss:$16 sps:$4 sm:$0xff]  }
  0x28   :  { %4958 = vmatprep.subr.bf16.mxu0 %v6998_v45  ;;  %5491 = vmatprep.subr.bf16.mxu1 %v7000_v46  ;;  %v7084_v45 = vld [vmem:[%s10644_s1 + $0x304] ss:$16 sps:$4 sm:$0xff]   ;;  %v7087_v46 = vld [vmem:[%s10644_s1 + $0x30c] ss:$16 sps:$4 sm:$0xff]  }
  0x2b   :  { %4959 = vmatpush1.bf16.msra.mxu0 %v7002_v47  ;;  %5492 = vmatpush1.bf16.msra.mxu1 %v7003_v48  ;;  %v7082_v47 = vld [vmem:[%s10644_s1 + $0x300] ss:$16 sps:$4 sm:$0xff]   ;;  %v7085_v48 = vld [vmem:[%s10644_s1 + $0x308] ss:$16 sps:$4 sm:$0xff]  }
  0x2c   :  { %4960 = vmatprep.subr.bf16.mxu0 %v7004_v50  ;;  %5493 = vmatprep.subr.bf16.mxu1 %v7006_v51  ;;  %v7090_v50 = vld [vmem:[%s10644_s1 + $0x324] ss:$16 sps:$4 sm:$0xff]   ;;  %v7093_v51 = vld [vmem:[%s10644_s1 + $0x32c] ss:$16 sps:$4 sm:$0xff]  }
  0x2f   :  { %4961 = vmatpush1.bf16.msra.mxu0 %v7008_v53  ;;  %5494 = vmatpush1.bf16.msra.mxu1 %v7009_v55  ;;  %v7088_v53 = vld [vmem:[%s10644_s1 + $0x320] ss:$16 sps:$4 sm:$0xff]   ;;  %v7096_v55 = vld [vmem:[%s10644_s1 + $0x344] ss:$16 sps:$4 sm:$0xff]  }
  0x30   :  { %4962 = vmatprep.subr.bf16.mxu0 %v7010_v56  ;;  %5495 = vmatprep.subr.bf16.mxu1 %v7012_v57  ;;  %v7099_v56 = vld [vmem:[%s10644_s1 + $0x34c] ss:$16 sps:$4 sm:$0xff]   ;;  %v7094_v57 = vld [vmem:[%s10644_s1 + $0x340] ss:$16 sps:$4 sm:$0xff]  }
  0x33   :  { %4963 = vmatpush1.bf16.msra.mxu0 %v7014_v59  ;;  %5496 = vmatpush1.bf16.msra.mxu1 %v7015_v61  ;;  %v7102_v59 = vld [vmem:[%s10644_s1 + $0x364] ss:$16 sps:$4 sm:$0xff]   ;;  %v7100_v61 = vld [vmem:[%s10644_s1 + $0x360] ss:$16 sps:$4 sm:$0xff]  }
  0x34   :  { %4964 = vmatprep.subr.bf16.mxu0 %v7016_v62  ;;  %5497 = vmatprep.subr.bf16.mxu1 %v7018_v63  ;;  %v7103_v62 = vld [vmem:[%s10644_s1 + $0x368] ss:$16 sps:$4 sm:$0xff]   ;;  %v7108_v63 = vld [vmem:[%s10644_s1 + $0x384] ss:$16 sps:$4 sm:$0xff]  }
  0x37   :  { %4965 = vmatpush1.bf16.msra.mxu0 %v7020_v0  ;;  %5498 = vmatpush1.bf16.msra.mxu1 %v7021_v1  ;;  %v7111_v0 = vld [vmem:[%s10644_s1 + $0x38c] ss:$16 sps:$4 sm:$0xff]   ;;  %v7106_v1 = vld [vmem:[%s10644_s1 + $0x380] ss:$16 sps:$4 sm:$0xff]  }
  0x38   :  { %4966 = vmatprep.subr.bf16.mxu0 %v7022_v2  ;;  %5499 = vmatprep.subr.bf16.mxu1 %v7024_v3  ;;  %v7109_v2 = vld [vmem:[%s10644_s1 + $0x388] ss:$16 sps:$4 sm:$0xff]   ;;  %v7114_v3 = vld [vmem:[%s10644_s1 + $0x3a4] ss:$16 sps:$4 sm:$0xff]  }
  0x3b   :  { %4967 = vmatpush1.bf16.msra.mxu0 %v7026_v4  ;;  %5500 = vmatpush1.bf16.msra.mxu1 %v7027_v5  ;;  %v7117_v4 = vld [vmem:[%s10644_s1 + $0x3ac] ss:$16 sps:$4 sm:$0xff]   ;;  %v7112_v5 = vld [vmem:[%s10644_s1 + $0x3a0] ss:$16 sps:$4 sm:$0xff]  }
  0x3c   :  { %4968 = vmatprep.subr.bf16.mxu0 %v7028_v6  ;;  %5501 = vmatprep.subr.bf16.mxu1 %v7030_v7  ;;  %v7115_v6 = vld [vmem:[%s10644_s1 + $0x3a8] ss:$16 sps:$4 sm:$0xff]   ;;  %v7120_v7 = vld [vmem:[%s10644_s1 + $0x3c4] ss:$16 sps:$4 sm:$0xff]  }
  0x3f   :  { %4969 = vmatpush1.bf16.msra.mxu0 %v7032_v8  ;;  %5502 = vmatpush1.bf16.msra.mxu1 %v7033_v9  ;;  %v7123_v8 = vld [vmem:[%s10644_s1 + $0x3cc] ss:$16 sps:$4 sm:$0xff]   ;;  %v829_v9 = vcombine.high %v8287_v52, %v8287_v52 }
  0x40   :  { %4979 = vmatprep.subr.bf16.mxu0 %v7036_v10  ;;  %5512 = vmatprep.subr.bf16.mxu1 %v7039_v11  ;;  %v7118_v10 = vld [vmem:[%s10644_s1 + $0x3c0] ss:$16 sps:$4 sm:$0xff]   ;;  %v7121_v11 = vld [vmem:[%s10644_s1 + $0x3c8] ss:$16 sps:$4 sm:$0xff]   ;;  %v7129_v52 = vld [vmem:[%s10644_s1 + $0x3ec] ss:$16 sps:$4 sm:$0xff]  }
  0x42   :  { %4971 = vmatmul.mubr.bf16.vlgmr.msra.gmra.mrb[0].mxu0 %v8356_v13  ;;  %5504 = vmatmul.mubr.bf16.vlgmr.msra.gmra.mrb[0].mxu1 %v8356_v13 }
  0x43   :  { %4980 = vmatpush1.bf16.msra.mxu0 %v7034_v12  ;;  %5513 = vmatpush1.bf16.msra.mxu1 %v7037_v14  ;;  %v7126_v12 = vld [vmem:[%s10644_s1 + $0x3e4] ss:$16 sps:$4 sm:$0xff]   ;;  %v8540_v14 = vrot.slane %v829_v9, %v8276_v49  ;;  %v7205_v9 = vld [vmem:[%s10644_s1 + $0x588] ss:$16 sps:$4 sm:$0xff]  }
  0x44   :  { %4981 = vmatprep.subr.bf16.mxu0 %v7042_v15  ;;  %5514 = vmatprep.subr.bf16.mxu1 %v7045_v16  ;;  %v7124_v15 = vld [vmem:[%s10644_s1 + $0x3e0] ss:$16 sps:$4 sm:$0xff]   ;;  %v7127_v16 = vld [vmem:[%s10644_s1 + $0x3e8] ss:$16 sps:$4 sm:$0xff]  }
  0x45   :  { %5011 = vmatprep.mubr.bf16.mxu0 %v876_v17  ;;  %5544 = vmatprep.mubr.bf16.mxu1 %v876_v17  ;;  %v7132_v17 = vld [vmem:[%s10644_s1 + $0x404] ss:$16 sps:$4 sm:$0xff]  }
  0x47   :  { %4982 = vmatpush1.bf16.msra.mxu0 %v7040_v18  ;;  %5515 = vmatpush1.bf16.msra.mxu1 %v7043_v19  ;;  %v7135_v18 = vld [vmem:[%s10644_s1 + $0x40c] ss:$16 sps:$4 sm:$0xff]   ;;  %v845_v19 = vcombine.high %v8540_v14, %v8540_v14 }
  0x48   :  { %4983 = vmatprep.subr.bf16.mxu0 %v7048_v20  ;;  %5516 = vmatprep.subr.bf16.mxu1 %v7051_v21  ;;  %v7130_v20 = vld [vmem:[%s10644_s1 + $0x400] ss:$16 sps:$4 sm:$0xff]   ;;  %v874_v21 = vcombine.high %v8356_v13, %v8356_v13 }
  0x49   :  { %v7136_v13 = vld [vmem:[%s10644_s1 + $0x420] ss:$16 sps:$4 sm:$0xff]  }
  0x4b   :  { %4984 = vmatpush1.bf16.msra.mxu0 %v7046_v22  ;;  %5517 = vmatpush1.bf16.msra.mxu1 %v7049_v23  ;;  %v7133_v22 = vld [vmem:[%s10644_s1 + $0x408] ss:$16 sps:$4 sm:$0xff]   ;;  %v7138_v23 = vld [vmem:[%s10644_s1 + $0x424] ss:$16 sps:$4 sm:$0xff]  }
  0x4c   :  { %4985 = vmatprep.subr.bf16.mxu0 %v7054_v24  ;;  %5518 = vmatprep.subr.bf16.mxu1 %v7057_v25  ;;  %v7141_v24 = vld [vmem:[%s10644_s1 + $0x42c] ss:$16 sps:$4 sm:$0xff]   ;;  %v8571_v25 = vrot.slane %v845_v19, %v8276_v49  ;;  %v7222_v19 = vld [vmem:[%s10644_s1 + $0x5e4] ss:$16 sps:$4 sm:$0xff]  }
  0x4f   :  { %4986 = vmatpush1.bf16.msra.mxu0 %v7052_v26  ;;  %5519 = vmatpush1.bf16.msra.mxu1 %v7055_v27  ;;  %v7139_v26 = vld [vmem:[%s10644_s1 + $0x428] ss:$16 sps:$4 sm:$0xff]   ;;  %v7144_v27 = vld [vmem:[%s10644_s1 + $0x444] ss:$16 sps:$4 sm:$0xff]  }
  0x50   :  { %4987 = vmatprep.subr.bf16.mxu0 %v7060_v28  ;;  %5520 = vmatprep.subr.bf16.mxu1 %v7063_v29  ;;  %v7147_v28 = vld [vmem:[%s10644_s1 + $0x44c] ss:$16 sps:$4 sm:$0xff]   ;;  %v7142_v29 = vld [vmem:[%s10644_s1 + $0x440] ss:$16 sps:$4 sm:$0xff]  }
  0x53   :  { %4988 = vmatpush1.bf16.msra.mxu0 %v7058_v30  ;;  %5521 = vmatpush1.bf16.msra.mxu1 %v7061_v31  ;;  %v7145_v30 = vld [vmem:[%s10644_s1 + $0x448] ss:$16 sps:$4 sm:$0xff]   ;;  %v7150_v31 = vld [vmem:[%s10644_s1 + $0x464] ss:$16 sps:$4 sm:$0xff]  }
  0x54   :  { %4989 = vmatprep.subr.bf16.mxu0 %v7066_v32  ;;  %5522 = vmatprep.subr.bf16.mxu1 %v7069_v33  ;;  %v7153_v32 = vld [vmem:[%s10644_s1 + $0x46c] ss:$16 sps:$4 sm:$0xff]   ;;  %v7148_v33 = vld [vmem:[%s10644_s1 + $0x460] ss:$16 sps:$4 sm:$0xff]  }
  0x57   :  { %4990 = vmatpush1.bf16.msra.mxu0 %v7064_v34  ;;  %5523 = vmatpush1.bf16.msra.mxu1 %v7067_v35  ;;  %v7151_v34 = vld [vmem:[%s10644_s1 + $0x468] ss:$16 sps:$4 sm:$0xff]   ;;  %v7156_v35 = vld [vmem:[%s10644_s1 + $0x484] ss:$16 sps:$4 sm:$0xff]  }
  0x58   :  { %4991 = vmatprep.subr.bf16.mxu0 %v7072_v36  ;;  %5524 = vmatprep.subr.bf16.mxu1 %v7075_v37  ;;  %v7159_v36 = vld [vmem:[%s10644_s1 + $0x48c] ss:$16 sps:$4 sm:$0xff]   ;;  %v7154_v37 = vld [vmem:[%s10644_s1 + $0x480] ss:$16 sps:$4 sm:$0xff]  }
  0x5b   :  { %4992 = vmatpush1.bf16.msra.mxu0 %v7070_v38  ;;  %5525 = vmatpush1.bf16.msra.mxu1 %v7073_v39  ;;  %v7157_v38 = vld [vmem:[%s10644_s1 + $0x488] ss:$16 sps:$4 sm:$0xff]   ;;  %v7162_v39 = vld [vmem:[%s10644_s1 + $0x4a4] ss:$16 sps:$4 sm:$0xff]  }
  0x5c   :  { %4993 = vmatprep.subr.bf16.mxu0 %v7078_v40  ;;  %5526 = vmatprep.subr.bf16.mxu1 %v7081_v41  ;;  %v7165_v40 = vld [vmem:[%s10644_s1 + $0x4ac] ss:$16 sps:$4 sm:$0xff]   ;;  %v7160_v41 = vld [vmem:[%s10644_s1 + $0x4a0] ss:$16 sps:$4 sm:$0xff]  }
  0x5f   :  { %4994 = vmatpush1.bf16.msra.mxu0 %v7076_v43  ;;  %5527 = vmatpush1.bf16.msra.mxu1 %v7079_v44  ;;  %v7163_v43 = vld [vmem:[%s10644_s1 + $0x4a8] ss:$16 sps:$4 sm:$0xff]   ;;  %v7168_v44 = vld [vmem:[%s10644_s1 + $0x4c4] ss:$16 sps:$4 sm:$0xff]  }
  0x60   :  { %4995 = vmatprep.subr.bf16.mxu0 %v7084_v45  ;;  %5528 = vmatprep.subr.bf16.mxu1 %v7087_v46  ;;  %v7171_v45 = vld [vmem:[%s10644_s1 + $0x4cc] ss:$16 sps:$4 sm:$0xff]   ;;  %v7166_v46 = vld [vmem:[%s10644_s1 + $0x4c0] ss:$16 sps:$4 sm:$0xff]  }
  0x63   :  { %4996 = vmatpush1.bf16.msra.mxu0 %v7082_v47  ;;  %5529 = vmatpush1.bf16.msra.mxu1 %v7085_v48  ;;  %v7169_v47 = vld [vmem:[%s10644_s1 + $0x4c8] ss:$16 sps:$4 sm:$0xff]   ;;  %v7174_v48 = vld [vmem:[%s10644_s1 + $0x4e4] ss:$16 sps:$4 sm:$0xff]  }
  0x64   :  { %4997 = vmatprep.subr.bf16.mxu0 %v7090_v50  ;;  %5530 = vmatprep.subr.bf16.mxu1 %v7093_v51  ;;  %v7177_v50 = vld [vmem:[%s10644_s1 + $0x4ec] ss:$16 sps:$4 sm:$0xff]   ;;  %v7172_v51 = vld [vmem:[%s10644_s1 + $0x4e0] ss:$16 sps:$4 sm:$0xff]  }
  0x67   :  { %4998 = vmatpush1.bf16.msra.mxu0 %v7088_v53  ;;  %5531 = vmatpush1.bf16.msra.mxu1 %v7091_v54  ;;  %v7175_v53 = vld [vmem:[%s10644_s1 + $0x4e8] ss:$16 sps:$4 sm:$0xff]   ;;  %v7180_v54 = vld [vmem:[%s10644_s1 + $0x504] ss:$16 sps:$4 sm:$0xff]  }
  0x68   :  { %4999 = vmatprep.subr.bf16.mxu0 %v7096_v55  ;;  %5532 = vmatprep.subr.bf16.mxu1 %v7099_v56  ;;  %v7183_v55 = vld [vmem:[%s10644_s1 + $0x50c] ss:$16 sps:$4 sm:$0xff]   ;;  %v7178_v56 = vld [vmem:[%s10644_s1 + $0x500] ss:$16 sps:$4 sm:$0xff]  }
  0x6b   :  { %5000 = vmatpush1.bf16.msra.mxu0 %v7094_v57  ;;  %5533 = vmatpush1.bf16.msra.mxu1 %v7097_v58  ;;  %v7181_v57 = vld [vmem:[%s10644_s1 + $0x508] ss:$16 sps:$4 sm:$0xff]   ;;  %v7186_v58 = vld [vmem:[%s10644_s1 + $0x524] ss:$16 sps:$4 sm:$0xff]  }
  0x6c   :  { %5001 = vmatprep.subr.bf16.mxu0 %v7102_v59  ;;  %5534 = vmatprep.subr.bf16.mxu1 %v7105_v60  ;;  %v7189_v59 = vld [vmem:[%s10644_s1 + $0x52c] ss:$16 sps:$4 sm:$0xff]   ;;  %v7184_v60 = vld [vmem:[%s10644_s1 + $0x520] ss:$16 sps:$4 sm:$0xff]  }
  0x6f   :  { %5002 = vmatpush1.bf16.msra.mxu0 %v7100_v61  ;;  %5535 = vmatpush1.bf16.msra.mxu1 %v7103_v62  ;;  %v7187_v61 = vld [vmem:[%s10644_s1 + $0x528] ss:$16 sps:$4 sm:$0xff]   ;;  %v7192_v62 = vld [vmem:[%s10644_s1 + $0x544] ss:$16 sps:$4 sm:$0xff]  }
  0x70   :  { %5003 = vmatprep.subr.bf16.mxu0 %v7108_v63  ;;  %5536 = vmatprep.subr.bf16.mxu1 %v7111_v0  ;;  %v7195_v63 = vld [vmem:[%s10644_s1 + $0x54c] ss:$16 sps:$4 sm:$0xff]   ;;  %v7190_v0 = vld [vmem:[%s10644_s1 + $0x540] ss:$16 sps:$4 sm:$0xff]  }
  0x73   :  { %5004 = vmatpush1.bf16.msra.mxu0 %v7106_v1  ;;  %5537 = vmatpush1.bf16.msra.mxu1 %v7109_v2  ;;  %v7193_v1 = vld [vmem:[%s10644_s1 + $0x548] ss:$16 sps:$4 sm:$0xff]   ;;  %v7198_v2 = vld [vmem:[%s10644_s1 + $0x564] ss:$16 sps:$4 sm:$0xff]  }
  0x74   :  { %5005 = vmatprep.subr.bf16.mxu0 %v7114_v3  ;;  %5538 = vmatprep.subr.bf16.mxu1 %v7117_v4  ;;  %v7201_v3 = vld [vmem:[%s10644_s1 + $0x56c] ss:$16 sps:$4 sm:$0xff]   ;;  %v7196_v4 = vld [vmem:[%s10644_s1 + $0x560] ss:$16 sps:$4 sm:$0xff]  }
  0x77   :  { %5006 = vmatpush1.bf16.msra.mxu0 %v7112_v5  ;;  %5539 = vmatpush1.bf16.msra.mxu1 %v7115_v6  ;;  %v7199_v5 = vld [vmem:[%s10644_s1 + $0x568] ss:$16 sps:$4 sm:$0xff]   ;;  %v7204_v6 = vld [vmem:[%s10644_s1 + $0x584] ss:$16 sps:$4 sm:$0xff]  }
  0x78   :  { %5007 = vmatprep.subr.bf16.mxu0 %v7120_v7  ;;  %5540 = vmatprep.subr.bf16.mxu1 %v7123_v8  ;;  %v7207_v7 = vld [vmem:[%s10644_s1 + $0x58c] ss:$16 sps:$4 sm:$0xff]   ;;  %v7202_v8 = vld [vmem:[%s10644_s1 + $0x580] ss:$16 sps:$4 sm:$0xff]  }
  0x7b   :  { %5008 = vmatpush1.bf16.msra.mxu0 %v7118_v10  ;;  %5541 = vmatpush1.bf16.msra.mxu1 %v7121_v11  ;;  %v7210_v10 = vld [vmem:[%s10644_s1 + $0x5a4] ss:$16 sps:$4 sm:$0xff]   ;;  %v7213_v11 = vld [vmem:[%s10644_s1 + $0x5ac] ss:$16 sps:$4 sm:$0xff]  }
  0x7c   :  { %5009 = vmatprep.subr.bf16.mxu0 %v7126_v12  ;;  %5542 = vmatprep.subr.bf16.mxu1 %v7129_v52  ;;  %v7208_v12 = vld [vmem:[%s10644_s1 + $0x5a0] ss:$16 sps:$4 sm:$0xff]   ;;  %v7211_v52 = vld [vmem:[%s10644_s1 + $0x5a8] ss:$16 sps:$4 sm:$0xff]  }
  0x7f   :  { %5010 = vmatpush1.bf16.msra.mxu0 %v7124_v15  ;;  %5543 = vmatpush1.bf16.msra.mxu1 %v7127_v16  ;;  %v7216_v15 = vld [vmem:[%s10644_s1 + $0x5c4] ss:$16 sps:$4 sm:$0xff]   ;;  %v7219_v16 = vld [vmem:[%s10644_s1 + $0x5cc] ss:$16 sps:$4 sm:$0xff]  }
  0x80   :  { %5020 = vmatprep.subr.bf16.mxu0 %v7132_v17  ;;  %5553 = vmatprep.subr.bf16.mxu1 %v7135_v18  ;;  %v7214_v17 = vld [vmem:[%s10644_s1 + $0x5c0] ss:$16 sps:$4 sm:$0xff]   ;;  %v7217_v18 = vld [vmem:[%s10644_s1 + $0x5c8] ss:$16 sps:$4 sm:$0xff]  }
  0x82   :  { %5012 = vmatmul.mubr.bf16.vlgmr.msra.gmra.mrb[0].mxu0 %v874_v21  ;;  %5545 = vmatmul.mubr.bf16.vlgmr.msra.gmra.mrb[0].mxu1 %v874_v21  ;;  %v7220_v21 = vld [vmem:[%s10644_s1 + $0x5e0] ss:$16 sps:$4 sm:$0xff]  }
  0x83   :  { %5021 = vmatpush1.bf16.msra.mxu0 %v7130_v20  ;;  %5554 = vmatpush1.bf16.msra.mxu1 %v7133_v22  ;;  %v7225_v20 = vld [vmem:[%s10644_s1 + $0x5ec] ss:$16 sps:$4 sm:$0xff]   ;;  %v7223_v22 = vld [vmem:[%s10644_s1 + $0x5e8] ss:$16 sps:$4 sm:$0xff]  }
  0x84   :  { %5022 = vmatprep.subr.bf16.mxu0 %v7138_v23  ;;  %5555 = vmatprep.subr.bf16.mxu1 %v7141_v24  ;;  %v7229_v23 = vld [vmem:[%s10644_s1 + $0x604] ss:$16 sps:$4 sm:$0xff]   ;;  %v7232_v24 = vld [vmem:[%s10644_s1 + $0x60c] ss:$16 sps:$4 sm:$0xff]  }
  0x85   :  { %5052 = vmatprep.mubr.bf16.mxu0 %v8571_v25  ;;  %5585 = vmatprep.mubr.bf16.mxu1 %v8571_v25 }
  0x87   :  { %5023 = vmatpush1.bf16.msra.mxu0 %v7136_v13  ;;  %5556 = vmatpush1.bf16.msra.mxu1 %v7139_v26  ;;  %v7227_v13 = vld [vmem:[%s10644_s1 + $0x600] ss:$16 sps:$4 sm:$0xff]   ;;  %v8760_v26 = vrot.slane %v8540_v14, %v8276_v49  ;;  %v877_v14 = vcombine.high %v8571_v25, %v8571_v25  ;;  %v7241_v25 = vld [vmem:[%s10644_s1 + $0x644] ss:$16 sps:$4 sm:$0xff]  }
  0x88   :  { %5024 = vmatprep.subr.bf16.mxu0 %v7144_v27  ;;  %5557 = vmatprep.subr.bf16.mxu1 %v7147_v28  ;;  %v7230_v27 = vld [vmem:[%s10644_s1 + $0x608] ss:$16 sps:$4 sm:$0xff]   ;;  %v7235_v28 = vld [vmem:[%s10644_s1 + $0x624] ss:$16 sps:$4 sm:$0xff]  }
  0x8b   :  { %5025 = vmatpush1.bf16.msra.mxu0 %v7142_v29  ;;  %5558 = vmatpush1.bf16.msra.mxu1 %v7145_v30  ;;  %v7238_v29 = vld [vmem:[%s10644_s1 + $0x62c] ss:$16 sps:$4 sm:$0xff]   ;;  %v7233_v30 = vld [vmem:[%s10644_s1 + $0x620] ss:$16 sps:$4 sm:$0xff]  }
  0x8c   :  { %5026 = vmatprep.subr.bf16.mxu0 %v7150_v31  ;;  %5559 = vmatprep.subr.bf16.mxu1 %v7153_v32  ;;  %v7236_v31 = vld [vmem:[%s10644_s1 + $0x628] ss:$16 sps:$4 sm:$0xff]   ;;  %v7244_v32 = vld [vmem:[%s10644_s1 + $0x64c] ss:$16 sps:$4 sm:$0xff]  }
  0x8f   :  { %5027 = vmatpush1.bf16.msra.mxu0 %v7148_v33  ;;  %5560 = vmatpush1.bf16.msra.mxu1 %v7151_v34  ;;  %v7239_v33 = vld [vmem:[%s10644_s1 + $0x640] ss:$16 sps:$4 sm:$0xff]   ;;  %v7242_v34 = vld [vmem:[%s10644_s1 + $0x648] ss:$16 sps:$4 sm:$0xff]  }
  0x90   :  { %5028 = vmatprep.subr.bf16.mxu0 %v7156_v35  ;;  %5561 = vmatprep.subr.bf16.mxu1 %v7159_v36  ;;  %v7247_v35 = vld [vmem:[%s10644_s1 + $0x664] ss:$16 sps:$4 sm:$0xff]   ;;  %v7250_v36 = vld [vmem:[%s10644_s1 + $0x66c] ss:$16 sps:$4 sm:$0xff]  }
  0x93   :  { %5029 = vmatpush1.bf16.msra.mxu0 %v7154_v37  ;;  %5562 = vmatpush1.bf16.msra.mxu1 %v7157_v38  ;;  %v7245_v37 = vld [vmem:[%s10644_s1 + $0x660] ss:$16 sps:$4 sm:$0xff]   ;;  %v7248_v38 = vld [vmem:[%s10644_s1 + $0x668] ss:$16 sps:$4 sm:$0xff]  }
  0x94   :  { %5030 = vmatprep.subr.bf16.mxu0 %v7162_v39  ;;  %5563 = vmatprep.subr.bf16.mxu1 %v7165_v40  ;;  %v7253_v39 = vld [vmem:[%s10644_s1 + $0x684] ss:$16 sps:$4 sm:$0xff]   ;;  %v7256_v40 = vld [vmem:[%s10644_s1 + $0x68c] ss:$16 sps:$4 sm:$0xff]  }
  0x97   :  { %5031 = vmatpush1.bf16.msra.mxu0 %v7160_v41  ;;  %5564 = vmatpush1.bf16.msra.mxu1 %v7163_v43  ;;  %v7251_v41 = vld [vmem:[%s10644_s1 + $0x680] ss:$16 sps:$4 sm:$0xff]   ;;  %v7254_v43 = vld [vmem:[%s10644_s1 + $0x688] ss:$16 sps:$4 sm:$0xff]  }
  0x98   :  { %5032 = vmatprep.subr.bf16.mxu0 %v7168_v44  ;;  %5565 = vmatprep.subr.bf16.mxu1 %v7171_v45  ;;  %v7259_v44 = vld [vmem:[%s10644_s1 + $0x6a4] ss:$16 sps:$4 sm:$0xff]   ;;  %v7262_v45 = vld [vmem:[%s10644_s1 + $0x6ac] ss:$16 sps:$4 sm:$0xff]  }
  0x9b   :  { %5033 = vmatpush1.bf16.msra.mxu0 %v7166_v46  ;;  %5566 = vmatpush1.bf16.msra.mxu1 %v7169_v47  ;;  %v7257_v46 = vld [vmem:[%s10644_s1 + $0x6a0] ss:$16 sps:$4 sm:$0xff]   ;;  %v7260_v47 = vld [vmem:[%s10644_s1 + $0x6a8] ss:$16 sps:$4 sm:$0xff]  }
  0x9c   :  { %5034 = vmatprep.subr.bf16.mxu0 %v7174_v48  ;;  %5567 = vmatprep.subr.bf16.mxu1 %v7177_v50  ;;  %v7265_v48 = vld [vmem:[%s10644_s1 + $0x6c4] ss:$16 sps:$4 sm:$0xff]   ;;  %v7268_v50 = vld [vmem:[%s10644_s1 + $0x6cc] ss:$16 sps:$4 sm:$0xff]  }
  0x9f   :  { %5035 = vmatpush1.bf16.msra.mxu0 %v7172_v51  ;;  %5568 = vmatpush1.bf16.msra.mxu1 %v7175_v53  ;;  %v7263_v51 = vld [vmem:[%s10644_s1 + $0x6c0] ss:$16 sps:$4 sm:$0xff]   ;;  %v7266_v53 = vld [vmem:[%s10644_s1 + $0x6c8] ss:$16 sps:$4 sm:$0xff]  }
  0xa0   :  { %5036 = vmatprep.subr.bf16.mxu0 %v7180_v54  ;;  %5569 = vmatprep.subr.bf16.mxu1 %v7183_v55  ;;  %v7271_v54 = vld [vmem:[%s10644_s1 + $0x6e4] ss:$16 sps:$4 sm:$0xff]   ;;  %v7274_v55 = vld [vmem:[%s10644_s1 + $0x6ec] ss:$16 sps:$4 sm:$0xff]  }
  0xa3   :  { %5037 = vmatpush1.bf16.msra.mxu0 %v7178_v56  ;;  %5570 = vmatpush1.bf16.msra.mxu1 %v7181_v57  ;;  %v7269_v56 = vld [vmem:[%s10644_s1 + $0x6e0] ss:$16 sps:$4 sm:$0xff]   ;;  %v7272_v57 = vld [vmem:[%s10644_s1 + $0x6e8] ss:$16 sps:$4 sm:$0xff]  }
  0xa4   :  { %5038 = vmatprep.subr.bf16.mxu0 %v7186_v58  ;;  %5571 = vmatprep.subr.bf16.mxu1 %v7189_v59  ;;  %v7277_v58 = vld [vmem:[%s10644_s1 + $0x704] ss:$16 sps:$4 sm:$0xff]   ;;  %v7280_v59 = vld [vmem:[%s10644_s1 + $0x70c] ss:$16 sps:$4 sm:$0xff]  }
  0xa7   :  { %5039 = vmatpush1.bf16.msra.mxu0 %v7184_v60  ;;  %5572 = vmatpush1.bf16.msra.mxu1 %v7187_v61  ;;  %v7275_v60 = vld [vmem:[%s10644_s1 + $0x700] ss:$16 sps:$4 sm:$0xff]   ;;  %v7278_v61 = vld [vmem:[%s10644_s1 + $0x708] ss:$16 sps:$4 sm:$0xff]  }
  0xa8   :  { %5040 = vmatprep.subr.bf16.mxu0 %v7192_v62  ;;  %5573 = vmatprep.subr.bf16.mxu1 %v7195_v63  ;;  %v7283_v62 = vld [vmem:[%s10644_s1 + $0x724] ss:$16 sps:$4 sm:$0xff]   ;;  %v7286_v63 = vld [vmem:[%s10644_s1 + $0x72c] ss:$16 sps:$4 sm:$0xff]  }
  0xab   :  { %5041 = vmatpush1.bf16.msra.mxu0 %v7190_v0  ;;  %5574 = vmatpush1.bf16.msra.mxu1 %v7193_v1  ;;  %v7281_v0 = vld [vmem:[%s10644_s1 + $0x720] ss:$16 sps:$4 sm:$0xff]   ;;  %v7284_v1 = vld [vmem:[%s10644_s1 + $0x728] ss:$16 sps:$4 sm:$0xff]  }
  0xac   :  { %5042 = vmatprep.subr.bf16.mxu0 %v7198_v2  ;;  %5575 = vmatprep.subr.bf16.mxu1 %v7201_v3  ;;  %v7289_v2 = vld [vmem:[%s10644_s1 + $0x744] ss:$16 sps:$4 sm:$0xff]   ;;  %v7292_v3 = vld [vmem:[%s10644_s1 + $0x74c] ss:$16 sps:$4 sm:$0xff]  }
  0xaf   :  { %5043 = vmatpush1.bf16.msra.mxu0 %v7196_v4  ;;  %5576 = vmatpush1.bf16.msra.mxu1 %v7199_v5  ;;  %v7287_v4 = vld [vmem:[%s10644_s1 + $0x740] ss:$16 sps:$4 sm:$0xff]   ;;  %v7290_v5 = vld [vmem:[%s10644_s1 + $0x748] ss:$16 sps:$4 sm:$0xff]  }
  0xb0   :  { %5044 = vmatprep.subr.bf16.mxu0 %v7204_v6  ;;  %5577 = vmatprep.subr.bf16.mxu1 %v7207_v7  ;;  %v7295_v6 = vld [vmem:[%s10644_s1 + $0x764] ss:$16 sps:$4 sm:$0xff]   ;;  %v7298_v7 = vld [vmem:[%s10644_s1 + $0x76c] ss:$16 sps:$4 sm:$0xff]  }
  0xb3   :  { %5045 = vmatpush1.bf16.msra.mxu0 %v7202_v8  ;;  %5578 = vmatpush1.bf16.msra.mxu1 %v7205_v9  ;;  %v7293_v8 = vld [vmem:[%s10644_s1 + $0x760] ss:$16 sps:$4 sm:$0xff]   ;;  %v7296_v9 = vld [vmem:[%s10644_s1 + $0x768] ss:$16 sps:$4 sm:$0xff]  }
  0xb4   :  { %5046 = vmatprep.subr.bf16.mxu0 %v7210_v10  ;;  %5579 = vmatprep.subr.bf16.mxu1 %v7213_v11  ;;  %v7301_v10 = vld [vmem:[%s10644_s1 + $0x784] ss:$16 sps:$4 sm:$0xff]   ;;  %v7304_v11 = vld [vmem:[%s10644_s1 + $0x78c] ss:$16 sps:$4 sm:$0xff]  }
  0xb7   :  { %5047 = vmatpush1.bf16.msra.mxu0 %v7208_v12  ;;  %5580 = vmatpush1.bf16.msra.mxu1 %v7211_v52  ;;  %v7299_v12 = vld [vmem:[%s10644_s1 + $0x780] ss:$16 sps:$4 sm:$0xff]   ;;  %v7302_v52 = vld [vmem:[%s10644_s1 + $0x788] ss:$16 sps:$4 sm:$0xff]  }
  0xb8   :  { %5048 = vmatprep.subr.bf16.mxu0 %v7216_v15  ;;  %5581 = vmatprep.subr.bf16.mxu1 %v7219_v16  ;;  %v7307_v15 = vld [vmem:[%s10644_s1 + $0x7a4] ss:$16 sps:$4 sm:$0xff]   ;;  %v7310_v16 = vld [vmem:[%s10644_s1 + $0x7ac] ss:$16 sps:$4 sm:$0xff]  }
  0xbb   :  { %5049 = vmatpush1.bf16.msra.mxu0 %v7214_v17  ;;  %5582 = vmatpush1.bf16.msra.mxu1 %v7217_v18  ;;  %v7305_v17 = vld [vmem:[%s10644_s1 + $0x7a0] ss:$16 sps:$4 sm:$0xff]   ;;  %v7308_v18 = vld [vmem:[%s10644_s1 + $0x7a8] ss:$16 sps:$4 sm:$0xff]  }
  0xbc   :  { %5050 = vmatprep.subr.bf16.mxu0 %v7222_v19  ;;  %5583 = vmatprep.subr.bf16.mxu1 %v7225_v20  ;;  %v7313_v19 = vld [vmem:[%s10644_s1 + $0x7c4] ss:$16 sps:$4 sm:$0xff]   ;;  %v7316_v20 = vld [vmem:[%s10644_s1 + $0x7cc] ss:$16 sps:$4 sm:$0xff]  }
  0xbf   :  { %5051 = vmatpush1.bf16.msra.mxu0 %v7220_v21  ;;  %5584 = vmatpush1.bf16.msra.mxu1 %v7223_v22  ;;  %v8934_v21 = vld.sshfl [vmem:[%s10645_s0 + $0x8] sm:$0xff pattern:$0x75316420]  ;;  %v7311_v22 = vld [vmem:[%s10644_s1 + $0x7c0] ss:$16 sps:$4 sm:$0xff]  }
  0xc0   :  { %5061 = vmatprep.subr.bf16.mxu0 %v7229_v23  ;;  %5594 = vmatprep.subr.bf16.mxu1 %v7232_v24  ;;  %v7314_v23 = vld [vmem:[%s10644_s1 + $0x7c8] ss:$16 sps:$4 sm:$0xff]   ;;  %v7319_v24 = vld [vmem:[%s10644_s1 + $0x7e4] ss:$16 sps:$4 sm:$0xff]  }
  0xc2   :  { %5053 = vmatmul.mubr.bf16.vlgmr.msra.gmra.mrb[0].mxu0 %v8760_v26  ;;  %5586 = vmatmul.mubr.bf16.vlgmr.msra.gmra.mrb[0].mxu1 %v8760_v26 }
  0xc3   :  { %5062 = vmatpush1.bf16.msra.mxu0 %v7227_v13  ;;  %5595 = vmatpush1.bf16.msra.mxu1 %v7230_v27  ;;  %v7322_v13 = vld [vmem:[%s10644_s1 + $0x7ec] ss:$16 sps:$4 sm:$0xff]   ;;  %v7317_v27 = vld [vmem:[%s10644_s1 + $0x7e0] ss:$16 sps:$4 sm:$0xff]  }
  0xc4   :  { %5063 = vmatprep.subr.bf16.mxu0 %v7235_v28  ;;  %5596 = vmatprep.subr.bf16.mxu1 %v7238_v29  ;;  %v7320_v28 = vld [vmem:[%s10644_s1 + $0x7e8] ss:$16 sps:$4 sm:$0xff]   ;;  %v7325_v29 = vld [vmem:[%s10644_s1 + $0x804] ss:$16 sps:$4 sm:$0xff]  }
  0xc5   :  { %5093 = vmatprep.mubr.bf16.mxu0 %v877_v14  ;;  %5626 = vmatprep.mubr.bf16.mxu1 %v877_v14  ;;  %v7328_v14 = vld [vmem:[%s10644_s1 + $0x80c] ss:$16 sps:$4 sm:$0xff]  }
  0xc7   :  { %5064 = vmatpush1.bf16.msra.mxu0 %v7233_v30  ;;  %5597 = vmatpush1.bf16.msra.mxu1 %v7236_v31  ;;  %v893_v30 = vcombine.high %v8934_v21, %v8934_v21  ;;  %v875_v31 = vcombine.high %v8760_v26, %v8760_v26  ;;  %v7334_v26 = vld [vmem:[%s10644_s1 + $0x82c] ss:$16 sps:$4 sm:$0xff]  }
  0xc8   :  { %5065 = vmatprep.subr.bf16.mxu0 %v7241_v25  ;;  %5598 = vmatprep.subr.bf16.mxu1 %v7244_v32  ;;  %v7323_v25 = vld [vmem:[%s10644_s1 + $0x800] ss:$16 sps:$4 sm:$0xff]   ;;  %v7326_v32 = vld [vmem:[%s10644_s1 + $0x808] ss:$16 sps:$4 sm:$0xff]  }
  0xcb   :  { %5066 = vmatpush1.bf16.msra.mxu0 %v7239_v33  ;;  %5599 = vmatpush1.bf16.msra.mxu1 %v7242_v34  ;;  %v7331_v33 = vld [vmem:[%s10644_s1 + $0x824] ss:$16 sps:$4 sm:$0xff]   ;;  %v8977_v34 = vrot.slane %v893_v30, %v8276_v49 }
  0xcc   :  { %5067 = vmatprep.subr.bf16.mxu0 %v7247_v35  ;;  %5600 = vmatprep.subr.bf16.mxu1 %v7250_v36  ;;  %v7329_v35 = vld [vmem:[%s10644_s1 + $0x820] ss:$16 sps:$4 sm:$0xff]   ;;  %v7332_v36 = vld [vmem:[%s10644_s1 + $0x828] ss:$16 sps:$4 sm:$0xff]   ;;  %v7415_v30 = vld [vmem:[%s10644_s1 + $0x9e4] ss:$16 sps:$4 sm:$0xff]  }
  0xcf   :  { %5068 = vmatpush1.bf16.msra.mxu0 %v7245_v37  ;;  %5601 = vmatpush1.bf16.msra.mxu1 %v7248_v38  ;;  %v7337_v37 = vld [vmem:[%s10644_s1 + $0x844] ss:$16 sps:$4 sm:$0xff]   ;;  %v7340_v38 = vld [vmem:[%s10644_s1 + $0x84c] ss:$16 sps:$4 sm:$0xff]  }
  0xd0   :  { %5069 = vmatprep.subr.bf16.mxu0 %v7253_v39  ;;  %5602 = vmatprep.subr.bf16.mxu1 %v7256_v40  ;;  %v7335_v39 = vld [vmem:[%s10644_s1 + $0x840] ss:$16 sps:$4 sm:$0xff]   ;;  %v7338_v40 = vld [vmem:[%s10644_s1 + $0x848] ss:$16 sps:$4 sm:$0xff]  }
  0xd3   :  { %5070 = vmatpush1.bf16.msra.mxu0 %v7251_v41  ;;  %5603 = vmatpush1.bf16.msra.mxu1 %v7254_v43  ;;  %v7343_v41 = vld [vmem:[%s10644_s1 + $0x864] ss:$16 sps:$4 sm:$0xff]   ;;  %v7346_v43 = vld [vmem:[%s10644_s1 + $0x86c] ss:$16 sps:$4 sm:$0xff]  }
  0xd4   :  { %5071 = vmatprep.subr.bf16.mxu0 %v7259_v44  ;;  %5604 = vmatprep.subr.bf16.mxu1 %v7262_v45  ;;  %v7341_v44 = vld [vmem:[%s10644_s1 + $0x860] ss:$16 sps:$4 sm:$0xff]   ;;  %v7344_v45 = vld [vmem:[%s10644_s1 + $0x868] ss:$16 sps:$4 sm:$0xff]  }
  0xd7   :  { %5072 = vmatpush1.bf16.msra.mxu0 %v7257_v46  ;;  %5605 = vmatpush1.bf16.msra.mxu1 %v7260_v47  ;;  %v7349_v46 = vld [vmem:[%s10644_s1 + $0x884] ss:$16 sps:$4 sm:$0xff]   ;;  %v7352_v47 = vld [vmem:[%s10644_s1 + $0x88c] ss:$16 sps:$4 sm:$0xff]  }
  0xd8   :  { %5073 = vmatprep.subr.bf16.mxu0 %v7265_v48  ;;  %5606 = vmatprep.subr.bf16.mxu1 %v7268_v50  ;;  %v7347_v48 = vld [vmem:[%s10644_s1 + $0x880] ss:$16 sps:$4 sm:$0xff]   ;;  %v7350_v50 = vld [vmem:[%s10644_s1 + $0x888] ss:$16 sps:$4 sm:$0xff]  }
  0xdb   :  { %5074 = vmatpush1.bf16.msra.mxu0 %v7263_v51  ;;  %5607 = vmatpush1.bf16.msra.mxu1 %v7266_v53  ;;  %v7355_v51 = vld [vmem:[%s10644_s1 + $0x8a4] ss:$16 sps:$4 sm:$0xff]   ;;  %v7358_v53 = vld [vmem:[%s10644_s1 + $0x8ac] ss:$16 sps:$4 sm:$0xff]  }
  0xdc   :  { %5075 = vmatprep.subr.bf16.mxu0 %v7271_v54  ;;  %5608 = vmatprep.subr.bf16.mxu1 %v7274_v55  ;;  %v7353_v54 = vld [vmem:[%s10644_s1 + $0x8a0] ss:$16 sps:$4 sm:$0xff]   ;;  %v7356_v55 = vld [vmem:[%s10644_s1 + $0x8a8] ss:$16 sps:$4 sm:$0xff]  }
  0xdf   :  { %5076 = vmatpush1.bf16.msra.mxu0 %v7269_v56  ;;  %5609 = vmatpush1.bf16.msra.mxu1 %v7272_v57  ;;  %v7361_v56 = vld [vmem:[%s10644_s1 + $0x8c4] ss:$16 sps:$4 sm:$0xff]   ;;  %v7364_v57 = vld [vmem:[%s10644_s1 + $0x8cc] ss:$16 sps:$4 sm:$0xff]  }
  0xe0   :  { %5077 = vmatprep.subr.bf16.mxu0 %v7277_v58  ;;  %5610 = vmatprep.subr.bf16.mxu1 %v7280_v59  ;;  %v7359_v58 = vld [vmem:[%s10644_s1 + $0x8c0] ss:$16 sps:$4 sm:$0xff]   ;;  %v7362_v59 = vld [vmem:[%s10644_s1 + $0x8c8] ss:$16 sps:$4 sm:$0xff]  }
  0xe3   :  { %5078 = vmatpush1.bf16.msra.mxu0 %v7275_v60  ;;  %5611 = vmatpush1.bf16.msra.mxu1 %v7278_v61  ;;  %v7367_v60 = vld [vmem:[%s10644_s1 + $0x8e4] ss:$16 sps:$4 sm:$0xff]   ;;  %v7370_v61 = vld [vmem:[%s10644_s1 + $0x8ec] ss:$16 sps:$4 sm:$0xff]  }
  0xe4   :  { %5079 = vmatprep.subr.bf16.mxu0 %v7283_v62  ;;  %5612 = vmatprep.subr.bf16.mxu1 %v7286_v63  ;;  %v7365_v62 = vld [vmem:[%s10644_s1 + $0x8e0] ss:$16 sps:$4 sm:$0xff]   ;;  %v7368_v63 = vld [vmem:[%s10644_s1 + $0x8e8] ss:$16 sps:$4 sm:$0xff]  }
  0xe7   :  { %5080 = vmatpush1.bf16.msra.mxu0 %v7281_v0  ;;  %5613 = vmatpush1.bf16.msra.mxu1 %v7284_v1  ;;  %v7373_v0 = vld [vmem:[%s10644_s1 + $0x904] ss:$16 sps:$4 sm:$0xff]   ;;  %v7376_v1 = vld [vmem:[%s10644_s1 + $0x90c] ss:$16 sps:$4 sm:$0xff]  }
  0xe8   :  { %5081 = vmatprep.subr.bf16.mxu0 %v7289_v2  ;;  %5614 = vmatprep.subr.bf16.mxu1 %v7292_v3  ;;  %v7371_v2 = vld [vmem:[%s10644_s1 + $0x900] ss:$16 sps:$4 sm:$0xff]   ;;  %v7374_v3 = vld [vmem:[%s10644_s1 + $0x908] ss:$16 sps:$4 sm:$0xff]  }
  0xeb   :  { %5082 = vmatpush1.bf16.msra.mxu0 %v7287_v4  ;;  %5615 = vmatpush1.bf16.msra.mxu1 %v7290_v5  ;;  %v7379_v4 = vld [vmem:[%s10644_s1 + $0x924] ss:$16 sps:$4 sm:$0xff]   ;;  %v7382_v5 = vld [vmem:[%s10644_s1 + $0x92c] ss:$16 sps:$4 sm:$0xff]  }
  0xec   :  { %5083 = vmatprep.subr.bf16.mxu0 %v7295_v6  ;;  %5616 = vmatprep.subr.bf16.mxu1 %v7298_v7  ;;  %v7377_v6 = vld [vmem:[%s10644_s1 + $0x920] ss:$16 sps:$4 sm:$0xff]   ;;  %v7380_v7 = vld [vmem:[%s10644_s1 + $0x928] ss:$16 sps:$4 sm:$0xff]  }
  0xef   :  { %5084 = vmatpush1.bf16.msra.mxu0 %v7293_v8  ;;  %5617 = vmatpush1.bf16.msra.mxu1 %v7296_v9  ;;  %v7385_v8 = vld [vmem:[%s10644_s1 + $0x944] ss:$16 sps:$4 sm:$0xff]   ;;  %v7388_v9 = vld [vmem:[%s10644_s1 + $0x94c] ss:$16 sps:$4 sm:$0xff]  }
  0xf0   :  { %5085 = vmatprep.subr.bf16.mxu0 %v7301_v10  ;;  %5618 = vmatprep.subr.bf16.mxu1 %v7304_v11  ;;  %v7383_v10 = vld [vmem:[%s10644_s1 + $0x940] ss:$16 sps:$4 sm:$0xff]   ;;  %v7386_v11 = vld [vmem:[%s10644_s1 + $0x948] ss:$16 sps:$4 sm:$0xff]  }
  0xf3   :  { %5086 = vmatpush1.bf16.msra.mxu0 %v7299_v12  ;;  %5619 = vmatpush1.bf16.msra.mxu1 %v7302_v52  ;;  %v7391_v12 = vld [vmem:[%s10644_s1 + $0x964] ss:$16 sps:$4 sm:$0xff]   ;;  %v7394_v52 = vld [vmem:[%s10644_s1 + $0x96c] ss:$16 sps:$4 sm:$0xff]  }
  0xf4   :  { %5087 = vmatprep.subr.bf16.mxu0 %v7307_v15  ;;  %5620 = vmatprep.subr.bf16.mxu1 %v7310_v16  ;;  %v7389_v15 = vld [vmem:[%s10644_s1 + $0x960] ss:$16 sps:$4 sm:$0xff]   ;;  %v7392_v16 = vld [vmem:[%s10644_s1 + $0x968] ss:$16 sps:$4 sm:$0xff]  }
  0xf7   :  { %5088 = vmatpush1.bf16.msra.mxu0 %v7305_v17  ;;  %5621 = vmatpush1.bf16.msra.mxu1 %v7308_v18  ;;  %v7397_v17 = vld [vmem:[%s10644_s1 + $0x984] ss:$16 sps:$4 sm:$0xff]   ;;  %v7400_v18 = vld [vmem:[%s10644_s1 + $0x98c] ss:$16 sps:$4 sm:$0xff]  }
  0xf8   :  { %5089 = vmatprep.subr.bf16.mxu0 %v7313_v19  ;;  %5622 = vmatprep.subr.bf16.mxu1 %v7316_v20  ;;  %v7395_v19 = vld [vmem:[%s10644_s1 + $0x980] ss:$16 sps:$4 sm:$0xff]   ;;  %v7398_v20 = vld [vmem:[%s10644_s1 + $0x988] ss:$16 sps:$4 sm:$0xff]  }
  0xfb   :  { %5090 = vmatpush1.bf16.msra.mxu0 %v7311_v22  ;;  %5623 = vmatpush1.bf16.msra.mxu1 %v7314_v23  ;;  %v7403_v22 = vld [vmem:[%s10644_s1 + $0x9a4] ss:$16 sps:$4 sm:$0xff]   ;;  %v7406_v23 = vld [vmem:[%s10644_s1 + $0x9ac] ss:$16 sps:$4 sm:$0xff]  }
  0xfc   :  { %5091 = vmatprep.subr.bf16.mxu0 %v7319_v24  ;;  %5624 = vmatprep.subr.bf16.mxu1 %v7322_v13  ;;  %v7401_v24 = vld [vmem:[%s10644_s1 + $0x9a0] ss:$16 sps:$4 sm:$0xff]   ;;  %v7404_v13 = vld [vmem:[%s10644_s1 + $0x9a8] ss:$16 sps:$4 sm:$0xff]  }
  0xff   :  { %5092 = vmatpush1.bf16.msra.mxu0 %v7317_v27  ;;  %5625 = vmatpush1.bf16.msra.mxu1 %v7320_v28  ;;  %v7409_v27 = vld [vmem:[%s10644_s1 + $0x9c4] ss:$16 sps:$4 sm:$0xff]   ;;  %v7412_v28 = vld [vmem:[%s10644_s1 + $0x9cc] ss:$16 sps:$4 sm:$0xff]  }
 0x100   :  { %5102 = vmatprep.subr.bf16.mxu0 %v7325_v29  ;;  %5635 = vmatprep.subr.bf16.mxu1 %v7328_v14  ;;  %v7407_v29 = vld [vmem:[%s10644_s1 + $0x9c0] ss:$16 sps:$4 sm:$0xff]   ;;  %v7410_v14 = vld [vmem:[%s10644_s1 + $0x9c8] ss:$16 sps:$4 sm:$0xff]  }
 0x102   :  { %5094 = vmatmul.mubr.bf16.vlgmr.msra.gmra.mrb[0].mxu0 %v875_v31  ;;  %5627 = vmatmul.mubr.bf16.vlgmr.msra.gmra.mrb[0].mxu1 %v875_v31  ;;  %v7418_v31 = vld [vmem:[%s10644_s1 + $0x9ec] ss:$16 sps:$4 sm:$0xff]  }
 0x103   :  { %5103 = vmatpush1.bf16.msra.mxu0 %v7323_v25  ;;  %5636 = vmatpush1.bf16.msra.mxu1 %v7326_v32  ;;  %v7413_v25 = vld [vmem:[%s10644_s1 + $0x9e0] ss:$16 sps:$4 sm:$0xff]   ;;  %v7416_v32 = vld [vmem:[%s10644_s1 + $0x9e8] ss:$16 sps:$4 sm:$0xff]  }
 0x104   :  { %5104 = vmatprep.subr.bf16.mxu0 %v7331_v33  ;;  %5637 = vmatprep.subr.bf16.mxu1 %v7334_v26  ;;  %v7421_v33 = vld [vmem:[%s10644_s1 + $0xa04] ss:$16 sps:$4 sm:$0xff]   ;;  %v7424_v26 = vld [vmem:[%s10644_s1 + $0xa0c] ss:$16 sps:$4 sm:$0xff]  }
 0x105   :  { %5134 = vmatprep.mubr.bf16.mxu0 %v8977_v34  ;;  %5667 = vmatprep.mubr.bf16.mxu1 %v8977_v34 }
 0x107   :  { %5105 = vmatpush1.bf16.msra.mxu0 %v7329_v35  ;;  %5638 = vmatpush1.bf16.msra.mxu1 %v7332_v36  ;;  %v9163_v35 = vrot.slane %v8934_v21, %v8276_v49  ;;  %v7419_v36 = vld [vmem:[%s10644_s1 + $0xa00] ss:$16 sps:$4 sm:$0xff]   ;;  %v7430_v21 = vld [vmem:[%s10644_s1 + $0xa2c] ss:$16 sps:$4 sm:$0xff]  }
 0x108   :  { %5106 = vmatprep.subr.bf16.mxu0 %v7337_v37  ;;  %5639 = vmatprep.subr.bf16.mxu1 %v7340_v38  ;;  %v7422_v37 = vld [vmem:[%s10644_s1 + $0xa08] ss:$16 sps:$4 sm:$0xff]   ;;  %v7427_v38 = vld [vmem:[%s10644_s1 + $0xa24] ss:$16 sps:$4 sm:$0xff]  }
 0x10b   :  { %5107 = vmatpush1.bf16.msra.mxu0 %v7335_v39  ;;  %5640 = vmatpush1.bf16.msra.mxu1 %v7338_v40  ;;  %v925_v39 = vcombine.high %v8977_v34, %v8977_v34  ;;  %v7425_v40 = vld [vmem:[%s10644_s1 + $0xa20] ss:$16 sps:$4 sm:$0xff]   ;;  %v7433_v34 = vld [vmem:[%s10644_s1 + $0xa44] ss:$16 sps:$4 sm:$0xff]  }
 0x10c   :  { %5108 = vmatprep.subr.bf16.mxu0 %v7343_v41  ;;  %5641 = vmatprep.subr.bf16.mxu1 %v7346_v43  ;;  %v7428_v41 = vld [vmem:[%s10644_s1 + $0xa28] ss:$16 sps:$4 sm:$0xff]   ;;  %v7436_v43 = vld [vmem:[%s10644_s1 + $0xa4c] ss:$16 sps:$4 sm:$0xff]  }
 0x10f   :  { %5109 = vmatpush1.bf16.msra.mxu0 %v7341_v44  ;;  %5642 = vmatpush1.bf16.msra.mxu1 %v7344_v45  ;;  %v7431_v44 = vld [vmem:[%s10644_s1 + $0xa40] ss:$16 sps:$4 sm:$0xff]   ;;  %v7434_v45 = vld [vmem:[%s10644_s1 + $0xa48] ss:$16 sps:$4 sm:$0xff]  }
 0x110   :  { %5110 = vmatprep.subr.bf16.mxu0 %v7349_v46  ;;  %5643 = vmatprep.subr.bf16.mxu1 %v7352_v47  ;;  %v7439_v46 = vld [vmem:[%s10644_s1 + $0xa64] ss:$16 sps:$4 sm:$0xff]   ;;  %v7442_v47 = vld [vmem:[%s10644_s1 + $0xa6c] ss:$16 sps:$4 sm:$0xff]  }
 0x113   :  { %5111 = vmatpush1.bf16.msra.mxu0 %v7347_v48  ;;  %5644 = vmatpush1.bf16.msra.mxu1 %v7350_v50  ;;  %v7437_v48 = vld [vmem:[%s10644_s1 + $0xa60] ss:$16 sps:$4 sm:$0xff]   ;;  %v7440_v50 = vld [vmem:[%s10644_s1 + $0xa68] ss:$16 sps:$4 sm:$0xff]  }
 0x114   :  { %5112 = vmatprep.subr.bf16.mxu0 %v7355_v51  ;;  %5645 = vmatprep.subr.bf16.mxu1 %v7358_v53  ;;  %v7445_v51 = vld [vmem:[%s10644_s1 + $0xa84] ss:$16 sps:$4 sm:$0xff]   ;;  %v7448_v53 = vld [vmem:[%s10644_s1 + $0xa8c] ss:$16 sps:$4 sm:$0xff]  }
 0x117   :  { %5113 = vmatpush1.bf16.msra.mxu0 %v7353_v54  ;;  %5646 = vmatpush1.bf16.msra.mxu1 %v7356_v55  ;;  %v7443_v54 = vld [vmem:[%s10644_s1 + $0xa80] ss:$16 sps:$4 sm:$0xff]   ;;  %v7446_v55 = vld [vmem:[%s10644_s1 + $0xa88] ss:$16 sps:$4 sm:$0xff]  }
 0x118   :  { %5114 = vmatprep.subr.bf16.mxu0 %v7361_v56  ;;  %5647 = vmatprep.subr.bf16.mxu1 %v7364_v57  ;;  %v7451_v56 = vld [vmem:[%s10644_s1 + $0xaa4] ss:$16 sps:$4 sm:$0xff]   ;;  %v7454_v57 = vld [vmem:[%s10644_s1 + $0xaac] ss:$16 sps:$4 sm:$0xff]  }
 0x11b   :  { %5115 = vmatpush1.bf16.msra.mxu0 %v7359_v58  ;;  %5648 = vmatpush1.bf16.msra.mxu1 %v7362_v59  ;;  %v7449_v58 = vld [vmem:[%s10644_s1 + $0xaa0] ss:$16 sps:$4 sm:$0xff]   ;;  %v7452_v59 = vld [vmem:[%s10644_s1 + $0xaa8] ss:$16 sps:$4 sm:$0xff]  }
 0x11c   :  { %5116 = vmatprep.subr.bf16.mxu0 %v7367_v60  ;;  %5649 = vmatprep.subr.bf16.mxu1 %v7370_v61  ;;  %v7457_v60 = vld [vmem:[%s10644_s1 + $0xac4] ss:$16 sps:$4 sm:$0xff]   ;;  %v7460_v61 = vld [vmem:[%s10644_s1 + $0xacc] ss:$16 sps:$4 sm:$0xff]  }
 0x11f   :  { %5117 = vmatpush1.bf16.msra.mxu0 %v7365_v62  ;;  %5650 = vmatpush1.bf16.msra.mxu1 %v7368_v63  ;;  %v7455_v62 = vld [vmem:[%s10644_s1 + $0xac0] ss:$16 sps:$4 sm:$0xff]   ;;  %v7458_v63 = vld [vmem:[%s10644_s1 + $0xac8] ss:$16 sps:$4 sm:$0xff]  }
 0x120   :  { %5118 = vmatprep.subr.bf16.mxu0 %v7373_v0  ;;  %5651 = vmatprep.subr.bf16.mxu1 %v7376_v1  ;;  %v7463_v0 = vld [vmem:[%s10644_s1 + $0xae4] ss:$16 sps:$4 sm:$0xff]   ;;  %v7466_v1 = vld [vmem:[%s10644_s1 + $0xaec] ss:$16 sps:$4 sm:$0xff]  }
 0x123   :  { %5119 = vmatpush1.bf16.msra.mxu0 %v7371_v2  ;;  %5652 = vmatpush1.bf16.msra.mxu1 %v7374_v3  ;;  %v7461_v2 = vld [vmem:[%s10644_s1 + $0xae0] ss:$16 sps:$4 sm:$0xff]   ;;  %v7464_v3 = vld [vmem:[%s10644_s1 + $0xae8] ss:$16 sps:$4 sm:$0xff]  }
 0x124   :  { %5120 = vmatprep.subr.bf16.mxu0 %v7379_v4  ;;  %5653 = vmatprep.subr.bf16.mxu1 %v7382_v5  ;;  %v7469_v4 = vld [vmem:[%s10644_s1 + $0xb04] ss:$16 sps:$4 sm:$0xff]   ;;  %v7472_v5 = vld [vmem:[%s10644_s1 + $0xb0c] ss:$16 sps:$4 sm:$0xff]  }
 0x127   :  { %5121 = vmatpush1.bf16.msra.mxu0 %v7377_v6  ;;  %5654 = vmatpush1.bf16.msra.mxu1 %v7380_v7  ;;  %v7467_v6 = vld [vmem:[%s10644_s1 + $0xb00] ss:$16 sps:$4 sm:$0xff]   ;;  %v7470_v7 = vld [vmem:[%s10644_s1 + $0xb08] ss:$16 sps:$4 sm:$0xff]  }
 0x128   :  { %5122 = vmatprep.subr.bf16.mxu0 %v7385_v8  ;;  %5655 = vmatprep.subr.bf16.mxu1 %v7388_v9  ;;  %v7475_v8 = vld [vmem:[%s10644_s1 + $0xb24] ss:$16 sps:$4 sm:$0xff]   ;;  %v7478_v9 = vld [vmem:[%s10644_s1 + $0xb2c] ss:$16 sps:$4 sm:$0xff]  }
 0x12b   :  { %5123 = vmatpush1.bf16.msra.mxu0 %v7383_v10  ;;  %5656 = vmatpush1.bf16.msra.mxu1 %v7386_v11  ;;  %v7473_v10 = vld [vmem:[%s10644_s1 + $0xb20] ss:$16 sps:$4 sm:$0xff]   ;;  %v7476_v11 = vld [vmem:[%s10644_s1 + $0xb28] ss:$16 sps:$4 sm:$0xff]  }
 0x12c   :  { %5124 = vmatprep.subr.bf16.mxu0 %v7391_v12  ;;  %5657 = vmatprep.subr.bf16.mxu1 %v7394_v52  ;;  %v7481_v12 = vld [vmem:[%s10644_s1 + $0xb44] ss:$16 sps:$4 sm:$0xff]   ;;  %v7484_v52 = vld [vmem:[%s10644_s1 + $0xb4c] ss:$16 sps:$4 sm:$0xff]  }
 0x12f   :  { %5125 = vmatpush1.bf16.msra.mxu0 %v7389_v15  ;;  %5658 = vmatpush1.bf16.msra.mxu1 %v7392_v16  ;;  %v7479_v15 = vld [vmem:[%s10644_s1 + $0xb40] ss:$16 sps:$4 sm:$0xff]   ;;  %v7482_v16 = vld [vmem:[%s10644_s1 + $0xb48] ss:$16 sps:$4 sm:$0xff]  }
 0x130   :  { %5126 = vmatprep.subr.bf16.mxu0 %v7397_v17  ;;  %5659 = vmatprep.subr.bf16.mxu1 %v7400_v18  ;;  %v7487_v17 = vld [vmem:[%s10644_s1 + $0xb64] ss:$16 sps:$4 sm:$0xff]   ;;  %v7490_v18 = vld [vmem:[%s10644_s1 + $0xb6c] ss:$16 sps:$4 sm:$0xff]  }
 0x133   :  { %5127 = vmatpush1.bf16.msra.mxu0 %v7395_v19  ;;  %5660 = vmatpush1.bf16.msra.mxu1 %v7398_v20  ;;  %v7485_v19 = vld [vmem:[%s10644_s1 + $0xb60] ss:$16 sps:$4 sm:$0xff]   ;;  %v7488_v20 = vld [vmem:[%s10644_s1 + $0xb68] ss:$16 sps:$4 sm:$0xff]  }
 0x134   :  { %5128 = vmatprep.subr.bf16.mxu0 %v7403_v22  ;;  %5661 = vmatprep.subr.bf16.mxu1 %v7406_v23  ;;  %v7493_v22 = vld [vmem:[%s10644_s1 + $0xb84] ss:$16 sps:$4 sm:$0xff]   ;;  %v7496_v23 = vld [vmem:[%s10644_s1 + $0xb8c] ss:$16 sps:$4 sm:$0xff]  }
 0x137   :  { %5129 = vmatpush1.bf16.msra.mxu0 %v7401_v24  ;;  %5662 = vmatpush1.bf16.msra.mxu1 %v7404_v13  ;;  %v7491_v24 = vld [vmem:[%s10644_s1 + $0xb80] ss:$16 sps:$4 sm:$0xff]   ;;  %v7494_v13 = vld [vmem:[%s10644_s1 + $0xb88] ss:$16 sps:$4 sm:$0xff]  }
 0x138   :  { %5130 = vmatprep.subr.bf16.mxu0 %v7409_v27  ;;  %5663 = vmatprep.subr.bf16.mxu1 %v7412_v28  ;;  %v7499_v27 = vld [vmem:[%s10644_s1 + $0xba4] ss:$16 sps:$4 sm:$0xff]   ;;  %v7502_v28 = vld [vmem:[%s10644_s1 + $0xbac] ss:$16 sps:$4 sm:$0xff]  }
 0x13b   :  { %5131 = vmatpush1.bf16.msra.mxu0 %v7407_v29  ;;  %5664 = vmatpush1.bf16.msra.mxu1 %v7410_v14  ;;  %v7497_v29 = vld [vmem:[%s10644_s1 + $0xba0] ss:$16 sps:$4 sm:$0xff]   ;;  %v7500_v14 = vld [vmem:[%s10644_s1 + $0xba8] ss:$16 sps:$4 sm:$0xff]  }
 0x13c   :  { %5132 = vmatprep.subr.bf16.mxu0 %v7415_v30  ;;  %5665 = vmatprep.subr.bf16.mxu1 %v7418_v31  ;;  %v7505_v30 = vld [vmem:[%s10644_s1 + $0xbc4] ss:$16 sps:$4 sm:$0xff]   ;;  %v7508_v31 = vld [vmem:[%s10644_s1 + $0xbcc] ss:$16 sps:$4 sm:$0xff]  }
 0x13f   :  { %5133 = vmatpush1.bf16.msra.mxu0 %v7413_v25  ;;  %5666 = vmatpush1.bf16.msra.mxu1 %v7416_v32  ;;  %v8117_v25 = vld [vmem:[%s10645_s0 + $0x8] sm:$0xff] }
 0x140   :  { %5143 = vmatprep.subr.bf16.mxu0 %v7421_v33  ;;  %5676 = vmatprep.subr.bf16.mxu1 %v7424_v26  ;;  %v878_v32 = vcombine.high %v8117_v25, %v8117_v25  ;;  %v7503_v33 = vld [vmem:[%s10644_s1 + $0xbc0] ss:$16 sps:$4 sm:$0xff]   ;;  %v7506_v26 = vld [vmem:[%s10644_s1 + $0xbc8] ss:$16 sps:$4 sm:$0xff]  }
 0x141   :  { %v7587_v25 = vld [vmem:[%s10644_s1 + $0xd80] ss:$16 sps:$4 sm:$0xff]  }
 0x142   :  { %5135 = vmatmul.mubr.bf16.vlgmr.msra.gmra.mrb[0].mxu0 %v9163_v35  ;;  %5668 = vmatmul.mubr.bf16.vlgmr.msra.gmra.mrb[0].mxu1 %v9163_v35 }
 0x143   :  { %5144 = vmatpush1.bf16.msra.mxu0 %v7419_v36  ;;  %5677 = vmatpush1.bf16.msra.mxu1 %v7422_v37  ;;  %v7511_v36 = vld [vmem:[%s10644_s1 + $0xbe4] ss:$16 sps:$4 sm:$0xff]   ;;  %v7514_v37 = vld [vmem:[%s10644_s1 + $0xbec] ss:$16 sps:$4 sm:$0xff]  }
 0x144   :  { %5145 = vmatprep.subr.bf16.mxu0 %v7427_v38  ;;  %5678 = vmatprep.subr.bf16.mxu1 %v7430_v21  ;;  %v9353_v38 = vrot.slane %v878_v32, %v8276_v49  ;;  %v7509_v21 = vld [vmem:[%s10644_s1 + $0xbe0] ss:$16 sps:$4 sm:$0xff]   ;;  %v7590_v32 = vld [vmem:[%s10644_s1 + $0xd88] ss:$16 sps:$4 sm:$0xff]  }
 0x145   :  { %5175 = vmatprep.mubr.bf16.mxu0 %v925_v39  ;;  %5708 = vmatprep.mubr.bf16.mxu1 %v925_v39  ;;  %v7512_v39 = vld [vmem:[%s10644_s1 + $0xbe8] ss:$16 sps:$4 sm:$0xff]  }
 0x147   :  { %5146 = vmatpush1.bf16.msra.mxu0 %v7425_v40  ;;  %5679 = vmatpush1.bf16.msra.mxu1 %v7428_v41  ;;  %v7517_v40 = vld [vmem:[%s10644_s1 + $0xc04] ss:$16 sps:$4 sm:$0xff]   ;;  %v7520_v41 = vld [vmem:[%s10644_s1 + $0xc0c] ss:$16 sps:$4 sm:$0xff]  }
 0x148   :  { %5147 = vmatprep.subr.bf16.mxu0 %v7433_v34  ;;  %5680 = vmatprep.subr.bf16.mxu1 %v7436_v43  ;;  %v894_v34 = vcombine.high %v9353_v38, %v9353_v38  ;;  %v923_v43 = vcombine.high %v9163_v35, %v9163_v35  ;;  %v7526_v35 = vld [vmem:[%s10644_s1 + $0xc2c] ss:$16 sps:$4 sm:$0xff]  }
 0x14b   :  { %5148 = vmatpush1.bf16.msra.mxu0 %v7431_v44  ;;  %5681 = vmatpush1.bf16.msra.mxu1 %v7434_v45  ;;  %v7515_v44 = vld [vmem:[%s10644_s1 + $0xc00] ss:$16 sps:$4 sm:$0xff]   ;;  %v7518_v45 = vld [vmem:[%s10644_s1 + $0xc08] ss:$16 sps:$4 sm:$0xff]  }
 0x14c   :  { %5149 = vmatprep.subr.bf16.mxu0 %v7439_v46  ;;  %5682 = vmatprep.subr.bf16.mxu1 %v7442_v47  ;;  %v7523_v46 = vld [vmem:[%s10644_s1 + $0xc24] ss:$16 sps:$4 sm:$0xff]   ;;  %v9384_v47 = vrot.slane %v894_v34, %v8276_v49 }
 0x14d   :  { %v7607_v34 = vld [vmem:[%s10644_s1 + $0xde4] ss:$16 sps:$4 sm:$0xff]  }
 0x14f   :  { %5150 = vmatpush1.bf16.msra.mxu0 %v7437_v48  ;;  %5683 = vmatpush1.bf16.msra.mxu1 %v7440_v50  ;;  %v7521_v48 = vld [vmem:[%s10644_s1 + $0xc20] ss:$16 sps:$4 sm:$0xff]   ;;  %v7524_v50 = vld [vmem:[%s10644_s1 + $0xc28] ss:$16 sps:$4 sm:$0xff]  }
 0x150   :  { %5151 = vmatprep.subr.bf16.mxu0 %v7445_v51  ;;  %5684 = vmatprep.subr.bf16.mxu1 %v7448_v53  ;;  %v7529_v51 = vld [vmem:[%s10644_s1 + $0xc44] ss:$16 sps:$4 sm:$0xff]   ;;  %v7532_v53 = vld [vmem:[%s10644_s1 + $0xc4c] ss:$16 sps:$4 sm:$0xff]  }
 0x153   :  { %5152 = vmatpush1.bf16.msra.mxu0 %v7443_v54  ;;  %5685 = vmatpush1.bf16.msra.mxu1 %v7446_v55  ;;  %v7527_v54 = vld [vmem:[%s10644_s1 + $0xc40] ss:$16 sps:$4 sm:$0xff]   ;;  %v7530_v55 = vld [vmem:[%s10644_s1 + $0xc48] ss:$16 sps:$4 sm:$0xff]  }
 0x154   :  { %5153 = vmatprep.subr.bf16.mxu0 %v7451_v56  ;;  %5686 = vmatprep.subr.bf16.mxu1 %v7454_v57  ;;  %v7535_v56 = vld [vmem:[%s10644_s1 + $0xc64] ss:$16 sps:$4 sm:$0xff]   ;;  %v7538_v57 = vld [vmem:[%s10644_s1 + $0xc6c] ss:$16 sps:$4 sm:$0xff]  }
 0x157   :  { %5154 = vmatpush1.bf16.msra.mxu0 %v7449_v58  ;;  %5687 = vmatpush1.bf16.msra.mxu1 %v7452_v59  ;;  %v7533_v58 = vld [vmem:[%s10644_s1 + $0xc60] ss:$16 sps:$4 sm:$0xff]   ;;  %v7536_v59 = vld [vmem:[%s10644_s1 + $0xc68] ss:$16 sps:$4 sm:$0xff]  }
 0x158   :  { %5155 = vmatprep.subr.bf16.mxu0 %v7457_v60  ;;  %5688 = vmatprep.subr.bf16.mxu1 %v7460_v61  ;;  %v7541_v60 = vld [vmem:[%s10644_s1 + $0xc84] ss:$16 sps:$4 sm:$0xff]   ;;  %v7544_v61 = vld [vmem:[%s10644_s1 + $0xc8c] ss:$16 sps:$4 sm:$0xff]  }
 0x15b   :  { %5156 = vmatpush1.bf16.msra.mxu0 %v7455_v62  ;;  %5689 = vmatpush1.bf16.msra.mxu1 %v7458_v63  ;;  %v7539_v62 = vld [vmem:[%s10644_s1 + $0xc80] ss:$16 sps:$4 sm:$0xff]   ;;  %v7542_v63 = vld [vmem:[%s10644_s1 + $0xc88] ss:$16 sps:$4 sm:$0xff]  }
 0x15c   :  { %5157 = vmatprep.subr.bf16.mxu0 %v7463_v0  ;;  %5690 = vmatprep.subr.bf16.mxu1 %v7466_v1  ;;  %v7547_v0 = vld [vmem:[%s10644_s1 + $0xca4] ss:$16 sps:$4 sm:$0xff]   ;;  %v7550_v1 = vld [vmem:[%s10644_s1 + $0xcac] ss:$16 sps:$4 sm:$0xff]  }
 0x15f   :  { %5158 = vmatpush1.bf16.msra.mxu0 %v7461_v2  ;;  %5691 = vmatpush1.bf16.msra.mxu1 %v7464_v3  ;;  %v7545_v2 = vld [vmem:[%s10644_s1 + $0xca0] ss:$16 sps:$4 sm:$0xff]   ;;  %v7548_v3 = vld [vmem:[%s10644_s1 + $0xca8] ss:$16 sps:$4 sm:$0xff]  }
 0x160   :  { %5159 = vmatprep.subr.bf16.mxu0 %v7469_v4  ;;  %5692 = vmatprep.subr.bf16.mxu1 %v7472_v5  ;;  %v7553_v4 = vld [vmem:[%s10644_s1 + $0xcc4] ss:$16 sps:$4 sm:$0xff]   ;;  %v7556_v5 = vld [vmem:[%s10644_s1 + $0xccc] ss:$16 sps:$4 sm:$0xff]  }
 0x163   :  { %5160 = vmatpush1.bf16.msra.mxu0 %v7467_v6  ;;  %5693 = vmatpush1.bf16.msra.mxu1 %v7470_v7  ;;  %v7551_v6 = vld [vmem:[%s10644_s1 + $0xcc0] ss:$16 sps:$4 sm:$0xff]   ;;  %v7554_v7 = vld [vmem:[%s10644_s1 + $0xcc8] ss:$16 sps:$4 sm:$0xff]  }
 0x164   :  { %5161 = vmatprep.subr.bf16.mxu0 %v7475_v8  ;;  %5694 = vmatprep.subr.bf16.mxu1 %v7478_v9  ;;  %v7559_v8 = vld [vmem:[%s10644_s1 + $0xce4] ss:$16 sps:$4 sm:$0xff]   ;;  %v7562_v9 = vld [vmem:[%s10644_s1 + $0xcec] ss:$16 sps:$4 sm:$0xff]  }
 0x167   :  { %5162 = vmatpush1.bf16.msra.mxu0 %v7473_v10  ;;  %5695 = vmatpush1.bf16.msra.mxu1 %v7476_v11  ;;  %v7557_v10 = vld [vmem:[%s10644_s1 + $0xce0] ss:$16 sps:$4 sm:$0xff]   ;;  %v7560_v11 = vld [vmem:[%s10644_s1 + $0xce8] ss:$16 sps:$4 sm:$0xff]  }
 0x168   :  { %5163 = vmatprep.subr.bf16.mxu0 %v7481_v12  ;;  %5696 = vmatprep.subr.bf16.mxu1 %v7484_v52  ;;  %v7565_v12 = vld [vmem:[%s10644_s1 + $0xd04] ss:$16 sps:$4 sm:$0xff]   ;;  %v7568_v52 = vld [vmem:[%s10644_s1 + $0xd0c] ss:$16 sps:$4 sm:$0xff]  }
 0x16b   :  { %5164 = vmatpush1.bf16.msra.mxu0 %v7479_v15  ;;  %5697 = vmatpush1.bf16.msra.mxu1 %v7482_v16  ;;  %v7563_v15 = vld [vmem:[%s10644_s1 + $0xd00] ss:$16 sps:$4 sm:$0xff]   ;;  %v7566_v16 = vld [vmem:[%s10644_s1 + $0xd08] ss:$16 sps:$4 sm:$0xff]  }
 0x16c   :  { %5165 = vmatprep.subr.bf16.mxu0 %v7487_v17  ;;  %5698 = vmatprep.subr.bf16.mxu1 %v7490_v18  ;;  %v7571_v17 = vld [vmem:[%s10644_s1 + $0xd24] ss:$16 sps:$4 sm:$0xff]   ;;  %v7574_v18 = vld [vmem:[%s10644_s1 + $0xd2c] ss:$16 sps:$4 sm:$0xff]  }
 0x16f   :  { %5166 = vmatpush1.bf16.msra.mxu0 %v7485_v19  ;;  %5699 = vmatpush1.bf16.msra.mxu1 %v7488_v20  ;;  %v7569_v19 = vld [vmem:[%s10644_s1 + $0xd20] ss:$16 sps:$4 sm:$0xff]   ;;  %v7572_v20 = vld [vmem:[%s10644_s1 + $0xd28] ss:$16 sps:$4 sm:$0xff]  }
 0x170   :  { %5167 = vmatprep.subr.bf16.mxu0 %v7493_v22  ;;  %5700 = vmatprep.subr.bf16.mxu1 %v7496_v23  ;;  %v7577_v22 = vld [vmem:[%s10644_s1 + $0xd44] ss:$16 sps:$4 sm:$0xff]   ;;  %v7580_v23 = vld [vmem:[%s10644_s1 + $0xd4c] ss:$16 sps:$4 sm:$0xff]  }
 0x173   :  { %5168 = vmatpush1.bf16.msra.mxu0 %v7491_v24  ;;  %5701 = vmatpush1.bf16.msra.mxu1 %v7494_v13  ;;  %v7575_v24 = vld [vmem:[%s10644_s1 + $0xd40] ss:$16 sps:$4 sm:$0xff]   ;;  %v7578_v13 = vld [vmem:[%s10644_s1 + $0xd48] ss:$16 sps:$4 sm:$0xff]  }
 0x174   :  { %5169 = vmatprep.subr.bf16.mxu0 %v7499_v27  ;;  %5702 = vmatprep.subr.bf16.mxu1 %v7502_v28  ;;  %v7583_v27 = vld [vmem:[%s10644_s1 + $0xd64] ss:$16 sps:$4 sm:$0xff]   ;;  %v7586_v28 = vld [vmem:[%s10644_s1 + $0xd6c] ss:$16 sps:$4 sm:$0xff]  }
 0x177   :  { %5170 = vmatpush1.bf16.msra.mxu0 %v7497_v29  ;;  %5703 = vmatpush1.bf16.msra.mxu1 %v7500_v14  ;;  %v7581_v29 = vld [vmem:[%s10644_s1 + $0xd60] ss:$16 sps:$4 sm:$0xff]   ;;  %v7584_v14 = vld [vmem:[%s10644_s1 + $0xd68] ss:$16 sps:$4 sm:$0xff]  }
 0x178   :  { %5171 = vmatprep.subr.bf16.mxu0 %v7505_v30  ;;  %5704 = vmatprep.subr.bf16.mxu1 %v7508_v31  ;;  %v7589_v30 = vld [vmem:[%s10644_s1 + $0xd84] ss:$16 sps:$4 sm:$0xff]   ;;  %v7592_v31 = vld [vmem:[%s10644_s1 + $0xd8c] ss:$16 sps:$4 sm:$0xff]  }
 0x17b   :  { %5172 = vmatpush1.bf16.msra.mxu0 %v7503_v33  ;;  %5705 = vmatpush1.bf16.msra.mxu1 %v7506_v26  ;;  %v7595_v33 = vld [vmem:[%s10644_s1 + $0xda4] ss:$16 sps:$4 sm:$0xff]   ;;  %v7598_v26 = vld [vmem:[%s10644_s1 + $0xdac] ss:$16 sps:$4 sm:$0xff]  }
 0x17c   :  { %5173 = vmatprep.subr.bf16.mxu0 %v7511_v36  ;;  %5706 = vmatprep.subr.bf16.mxu1 %v7514_v37  ;;  %v7593_v36 = vld [vmem:[%s10644_s1 + $0xda0] ss:$16 sps:$4 sm:$0xff]   ;;  %v7596_v37 = vld [vmem:[%s10644_s1 + $0xda8] ss:$16 sps:$4 sm:$0xff]  }
 0x17f   :  { %5174 = vmatpush1.bf16.msra.mxu0 %v7509_v21  ;;  %5707 = vmatpush1.bf16.msra.mxu1 %v7512_v39  ;;  %v7601_v21 = vld [vmem:[%s10644_s1 + $0xdc4] ss:$16 sps:$4 sm:$0xff]   ;;  %v7604_v39 = vld [vmem:[%s10644_s1 + $0xdcc] ss:$16 sps:$4 sm:$0xff]  }
 0x180   :  { %5184 = vmatprep.subr.bf16.mxu0 %v7517_v40  ;;  %5717 = vmatprep.subr.bf16.mxu1 %v7520_v41  ;;  %v7599_v40 = vld [vmem:[%s10644_s1 + $0xdc0] ss:$16 sps:$4 sm:$0xff]   ;;  %v7602_v41 = vld [vmem:[%s10644_s1 + $0xdc8] ss:$16 sps:$4 sm:$0xff]  }
 0x182   :  { %5176 = vmatmul.mubr.bf16.vlgmr.msra.gmra.mrb[0].mxu0 %v923_v43  ;;  %5709 = vmatmul.mubr.bf16.vlgmr.msra.gmra.mrb[0].mxu1 %v923_v43  ;;  %v7610_v43 = vld [vmem:[%s10644_s1 + $0xdec] ss:$16 sps:$4 sm:$0xff]  }
 0x183   :  { %5185 = vmatpush1.bf16.msra.mxu0 %v7515_v44  ;;  %5718 = vmatpush1.bf16.msra.mxu1 %v7518_v45  ;;  %v7605_v44 = vld [vmem:[%s10644_s1 + $0xde0] ss:$16 sps:$4 sm:$0xff]   ;;  %v7608_v45 = vld [vmem:[%s10644_s1 + $0xde8] ss:$16 sps:$4 sm:$0xff]  }
 0x184   :  { %5186 = vmatprep.subr.bf16.mxu0 %v7523_v46  ;;  %5719 = vmatprep.subr.bf16.mxu1 %v7526_v35  ;;  %v7614_v46 = vld [vmem:[%s10644_s1 + $0xe04] ss:$16 sps:$4 sm:$0xff]   ;;  %v7617_v35 = vld [vmem:[%s10644_s1 + $0xe0c] ss:$16 sps:$4 sm:$0xff]  }
 0x185   :  { %5216 = vmatprep.mubr.bf16.mxu0 %v9384_v47  ;;  %5749 = vmatprep.mubr.bf16.mxu1 %v9384_v47 }
 0x187   :  { %5187 = vmatpush1.bf16.msra.mxu0 %v7521_v48  ;;  %5720 = vmatpush1.bf16.msra.mxu1 %v7524_v50  ;;  %v9570_v48 = vrot.slane %v9353_v38, %v8276_v49  ;;  %v7612_v50 = vld [vmem:[%s10644_s1 + $0xe00] ss:$16 sps:$4 sm:$0xff]   ;;  %v7623_v38 = vld [vmem:[%s10644_s1 + $0xe2c] ss:$16 sps:$4 sm:$0xff]  }
 0x188   :  { %5188 = vmatprep.subr.bf16.mxu0 %v7529_v51  ;;  %5721 = vmatprep.subr.bf16.mxu1 %v7532_v53  ;;  %v7615_v51 = vld [vmem:[%s10644_s1 + $0xe08] ss:$16 sps:$4 sm:$0xff]   ;;  %v7620_v53 = vld [vmem:[%s10644_s1 + $0xe24] ss:$16 sps:$4 sm:$0xff]  }
 0x18b   :  { %5189 = vmatpush1.bf16.msra.mxu0 %v7527_v54  ;;  %5722 = vmatpush1.bf16.msra.mxu1 %v7530_v55  ;;  %v926_v54 = vcombine.high %v9384_v47, %v9384_v47  ;;  %v7618_v55 = vld [vmem:[%s10644_s1 + $0xe20] ss:$16 sps:$4 sm:$0xff]   ;;  %v7626_v47 = vld [vmem:[%s10644_s1 + $0xe44] ss:$16 sps:$4 sm:$0xff]  }
 0x18c   :  { %5190 = vmatprep.subr.bf16.mxu0 %v7535_v56  ;;  %5723 = vmatprep.subr.bf16.mxu1 %v7538_v57  ;;  %v7621_v56 = vld [vmem:[%s10644_s1 + $0xe28] ss:$16 sps:$4 sm:$0xff]   ;;  %v7629_v57 = vld [vmem:[%s10644_s1 + $0xe4c] ss:$16 sps:$4 sm:$0xff]  }
 0x18f   :  { %5191 = vmatpush1.bf16.msra.mxu0 %v7533_v58  ;;  %5724 = vmatpush1.bf16.msra.mxu1 %v7536_v59  ;;  %v7624_v58 = vld [vmem:[%s10644_s1 + $0xe40] ss:$16 sps:$4 sm:$0xff]   ;;  %v7627_v59 = vld [vmem:[%s10644_s1 + $0xe48] ss:$16 sps:$4 sm:$0xff]  }
 0x190   :  { %5192 = vmatprep.subr.bf16.mxu0 %v7541_v60  ;;  %5725 = vmatprep.subr.bf16.mxu1 %v7544_v61  ;;  %v7632_v60 = vld [vmem:[%s10644_s1 + $0xe64] ss:$16 sps:$4 sm:$0xff]   ;;  %v7635_v61 = vld [vmem:[%s10644_s1 + $0xe6c] ss:$16 sps:$4 sm:$0xff]  }
 0x193   :  { %5193 = vmatpush1.bf16.msra.mxu0 %v7539_v62  ;;  %5726 = vmatpush1.bf16.msra.mxu1 %v7542_v63  ;;  %v7630_v62 = vld [vmem:[%s10644_s1 + $0xe60] ss:$16 sps:$4 sm:$0xff]   ;;  %v7633_v63 = vld [vmem:[%s10644_s1 + $0xe68] ss:$16 sps:$4 sm:$0xff]  }
 0x194   :  { %5194 = vmatprep.subr.bf16.mxu0 %v7547_v0  ;;  %5727 = vmatprep.subr.bf16.mxu1 %v7550_v1  ;;  %v7638_v0 = vld [vmem:[%s10644_s1 + $0xe84] ss:$16 sps:$4 sm:$0xff]   ;;  %v7641_v1 = vld [vmem:[%s10644_s1 + $0xe8c] ss:$16 sps:$4 sm:$0xff]  }
 0x197   :  { %5195 = vmatpush1.bf16.msra.mxu0 %v7545_v2  ;;  %5728 = vmatpush1.bf16.msra.mxu1 %v7548_v3  ;;  %v7636_v2 = vld [vmem:[%s10644_s1 + $0xe80] ss:$16 sps:$4 sm:$0xff]   ;;  %v7639_v3 = vld [vmem:[%s10644_s1 + $0xe88] ss:$16 sps:$4 sm:$0xff]  }
 0x198   :  { %5196 = vmatprep.subr.bf16.mxu0 %v7553_v4  ;;  %5729 = vmatprep.subr.bf16.mxu1 %v7556_v5  ;;  %v7644_v4 = vld [vmem:[%s10644_s1 + $0xea4] ss:$16 sps:$4 sm:$0xff]   ;;  %v7647_v5 = vld [vmem:[%s10644_s1 + $0xeac] ss:$16 sps:$4 sm:$0xff]  }
 0x19b   :  { %5197 = vmatpush1.bf16.msra.mxu0 %v7551_v6  ;;  %5730 = vmatpush1.bf16.msra.mxu1 %v7554_v7  ;;  %v7642_v6 = vld [vmem:[%s10644_s1 + $0xea0] ss:$16 sps:$4 sm:$0xff]   ;;  %v7645_v7 = vld [vmem:[%s10644_s1 + $0xea8] ss:$16 sps:$4 sm:$0xff]  }
 0x19c   :  { %5198 = vmatprep.subr.bf16.mxu0 %v7559_v8  ;;  %5731 = vmatprep.subr.bf16.mxu1 %v7562_v9  ;;  %v7650_v8 = vld [vmem:[%s10644_s1 + $0xec4] ss:$16 sps:$4 sm:$0xff]   ;;  %v7653_v9 = vld [vmem:[%s10644_s1 + $0xecc] ss:$16 sps:$4 sm:$0xff]  }
 0x19f   :  { %5199 = vmatpush1.bf16.msra.mxu0 %v7557_v10  ;;  %5732 = vmatpush1.bf16.msra.mxu1 %v7560_v11  ;;  %v7648_v10 = vld [vmem:[%s10644_s1 + $0xec0] ss:$16 sps:$4 sm:$0xff]   ;;  %v7651_v11 = vld [vmem:[%s10644_s1 + $0xec8] ss:$16 sps:$4 sm:$0xff]  }
 0x1a0   :  { %5200 = vmatprep.subr.bf16.mxu0 %v7565_v12  ;;  %5733 = vmatprep.subr.bf16.mxu1 %v7568_v52  ;;  %v7656_v12 = vld [vmem:[%s10644_s1 + $0xee4] ss:$16 sps:$4 sm:$0xff]   ;;  %v7659_v52 = vld [vmem:[%s10644_s1 + $0xeec] ss:$16 sps:$4 sm:$0xff]  }
 0x1a3   :  { %5201 = vmatpush1.bf16.msra.mxu0 %v7563_v15  ;;  %5734 = vmatpush1.bf16.msra.mxu1 %v7566_v16  ;;  %v7654_v15 = vld [vmem:[%s10644_s1 + $0xee0] ss:$16 sps:$4 sm:$0xff]   ;;  %v7657_v16 = vld [vmem:[%s10644_s1 + $0xee8] ss:$16 sps:$4 sm:$0xff]  }
 0x1a4   :  { %5202 = vmatprep.subr.bf16.mxu0 %v7571_v17  ;;  %5735 = vmatprep.subr.bf16.mxu1 %v7574_v18  ;;  %v7662_v17 = vld [vmem:[%s10644_s1 + $0xf04] ss:$16 sps:$4 sm:$0xff]   ;;  %v7665_v18 = vld [vmem:[%s10644_s1 + $0xf0c] ss:$16 sps:$4 sm:$0xff]  }
 0x1a7   :  { %5203 = vmatpush1.bf16.msra.mxu0 %v7569_v19  ;;  %5736 = vmatpush1.bf16.msra.mxu1 %v7572_v20  ;;  %v7660_v19 = vld [vmem:[%s10644_s1 + $0xf00] ss:$16 sps:$4 sm:$0xff]   ;;  %v7663_v20 = vld [vmem:[%s10644_s1 + $0xf08] ss:$16 sps:$4 sm:$0xff]  }
 0x1a8   :  { %5204 = vmatprep.subr.bf16.mxu0 %v7577_v22  ;;  %5737 = vmatprep.subr.bf16.mxu1 %v7580_v23  ;;  %v7668_v22 = vld [vmem:[%s10644_s1 + $0xf24] ss:$16 sps:$4 sm:$0xff]   ;;  %v7671_v23 = vld [vmem:[%s10644_s1 + $0xf2c] ss:$16 sps:$4 sm:$0xff]  }
 0x1ab   :  { %5205 = vmatpush1.bf16.msra.mxu0 %v7575_v24  ;;  %5738 = vmatpush1.bf16.msra.mxu1 %v7578_v13  ;;  %v7666_v24 = vld [vmem:[%s10644_s1 + $0xf20] ss:$16 sps:$4 sm:$0xff]   ;;  %v7669_v13 = vld [vmem:[%s10644_s1 + $0xf28] ss:$16 sps:$4 sm:$0xff]  }
 0x1ac   :  { %5206 = vmatprep.subr.bf16.mxu0 %v7583_v27  ;;  %5739 = vmatprep.subr.bf16.mxu1 %v7586_v28  ;;  %v7674_v27 = vld [vmem:[%s10644_s1 + $0xf44] ss:$16 sps:$4 sm:$0xff]   ;;  %v7677_v28 = vld [vmem:[%s10644_s1 + $0xf4c] ss:$16 sps:$4 sm:$0xff]  }
 0x1af   :  { %5207 = vmatpush1.bf16.msra.mxu0 %v7581_v29  ;;  %5740 = vmatpush1.bf16.msra.mxu1 %v7584_v14  ;;  %v7672_v29 = vld [vmem:[%s10644_s1 + $0xf40] ss:$16 sps:$4 sm:$0xff]   ;;  %v7675_v14 = vld [vmem:[%s10644_s1 + $0xf48] ss:$16 sps:$4 sm:$0xff]  }
 0x1b0   :  { %5208 = vmatprep.subr.bf16.mxu0 %v7589_v30  ;;  %5741 = vmatprep.subr.bf16.mxu1 %v7592_v31  ;;  %v7680_v30 = vld [vmem:[%s10644_s1 + $0xf64] ss:$16 sps:$4 sm:$0xff]   ;;  %v7683_v31 = vld [vmem:[%s10644_s1 + $0xf6c] ss:$16 sps:$4 sm:$0xff]  }
 0x1b3   :  { %5209 = vmatpush1.bf16.msra.mxu0 %v7587_v25  ;;  %5742 = vmatpush1.bf16.msra.mxu1 %v7590_v32  ;;  %v7678_v25 = vld [vmem:[%s10644_s1 + $0xf60] ss:$16 sps:$4 sm:$0xff]   ;;  %v7681_v32 = vld [vmem:[%s10644_s1 + $0xf68] ss:$16 sps:$4 sm:$0xff]  }
 0x1b4   :  { %5210 = vmatprep.subr.bf16.mxu0 %v7595_v33  ;;  %5743 = vmatprep.subr.bf16.mxu1 %v7598_v26  ;;  %v7686_v33 = vld [vmem:[%s10644_s1 + $0xf84] ss:$16 sps:$4 sm:$0xff]   ;;  %v7689_v26 = vld [vmem:[%s10644_s1 + $0xf8c] ss:$16 sps:$4 sm:$0xff]  }
 0x1b7   :  { %5211 = vmatpush1.bf16.msra.mxu0 %v7593_v36  ;;  %5744 = vmatpush1.bf16.msra.mxu1 %v7596_v37  ;;  %v7684_v36 = vld [vmem:[%s10644_s1 + $0xf80] ss:$16 sps:$4 sm:$0xff]   ;;  %v7687_v37 = vld [vmem:[%s10644_s1 + $0xf88] ss:$16 sps:$4 sm:$0xff]  }
 0x1b8   :  { %5212 = vmatprep.subr.bf16.mxu0 %v7601_v21  ;;  %5745 = vmatprep.subr.bf16.mxu1 %v7604_v39  ;;  %v7692_v21 = vld [vmem:[%s10644_s1 + $0xfa4] ss:$16 sps:$4 sm:$0xff]   ;;  %v7695_v39 = vld [vmem:[%s10644_s1 + $0xfac] ss:$16 sps:$4 sm:$0xff]  }
 0x1bb   :  { %5213 = vmatpush1.bf16.msra.mxu0 %v7599_v40  ;;  %5746 = vmatpush1.bf16.msra.mxu1 %v7602_v41  ;;  %v7690_v40 = vld [vmem:[%s10644_s1 + $0xfa0] ss:$16 sps:$4 sm:$0xff]   ;;  %v7693_v41 = vld [vmem:[%s10644_s1 + $0xfa8] ss:$16 sps:$4 sm:$0xff]  }
 0x1bc   :  { %5214 = vmatprep.subr.bf16.mxu0 %v7607_v34  ;;  %5747 = vmatprep.subr.bf16.mxu1 %v7610_v43  ;;  %v7698_v34 = vld [vmem:[%s10644_s1 + $0xfc4] ss:$16 sps:$4 sm:$0xff]   ;;  %v7701_v43 = vld [vmem:[%s10644_s1 + $0xfcc] ss:$16 sps:$4 sm:$0xff]  }
 0x1bf   :  { %5215 = vmatpush1.bf16.msra.mxu0 %v7605_v44  ;;  %5748 = vmatpush1.bf16.msra.mxu1 %v7608_v45  ;;  %v9747_v44 = vld [vmem:[%s10645_s0 + $0x10] sm:$0xff] }
 0x1c0   :  { %5225 = vmatprep.subr.bf16.mxu0 %v7614_v46  ;;  %5758 = vmatprep.subr.bf16.mxu1 %v7617_v35  ;;  %v7696_v45 = vld [vmem:[%s10644_s1 + $0xfc0] ss:$16 sps:$4 sm:$0xff]   ;;  %v7699_v46 = vld [vmem:[%s10644_s1 + $0xfc8] ss:$16 sps:$4 sm:$0xff]   ;;  %v7704_v35 = vld [vmem:[%s10644_s1 + $0xfe4] ss:$16 sps:$4 sm:$0xff]  }
 0x1c2   :  { %5217 = vmatmul.mubr.bf16.vlgmr.msra.gmra.mrb[0].mxu0 %v9570_v48  ;;  %5750 = vmatmul.mubr.bf16.vlgmr.msra.gmra.mrb[0].mxu1 %v9570_v48 }
 0x1c3   :  { %5226 = vmatpush1.bf16.msra.mxu0 %v7612_v50  ;;  %5759 = vmatpush1.bf16.msra.mxu1 %v7615_v51  ;;  %v7707_v50 = vld [vmem:[%s10644_s1 + $0xfec] ss:$16 sps:$4 sm:$0xff]   ;;  %v9763_v51 = vrot.slane %v9747_v44, %v8276_v49 }
 0x1c4   :  { %5227 = vmatprep.subr.bf16.mxu0 %v7620_v53  ;;  %5760 = vmatprep.subr.bf16.mxu1 %v7623_v38  ;;  %v7702_v53 = vld [vmem:[%s10644_s1 + $0xfe0] ss:$16 sps:$4 sm:$0xff]   ;;  %v7705_v38 = vld [vmem:[%s10644_s1 + $0xfe8] ss:$16 sps:$4 sm:$0xff]  }
 0x1c5   :  { %5257 = vmatprep.mubr.bf16.mxu0 %v926_v54  ;;  %5790 = vmatprep.mubr.bf16.mxu1 %v926_v54  ;;  %v7710_v54 = vld [vmem:[%s10644_s1 + $0x1004] ss:$16 sps:$4 sm:$0xff]  }
 0x1c7   :  { %5228 = vmatpush1.bf16.msra.mxu0 %v7618_v55  ;;  %5761 = vmatpush1.bf16.msra.mxu1 %v7621_v56  ;;  %v7713_v55 = vld [vmem:[%s10644_s1 + $0x100c] ss:$16 sps:$4 sm:$0xff]   ;;  %v942_v56 = vcombine.high %v9763_v51, %v9763_v51 }
 0x1c8   :  { %5229 = vmatprep.subr.bf16.mxu0 %v7626_v47  ;;  %5762 = vmatprep.subr.bf16.mxu1 %v7629_v57  ;;  %v924_v47 = vcombine.high %v9570_v48, %v9570_v48  ;;  %v7708_v57 = vld [vmem:[%s10644_s1 + $0x1000] ss:$16 sps:$4 sm:$0xff]   ;;  %v7719_v48 = vld [vmem:[%s10644_s1 + $0x102c] ss:$16 sps:$4 sm:$0xff]  }
 0x1cb   :  { %5230 = vmatpush1.bf16.msra.mxu0 %v7624_v58  ;;  %5763 = vmatpush1.bf16.msra.mxu1 %v7627_v59  ;;  %v7711_v58 = vld [vmem:[%s10644_s1 + $0x1008] ss:$16 sps:$4 sm:$0xff]   ;;  %v7716_v59 = vld [vmem:[%s10644_s1 + $0x1024] ss:$16 sps:$4 sm:$0xff]  }
 0x1cc   :  { %5231 = vmatprep.subr.bf16.mxu0 %v7632_v60  ;;  %5764 = vmatprep.subr.bf16.mxu1 %v7635_v61  ;;  %v9794_v60 = vrot.slane %v942_v56, %v8276_v49  ;;  %v7714_v61 = vld [vmem:[%s10644_s1 + $0x1020] ss:$16 sps:$4 sm:$0xff]   ;;  %v7795_v56 = vld [vmem:[%s10644_s1 + $0x11c8] ss:$16 sps:$4 sm:$0xff]  }
 0x1cf   :  { %5232 = vmatpush1.bf16.msra.mxu0 %v7630_v62  ;;  %5765 = vmatpush1.bf16.msra.mxu1 %v7633_v63  ;;  %v7717_v62 = vld [vmem:[%s10644_s1 + $0x1028] ss:$16 sps:$4 sm:$0xff]   ;;  %v7722_v63 = vld [vmem:[%s10644_s1 + $0x1044] ss:$16 sps:$4 sm:$0xff]  }
 0x1d0   :  { %5233 = vmatprep.subr.bf16.mxu0 %v7638_v0  ;;  %5766 = vmatprep.subr.bf16.mxu1 %v7641_v1  ;;  %v7725_v0 = vld [vmem:[%s10644_s1 + $0x104c] ss:$16 sps:$4 sm:$0xff]   ;;  %v7720_v1 = vld [vmem:[%s10644_s1 + $0x1040] ss:$16 sps:$4 sm:$0xff]  }
 0x1d3   :  { %5234 = vmatpush1.bf16.msra.mxu0 %v7636_v2  ;;  %5767 = vmatpush1.bf16.msra.mxu1 %v7639_v3  ;;  %v7723_v2 = vld [vmem:[%s10644_s1 + $0x1048] ss:$16 sps:$4 sm:$0xff]   ;;  %v7728_v3 = vld [vmem:[%s10644_s1 + $0x1064] ss:$16 sps:$4 sm:$0xff]  }
 0x1d4   :  { %5235 = vmatprep.subr.bf16.mxu0 %v7644_v4  ;;  %5768 = vmatprep.subr.bf16.mxu1 %v7647_v5  ;;  %v7731_v4 = vld [vmem:[%s10644_s1 + $0x106c] ss:$16 sps:$4 sm:$0xff]   ;;  %v7726_v5 = vld [vmem:[%s10644_s1 + $0x1060] ss:$16 sps:$4 sm:$0xff]  }
 0x1d7   :  { %5236 = vmatpush1.bf16.msra.mxu0 %v7642_v6  ;;  %5769 = vmatpush1.bf16.msra.mxu1 %v7645_v7  ;;  %v7729_v6 = vld [vmem:[%s10644_s1 + $0x1068] ss:$16 sps:$4 sm:$0xff]   ;;  %v7734_v7 = vld [vmem:[%s10644_s1 + $0x1084] ss:$16 sps:$4 sm:$0xff]  }
 0x1d8   :  { %5237 = vmatprep.subr.bf16.mxu0 %v7650_v8  ;;  %5770 = vmatprep.subr.bf16.mxu1 %v7653_v9  ;;  %v7737_v8 = vld [vmem:[%s10644_s1 + $0x108c] ss:$16 sps:$4 sm:$0xff]   ;;  %v7732_v9 = vld [vmem:[%s10644_s1 + $0x1080] ss:$16 sps:$4 sm:$0xff]  }
 0x1db   :  { %5238 = vmatpush1.bf16.msra.mxu0 %v7648_v10  ;;  %5771 = vmatpush1.bf16.msra.mxu1 %v7651_v11  ;;  %v7735_v10 = vld [vmem:[%s10644_s1 + $0x1088] ss:$16 sps:$4 sm:$0xff]   ;;  %v7740_v11 = vld [vmem:[%s10644_s1 + $0x10a4] ss:$16 sps:$4 sm:$0xff]  }
 0x1dc   :  { %5239 = vmatprep.subr.bf16.mxu0 %v7656_v12  ;;  %5772 = vmatprep.subr.bf16.mxu1 %v7659_v52  ;;  %v7743_v12 = vld [vmem:[%s10644_s1 + $0x10ac] ss:$16 sps:$4 sm:$0xff]   ;;  %v7738_v52 = vld [vmem:[%s10644_s1 + $0x10a0] ss:$16 sps:$4 sm:$0xff]  }
 0x1df   :  { %5240 = vmatpush1.bf16.msra.mxu0 %v7654_v15  ;;  %5773 = vmatpush1.bf16.msra.mxu1 %v7657_v16  ;;  %v7741_v15 = vld [vmem:[%s10644_s1 + $0x10a8] ss:$16 sps:$4 sm:$0xff]   ;;  %v7746_v16 = vld [vmem:[%s10644_s1 + $0x10c4] ss:$16 sps:$4 sm:$0xff]  }
 0x1e0   :  { %5241 = vmatprep.subr.bf16.mxu0 %v7662_v17  ;;  %5774 = vmatprep.subr.bf16.mxu1 %v7665_v18  ;;  %v7749_v17 = vld [vmem:[%s10644_s1 + $0x10cc] ss:$16 sps:$4 sm:$0xff]   ;;  %v7744_v18 = vld [vmem:[%s10644_s1 + $0x10c0] ss:$16 sps:$4 sm:$0xff]  }
 0x1e3   :  { %5242 = vmatpush1.bf16.msra.mxu0 %v7660_v19  ;;  %5775 = vmatpush1.bf16.msra.mxu1 %v7663_v20  ;;  %v7747_v19 = vld [vmem:[%s10644_s1 + $0x10c8] ss:$16 sps:$4 sm:$0xff]   ;;  %v7752_v20 = vld [vmem:[%s10644_s1 + $0x10e4] ss:$16 sps:$4 sm:$0xff]  }
 0x1e4   :  { %5243 = vmatprep.subr.bf16.mxu0 %v7668_v22  ;;  %5776 = vmatprep.subr.bf16.mxu1 %v7671_v23  ;;  %v7755_v22 = vld [vmem:[%s10644_s1 + $0x10ec] ss:$16 sps:$4 sm:$0xff]   ;;  %v7750_v23 = vld [vmem:[%s10644_s1 + $0x10e0] ss:$16 sps:$4 sm:$0xff]  }
 0x1e7   :  { %5244 = vmatpush1.bf16.msra.mxu0 %v7666_v24  ;;  %5777 = vmatpush1.bf16.msra.mxu1 %v7669_v13  ;;  %v7753_v24 = vld [vmem:[%s10644_s1 + $0x10e8] ss:$16 sps:$4 sm:$0xff]   ;;  %v7758_v13 = vld [vmem:[%s10644_s1 + $0x1104] ss:$16 sps:$4 sm:$0xff]  }
 0x1e8   :  { %5245 = vmatprep.subr.bf16.mxu0 %v7674_v27  ;;  %5778 = vmatprep.subr.bf16.mxu1 %v7677_v28  ;;  %v7761_v27 = vld [vmem:[%s10644_s1 + $0x110c] ss:$16 sps:$4 sm:$0xff]   ;;  %v7756_v28 = vld [vmem:[%s10644_s1 + $0x1100] ss:$16 sps:$4 sm:$0xff]  }
 0x1eb   :  { %5246 = vmatpush1.bf16.msra.mxu0 %v7672_v29  ;;  %5779 = vmatpush1.bf16.msra.mxu1 %v7675_v14  ;;  %v7759_v29 = vld [vmem:[%s10644_s1 + $0x1108] ss:$16 sps:$4 sm:$0xff]   ;;  %v7764_v14 = vld [vmem:[%s10644_s1 + $0x1124] ss:$16 sps:$4 sm:$0xff]  }
 0x1ec   :  { %5247 = vmatprep.subr.bf16.mxu0 %v7680_v30  ;;  %5780 = vmatprep.subr.bf16.mxu1 %v7683_v31  ;;  %v7767_v30 = vld [vmem:[%s10644_s1 + $0x112c] ss:$16 sps:$4 sm:$0xff]   ;;  %v7762_v31 = vld [vmem:[%s10644_s1 + $0x1120] ss:$16 sps:$4 sm:$0xff]  }
 0x1ef   :  { %5248 = vmatpush1.bf16.msra.mxu0 %v7678_v25  ;;  %5781 = vmatpush1.bf16.msra.mxu1 %v7681_v32  ;;  %v7765_v25 = vld [vmem:[%s10644_s1 + $0x1128] ss:$16 sps:$4 sm:$0xff]   ;;  %v7770_v32 = vld [vmem:[%s10644_s1 + $0x1144] ss:$16 sps:$4 sm:$0xff]  }
 0x1f0   :  { %5249 = vmatprep.subr.bf16.mxu0 %v7686_v33  ;;  %5782 = vmatprep.subr.bf16.mxu1 %v7689_v26  ;;  %v7773_v33 = vld [vmem:[%s10644_s1 + $0x114c] ss:$16 sps:$4 sm:$0xff]   ;;  %v7768_v26 = vld [vmem:[%s10644_s1 + $0x1140] ss:$16 sps:$4 sm:$0xff]  }
 0x1f3   :  { %5250 = vmatpush1.bf16.msra.mxu0 %v7684_v36  ;;  %5783 = vmatpush1.bf16.msra.mxu1 %v7687_v37  ;;  %v7771_v36 = vld [vmem:[%s10644_s1 + $0x1148] ss:$16 sps:$4 sm:$0xff]   ;;  %v7776_v37 = vld [vmem:[%s10644_s1 + $0x1164] ss:$16 sps:$4 sm:$0xff]  }
 0x1f4   :  { %5251 = vmatprep.subr.bf16.mxu0 %v7692_v21  ;;  %5784 = vmatprep.subr.bf16.mxu1 %v7695_v39  ;;  %v7779_v21 = vld [vmem:[%s10644_s1 + $0x116c] ss:$16 sps:$4 sm:$0xff]   ;;  %v7774_v39 = vld [vmem:[%s10644_s1 + $0x1160] ss:$16 sps:$4 sm:$0xff]  }
 0x1f7   :  { %5252 = vmatpush1.bf16.msra.mxu0 %v7690_v40  ;;  %5785 = vmatpush1.bf16.msra.mxu1 %v7693_v41  ;;  %v7777_v40 = vld [vmem:[%s10644_s1 + $0x1168] ss:$16 sps:$4 sm:$0xff]   ;;  %v7782_v41 = vld [vmem:[%s10644_s1 + $0x1184] ss:$16 sps:$4 sm:$0xff]  }
 0x1f8   :  { %5253 = vmatprep.subr.bf16.mxu0 %v7698_v34  ;;  %5786 = vmatprep.subr.bf16.mxu1 %v7701_v43  ;;  %v7785_v34 = vld [vmem:[%s10644_s1 + $0x118c] ss:$16 sps:$4 sm:$0xff]   ;;  %v7780_v43 = vld [vmem:[%s10644_s1 + $0x1180] ss:$16 sps:$4 sm:$0xff]  }
 0x1fb   :  { %5254 = vmatpush1.bf16.msra.mxu0 %v7696_v45  ;;  %5787 = vmatpush1.bf16.msra.mxu1 %v7699_v46  ;;  %v7783_v45 = vld [vmem:[%s10644_s1 + $0x1188] ss:$16 sps:$4 sm:$0xff]   ;;  %v7788_v46 = vld [vmem:[%s10644_s1 + $0x11a4] ss:$16 sps:$4 sm:$0xff]  }
 0x1fc   :  { %5255 = vmatprep.subr.bf16.mxu0 %v7704_v35  ;;  %5788 = vmatprep.subr.bf16.mxu1 %v7707_v50  ;;  %v7791_v35 = vld [vmem:[%s10644_s1 + $0x11ac] ss:$16 sps:$4 sm:$0xff]   ;;  %v7786_v50 = vld [vmem:[%s10644_s1 + $0x11a0] ss:$16 sps:$4 sm:$0xff]  }
 0x1ff   :  { %5256 = vmatpush1.bf16.msra.mxu0 %v7702_v53  ;;  %5789 = vmatpush1.bf16.msra.mxu1 %v7705_v38  ;;  %v7789_v53 = vld [vmem:[%s10644_s1 + $0x11a8] ss:$16 sps:$4 sm:$0xff]   ;;  %v7794_v38 = vld [vmem:[%s10644_s1 + $0x11c4] ss:$16 sps:$4 sm:$0xff]  }
 0x200   :  { %5266 = vmatprep.subr.bf16.mxu0 %v7710_v54  ;;  %5799 = vmatprep.subr.bf16.mxu1 %v7713_v55  ;;  %v7797_v54 = vld [vmem:[%s10644_s1 + $0x11cc] ss:$16 sps:$4 sm:$0xff]   ;;  %v7792_v55 = vld [vmem:[%s10644_s1 + $0x11c0] ss:$16 sps:$4 sm:$0xff]  }
 0x202   :  { %5258 = vmatmul.mubr.bf16.vlgmr.msra.gmra.mrb[0].mxu0 %v924_v47  ;;  %5791 = vmatmul.mubr.bf16.vlgmr.msra.gmra.mrb[0].mxu1 %v924_v47  ;;  %v7800_v47 = vld [vmem:[%s10644_s1 + $0x11e4] ss:$16 sps:$4 sm:$0xff]  }
 0x203   :  { %5267 = vmatpush1.bf16.msra.mxu0 %v7708_v57  ;;  %5800 = vmatpush1.bf16.msra.mxu1 %v7711_v58  ;;  %v7803_v57 = vld [vmem:[%s10644_s1 + $0x11ec] ss:$16 sps:$4 sm:$0xff]   ;;  %v7798_v58 = vld [vmem:[%s10644_s1 + $0x11e0] ss:$16 sps:$4 sm:$0xff]  }
 0x204   :  { %5268 = vmatprep.subr.bf16.mxu0 %v7716_v59  ;;  %5801 = vmatprep.subr.bf16.mxu1 %v7719_v48  ;;  %v7801_v59 = vld [vmem:[%s10644_s1 + $0x11e8] ss:$16 sps:$4 sm:$0xff]   ;;  %v7806_v48 = vld [vmem:[%s10644_s1 + $0x1204] ss:$16 sps:$4 sm:$0xff]  }
 0x205   :  { %5298 = vmatprep.mubr.bf16.mxu0 %v9794_v60  ;;  %5831 = vmatprep.mubr.bf16.mxu1 %v9794_v60 }
 0x207   :  { %5269 = vmatpush1.bf16.msra.mxu0 %v7714_v61  ;;  %5802 = vmatpush1.bf16.msra.mxu1 %v7717_v62  ;;  %v7809_v61 = vld [vmem:[%s10644_s1 + $0x120c] ss:$16 sps:$4 sm:$0xff]   ;;  %v9980_v62 = vrot.slane %v9763_v51, %v8276_v49 }
 0x208   :  { %5270 = vmatprep.subr.bf16.mxu0 %v7722_v63  ;;  %5803 = vmatprep.subr.bf16.mxu1 %v7725_v0  ;;  %v7804_v63 = vld [vmem:[%s10644_s1 + $0x1200] ss:$16 sps:$4 sm:$0xff]   ;;  %v7807_v0 = vld [vmem:[%s10644_s1 + $0x1208] ss:$16 sps:$4 sm:$0xff]   ;;  %v7815_v51 = vld [vmem:[%s10644_s1 + $0x122c] ss:$16 sps:$4 sm:$0xff]  }
 0x20b   :  { %5271 = vmatpush1.bf16.msra.mxu0 %v7720_v1  ;;  %5804 = vmatpush1.bf16.msra.mxu1 %v7723_v2  ;;  %v7812_v1 = vld [vmem:[%s10644_s1 + $0x1224] ss:$16 sps:$4 sm:$0xff]   ;;  %v974_v2 = vcombine.high %v9794_v60, %v9794_v60 }
 0x20c   :  { %5272 = vmatprep.subr.bf16.mxu0 %v7728_v3  ;;  %5805 = vmatprep.subr.bf16.mxu1 %v7731_v4  ;;  %v7810_v3 = vld [vmem:[%s10644_s1 + $0x1220] ss:$16 sps:$4 sm:$0xff]   ;;  %v7813_v4 = vld [vmem:[%s10644_s1 + $0x1228] ss:$16 sps:$4 sm:$0xff]   ;;  %v7818_v60 = vld [vmem:[%s10644_s1 + $0x1244] ss:$16 sps:$4 sm:$0xff]  }
 0x20f   :  { %5273 = vmatpush1.bf16.msra.mxu0 %v7726_v5  ;;  %5806 = vmatpush1.bf16.msra.mxu1 %v7729_v6  ;;  %v7821_v5 = vld [vmem:[%s10644_s1 + $0x124c] ss:$16 sps:$4 sm:$0xff]   ;;  %v7816_v6 = vld [vmem:[%s10644_s1 + $0x1240] ss:$16 sps:$4 sm:$0xff]  }
 0x210   :  { %5274 = vmatprep.subr.bf16.mxu0 %v7734_v7  ;;  %5807 = vmatprep.subr.bf16.mxu1 %v7737_v8  ;;  %v7819_v7 = vld [vmem:[%s10644_s1 + $0x1248] ss:$16 sps:$4 sm:$0xff]   ;;  %v7824_v8 = vld [vmem:[%s10644_s1 + $0x1264] ss:$16 sps:$4 sm:$0xff]  }
 0x213   :  { %5275 = vmatpush1.bf16.msra.mxu0 %v7732_v9  ;;  %5808 = vmatpush1.bf16.msra.mxu1 %v7735_v10  ;;  %v7827_v9 = vld [vmem:[%s10644_s1 + $0x126c] ss:$16 sps:$4 sm:$0xff]   ;;  %v7822_v10 = vld [vmem:[%s10644_s1 + $0x1260] ss:$16 sps:$4 sm:$0xff]  }
 0x214   :  { %5276 = vmatprep.subr.bf16.mxu0 %v7740_v11  ;;  %5809 = vmatprep.subr.bf16.mxu1 %v7743_v12  ;;  %v7825_v11 = vld [vmem:[%s10644_s1 + $0x1268] ss:$16 sps:$4 sm:$0xff]   ;;  %v7830_v12 = vld [vmem:[%s10644_s1 + $0x1284] ss:$16 sps:$4 sm:$0xff]  }
 0x217   :  { %5277 = vmatpush1.bf16.msra.mxu0 %v7738_v52  ;;  %5810 = vmatpush1.bf16.msra.mxu1 %v7741_v15  ;;  %v7833_v52 = vld [vmem:[%s10644_s1 + $0x128c] ss:$16 sps:$4 sm:$0xff]   ;;  %v7828_v15 = vld [vmem:[%s10644_s1 + $0x1280] ss:$16 sps:$4 sm:$0xff]  }
 0x218   :  { %5278 = vmatprep.subr.bf16.mxu0 %v7746_v16  ;;  %5811 = vmatprep.subr.bf16.mxu1 %v7749_v17  ;;  %v7831_v16 = vld [vmem:[%s10644_s1 + $0x1288] ss:$16 sps:$4 sm:$0xff]   ;;  %v7836_v17 = vld [vmem:[%s10644_s1 + $0x12a4] ss:$16 sps:$4 sm:$0xff]  }
 0x21b   :  { %5279 = vmatpush1.bf16.msra.mxu0 %v7744_v18  ;;  %5812 = vmatpush1.bf16.msra.mxu1 %v7747_v19  ;;  %v7839_v18 = vld [vmem:[%s10644_s1 + $0x12ac] ss:$16 sps:$4 sm:$0xff]   ;;  %v7834_v19 = vld [vmem:[%s10644_s1 + $0x12a0] ss:$16 sps:$4 sm:$0xff]  }
 0x21c   :  { %5280 = vmatprep.subr.bf16.mxu0 %v7752_v20  ;;  %5813 = vmatprep.subr.bf16.mxu1 %v7755_v22  ;;  %v7837_v20 = vld [vmem:[%s10644_s1 + $0x12a8] ss:$16 sps:$4 sm:$0xff]   ;;  %v7842_v22 = vld [vmem:[%s10644_s1 + $0x12c4] ss:$16 sps:$4 sm:$0xff]  }
 0x21f   :  { %5281 = vmatpush1.bf16.msra.mxu0 %v7750_v23  ;;  %5814 = vmatpush1.bf16.msra.mxu1 %v7753_v24  ;;  %v7845_v23 = vld [vmem:[%s10644_s1 + $0x12cc] ss:$16 sps:$4 sm:$0xff]   ;;  %v7840_v24 = vld [vmem:[%s10644_s1 + $0x12c0] ss:$16 sps:$4 sm:$0xff]  }
 0x220   :  { %5282 = vmatprep.subr.bf16.mxu0 %v7758_v13  ;;  %5815 = vmatprep.subr.bf16.mxu1 %v7761_v27  ;;  %v7843_v13 = vld [vmem:[%s10644_s1 + $0x12c8] ss:$16 sps:$4 sm:$0xff]   ;;  %v7848_v27 = vld [vmem:[%s10644_s1 + $0x12e4] ss:$16 sps:$4 sm:$0xff]  }
 0x223   :  { %5283 = vmatpush1.bf16.msra.mxu0 %v7756_v28  ;;  %5816 = vmatpush1.bf16.msra.mxu1 %v7759_v29  ;;  %v7851_v28 = vld [vmem:[%s10644_s1 + $0x12ec] ss:$16 sps:$4 sm:$0xff]   ;;  %v7846_v29 = vld [vmem:[%s10644_s1 + $0x12e0] ss:$16 sps:$4 sm:$0xff]  }
 0x224   :  { %5284 = vmatprep.subr.bf16.mxu0 %v7764_v14  ;;  %5817 = vmatprep.subr.bf16.mxu1 %v7767_v30  ;;  %v7849_v14 = vld [vmem:[%s10644_s1 + $0x12e8] ss:$16 sps:$4 sm:$0xff]   ;;  %v7854_v30 = vld [vmem:[%s10644_s1 + $0x1304] ss:$16 sps:$4 sm:$0xff]  }
 0x227   :  { %5285 = vmatpush1.bf16.msra.mxu0 %v7762_v31  ;;  %5818 = vmatpush1.bf16.msra.mxu1 %v7765_v25  ;;  %v7857_v31 = vld [vmem:[%s10644_s1 + $0x130c] ss:$16 sps:$4 sm:$0xff]   ;;  %v7852_v25 = vld [vmem:[%s10644_s1 + $0x1300] ss:$16 sps:$4 sm:$0xff]  }
 0x228   :  { %5286 = vmatprep.subr.bf16.mxu0 %v7770_v32  ;;  %5819 = vmatprep.subr.bf16.mxu1 %v7773_v33  ;;  %v7855_v32 = vld [vmem:[%s10644_s1 + $0x1308] ss:$16 sps:$4 sm:$0xff]   ;;  %v7860_v33 = vld [vmem:[%s10644_s1 + $0x1324] ss:$16 sps:$4 sm:$0xff]  }
 0x22b   :  { %5287 = vmatpush1.bf16.msra.mxu0 %v7768_v26  ;;  %5820 = vmatpush1.bf16.msra.mxu1 %v7771_v36  ;;  %v7863_v26 = vld [vmem:[%s10644_s1 + $0x132c] ss:$16 sps:$4 sm:$0xff]   ;;  %v7858_v36 = vld [vmem:[%s10644_s1 + $0x1320] ss:$16 sps:$4 sm:$0xff]  }
 0x22c   :  { %5288 = vmatprep.subr.bf16.mxu0 %v7776_v37  ;;  %5821 = vmatprep.subr.bf16.mxu1 %v7779_v21  ;;  %v7861_v37 = vld [vmem:[%s10644_s1 + $0x1328] ss:$16 sps:$4 sm:$0xff]   ;;  %v7866_v21 = vld [vmem:[%s10644_s1 + $0x1344] ss:$16 sps:$4 sm:$0xff]  }
 0x22f   :  { %5289 = vmatpush1.bf16.msra.mxu0 %v7774_v39  ;;  %5822 = vmatpush1.bf16.msra.mxu1 %v7777_v40  ;;  %v7869_v39 = vld [vmem:[%s10644_s1 + $0x134c] ss:$16 sps:$4 sm:$0xff]   ;;  %v7864_v40 = vld [vmem:[%s10644_s1 + $0x1340] ss:$16 sps:$4 sm:$0xff]  }
 0x230   :  { %5290 = vmatprep.subr.bf16.mxu0 %v7782_v41  ;;  %5823 = vmatprep.subr.bf16.mxu1 %v7785_v34  ;;  %v7867_v41 = vld [vmem:[%s10644_s1 + $0x1348] ss:$16 sps:$4 sm:$0xff]   ;;  %v7872_v34 = vld [vmem:[%s10644_s1 + $0x1364] ss:$16 sps:$4 sm:$0xff]  }
 0x233   :  { %5291 = vmatpush1.bf16.msra.mxu0 %v7780_v43  ;;  %5824 = vmatpush1.bf16.msra.mxu1 %v7783_v45  ;;  %v7875_v43 = vld [vmem:[%s10644_s1 + $0x136c] ss:$16 sps:$4 sm:$0xff]   ;;  %v7870_v45 = vld [vmem:[%s10644_s1 + $0x1360] ss:$16 sps:$4 sm:$0xff]  }
 0x234   :  { %5292 = vmatprep.subr.bf16.mxu0 %v7788_v46  ;;  %5825 = vmatprep.subr.bf16.mxu1 %v7791_v35  ;;  %v7873_v46 = vld [vmem:[%s10644_s1 + $0x1368] ss:$16 sps:$4 sm:$0xff]   ;;  %v7878_v35 = vld [vmem:[%s10644_s1 + $0x1384] ss:$16 sps:$4 sm:$0xff]  }
 0x237   :  { %5293 = vmatpush1.bf16.msra.mxu0 %v7786_v50  ;;  %5826 = vmatpush1.bf16.msra.mxu1 %v7789_v53  ;;  %v7881_v50 = vld [vmem:[%s10644_s1 + $0x138c] ss:$16 sps:$4 sm:$0xff]   ;;  %v7876_v53 = vld [vmem:[%s10644_s1 + $0x1380] ss:$16 sps:$4 sm:$0xff]  }
 0x238   :  { %5294 = vmatprep.subr.bf16.mxu0 %v7794_v38  ;;  %5827 = vmatprep.subr.bf16.mxu1 %v7797_v54  ;;  %v7879_v38 = vld [vmem:[%s10644_s1 + $0x1388] ss:$16 sps:$4 sm:$0xff]   ;;  %v7884_v54 = vld [vmem:[%s10644_s1 + $0x13a4] ss:$16 sps:$4 sm:$0xff]  }
 0x23b   :  { %5295 = vmatpush1.bf16.msra.mxu0 %v7792_v55  ;;  %5828 = vmatpush1.bf16.msra.mxu1 %v7795_v56  ;;  %v7887_v55 = vld [vmem:[%s10644_s1 + $0x13ac] ss:$16 sps:$4 sm:$0xff]   ;;  %v7882_v56 = vld [vmem:[%s10644_s1 + $0x13a0] ss:$16 sps:$4 sm:$0xff]  }
 0x23c   :  { %5296 = vmatprep.subr.bf16.mxu0 %v7800_v47  ;;  %5829 = vmatprep.subr.bf16.mxu1 %v7803_v57  ;;  %v7885_v47 = vld [vmem:[%s10644_s1 + $0x13a8] ss:$16 sps:$4 sm:$0xff]   ;;  %v7890_v57 = vld [vmem:[%s10644_s1 + $0x13c4] ss:$16 sps:$4 sm:$0xff]  }
 0x23f   :  { %5297 = vmatpush1.bf16.msra.mxu0 %v7798_v58  ;;  %5830 = vmatpush1.bf16.msra.mxu1 %v7801_v59  ;;  %v7893_v58 = vld [vmem:[%s10644_s1 + $0x13cc] ss:$16 sps:$4 sm:$0xff]   ;;  %v927_v59 = vcombine.high %v9747_v44, %v9747_v44 }
 0x240   :  { %5307 = vmatprep.subr.bf16.mxu0 %v7806_v48  ;;  %5840 = vmatprep.subr.bf16.mxu1 %v7809_v61  ;;  %v7888_v48 = vld [vmem:[%s10644_s1 + $0x13c0] ss:$16 sps:$4 sm:$0xff]   ;;  %v7891_v61 = vld [vmem:[%s10644_s1 + $0x13c8] ss:$16 sps:$4 sm:$0xff]   ;;  %v7899_v44 = vld [vmem:[%s10644_s1 + $0x13ec] ss:$16 sps:$4 sm:$0xff]  }
 0x242   :  { %5299 = vmatmul.mubr.bf16.vlgmr.msra.gmra.mrb[0].mxu0 %v9980_v62  ;;  %5832 = vmatmul.mubr.bf16.vlgmr.msra.gmra.mrb[0].mxu1 %v9980_v62 }
 0x243   :  { %5308 = vmatpush1.bf16.msra.mxu0 %v7804_v63  ;;  %5841 = vmatpush1.bf16.msra.mxu1 %v7807_v0  ;;  %v7896_v63 = vld [vmem:[%s10644_s1 + $0x13e4] ss:$16 sps:$4 sm:$0xff]   ;;  %v10169_v0 = vrot.slane %v927_v59, %v8276_v49  ;;  %v7975_v59 = vld [vmem:[%s10644_s1 + $0x1588] ss:$16 sps:$4 sm:$0xff]  }
 0x244   :  { %5309 = vmatprep.subr.bf16.mxu0 %v7812_v1  ;;  %5842 = vmatprep.subr.bf16.mxu1 %v7815_v51  ;;  %v7894_v1 = vld [vmem:[%s10644_s1 + $0x13e0] ss:$16 sps:$4 sm:$0xff]   ;;  %v7897_v51 = vld [vmem:[%s10644_s1 + $0x13e8] ss:$16 sps:$4 sm:$0xff]  }
 0x245   :  { %5339 = vmatprep.mubr.bf16.mxu0 %v974_v2  ;;  %5872 = vmatprep.mubr.bf16.mxu1 %v974_v2  ;;  %v7902_v2 = vld [vmem:[%s10644_s1 + $0x1404] ss:$16 sps:$4 sm:$0xff]  }
 0x247   :  { %5310 = vmatpush1.bf16.msra.mxu0 %v7810_v3  ;;  %5843 = vmatpush1.bf16.msra.mxu1 %v7813_v4  ;;  %v7905_v3 = vld [vmem:[%s10644_s1 + $0x140c] ss:$16 sps:$4 sm:$0xff]   ;;  %v943_v4 = vcombine.high %v10169_v0, %v10169_v0 }
 0x248   :  { %5311 = vmatprep.subr.bf16.mxu0 %v7818_v60  ;;  %5844 = vmatprep.subr.bf16.mxu1 %v7821_v5  ;;  %v972_v60 = vcombine.high %v9980_v62, %v9980_v62  ;;  %v7900_v5 = vld [vmem:[%s10644_s1 + $0x1400] ss:$16 sps:$4 sm:$0xff]   ;;  %v7911_v62 = vld [vmem:[%s10644_s1 + $0x142c] ss:$16 sps:$4 sm:$0xff]  }
 0x24b   :  { %5312 = vmatpush1.bf16.msra.mxu0 %v7816_v6  ;;  %5845 = vmatpush1.bf16.msra.mxu1 %v7819_v7  ;;  %v7903_v6 = vld [vmem:[%s10644_s1 + $0x1408] ss:$16 sps:$4 sm:$0xff]   ;;  %v7908_v7 = vld [vmem:[%s10644_s1 + $0x1424] ss:$16 sps:$4 sm:$0xff]  }
 0x24c   :  { %5313 = vmatprep.subr.bf16.mxu0 %v7824_v8  ;;  %5846 = vmatprep.subr.bf16.mxu1 %v7827_v9  ;;  %v10200_v8 = vrot.slane %v943_v4, %v8276_v49  ;;  %v7906_v9 = vld [vmem:[%s10644_s1 + $0x1420] ss:$16 sps:$4 sm:$0xff]   ;;  %v7992_v4 = vld [vmem:[%s10644_s1 + $0x15e4] ss:$16 sps:$4 sm:$0xff]  }
 0x24f   :  { %5314 = vmatpush1.bf16.msra.mxu0 %v7822_v10  ;;  %5847 = vmatpush1.bf16.msra.mxu1 %v7825_v11  ;;  %v7909_v10 = vld [vmem:[%s10644_s1 + $0x1428] ss:$16 sps:$4 sm:$0xff]   ;;  %v7914_v11 = vld [vmem:[%s10644_s1 + $0x1444] ss:$16 sps:$4 sm:$0xff]  }
 0x250   :  { %5315 = vmatprep.subr.bf16.mxu0 %v7830_v12  ;;  %5848 = vmatprep.subr.bf16.mxu1 %v7833_v52  ;;  %v7917_v12 = vld [vmem:[%s10644_s1 + $0x144c] ss:$16 sps:$4 sm:$0xff]   ;;  %v7912_v52 = vld [vmem:[%s10644_s1 + $0x1440] ss:$16 sps:$4 sm:$0xff]  }
 0x253   :  { %5316 = vmatpush1.bf16.msra.mxu0 %v7828_v15  ;;  %5849 = vmatpush1.bf16.msra.mxu1 %v7831_v16  ;;  %v7915_v15 = vld [vmem:[%s10644_s1 + $0x1448] ss:$16 sps:$4 sm:$0xff]   ;;  %v7920_v16 = vld [vmem:[%s10644_s1 + $0x1464] ss:$16 sps:$4 sm:$0xff]  }
 0x254   :  { %5317 = vmatprep.subr.bf16.mxu0 %v7836_v17  ;;  %5850 = vmatprep.subr.bf16.mxu1 %v7839_v18  ;;  %v7923_v17 = vld [vmem:[%s10644_s1 + $0x146c] ss:$16 sps:$4 sm:$0xff]   ;;  %v7918_v18 = vld [vmem:[%s10644_s1 + $0x1460] ss:$16 sps:$4 sm:$0xff]  }
 0x257   :  { %5318 = vmatpush1.bf16.msra.mxu0 %v7834_v19  ;;  %5851 = vmatpush1.bf16.msra.mxu1 %v7837_v20  ;;  %v7921_v19 = vld [vmem:[%s10644_s1 + $0x1468] ss:$16 sps:$4 sm:$0xff]   ;;  %v7926_v20 = vld [vmem:[%s10644_s1 + $0x1484] ss:$16 sps:$4 sm:$0xff]  }
 0x258   :  { %5319 = vmatprep.subr.bf16.mxu0 %v7842_v22  ;;  %5852 = vmatprep.subr.bf16.mxu1 %v7845_v23  ;;  %v7929_v22 = vld [vmem:[%s10644_s1 + $0x148c] ss:$16 sps:$4 sm:$0xff]   ;;  %v7924_v23 = vld [vmem:[%s10644_s1 + $0x1480] ss:$16 sps:$4 sm:$0xff]  }
 0x25b   :  { %5320 = vmatpush1.bf16.msra.mxu0 %v7840_v24  ;;  %5853 = vmatpush1.bf16.msra.mxu1 %v7843_v13  ;;  %v7927_v24 = vld [vmem:[%s10644_s1 + $0x1488] ss:$16 sps:$4 sm:$0xff]   ;;  %v7932_v13 = vld [vmem:[%s10644_s1 + $0x14a4] ss:$16 sps:$4 sm:$0xff]  }
 0x25c   :  { %5321 = vmatprep.subr.bf16.mxu0 %v7848_v27  ;;  %5854 = vmatprep.subr.bf16.mxu1 %v7851_v28  ;;  %v7935_v27 = vld [vmem:[%s10644_s1 + $0x14ac] ss:$16 sps:$4 sm:$0xff]   ;;  %v7930_v28 = vld [vmem:[%s10644_s1 + $0x14a0] ss:$16 sps:$4 sm:$0xff]  }
 0x25f   :  { %5322 = vmatpush1.bf16.msra.mxu0 %v7846_v29  ;;  %5855 = vmatpush1.bf16.msra.mxu1 %v7849_v14  ;;  %v7933_v29 = vld [vmem:[%s10644_s1 + $0x14a8] ss:$16 sps:$4 sm:$0xff]   ;;  %v7938_v14 = vld [vmem:[%s10644_s1 + $0x14c4] ss:$16 sps:$4 sm:$0xff]  }
 0x260   :  { %5323 = vmatprep.subr.bf16.mxu0 %v7854_v30  ;;  %5856 = vmatprep.subr.bf16.mxu1 %v7857_v31  ;;  %v7941_v30 = vld [vmem:[%s10644_s1 + $0x14cc] ss:$16 sps:$4 sm:$0xff]   ;;  %v7936_v31 = vld [vmem:[%s10644_s1 + $0x14c0] ss:$16 sps:$4 sm:$0xff]  }
 0x263   :  { %5324 = vmatpush1.bf16.msra.mxu0 %v7852_v25  ;;  %5857 = vmatpush1.bf16.msra.mxu1 %v7855_v32  ;;  %v7939_v25 = vld [vmem:[%s10644_s1 + $0x14c8] ss:$16 sps:$4 sm:$0xff]   ;;  %v7944_v32 = vld [vmem:[%s10644_s1 + $0x14e4] ss:$16 sps:$4 sm:$0xff]  }
 0x264   :  { %5325 = vmatprep.subr.bf16.mxu0 %v7860_v33  ;;  %5858 = vmatprep.subr.bf16.mxu1 %v7863_v26  ;;  %v7947_v33 = vld [vmem:[%s10644_s1 + $0x14ec] ss:$16 sps:$4 sm:$0xff]   ;;  %v7942_v26 = vld [vmem:[%s10644_s1 + $0x14e0] ss:$16 sps:$4 sm:$0xff]  }
 0x267   :  { %5326 = vmatpush1.bf16.msra.mxu0 %v7858_v36  ;;  %5859 = vmatpush1.bf16.msra.mxu1 %v7861_v37  ;;  %v7945_v36 = vld [vmem:[%s10644_s1 + $0x14e8] ss:$16 sps:$4 sm:$0xff]   ;;  %v7950_v37 = vld [vmem:[%s10644_s1 + $0x1504] ss:$16 sps:$4 sm:$0xff]  }
 0x268   :  { %5327 = vmatprep.subr.bf16.mxu0 %v7866_v21  ;;  %5860 = vmatprep.subr.bf16.mxu1 %v7869_v39  ;;  %v7953_v21 = vld [vmem:[%s10644_s1 + $0x150c] ss:$16 sps:$4 sm:$0xff]   ;;  %v7948_v39 = vld [vmem:[%s10644_s1 + $0x1500] ss:$16 sps:$4 sm:$0xff]  }
 0x26b   :  { %5328 = vmatpush1.bf16.msra.mxu0 %v7864_v40  ;;  %5861 = vmatpush1.bf16.msra.mxu1 %v7867_v41  ;;  %v7951_v40 = vld [vmem:[%s10644_s1 + $0x1508] ss:$16 sps:$4 sm:$0xff]   ;;  %v7956_v41 = vld [vmem:[%s10644_s1 + $0x1524] ss:$16 sps:$4 sm:$0xff]  }
 0x26c   :  { %5329 = vmatprep.subr.bf16.mxu0 %v7872_v34  ;;  %5862 = vmatprep.subr.bf16.mxu1 %v7875_v43  ;;  %v7959_v34 = vld [vmem:[%s10644_s1 + $0x152c] ss:$16 sps:$4 sm:$0xff]   ;;  %v7954_v43 = vld [vmem:[%s10644_s1 + $0x1520] ss:$16 sps:$4 sm:$0xff]  }
 0x26f   :  { %5330 = vmatpush1.bf16.msra.mxu0 %v7870_v45  ;;  %5863 = vmatpush1.bf16.msra.mxu1 %v7873_v46  ;;  %v7957_v45 = vld [vmem:[%s10644_s1 + $0x1528] ss:$16 sps:$4 sm:$0xff]   ;;  %v7962_v46 = vld [vmem:[%s10644_s1 + $0x1544] ss:$16 sps:$4 sm:$0xff]  }
 0x270   :  { %5331 = vmatprep.subr.bf16.mxu0 %v7878_v35  ;;  %5864 = vmatprep.subr.bf16.mxu1 %v7881_v50  ;;  %v7965_v35 = vld [vmem:[%s10644_s1 + $0x154c] ss:$16 sps:$4 sm:$0xff]   ;;  %v7960_v50 = vld [vmem:[%s10644_s1 + $0x1540] ss:$16 sps:$4 sm:$0xff]  }
 0x273   :  { %5332 = vmatpush1.bf16.msra.mxu0 %v7876_v53  ;;  %5865 = vmatpush1.bf16.msra.mxu1 %v7879_v38  ;;  %v7963_v53 = vld [vmem:[%s10644_s1 + $0x1548] ss:$16 sps:$4 sm:$0xff]   ;;  %v7968_v38 = vld [vmem:[%s10644_s1 + $0x1564] ss:$16 sps:$4 sm:$0xff]  }
 0x274   :  { %5333 = vmatprep.subr.bf16.mxu0 %v7884_v54  ;;  %5866 = vmatprep.subr.bf16.mxu1 %v7887_v55  ;;  %v7971_v54 = vld [vmem:[%s10644_s1 + $0x156c] ss:$16 sps:$4 sm:$0xff]   ;;  %v7966_v55 = vld [vmem:[%s10644_s1 + $0x1560] ss:$16 sps:$4 sm:$0xff]  }
 0x277   :  { %5334 = vmatpush1.bf16.msra.mxu0 %v7882_v56  ;;  %5867 = vmatpush1.bf16.msra.mxu1 %v7885_v47  ;;  %v7969_v56 = vld [vmem:[%s10644_s1 + $0x1568] ss:$16 sps:$4 sm:$0xff]   ;;  %v7974_v47 = vld [vmem:[%s10644_s1 + $0x1584] ss:$16 sps:$4 sm:$0xff]  }
 0x278   :  { %5335 = vmatprep.subr.bf16.mxu0 %v7890_v57  ;;  %5868 = vmatprep.subr.bf16.mxu1 %v7893_v58  ;;  %v7977_v57 = vld [vmem:[%s10644_s1 + $0x158c] ss:$16 sps:$4 sm:$0xff]   ;;  %v7972_v58 = vld [vmem:[%s10644_s1 + $0x1580] ss:$16 sps:$4 sm:$0xff]  }
 0x27b   :  { %5336 = vmatpush1.bf16.msra.mxu0 %v7888_v48  ;;  %5869 = vmatpush1.bf16.msra.mxu1 %v7891_v61  ;;  %v7980_v48 = vld [vmem:[%s10644_s1 + $0x15a4] ss:$16 sps:$4 sm:$0xff]   ;;  %v7983_v61 = vld [vmem:[%s10644_s1 + $0x15ac] ss:$16 sps:$4 sm:$0xff]  }
 0x27c   :  { %5337 = vmatprep.subr.bf16.mxu0 %v7896_v63  ;;  %5870 = vmatprep.subr.bf16.mxu1 %v7899_v44  ;;  %v7978_v63 = vld [vmem:[%s10644_s1 + $0x15a0] ss:$16 sps:$4 sm:$0xff]   ;;  %v7981_v44 = vld [vmem:[%s10644_s1 + $0x15a8] ss:$16 sps:$4 sm:$0xff]  }
 0x27f   :  { %5338 = vmatpush1.bf16.msra.mxu0 %v7894_v1  ;;  %5871 = vmatpush1.bf16.msra.mxu1 %v7897_v51  ;;  %v7986_v1 = vld [vmem:[%s10644_s1 + $0x15c4] ss:$16 sps:$4 sm:$0xff]   ;;  %v7989_v51 = vld [vmem:[%s10644_s1 + $0x15cc] ss:$16 sps:$4 sm:$0xff]  }
 0x280   :  { %5348 = vmatprep.subr.bf16.mxu0 %v7902_v2  ;;  %5881 = vmatprep.subr.bf16.mxu1 %v7905_v3  ;;  %v7984_v2 = vld [vmem:[%s10644_s1 + $0x15c0] ss:$16 sps:$4 sm:$0xff]   ;;  %v7987_v3 = vld [vmem:[%s10644_s1 + $0x15c8] ss:$16 sps:$4 sm:$0xff]  }
 0x282   :  { %5340 = vmatmul.mubr.bf16.vlgmr.msra.gmra.mrb[0].mxu0 %v972_v60  ;;  %5873 = vmatmul.mubr.bf16.vlgmr.msra.gmra.mrb[0].mxu1 %v972_v60  ;;  %v7995_v60 = vld [vmem:[%s10644_s1 + $0x15ec] ss:$16 sps:$4 sm:$0xff]  }
 0x283   :  { %5349 = vmatpush1.bf16.msra.mxu0 %v7900_v5  ;;  %5882 = vmatpush1.bf16.msra.mxu1 %v7903_v6  ;;  %v7990_v5 = vld [vmem:[%s10644_s1 + $0x15e0] ss:$16 sps:$4 sm:$0xff]   ;;  %v7993_v6 = vld [vmem:[%s10644_s1 + $0x15e8] ss:$16 sps:$4 sm:$0xff]  }
 0x284   :  { %5350 = vmatprep.subr.bf16.mxu0 %v7908_v7  ;;  %5883 = vmatprep.subr.bf16.mxu1 %v7911_v62  ;;  %v7999_v7 = vld [vmem:[%s10644_s1 + $0x1604] ss:$16 sps:$4 sm:$0xff]   ;;  %v8002_v62 = vld [vmem:[%s10644_s1 + $0x160c] ss:$16 sps:$4 sm:$0xff]  }
 0x285   :  { %5380 = vmatprep.mubr.bf16.mxu0 %v10200_v8  ;;  %5913 = vmatprep.mubr.bf16.mxu1 %v10200_v8 }
 0x287   :  { %5351 = vmatpush1.bf16.msra.mxu0 %v7906_v9  ;;  %5884 = vmatpush1.bf16.msra.mxu1 %v7909_v10  ;;  %v10386_v9 = vrot.slane %v10169_v0, %v8276_v49  ;;  %v7997_v10 = vld [vmem:[%s10644_s1 + $0x1600] ss:$16 sps:$4 sm:$0xff]   ;;  %v8008_v0 = vld [vmem:[%s10644_s1 + $0x162c] ss:$16 sps:$4 sm:$0xff]  }
 0x288   :  { %5352 = vmatprep.subr.bf16.mxu0 %v7914_v11  ;;  %5885 = vmatprep.subr.bf16.mxu1 %v7917_v12  ;;  %v8000_v11 = vld [vmem:[%s10644_s1 + $0x1608] ss:$16 sps:$4 sm:$0xff]   ;;  %v8005_v12 = vld [vmem:[%s10644_s1 + $0x1624] ss:$16 sps:$4 sm:$0xff]  }
 0x28b   :  { %5353 = vmatpush1.bf16.msra.mxu0 %v7912_v52  ;;  %5886 = vmatpush1.bf16.msra.mxu1 %v7915_v15  ;;  %v975_v52 = vcombine.high %v10200_v8, %v10200_v8  ;;  %v8003_v15 = vld [vmem:[%s10644_s1 + $0x1620] ss:$16 sps:$4 sm:$0xff]   ;;  %v8011_v8 = vld [vmem:[%s10644_s1 + $0x1644] ss:$16 sps:$4 sm:$0xff]  }
 0x28c   :  { %5354 = vmatprep.subr.bf16.mxu0 %v7920_v16  ;;  %5887 = vmatprep.subr.bf16.mxu1 %v7923_v17  ;;  %v8006_v16 = vld [vmem:[%s10644_s1 + $0x1628] ss:$16 sps:$4 sm:$0xff]   ;;  %v8014_v17 = vld [vmem:[%s10644_s1 + $0x164c] ss:$16 sps:$4 sm:$0xff]  }
 0x28f   :  { %5355 = vmatpush1.bf16.msra.mxu0 %v7918_v18  ;;  %5888 = vmatpush1.bf16.msra.mxu1 %v7921_v19  ;;  %v8009_v18 = vld [vmem:[%s10644_s1 + $0x1640] ss:$16 sps:$4 sm:$0xff]   ;;  %v8012_v19 = vld [vmem:[%s10644_s1 + $0x1648] ss:$16 sps:$4 sm:$0xff]  }
 0x290   :  { %5356 = vmatprep.subr.bf16.mxu0 %v7926_v20  ;;  %5889 = vmatprep.subr.bf16.mxu1 %v7929_v22  ;;  %v8017_v20 = vld [vmem:[%s10644_s1 + $0x1664] ss:$16 sps:$4 sm:$0xff]   ;;  %v8020_v22 = vld [vmem:[%s10644_s1 + $0x166c] ss:$16 sps:$4 sm:$0xff]  }
 0x293   :  { %5357 = vmatpush1.bf16.msra.mxu0 %v7924_v23  ;;  %5890 = vmatpush1.bf16.msra.mxu1 %v7927_v24  ;;  %v8015_v23 = vld [vmem:[%s10644_s1 + $0x1660] ss:$16 sps:$4 sm:$0xff]   ;;  %v8018_v24 = vld [vmem:[%s10644_s1 + $0x1668] ss:$16 sps:$4 sm:$0xff]  }
 0x294   :  { %5358 = vmatprep.subr.bf16.mxu0 %v7932_v13  ;;  %5891 = vmatprep.subr.bf16.mxu1 %v7935_v27  ;;  %v8023_v13 = vld [vmem:[%s10644_s1 + $0x1684] ss:$16 sps:$4 sm:$0xff]   ;;  %v8026_v27 = vld [vmem:[%s10644_s1 + $0x168c] ss:$16 sps:$4 sm:$0xff]  }
 0x297   :  { %5359 = vmatpush1.bf16.msra.mxu0 %v7930_v28  ;;  %5892 = vmatpush1.bf16.msra.mxu1 %v7933_v29  ;;  %v8021_v28 = vld [vmem:[%s10644_s1 + $0x1680] ss:$16 sps:$4 sm:$0xff]   ;;  %v8024_v29 = vld [vmem:[%s10644_s1 + $0x1688] ss:$16 sps:$4 sm:$0xff]  }
 0x298   :  { %5360 = vmatprep.subr.bf16.mxu0 %v7938_v14  ;;  %5893 = vmatprep.subr.bf16.mxu1 %v7941_v30  ;;  %v8029_v14 = vld [vmem:[%s10644_s1 + $0x16a4] ss:$16 sps:$4 sm:$0xff]   ;;  %v8032_v30 = vld [vmem:[%s10644_s1 + $0x16ac] ss:$16 sps:$4 sm:$0xff]  }
 0x29b   :  { %5361 = vmatpush1.bf16.msra.mxu0 %v7936_v31  ;;  %5894 = vmatpush1.bf16.msra.mxu1 %v7939_v25  ;;  %v8027_v31 = vld [vmem:[%s10644_s1 + $0x16a0] ss:$16 sps:$4 sm:$0xff]   ;;  %v8030_v25 = vld [vmem:[%s10644_s1 + $0x16a8] ss:$16 sps:$4 sm:$0xff]  }
 0x29c   :  { %5362 = vmatprep.subr.bf16.mxu0 %v7944_v32  ;;  %5895 = vmatprep.subr.bf16.mxu1 %v7947_v33  ;;  %v8035_v32 = vld [vmem:[%s10644_s1 + $0x16c4] ss:$16 sps:$4 sm:$0xff]   ;;  %v8038_v33 = vld [vmem:[%s10644_s1 + $0x16cc] ss:$16 sps:$4 sm:$0xff]  }
 0x29f   :  { %5363 = vmatpush1.bf16.msra.mxu0 %v7942_v26  ;;  %5896 = vmatpush1.bf16.msra.mxu1 %v7945_v36  ;;  %v8033_v26 = vld [vmem:[%s10644_s1 + $0x16c0] ss:$16 sps:$4 sm:$0xff]   ;;  %v8036_v36 = vld [vmem:[%s10644_s1 + $0x16c8] ss:$16 sps:$4 sm:$0xff]  }
 0x2a0   :  { %5364 = vmatprep.subr.bf16.mxu0 %v7950_v37  ;;  %5897 = vmatprep.subr.bf16.mxu1 %v7953_v21  ;;  %v8041_v37 = vld [vmem:[%s10644_s1 + $0x16e4] ss:$16 sps:$4 sm:$0xff]   ;;  %v8044_v21 = vld [vmem:[%s10644_s1 + $0x16ec] ss:$16 sps:$4 sm:$0xff]  }
 0x2a3   :  { %5365 = vmatpush1.bf16.msra.mxu0 %v7948_v39  ;;  %5898 = vmatpush1.bf16.msra.mxu1 %v7951_v40  ;;  %v8039_v39 = vld [vmem:[%s10644_s1 + $0x16e0] ss:$16 sps:$4 sm:$0xff]   ;;  %v8042_v40 = vld [vmem:[%s10644_s1 + $0x16e8] ss:$16 sps:$4 sm:$0xff]  }
 0x2a4   :  { %5366 = vmatprep.subr.bf16.mxu0 %v7956_v41  ;;  %5899 = vmatprep.subr.bf16.mxu1 %v7959_v34  ;;  %v8047_v41 = vld [vmem:[%s10644_s1 + $0x1704] ss:$16 sps:$4 sm:$0xff]   ;;  %v8050_v34 = vld [vmem:[%s10644_s1 + $0x170c] ss:$16 sps:$4 sm:$0xff]  }
 0x2a7   :  { %5367 = vmatpush1.bf16.msra.mxu0 %v7954_v43  ;;  %5900 = vmatpush1.bf16.msra.mxu1 %v7957_v45  ;;  %v8045_v43 = vld [vmem:[%s10644_s1 + $0x1700] ss:$16 sps:$4 sm:$0xff]   ;;  %v8048_v45 = vld [vmem:[%s10644_s1 + $0x1708] ss:$16 sps:$4 sm:$0xff]  }
 0x2a8   :  { %5368 = vmatprep.subr.bf16.mxu0 %v7962_v46  ;;  %5901 = vmatprep.subr.bf16.mxu1 %v7965_v35  ;;  %v8053_v46 = vld [vmem:[%s10644_s1 + $0x1724] ss:$16 sps:$4 sm:$0xff]   ;;  %v8056_v35 = vld [vmem:[%s10644_s1 + $0x172c] ss:$16 sps:$4 sm:$0xff]  }
 0x2ab   :  { %5369 = vmatpush1.bf16.msra.mxu0 %v7960_v50  ;;  %5902 = vmatpush1.bf16.msra.mxu1 %v7963_v53  ;;  %v8051_v50 = vld [vmem:[%s10644_s1 + $0x1720] ss:$16 sps:$4 sm:$0xff]   ;;  %v8054_v53 = vld [vmem:[%s10644_s1 + $0x1728] ss:$16 sps:$4 sm:$0xff]  }
 0x2ac   :  { %5370 = vmatprep.subr.bf16.mxu0 %v7968_v38  ;;  %5903 = vmatprep.subr.bf16.mxu1 %v7971_v54  ;;  %v8059_v38 = vld [vmem:[%s10644_s1 + $0x1744] ss:$16 sps:$4 sm:$0xff]   ;;  %v8062_v54 = vld [vmem:[%s10644_s1 + $0x174c] ss:$16 sps:$4 sm:$0xff]  }
 0x2af   :  { %5371 = vmatpush1.bf16.msra.mxu0 %v7966_v55  ;;  %5904 = vmatpush1.bf16.msra.mxu1 %v7969_v56  ;;  %v8057_v55 = vld [vmem:[%s10644_s1 + $0x1740] ss:$16 sps:$4 sm:$0xff]   ;;  %v8060_v56 = vld [vmem:[%s10644_s1 + $0x1748] ss:$16 sps:$4 sm:$0xff]  }
 0x2b0   :  { %5372 = vmatprep.subr.bf16.mxu0 %v7974_v47  ;;  %5905 = vmatprep.subr.bf16.mxu1 %v7977_v57  ;;  %v8065_v47 = vld [vmem:[%s10644_s1 + $0x1764] ss:$16 sps:$4 sm:$0xff]   ;;  %v8068_v57 = vld [vmem:[%s10644_s1 + $0x176c] ss:$16 sps:$4 sm:$0xff]  }
 0x2b3   :  { %5373 = vmatpush1.bf16.msra.mxu0 %v7972_v58  ;;  %5906 = vmatpush1.bf16.msra.mxu1 %v7975_v59  ;;  %v8063_v58 = vld [vmem:[%s10644_s1 + $0x1760] ss:$16 sps:$4 sm:$0xff]   ;;  %v8066_v59 = vld [vmem:[%s10644_s1 + $0x1768] ss:$16 sps:$4 sm:$0xff]  }
 0x2b4   :  { %5374 = vmatprep.subr.bf16.mxu0 %v7980_v48  ;;  %5907 = vmatprep.subr.bf16.mxu1 %v7983_v61  ;;  %v8071_v48 = vld [vmem:[%s10644_s1 + $0x1784] ss:$16 sps:$4 sm:$0xff]   ;;  %v8074_v61 = vld [vmem:[%s10644_s1 + $0x178c] ss:$16 sps:$4 sm:$0xff]  }
 0x2b7   :  { %5375 = vmatpush1.bf16.msra.mxu0 %v7978_v63  ;;  %5908 = vmatpush1.bf16.msra.mxu1 %v7981_v44  ;;  %v8069_v63 = vld [vmem:[%s10644_s1 + $0x1780] ss:$16 sps:$4 sm:$0xff]   ;;  %v8072_v44 = vld [vmem:[%s10644_s1 + $0x1788] ss:$16 sps:$4 sm:$0xff]  }
 0x2b8   :  { %5376 = vmatprep.subr.bf16.mxu0 %v7986_v1  ;;  %5909 = vmatprep.subr.bf16.mxu1 %v7989_v51  ;;  %v8077_v1 = vld [vmem:[%s10644_s1 + $0x17a4] ss:$16 sps:$4 sm:$0xff]   ;;  %v8080_v51 = vld [vmem:[%s10644_s1 + $0x17ac] ss:$16 sps:$4 sm:$0xff]  }
 0x2bb   :  { %5377 = vmatpush1.bf16.msra.mxu0 %v7984_v2  ;;  %5910 = vmatpush1.bf16.msra.mxu1 %v7987_v3  ;;  %v8075_v2 = vld [vmem:[%s10644_s1 + $0x17a0] ss:$16 sps:$4 sm:$0xff]   ;;  %v8078_v3 = vld [vmem:[%s10644_s1 + $0x17a8] ss:$16 sps:$4 sm:$0xff]  }
 0x2bc   :  { %5378 = vmatprep.subr.bf16.mxu0 %v7992_v4  ;;  %5911 = vmatprep.subr.bf16.mxu1 %v7995_v60  ;;  %v8083_v4 = vld [vmem:[%s10644_s1 + $0x17c4] ss:$16 sps:$4 sm:$0xff]   ;;  %v8086_v60 = vld [vmem:[%s10644_s1 + $0x17cc] ss:$16 sps:$4 sm:$0xff]  }
 0x2bf   :  { %5379 = vmatpush1.bf16.msra.mxu0 %v7990_v5  ;;  %5912 = vmatpush1.bf16.msra.mxu1 %v7993_v6  ;;  %v8081_v5 = vld [vmem:[%s10644_s1 + $0x17c0] ss:$16 sps:$4 sm:$0xff]   ;;  %v8084_v6 = vld [vmem:[%s10644_s1 + $0x17c8] ss:$16 sps:$4 sm:$0xff]  }
 0x2c0   :  { %5389 = vmatprep.subr.bf16.mxu0 %v7999_v7  ;;  %5922 = vmatprep.subr.bf16.mxu1 %v8002_v62  ;;  %v8089_v7 = vld [vmem:[%s10644_s1 + $0x17e4] ss:$16 sps:$4 sm:$0xff]   ;;  %v8092_v62 = vld [vmem:[%s10644_s1 + $0x17ec] ss:$16 sps:$4 sm:$0xff]  }
 0x2c2   :  { %5381 = vmatmul.mubr.bf16.vlgmr.msra.gmra.mrb[0].mxu0 %v10386_v9  ;;  %5914 = vmatmul.mubr.bf16.vlgmr.msra.gmra.mrb[0].mxu1 %v10386_v9 }
 0x2c3   :  { %5390 = vmatpush1.bf16.msra.mxu0 %v7997_v10  ;;  %5923 = vmatpush1.bf16.msra.mxu1 %v8000_v11  ;;  %v8087_v10 = vld [vmem:[%s10644_s1 + $0x17e0] ss:$16 sps:$4 sm:$0xff]   ;;  %v8090_v11 = vld [vmem:[%s10644_s1 + $0x17e8] ss:$16 sps:$4 sm:$0xff]  }
 0x2c4   :  { %5391 = vmatprep.subr.bf16.mxu0 %v8005_v12  ;;  %5924 = vmatprep.subr.bf16.mxu1 %v8008_v0  ;;  %v8095_v12 = vld [vmem:[%s10644_s1 + $0x1804] ss:$16 sps:$4 sm:$0xff]   ;;  %v8098_v0 = vld [vmem:[%s10644_s1 + $0x180c] ss:$16 sps:$4 sm:$0xff]  }
 0x2c5   :  { %5421 = vmatprep.mubr.bf16.mxu0 %v975_v52  ;;  %5954 = vmatprep.mubr.bf16.mxu1 %v975_v52  ;;  %v973_v52 = vcombine.high %v10386_v9, %v10386_v9  ;;  %v8104_v9 = vld [vmem:[%s10644_s1 + $0x182c] ss:$16 sps:$4 sm:$0xff]  }
 0x2c7   :  { %5392 = vmatpush1.bf16.msra.mxu0 %v8003_v15  ;;  %5925 = vmatpush1.bf16.msra.mxu1 %v8006_v16  ;;  %v8093_v15 = vld [vmem:[%s10644_s1 + $0x1800] ss:$16 sps:$4 sm:$0xff]   ;;  %v8096_v16 = vld [vmem:[%s10644_s1 + $0x1808] ss:$16 sps:$4 sm:$0xff]  }
 0x2c8   :  { %5393 = vmatprep.subr.bf16.mxu0 %v8011_v8  ;;  %5926 = vmatprep.subr.bf16.mxu1 %v8014_v17  ;;  %v8101_v8 = vld [vmem:[%s10644_s1 + $0x1824] ss:$16 sps:$4 sm:$0xff]   ;;  %v8099_v17 = vld [vmem:[%s10644_s1 + $0x1820] ss:$16 sps:$4 sm:$0xff]  }
 0x2cb   :  { %5394 = vmatpush1.bf16.msra.mxu0 %v8009_v18  ;;  %5927 = vmatpush1.bf16.msra.mxu1 %v8012_v19  ;;  %v8102_v18 = vld [vmem:[%s10644_s1 + $0x1828] ss:$16 sps:$4 sm:$0xff]   ;;  %v8107_v19 = vld [vmem:[%s10644_s1 + $0x1844] ss:$16 sps:$4 sm:$0xff]  }
 0x2cc   :  { %5395 = vmatprep.subr.bf16.mxu0 %v8017_v20  ;;  %5928 = vmatprep.subr.bf16.mxu1 %v8020_v22  ;;  %v8110_v20 = vld [vmem:[%s10644_s1 + $0x184c] ss:$16 sps:$4 sm:$0xff]   ;;  %v8120_v22 = vmov 0  }
 0x2cf   :  { %5396 = vmatpush1.bf16.msra.mxu0 %v8015_v23  ;;  %5929 = vmatpush1.bf16.msra.mxu1 %v8018_v24  ;;  %v8105_v23 = vld [vmem:[%s10644_s1 + $0x1840] ss:$16 sps:$4 sm:$0xff]   ;;  %v8108_v24 = vld [vmem:[%s10644_s1 + $0x1848] ss:$16 sps:$4 sm:$0xff]  }
 0x2d0   :  { %5397 = vmatprep.subr.bf16.mxu0 %v8023_v13  ;;  %5930 = vmatprep.subr.bf16.mxu1 %v8026_v27  ;;  %v8113_v13 = vld [vmem:[%s10644_s1 + $0x1864] ss:$16 sps:$4 sm:$0xff]   ;;  %v8116_v27 = vld [vmem:[%s10644_s1 + $0x186c] ss:$16 sps:$4 sm:$0xff]  }
 0x2d3   :  { %5398 = vmatpush1.bf16.msra.mxu0 %v8021_v28  ;;  %5931 = vmatpush1.bf16.msra.mxu1 %v8024_v29  ;;  %v8111_v28 = vld [vmem:[%s10644_s1 + $0x1860] ss:$16 sps:$4 sm:$0xff]   ;;  %v8114_v29 = vld [vmem:[%s10644_s1 + $0x1868] ss:$16 sps:$4 sm:$0xff]  }
 0x2d4   :  { %5399 = vmatprep.subr.bf16.mxu0 %v8029_v14  ;;  %5932 = vmatprep.subr.bf16.mxu1 %v8032_v30  ;;  %v6046_v14 = vld.sshfl [vmem:[%s10645_s0 + $0x18] sm:$0x1 pattern:$0x75316420] }
 0x2d5   :  { %v989_v30 = vrot.slane %v6046_v14, %v8276_v49 }
 0x2d7   :  { %5400 = vmatpush1.bf16.msra.mxu0 %v8027_v31  ;;  %5933 = vmatpush1.bf16.msra.mxu1 %v8030_v25  ;;  %v807_v31 = vsub.s32 0, %v8258_v42  ;;  %v815_v25 = vsub.s32 2, %v8258_v42 }
 0x2d8   :  { %5401 = vmatprep.subr.bf16.mxu0 %v8035_v32  ;;  %5934 = vmatprep.subr.bf16.mxu1 %v8038_v33  ;;  %v803_v32 = vld [vmem:[%s10646_s2] sm:$0xf]  ;;  %v811_v33 = vsub.s32 1, %v8258_v42 }
 0x2db   :  { %5402 = vmatpush1.bf16.msra.mxu0 %v8033_v26  ;;  %5935 = vmatpush1.bf16.msra.mxu1 %v8036_v36  ;;  %v819_v26 = vsub.s32 3, %v8258_v42  ;;  %v808_v36 = vrot.slane %v803_v32, %v807_v31 }
 0x2dc   :  { %5403 = vmatprep.subr.bf16.mxu0 %v8041_v37  ;;  %5936 = vmatprep.subr.bf16.mxu1 %v8044_v21  ;;  %v816_v37 = vrot.slane %v803_v32, %v815_v25  ;;  %v812_v21 = vrot.slane %v803_v32, %v811_v33 }
 0x2df   :  { %5404 = vmatpush1.bf16.msra.mxu0 %v8039_v39  ;;  %5937 = vmatpush1.bf16.msra.mxu1 %v8042_v40  ;;  %v820_v39 = vrot.slane %v803_v32, %v819_v26 }
 0x2e0   :  { %5405 = vmatprep.subr.bf16.mxu0 %v8047_v41  ;;  %5938 = vmatprep.subr.bf16.mxu1 %v8050_v34 }
 0x2e3   :  { %5406 = vmatpush1.bf16.msra.mxu0 %v8045_v43  ;;  %5939 = vmatpush1.bf16.msra.mxu1 %v8048_v45 }
 0x2e4   :  { %5407 = vmatprep.subr.bf16.mxu0 %v8053_v46  ;;  %5940 = vmatprep.subr.bf16.mxu1 %v8056_v35 }
 0x2e7   :  { %5408 = vmatpush1.bf16.msra.mxu0 %v8051_v50  ;;  %5941 = vmatpush1.bf16.msra.mxu1 %v8054_v53 }
 0x2e8   :  { %5409 = vmatprep.subr.bf16.mxu0 %v8059_v38  ;;  %5942 = vmatprep.subr.bf16.mxu1 %v8062_v54 }
 0x2eb   :  { %5410 = vmatpush1.bf16.msra.mxu0 %v8057_v55  ;;  %5943 = vmatpush1.bf16.msra.mxu1 %v8060_v56 }
 0x2ec   :  { %5411 = vmatprep.subr.bf16.mxu0 %v8065_v47  ;;  %5944 = vmatprep.subr.bf16.mxu1 %v8068_v57 }
 0x2ef   :  { %5412 = vmatpush1.bf16.msra.mxu0 %v8063_v58  ;;  %5945 = vmatpush1.bf16.msra.mxu1 %v8066_v59 }
 0x2f0   :  { %5413 = vmatprep.subr.bf16.mxu0 %v8071_v48  ;;  %5946 = vmatprep.subr.bf16.mxu1 %v8074_v61 }
 0x2f3   :  { %5414 = vmatpush1.bf16.msra.mxu0 %v8069_v63  ;;  %5947 = vmatpush1.bf16.msra.mxu1 %v8072_v44 }
 0x2f4   :  { %5415 = vmatprep.subr.bf16.mxu0 %v8077_v1  ;;  %5948 = vmatprep.subr.bf16.mxu1 %v8080_v51 }
 0x2f7   :  { %5416 = vmatpush1.bf16.msra.mxu0 %v8075_v2  ;;  %5949 = vmatpush1.bf16.msra.mxu1 %v8078_v3 }
 0x2f8   :  { %5417 = vmatprep.subr.bf16.mxu0 %v8083_v4  ;;  %5950 = vmatprep.subr.bf16.mxu1 %v8086_v60 }
 0x2fb   :  { %5418 = vmatpush1.bf16.msra.mxu0 %v8081_v5  ;;  %5951 = vmatpush1.bf16.msra.mxu1 %v8084_v6 }
 0x2fc   :  { %5419 = vmatprep.subr.bf16.mxu0 %v8089_v7  ;;  %5952 = vmatprep.subr.bf16.mxu1 %v8092_v62 }
 0x2ff   :  { %5420 = vmatpush1.bf16.msra.mxu0 %v8087_v10  ;;  %5953 = vmatpush1.bf16.msra.mxu1 %v8090_v11 }
 0x300   :  { %5430 = vmatprep.subr.bf16.mxu0 %v8095_v12  ;;  %5963 = vmatprep.subr.bf16.mxu1 %v8098_v0 }
 0x302   :  { %5422 = vmatmul.mubr.bf16.vlgmr.msra.gmra.mrb[0].mxu0 %v973_v52  ;;  %5955 = vmatmul.mubr.bf16.vlgmr.msra.gmra.mrb[0].mxu1 %v973_v52 }
 0x303   :  { %5431 = vmatpush1.bf16.msra.mxu0 %v8093_v15  ;;  %5964 = vmatpush1.bf16.msra.mxu1 %v8096_v16 }
 0x304   :  { %5432 = vmatprep.subr.bf16.mxu0 %v8101_v8  ;;  %5965 = vmatprep.subr.bf16.mxu1 %v8104_v9 }
 0x305   :  { %5462 = vmatprep.mubr.bf16.mxu0 %v8120_v22  ;;  %5995 = vmatprep.mubr.bf16.mxu1 %v8120_v22 }
 0x307   :  { %5433 = vmatpush1.bf16.msra.mxu0 %v8099_v17  ;;  %5966 = vmatpush1.bf16.msra.mxu1 %v8102_v18 }
 0x308   :  { %5434 = vmatprep.subr.bf16.mxu0 %v8107_v19  ;;  %5967 = vmatprep.subr.bf16.mxu1 %v8110_v20 }
 0x30b   :  { %5435 = vmatpush1.bf16.msra.mxu0 %v8105_v23  ;;  %5968 = vmatpush1.bf16.msra.mxu1 %v8108_v24 }
 0x30c   :  { %5436 = vmatprep.subr.bf16.mxu0 %v8113_v13  ;;  %5969 = vmatprep.subr.bf16.mxu1 %v8116_v27 }
 0x30f   :  { %5437 = vmatpush1.bf16.msra.mxu0 %v8111_v28  ;;  %5970 = vmatpush1.bf16.msra.mxu1 %v8114_v29 }
 0x312   :  { %6831 = vmatmul.mubr.msk.bf16.vlgmr.msra.gmra.mrb[0].mxu0 %vm4934_vm0, %v989_v30  ;;  %6832 = vmatmul.mubr.msk.bf16.vlgmr.msra.gmra.mrb[0].mxu1 %vm4934_vm0, %v989_v30 }
 0x3e5   :  { %v5464_v40 = vpop.f32.mrb[0].mxu0  ;;  %v5997_v41 = vpop.f32.mrb[0].mxu1 }
 0x3e6   :  { %v6836_v34 = vadd.f32 %v5464_v40, %v808_v36  ;;  %v6838_v43 = vadd.f32 %v5997_v41, %v816_v37  ;;  %v5466_v45 = vpop.f32.mrb[1].mxu0  ;;  %v5999_v46 = vpop.f32.mrb[1].mxu1 }
 0x3e7   :  { %v6837_v35 = vadd.f32 %v5466_v45, %v812_v21  ;;  %v6839_v50 = vadd.f32 %v5999_v46, %v820_v39  ;;  %v5468_v53 = vpop.f32.mrb[2].mxu0  ;;  %v6001_v38 = vpop.f32.mrb[2].mxu1 }
 0x3e8   :  { %v6004_v54 = vmax.f32 %v6836_v34, 0.0  ;;  %v6006_v55 = vmax.f32 %v6838_v43, 0.0  ;;  %v5469_v56 = vpop.f32.mrb[3].mxu0  ;;  %v6002_v47 = vpop.f32.mrb[3].mxu1 }
 0x3e9   :  { %v6005_v57 = vmax.f32 %v6837_v35, 0.0  ;;  %v6007_v42 = vmax.f32 %v6839_v50, 0.0 }
 0x3eb   :  { %v6833_v58 = vpack.c.bf16 %v6005_v57, %v6004_v54  ;;  %v6834_v59 = vpack.c.bf16 %v6007_v42, %v6006_v55 }
 0x3ed   :  { %v6024_v48 = vrot.slane %v6833_v58, %v8276_v49  ;;  %v6031_v61 = vrot.slane %v6834_v59, %v8276_v49 }
 0x3ef   :  { %v6032_v63 = vcombine.low %v6024_v48, %v6031_v61 }
 0x3f1   :  { %6835 = vst.sshfl [vmem:[%s10647_s3] sm:$0x55 pattern:$0x73625140] %v6032_v63 }

</bundles_post_ra>
